<compile_context>
chip_gen: v5e
topology: v5e:2x2
jax: 0.10.0
libtpu: 0.0.40
codegen_flags: <defaults>
</compile_context>

<pallas_src>
import jax
import jax.numpy as jnp
from jax import lax
from jax.experimental import pallas as pl
from jax.experimental.pallas import tpu as pltpu


# ----------------------------------------------------------------------------
# Kernel
# ----------------------------------------------------------------------------
def _make_ggru_kernel(T, Bb, Hp, h_real, t_chunk, unroll_steps, eps=1e-5):
    """Kernel closure over static tiling parameters."""
    inv_h = 1.0 / float(h_real)        # LN statistics over the REAL H features
    n_chunks = T // t_chunk

    def kernel(x_ref,
               w1i_ref, w1h_ref, b1_ref, bhn1_ref, g1_ref, be1_ref,
               w2i_ref, w2h_ref, b2_ref, bhn2_ref, g2_ref, be2_ref,
               out_ref, xr_scr, xz_scr, xn_scr):
        xp_scr = (xr_scr, xz_scr, xn_scr)          # per-gate (T, Bb, Hp) bufs

        def input_proj(src_ref, wi_ref, b_ref):
            # One big (chunked over time) input projection per gate; every
            # output is a lane-dense (tc*Bb, Hp) slab stored straight into its
            # gate buffer (no 3H-wide slab, no slicing at H / 2H offsets).
            def do_chunk(t0):
                xc = src_ref[pl.ds(t0, t_chunk)]               # (tc, Bb, Hp)
                xc = xc.reshape(t_chunk * Bb, Hp).astype(wi_ref.dtype)
                for g in range(3):                             # r, z, n
                    xp = jnp.dot(xc, wi_ref[g],
                                 preferred_element_type=jnp.float32)
                    xp = xp + b_ref[g]                         # (1, Hp) bcast
                    xp_scr[g][pl.ds(t0, t_chunk)] = xp.reshape(
                        t_chunk, Bb, Hp)

            if n_chunks == 1:
                do_chunk(0)
            else:
                def body(ci, carry):
                    do_chunk(pl.multiple_of(ci * t_chunk, t_chunk))
                    return carry
                lax.fori_loop(0, n_chunks, body, 0)

        def run_stage(src_ref, wi_ref, wh_ref, b_ref, bhn_ref,
                      gam_ref, bet_ref):
            input_proj(src_ref, wi_ref, b_ref)
            # Recurrent weights are held across the whole time loop; with the
            # full batch in one block the per-step weight push is amortised
            # over a large LHS (no explicit MXU drive needed).
            w_r = wh_ref[0]                                    # (Hp, Hp)
            w_z = wh_ref[1]
            w_n = wh_ref[2]
            bhn = bhn_ref[...]                                 # (1, Hp)
            gamma = gam_ref[...]                               # (1, Hp)
            beta = bet_ref[...]                                # (1, Hp)

            def step(t, h):
                hm = h.astype(w_r.dtype)
                hr = jnp.dot(hm, w_r, preferred_element_type=jnp.float32)
                hz = jnp.dot(hm, w_z, preferred_element_type=jnp.float32)
                hn = jnp.dot(hm, w_n, preferred_element_type=jnp.float32)
                r = jax.nn.sigmoid(xr_scr[t] + hr)
                z = jax.nn.sigmoid(xz_scr[t] + hz)
                n = jnp.tanh(xn_scr[t] + r * (hn + bhn))
                h_new = (1.0 - z) * n + z * h
                # LayerNorm over the real H features (pad columns are zero and
                # so are their gamma/beta).  sum / sum-of-squares keeps the two
                # cross-lane reductions independent; rsqrt goes to the EUP.
                mean = jnp.sum(h_new, axis=-1, keepdims=True) * inv_h
                msq = jnp.sum(h_new * h_new, axis=-1, keepdims=True) * inv_h
                var = msq - mean * mean
                out_ref[t] = ((h_new - mean) * lax.rsqrt(var + eps)
                              * gamma + beta)
                return h_new

            lax.fori_loop(0, T, step, jnp.zeros((Bb, Hp), jnp.float32),
                          unroll=unroll_steps)

        # Stage 1: grouped GRUs (block-diag per-gate weights) + LN1 (the group
        # interleave is folded into ln1 gamma/beta).  Result kept in out_ref.
        run_stage(x_ref, w1i_ref, w1h_ref, b1_ref, bhn1_ref, g1_ref, be1_ref)
        # Stage 2: reads the LN1 output from out_ref (interleave folded into
        # the rows of W2_ih); overwrites out_ref with the LN2'd output.
        run_stage(out_ref, w2i_ref, w2h_ref, b2_ref, bhn2_ref, g2_ref, be2_ref)

    return kernel


# ----------------------------------------------------------------------------
# Wrapper-side parameter packing
# ----------------------------------------------------------------------------
def _block_diag(blocks):
    """List of G (a, b) matrices -> (G*a, G*b) block-diagonal matrix."""
    G = len(blocks)
    a, b = blocks[0].shape
    out = jnp.zeros((G, a, G, b), blocks[0].dtype)
    for g in range(G):
        out = out.at[g, :, g, :].set(blocks[g])
    return out.reshape(G * a, G * b)


def _pack_stage_params(w_ih, w_hh, b_ih, b_hh, groups):
    """Per-group PyTorch GRU params (G, 3Ht, Ht)/(G, 3Ht) -> fused per-gate
    block-diagonal right-multiply weights (3, H, H) in gate order [r, z, n],
    plus folded biases: b_x (3, H) = b_ih (+ b_hh for r, z), b_hn (H,)."""
    G = groups
    Ht = w_ih.shape[-1]
    H = G * Ht

    def per_gate(w):                               # (G, 3Ht, Ht) -> (3, H, H)
        wg = w.reshape(G, 3, Ht, Ht)               # (group, gate, out, in)
        return jnp.stack(
            [_block_diag([wg[g, gate].T for g in range(G)])
             for gate in range(3)], axis=0)

    def per_gate_bias(b):                          # (G, 3Ht) -> (3, H)
        return jnp.transpose(b.reshape(G, 3, Ht), (1, 0, 2)).reshape(3, H)

    Wi, Wh = per_gate(w_ih), per_gate(w_hh)
    bi, bh = per_gate_bias(b_ih), per_gate_bias(b_hh)
    bx = bi.at[:2].add(bh[:2])     # r/z hidden biases fold into the input bias
    bhn = bh[2]                    # n-gate hidden bias is gated by r: keep it
    return Wi, Wh, bx, bhn


# ----------------------------------------------------------------------------
# Per-generation tiling helpers
# ----------------------------------------------------------------------------
def _vmem_capacity_bytes():
    try:
        cap = int(pltpu.get_tpu_info().vmem_capacity_bytes)
        if (16 << 20) <= cap <= (1 << 30):
            return cap
    except Exception:
        pass
    return 64 * 1024 * 1024        # conservative (v7x-sized) fallback


def _num_tensorcores():
    try:
        kind = (jax.devices()[0].device_kind or "").lower()
        if "v7" in kind or "tpu7" in kind or "7x" in kind:
            return 2               # v7x: 2 TensorCores per chip
    except Exception:
        pass
    return 1                       # v5e / v6e: 1 TensorCore


def _pick_t_chunk(T, Bb, max_rows=1024):
    """Largest divisor of T keeping the input-projection LHS <= max_rows."""
    if T * Bb <= max_rows:
        return T
    target = max(1, max_rows // Bb)
    for c in range(min(T, target), 0, -1):
        if T % c == 0:
            return c
    return 1


def _vmem_need_bytes(T, bb, Hp, in_w_bytes, h_w_bytes):
    f32 = 4
    io = 2 * (2 * T * bb * Hp * f32)                 # x + out, double-buffered
    xp = 3 * T * bb * Hp * f32                       # gate scratch
    w = 2 * 3 * Hp * Hp * (in_w_bytes + h_w_bytes)   # both stages, resident
    small = 2 * (3 * Hp + 4 * Hp) * f32
    tc = _pick_t_chunk(T, bb)
    tmp = 3 * tc * bb * Hp * f32                     # matmul in/out temps
    return int(1.25 * (io + xp + w + small + tmp)) + (2 << 20)


def _pick_block_b(Bp, T, Hp, in_w_bytes, h_w_bytes, budget, n_cores):
    """Largest multiple-of-8 divisor of Bp that fits VMEM; on v7x prefer
    exactly one block per TensorCore, otherwise the whole batch."""
    prefer = Bp
    if n_cores > 1 and Bp % (8 * n_cores) == 0:
        prefer = Bp // n_cores
    for d in range(Bp, 7, -8):
        if Bp % d or d > prefer:
            continue
        if _vmem_need_bytes(T, d, Hp, in_w_bytes, h_w_bytes) <= budget:
            return d
    return 8


# ----------------------------------------------------------------------------
# Forward
# ----------------------------------------------------------------------------
def ggru_forward(x_nchw, params, groups=2,
                 input_w_dtype=jnp.bfloat16, hidden_w_dtype=jnp.float32):
    B, C, T, Fdim = x_nchw.shape
    H = C * Fdim
    assert H % groups == 0
    Ht = H // groups
    Hp = max(128, ((H + 127) // 128) * 128)      # lane-dense feature width
    Bp = ((B + 7) // 8) * 8                      # sublane-aligned batch

    (wih1, whh1, bih1, bhh1, g1, be1,
     wih2, whh2, bih2, bhh2, g2, be2) = params

    # ---- parameter packing (pure JAX, outside the kernel) ------------------
    W1i, W1h, b1x, b1hn = _pack_stage_params(wih1, whh1, bih1, bhh1, groups)
    W2i, W2h, b2x, b2hn = _pack_stage_params(wih2, whh2, bih2, bhh2, groups)

    # Fold torch.stack(dim=-1)+flatten between the stages: group-blocked
    # feature j lands at interleaved position inv[j] = (j % Ht)*G + j // Ht.
    # LayerNorm statistics are permutation-invariant, so permuting ln1
    # gamma/beta and the rows of the stage-2 input weights reproduces the
    # interleave exactly — no permutation matmul.
    idx = jnp.arange(H)
    inv = (idx % Ht) * groups + idx // Ht
    g1p, be1p = g1[inv], be1[inv]
    W2i = W2i[:, inv, :]

    def pad_w(w, dtype):      # (3, H, H) -> (3, Hp, Hp), zero-padded
        return jnp.pad(w, ((0, 0), (0, Hp - H), (0, Hp - H))).astype(dtype)

    def pad_b3(b):            # (3, H) -> (3, 1, Hp)
        return jnp.pad(b, ((0, 0), (0, Hp - H))).reshape(
            3, 1, Hp).astype(jnp.float32)

    def pad_v(v):             # (H,) -> (1, Hp)
        return jnp.pad(v, (0, Hp - H)).reshape(1, Hp).astype(jnp.float32)

    weight_args = (
        pad_w(W1i, input_w_dtype), pad_w(W1h, hidden_w_dtype),
        pad_b3(b1x), pad_v(b1hn), pad_v(g1p), pad_v(be1p),
        pad_w(W2i, input_w_dtype), pad_w(W2h, hidden_w_dtype),
        pad_b3(b2x), pad_v(b2hn), pad_v(g2), pad_v(be2),
    )

    # ---- layout glue: NCHW -> time-major, padded (T, Bp, Hp) ---------------
    x_tbh = jnp.transpose(x_nchw, (2, 0, 1, 3)).reshape(T, B, H)
    x_pad = jnp.pad(x_tbh, ((0, 0), (0, Bp - B), (0, Hp - H)))

    # ---- per-generation tiling ---------------------------------------------
    in_b = jnp.dtype(input_w_dtype).itemsize
    h_b = jnp.dtype(hidden_w_dtype).itemsize
    budget = int(0.8 * _vmem_capacity_bytes())
    n_cores = _num_tensorcores()
    block_b = _pick_block_b(Bp, T, Hp, in_b, h_b, budget, n_cores)
    assert Bp % block_b == 0
    t_chunk = _pick_t_chunk(T, block_b)
    need = _vmem_need_bytes(T, block_b, Hp, in_b, h_b)
    vmem_limit = int(min(budget, max(32 * 1024 * 1024, need)))
    grid = (Bp // block_b,)

    kernel = _make_ggru_kernel(T, block_b, Hp, H, t_chunk,
                               unroll_steps=max(1, min(T, 8)))

    # Weights / biases / LN params: whole-array VMEM residents (no blocking,
    # no double-buffering).
    resident = pl.BlockSpec(memory_space=pltpu.MemorySpace.VMEM)

    out_pad = pl.pallas_call(
        kernel,
        out_shape=jax.ShapeDtypeStruct((T, Bp, Hp), jnp.float32),
        grid=grid,
        in_specs=[pl.BlockSpec((T, block_b, Hp), lambda b: (0, b, 0))]
                 + [resident] * 12,
        out_specs=pl.BlockSpec((T, block_b, Hp), lambda b: (0, b, 0)),
        scratch_shapes=[pltpu.VMEM((T, block_b, Hp), jnp.float32)
                        for _ in range(3)],
        compiler_params=pltpu.CompilerParams(
            dimension_semantics=("parallel",),
            vmem_limit_bytes=vmem_limit),
    )(x_pad, *weight_args)

    # ---- layout glue back: (T, Bp, Hp) -> (B, C, T, F) ---------------------
    y = out_pad[:, :B, :H].reshape(T, B, C, Fdim)
    return jnp.transpose(y, (1, 2, 0, 3))


# ----------------------------------------------------------------------------
# Pure-JAX reference mirroring the PyTorch forward (HIGHEST-precision matmuls)
# ----------------------------------------------------------------------------
def ggru_reference(x_nchw, params, groups=2):
    B, C, T, Fdim = x_nchw.shape
    H = C * Fdim
    Ht = H // groups
    (wih1, whh1, bih1, bhh1, g1, be1,
     wih2, whh2, bih2, bhh2, g2, be2) = params
    hi = jax.lax.Precision.HIGHEST
    x = jnp.transpose(x_nchw, (0, 2, 1, 3)).reshape(B, T, H)

    def gru(xg, wih, whh, bih, bhh):
        h = jnp.zeros((B, Ht), jnp.float32)
        ys = []
        for t in range(T):
            gi = jnp.dot(xg[:, t, :], wih.T, precision=hi) + bih
            gh = jnp.dot(h, whh.T, precision=hi) + bhh
            r = jax.nn.sigmoid(gi[:, :Ht] + gh[:, :Ht])
            z = jax.nn.sigmoid(gi[:, Ht:2 * Ht] + gh[:, Ht:2 * Ht])
            n = jnp.tanh(gi[:, 2 * Ht:] + r * gh[:, 2 * Ht:])
            h = (1 - z) * n + z * h
            ys.append(h)
        return jnp.stack(ys, axis=1)

    def ln(y, gamma, beta):
        m = y.mean(-1, keepdims=True)
        v = ((y - m) ** 2).mean(-1, keepdims=True)
        return (y - m) / jnp.sqrt(v + 1e-5) * gamma + beta

    chunks = [x[:, :, g * Ht:(g + 1) * Ht] for g in range(groups)]
    y1 = jnp.stack([gru(chunks[g], wih1[g], whh1[g], bih1[g], bhh1[g])
                    for g in range(groups)], axis=-1).reshape(B, T, H)
    y1 = ln(y1, g1, be1)
    chunks = [y1[:, :, g * Ht:(g + 1) * Ht] for g in range(groups)]
    y2 = jnp.concatenate([gru(chunks[g], wih2[g], whh2[g], bih2[g], bhh2[g])
                          for g in range(groups)], axis=-1)
    y2 = ln(y2, g2, be2)
    return jnp.transpose(y2.reshape(B, T, C, Fdim), (0, 2, 1, 3))


# ----------------------------------------------------------------------------
if __name__ == "__main__":
    # Small shapes consistent with the module: hidden_size = C * F, groups = 2.
    B, C, T, Fdim = 2, 4, 8, 16
    G = 2
    H = C * Fdim          # 64
    Ht = H // G           # 32

    key = jax.random.PRNGKey(0)
    keys = jax.random.split(key, 13)
    k = 1.0 / (Ht ** 0.5)

    def uni(kk, shape):
        return jax.random.uniform(kk, shape, jnp.float32, -k, k)

    params = (
        uni(keys[0], (G, 3 * Ht, Ht)),                               # wih1
        uni(keys[1], (G, 3 * Ht, Ht)),                               # whh1
        uni(keys[2], (G, 3 * Ht)),                                   # bih1
        uni(keys[3], (G, 3 * Ht)),                                   # bhh1
        jax.random.uniform(keys[4], (H,), jnp.float32, 0.5, 1.5),    # ln1 gamma
        jax.random.uniform(keys[5], (H,), jnp.float32, -0.2, 0.2),   # ln1 beta
        uni(keys[6], (G, 3 * Ht, Ht)),                               # wih2
        uni(keys[7], (G, 3 * Ht, Ht)),                               # whh2
        uni(keys[8], (G, 3 * Ht)),                                   # bih2
        uni(keys[9], (G, 3 * Ht)),                                   # bhh2
        jax.random.uniform(keys[10], (H,), jnp.float32, 0.5, 1.5),   # ln2 gamma
        jax.random.uniform(keys[11], (H,), jnp.float32, -0.2, 0.2),  # ln2 beta
    )

    x = jax.random.normal(keys[12], (B, C, T, Fdim), jnp.float32)

    ref = jax.block_until_ready(ggru_reference(x, params, groups=G))

    # Pure-f32 path: tight check (catches packing / permutation mistakes).
    out_f32 = jax.block_until_ready(
        ggru_forward(x, params, groups=G,
                     input_w_dtype=jnp.float32, hidden_w_dtype=jnp.float32))
    assert out_f32.shape == (B, C, T, Fdim), out_f32.shape
    err = float(jnp.max(jnp.abs(out_f32 - ref)))
    assert err < 5e-3, f"f32 path mismatch vs reference, max abs err = {err}"

    # Default fast path: bf16 input-projection weights, f32 recurrent weights
    # (the hidden state is never rounded per step).  Looser check.
    out_fast = jax.block_until_ready(ggru_forward(x, params, groups=G))
    err_fast = float(jnp.max(jnp.abs(out_fast - ref)))
    assert err_fast < 1.5e-1, f"bf16 fast path mismatch, max abs err = {err_fast}"

    print("KERNEL_OK")
</pallas_src>

<mosaic_0001>
module attributes {stable_mosaic.version = 11 : i64} {
  func.func @kernel(%arg0: i32, %arg1: memref<8x8x128xf32, #tpu.memory_space<vmem>>, %arg2: memref<3x128x128xf32, #tpu.memory_space<vmem>>, %arg3: memref<3x128x128xf32, #tpu.memory_space<vmem>>, %arg4: memref<3x1x128xf32, #tpu.memory_space<vmem>>, %arg5: memref<1x128xf32, #tpu.memory_space<vmem>>, %arg6: memref<1x128xf32, #tpu.memory_space<vmem>>, %arg7: memref<1x128xf32, #tpu.memory_space<vmem>>, %arg8: memref<3x128x128xf32, #tpu.memory_space<vmem>>, %arg9: memref<3x128x128xf32, #tpu.memory_space<vmem>>, %arg10: memref<3x1x128xf32, #tpu.memory_space<vmem>>, %arg11: memref<1x128xf32, #tpu.memory_space<vmem>>, %arg12: memref<1x128xf32, #tpu.memory_space<vmem>>, %arg13: memref<1x128xf32, #tpu.memory_space<vmem>>, %arg14: memref<8x8x128xf32, #tpu.memory_space<vmem>>, %arg15: memref<8x8x128xf32, #tpu.memory_space<vmem>>, %arg16: memref<8x8x128xf32, #tpu.memory_space<vmem>>, %arg17: memref<8x8x128xf32, #tpu.memory_space<vmem>>) attributes {dimension_semantics = [#tpu.dimension_semantics<parallel>], iteration_bounds = array<i64: 1>, scalar_prefetch = 0 : i64, scratch_operands = 3 : i64, tpu.core_type = #tpu.core_type<tc>, window_params = [{transform_indices = @transform_0, window_bounds = array<i64: 8, 8, 128>}, {pipeline_mode = #tpu.pipeline_mode<synchronous>, transform_indices = @transform_1, window_bounds = array<i64: 3, 128, 128>}, {pipeline_mode = #tpu.pipeline_mode<synchronous>, transform_indices = @transform_2, window_bounds = array<i64: 3, 128, 128>}, {pipeline_mode = #tpu.pipeline_mode<synchronous>, transform_indices = @transform_3, window_bounds = array<i64: 3, 1, 128>}, {pipeline_mode = #tpu.pipeline_mode<synchronous>, transform_indices = @transform_4, window_bounds = array<i64: 1, 128>}, {pipeline_mode = #tpu.pipeline_mode<synchronous>, transform_indices = @transform_5, window_bounds = array<i64: 1, 128>}, {pipeline_mode = #tpu.pipeline_mode<synchronous>, transform_indices = @transform_6, window_bounds = array<i64: 1, 128>}, {pipeline_mode = #tpu.pipeline_mode<synchronous>, transform_indices = @transform_7, window_bounds = array<i64: 3, 128, 128>}, {pipeline_mode = #tpu.pipeline_mode<synchronous>, transform_indices = @transform_8, window_bounds = array<i64: 3, 128, 128>}, {pipeline_mode = #tpu.pipeline_mode<synchronous>, transform_indices = @transform_9, window_bounds = array<i64: 3, 1, 128>}, {pipeline_mode = #tpu.pipeline_mode<synchronous>, transform_indices = @transform_10, window_bounds = array<i64: 1, 128>}, {pipeline_mode = #tpu.pipeline_mode<synchronous>, transform_indices = @transform_11, window_bounds = array<i64: 1, 128>}, {pipeline_mode = #tpu.pipeline_mode<synchronous>, transform_indices = @transform_12, window_bounds = array<i64: 1, 128>}, {transform_indices = @transform_13, window_bounds = array<i64: 8, 8, 128>}]} {
    %c0 = arith.constant 0 : index
    %c0_0 = arith.constant 0 : index
    %c0_1 = arith.constant 0 : index
    %0 = vector.load %arg1[%c0, %c0_0, %c0_1] : memref<8x8x128xf32, #tpu.memory_space<vmem>>, vector<8x8x128xf32>
    %1 = vector.shape_cast %0 : vector<8x8x128xf32> to vector<64x128xf32>
    %c0_2 = arith.constant 0 : index
    %c0_3 = arith.constant 0 : index
    %c0_4 = arith.constant 0 : index
    %2 = vector.load %arg2[%c0_2, %c0_3, %c0_4] : memref<3x128x128xf32, #tpu.memory_space<vmem>>, vector<1x128x128xf32>
    %3 = vector.shape_cast %2 : vector<1x128x128xf32> to vector<128x128xf32>
    %cst = arith.constant dense<0.000000e+00> : vector<64x128xf32>
    %4 = tpu.matmul %1, %3, %cst {dimension_numbers = #tpu.dot_dimension_numbers<[1], [0], [0], [1], [0, 0, 1, 1], [], []>} : vector<64x128xf32>, vector<128x128xf32>, vector<64x128xf32> -> vector<64x128xf32>
    %c0_5 = arith.constant 0 : index
    %c0_6 = arith.constant 0 : index
    %c0_7 = arith.constant 0 : index
    %5 = vector.load %arg4[%c0_5, %c0_6, %c0_7] : memref<3x1x128xf32, #tpu.memory_space<vmem>>, vector<1x1x128xf32>
    %6 = vector.shape_cast %5 : vector<1x1x128xf32> to vector<1x128xf32>
    %7 = vector.broadcast %6 : vector<1x128xf32> to vector<64x128xf32>
    %8 = arith.addf %4, %7 : vector<64x128xf32>
    %9 = vector.shape_cast %8 : vector<64x128xf32> to vector<8x8x128xf32>
    %c0_8 = arith.constant 0 : index
    %c0_9 = arith.constant 0 : index
    %c0_10 = arith.constant 0 : index
    %10 = vector.load %arg15[%c0_8, %c0_9, %c0_10] : memref<8x8x128xf32, #tpu.memory_space<vmem>>, vector<8x8x128xf32>
    tpu.vector_store %arg15[%c0_8, %c0_9, %c0_10], %9 {strides = array<i32>} : memref<8x8x128xf32, #tpu.memory_space<vmem>>, vector<8x8x128xf32>,
    %c1 = arith.constant 1 : index
    %c0_11 = arith.constant 0 : index
    %c0_12 = arith.constant 0 : index
    %11 = vector.load %arg2[%c1, %c0_11, %c0_12] : memref<3x128x128xf32, #tpu.memory_space<vmem>>, vector<1x128x128xf32>
    %12 = vector.shape_cast %11 : vector<1x128x128xf32> to vector<128x128xf32>
    %cst_13 = arith.constant dense<0.000000e+00> : vector<64x128xf32>
    %13 = tpu.matmul %1, %12, %cst_13 {dimension_numbers = #tpu.dot_dimension_numbers<[1], [0], [0], [1], [0, 0, 1, 1], [], []>} : vector<64x128xf32>, vector<128x128xf32>, vector<64x128xf32> -> vector<64x128xf32>
    %c1_14 = arith.constant 1 : index
    %c0_15 = arith.constant 0 : index
    %c0_16 = arith.constant 0 : index
    %14 = vector.load %arg4[%c1_14, %c0_15, %c0_16] : memref<3x1x128xf32, #tpu.memory_space<vmem>>, vector<1x1x128xf32>
    %15 = vector.shape_cast %14 : vector<1x1x128xf32> to vector<1x128xf32>
    %16 = vector.broadcast %15 : vector<1x128xf32> to vector<64x128xf32>
    %17 = arith.addf %13, %16 : vector<64x128xf32>
    %18 = vector.shape_cast %17 : vector<64x128xf32> to vector<8x8x128xf32>
    %c0_17 = arith.constant 0 : index
    %c0_18 = arith.constant 0 : index
    %c0_19 = arith.constant 0 : index
    %19 = vector.load %arg16[%c0_17, %c0_18, %c0_19] : memref<8x8x128xf32, #tpu.memory_space<vmem>>, vector<8x8x128xf32>
    tpu.vector_store %arg16[%c0_17, %c0_18, %c0_19], %18 {strides = array<i32>} : memref<8x8x128xf32, #tpu.memory_space<vmem>>, vector<8x8x128xf32>,
    %c2 = arith.constant 2 : index
    %c0_20 = arith.constant 0 : index
    %c0_21 = arith.constant 0 : index
    %20 = vector.load %arg2[%c2, %c0_20, %c0_21] : memref<3x128x128xf32, #tpu.memory_space<vmem>>, vector<1x128x128xf32>
    %21 = vector.shape_cast %20 : vector<1x128x128xf32> to vector<128x128xf32>
    %cst_22 = arith.constant dense<0.000000e+00> : vector<64x128xf32>
    %22 = tpu.matmul %1, %21, %cst_22 {dimension_numbers = #tpu.dot_dimension_numbers<[1], [0], [0], [1], [0, 0, 1, 1], [], []>} : vector<64x128xf32>, vector<128x128xf32>, vector<64x128xf32> -> vector<64x128xf32>
    %c2_23 = arith.constant 2 : index
    %c0_24 = arith.constant 0 : index
    %c0_25 = arith.constant 0 : index
    %23 = vector.load %arg4[%c2_23, %c0_24, %c0_25] : memref<3x1x128xf32, #tpu.memory_space<vmem>>, vector<1x1x128xf32>
    %24 = vector.shape_cast %23 : vector<1x1x128xf32> to vector<1x128xf32>
    %25 = vector.broadcast %24 : vector<1x128xf32> to vector<64x128xf32>
    %26 = arith.addf %22, %25 : vector<64x128xf32>
    %27 = vector.shape_cast %26 : vector<64x128xf32> to vector<8x8x128xf32>
    %c0_26 = arith.constant 0 : index
    %c0_27 = arith.constant 0 : index
    %c0_28 = arith.constant 0 : index
    %28 = vector.load %arg17[%c0_26, %c0_27, %c0_28] : memref<8x8x128xf32, #tpu.memory_space<vmem>>, vector<8x8x128xf32>
    tpu.vector_store %arg17[%c0_26, %c0_27, %c0_28], %27 {strides = array<i32>} : memref<8x8x128xf32, #tpu.memory_space<vmem>>, vector<8x8x128xf32>,
    %c0_29 = arith.constant 0 : index
    %c0_30 = arith.constant 0 : index
    %c0_31 = arith.constant 0 : index
    %29 = vector.load %arg3[%c0_29, %c0_30, %c0_31] : memref<3x128x128xf32, #tpu.memory_space<vmem>>, vector<1x128x128xf32>
    %30 = vector.shape_cast %29 : vector<1x128x128xf32> to vector<128x128xf32>
    %c1_32 = arith.constant 1 : index
    %c0_33 = arith.constant 0 : index
    %c0_34 = arith.constant 0 : index
    %31 = vector.load %arg3[%c1_32, %c0_33, %c0_34] : memref<3x128x128xf32, #tpu.memory_space<vmem>>, vector<1x128x128xf32>
    %32 = vector.shape_cast %31 : vector<1x128x128xf32> to vector<128x128xf32>
    %c2_35 = arith.constant 2 : index
    %c0_36 = arith.constant 0 : index
    %c0_37 = arith.constant 0 : index
    %33 = vector.load %arg3[%c2_35, %c0_36, %c0_37] : memref<3x128x128xf32, #tpu.memory_space<vmem>>, vector<1x128x128xf32>
    %34 = vector.shape_cast %33 : vector<1x128x128xf32> to vector<128x128xf32>
    %c0_38 = arith.constant 0 : index
    %c0_39 = arith.constant 0 : index
    %35 = vector.load %arg5[%c0_38, %c0_39] : memref<1x128xf32, #tpu.memory_space<vmem>>, vector<1x128xf32>
    %c0_40 = arith.constant 0 : index
    %c0_41 = arith.constant 0 : index
    %36 = vector.load %arg6[%c0_40, %c0_41] : memref<1x128xf32, #tpu.memory_space<vmem>>, vector<1x128xf32>
    %c0_42 = arith.constant 0 : index
    %c0_43 = arith.constant 0 : index
    %37 = vector.load %arg7[%c0_42, %c0_43] : memref<1x128xf32, #tpu.memory_space<vmem>>, vector<1x128xf32>
    %cst_44 = arith.constant 0.000000e+00 : f32
    %38 = vector.broadcast %cst_44 : f32 to vector<8x128xf32>
    %c0_i32 = arith.constant 0 : i32
    %cst_45 = arith.constant dense<0.000000e+00> : vector<8x128xf32>
    %39 = tpu.matmul %38, %30, %cst_45 {dimension_numbers = #tpu.dot_dimension_numbers<[1], [0], [0], [1], [0, 0, 1, 1], [], []>} : vector<8x128xf32>, vector<128x128xf32>, vector<8x128xf32> -> vector<8x128xf32>
    %cst_46 = arith.constant dense<0.000000e+00> : vector<8x128xf32>
    %40 = tpu.matmul %38, %32, %cst_46 {dimension_numbers = #tpu.dot_dimension_numbers<[1], [0], [0], [1], [0, 0, 1, 1], [], []>} : vector<8x128xf32>, vector<128x128xf32>, vector<8x128xf32> -> vector<8x128xf32>
    %cst_47 = arith.constant dense<0.000000e+00> : vector<8x128xf32>
    %41 = tpu.matmul %38, %34, %cst_47 {dimension_numbers = #tpu.dot_dimension_numbers<[1], [0], [0], [1], [0, 0, 1, 1], [], []>} : vector<8x128xf32>, vector<128x128xf32>, vector<8x128xf32> -> vector<8x128xf32>
    %42 = arith.index_cast %c0_i32 : i32 to index
    %c0_48 = arith.constant 0 : index
    %c0_49 = arith.constant 0 : index
    %43 = vector.load %arg15[%42, %c0_48, %c0_49] : memref<8x8x128xf32, #tpu.memory_space<vmem>>, vector<1x8x128xf32>
    %44 = vector.shape_cast %43 : vector<1x8x128xf32> to vector<8x128xf32>
    %45 = arith.addf %44, %39 : vector<8x128xf32>
    %46 = arith.negf %45 : vector<8x128xf32>
    %47 = math.exp %46 : vector<8x128xf32>
    %cst_50 = arith.constant 1.000000e+00 : f32
    %48 = vector.broadcast %cst_50 : f32 to vector<8x128xf32>
    %49 = arith.addf %48, %47 : vector<8x128xf32>
    %50 = arith.divf %48, %49 : vector<8x128xf32>
    %51 = arith.index_cast %c0_i32 : i32 to index
    %c0_51 = arith.constant 0 : index
    %c0_52 = arith.constant 0 : index
    %52 = vector.load %arg16[%51, %c0_51, %c0_52] : memref<8x8x128xf32, #tpu.memory_space<vmem>>, vector<1x8x128xf32>
    %53 = vector.shape_cast %52 : vector<1x8x128xf32> to vector<8x128xf32>
    %54 = arith.addf %53, %40 : vector<8x128xf32>
    %55 = arith.negf %54 : vector<8x128xf32>
    %56 = math.exp %55 : vector<8x128xf32>
    %cst_53 = arith.constant 1.000000e+00 : f32
    %57 = vector.broadcast %cst_53 : f32 to vector<8x128xf32>
    %58 = arith.addf %57, %56 : vector<8x128xf32>
    %59 = arith.divf %57, %58 : vector<8x128xf32>
    %60 = arith.index_cast %c0_i32 : i32 to index
    %c0_54 = arith.constant 0 : index
    %c0_55 = arith.constant 0 : index
    %61 = vector.load %arg17[%60, %c0_54, %c0_55] : memref<8x8x128xf32, #tpu.memory_space<vmem>>, vector<1x8x128xf32>
    %62 = vector.shape_cast %61 : vector<1x8x128xf32> to vector<8x128xf32>
    %63 = vector.broadcast %35 : vector<1x128xf32> to vector<8x128xf32>
    %64 = arith.addf %41, %63 : vector<8x128xf32>
    %65 = arith.mulf %50, %64 : vector<8x128xf32>
    %66 = arith.addf %62, %65 : vector<8x128xf32>
    %67 = math.tanh %66 : vector<8x128xf32>
    %cst_56 = arith.constant 1.000000e+00 : f32
    %68 = vector.broadcast %cst_56 : f32 to vector<8x128xf32>
    %69 = arith.subf %68, %59 : vector<8x128xf32>
    %70 = arith.mulf %69, %67 : vector<8x128xf32>
    %71 = arith.mulf %59, %38 : vector<8x128xf32>
    %72 = arith.addf %70, %71 : vector<8x128xf32>
    %cst_57 = arith.constant dense<0.000000e+00> : vector<8xf32>
    %73 = vector.multi_reduction <add>, %72, %cst_57 [1] : vector<8x128xf32> to vector<8xf32>
    %74 = vector.shape_cast %73 : vector<8xf32> to vector<8x1xf32>
    %cst_58 = arith.constant 1.562500e-02 : f32
    %75 = vector.broadcast %cst_58 : f32 to vector<8x1xf32>
    %76 = arith.mulf %74, %75 : vector<8x1xf32>
    %77 = arith.mulf %72, %72 : vector<8x128xf32>
    %cst_59 = arith.constant dense<0.000000e+00> : vector<8xf32>
    %78 = vector.multi_reduction <add>, %77, %cst_59 [1] : vector<8x128xf32> to vector<8xf32>
    %79 = vector.shape_cast %78 : vector<8xf32> to vector<8x1xf32>
    %cst_60 = arith.constant 1.562500e-02 : f32
    %80 = vector.broadcast %cst_60 : f32 to vector<8x1xf32>
    %81 = arith.mulf %79, %80 : vector<8x1xf32>
    %82 = arith.mulf %76, %76 : vector<8x1xf32>
    %83 = arith.subf %81, %82 : vector<8x1xf32>
    %84 = vector.broadcast %76 : vector<8x1xf32> to vector<8x128xf32>
    %85 = arith.subf %72, %84 : vector<8x128xf32>
    %cst_61 = arith.constant 9.99999974E-6 : f32
    %86 = vector.broadcast %cst_61 : f32 to vector<8x1xf32>
    %87 = arith.addf %83, %86 : vector<8x1xf32>
    %88 = math.rsqrt %87 : vector<8x1xf32>
    %89 = vector.broadcast %88 : vector<8x1xf32> to vector<8x128xf32>
    %90 = arith.mulf %85, %89 : vector<8x128xf32>
    %91 = vector.broadcast %36 : vector<1x128xf32> to vector<8x128xf32>
    %92 = arith.mulf %90, %91 : vector<8x128xf32>
    %93 = vector.broadcast %37 : vector<1x128xf32> to vector<8x128xf32>
    %94 = arith.addf %92, %93 : vector<8x128xf32>
    %95 = arith.index_cast %c0_i32 : i32 to index
    %c0_62 = arith.constant 0 : index
    %c0_63 = arith.constant 0 : index
    %96 = vector.load %arg14[%95, %c0_62, %c0_63] : memref<8x8x128xf32, #tpu.memory_space<vmem>>, vector<1x8x128xf32>
    %97 = vector.shape_cast %96 : vector<1x8x128xf32> to vector<8x128xf32>
    %98 = vector.shape_cast %94 : vector<8x128xf32> to vector<1x8x128xf32>
    tpu.vector_store %arg14[%95, %c0_62, %c0_63], %98 {strides = array<i32>} : memref<8x8x128xf32, #tpu.memory_space<vmem>>, vector<1x8x128xf32>,
    %c1_i32 = arith.constant 1 : i32
    %cst_64 = arith.constant dense<0.000000e+00> : vector<8x128xf32>
    %99 = tpu.matmul %72, %30, %cst_64 {dimension_numbers = #tpu.dot_dimension_numbers<[1], [0], [0], [1], [0, 0, 1, 1], [], []>} : vector<8x128xf32>, vector<128x128xf32>, vector<8x128xf32> -> vector<8x128xf32>
    %cst_65 = arith.constant dense<0.000000e+00> : vector<8x128xf32>
    %100 = tpu.matmul %72, %32, %cst_65 {dimension_numbers = #tpu.dot_dimension_numbers<[1], [0], [0], [1], [0, 0, 1, 1], [], []>} : vector<8x128xf32>, vector<128x128xf32>, vector<8x128xf32> -> vector<8x128xf32>
    %cst_66 = arith.constant dense<0.000000e+00> : vector<8x128xf32>
    %101 = tpu.matmul %72, %34, %cst_66 {dimension_numbers = #tpu.dot_dimension_numbers<[1], [0], [0], [1], [0, 0, 1, 1], [], []>} : vector<8x128xf32>, vector<128x128xf32>, vector<8x128xf32> -> vector<8x128xf32>
    %102 = arith.index_cast %c1_i32 : i32 to index
    %c0_67 = arith.constant 0 : index
    %c0_68 = arith.constant 0 : index
    %103 = vector.load %arg15[%102, %c0_67, %c0_68] : memref<8x8x128xf32, #tpu.memory_space<vmem>>, vector<1x8x128xf32>
    %104 = vector.shape_cast %103 : vector<1x8x128xf32> to vector<8x128xf32>
    %105 = arith.addf %104, %99 : vector<8x128xf32>
    %106 = arith.negf %105 : vector<8x128xf32>
    %107 = math.exp %106 : vector<8x128xf32>
    %cst_69 = arith.constant 1.000000e+00 : f32
    %108 = vector.broadcast %cst_69 : f32 to vector<8x128xf32>
    %109 = arith.addf %108, %107 : vector<8x128xf32>
    %110 = arith.divf %108, %109 : vector<8x128xf32>
    %111 = arith.index_cast %c1_i32 : i32 to index
    %c0_70 = arith.constant 0 : index
    %c0_71 = arith.constant 0 : index
    %112 = vector.load %arg16[%111, %c0_70, %c0_71] : memref<8x8x128xf32, #tpu.memory_space<vmem>>, vector<1x8x128xf32>
    %113 = vector.shape_cast %112 : vector<1x8x128xf32> to vector<8x128xf32>
    %114 = arith.addf %113, %100 : vector<8x128xf32>
    %115 = arith.negf %114 : vector<8x128xf32>
    %116 = math.exp %115 : vector<8x128xf32>
    %cst_72 = arith.constant 1.000000e+00 : f32
    %117 = vector.broadcast %cst_72 : f32 to vector<8x128xf32>
    %118 = arith.addf %117, %116 : vector<8x128xf32>
    %119 = arith.divf %117, %118 : vector<8x128xf32>
    %120 = arith.index_cast %c1_i32 : i32 to index
    %c0_73 = arith.constant 0 : index
    %c0_74 = arith.constant 0 : index
    %121 = vector.load %arg17[%120, %c0_73, %c0_74] : memref<8x8x128xf32, #tpu.memory_space<vmem>>, vector<1x8x128xf32>
    %122 = vector.shape_cast %121 : vector<1x8x128xf32> to vector<8x128xf32>
    %123 = vector.broadcast %35 : vector<1x128xf32> to vector<8x128xf32>
    %124 = arith.addf %101, %123 : vector<8x128xf32>
    %125 = arith.mulf %110, %124 : vector<8x128xf32>
    %126 = arith.addf %122, %125 : vector<8x128xf32>
    %127 = math.tanh %126 : vector<8x128xf32>
    %cst_75 = arith.constant 1.000000e+00 : f32
    %128 = vector.broadcast %cst_75 : f32 to vector<8x128xf32>
    %129 = arith.subf %128, %119 : vector<8x128xf32>
    %130 = arith.mulf %129, %127 : vector<8x128xf32>
    %131 = arith.mulf %119, %72 : vector<8x128xf32>
    %132 = arith.addf %130, %131 : vector<8x128xf32>
    %cst_76 = arith.constant dense<0.000000e+00> : vector<8xf32>
    %133 = vector.multi_reduction <add>, %132, %cst_76 [1] : vector<8x128xf32> to vector<8xf32>
    %134 = vector.shape_cast %133 : vector<8xf32> to vector<8x1xf32>
    %cst_77 = arith.constant 1.562500e-02 : f32
    %135 = vector.broadcast %cst_77 : f32 to vector<8x1xf32>
    %136 = arith.mulf %134, %135 : vector<8x1xf32>
    %137 = arith.mulf %132, %132 : vector<8x128xf32>
    %cst_78 = arith.constant dense<0.000000e+00> : vector<8xf32>
    %138 = vector.multi_reduction <add>, %137, %cst_78 [1] : vector<8x128xf32> to vector<8xf32>
    %139 = vector.shape_cast %138 : vector<8xf32> to vector<8x1xf32>
    %cst_79 = arith.constant 1.562500e-02 : f32
    %140 = vector.broadcast %cst_79 : f32 to vector<8x1xf32>
    %141 = arith.mulf %139, %140 : vector<8x1xf32>
    %142 = arith.mulf %136, %136 : vector<8x1xf32>
    %143 = arith.subf %141, %142 : vector<8x1xf32>
    %144 = vector.broadcast %136 : vector<8x1xf32> to vector<8x128xf32>
    %145 = arith.subf %132, %144 : vector<8x128xf32>
    %cst_80 = arith.constant 9.99999974E-6 : f32
    %146 = vector.broadcast %cst_80 : f32 to vector<8x1xf32>
    %147 = arith.addf %143, %146 : vector<8x1xf32>
    %148 = math.rsqrt %147 : vector<8x1xf32>
    %149 = vector.broadcast %148 : vector<8x1xf32> to vector<8x128xf32>
    %150 = arith.mulf %145, %149 : vector<8x128xf32>
    %151 = vector.broadcast %36 : vector<1x128xf32> to vector<8x128xf32>
    %152 = arith.mulf %150, %151 : vector<8x128xf32>
    %153 = vector.broadcast %37 : vector<1x128xf32> to vector<8x128xf32>
    %154 = arith.addf %152, %153 : vector<8x128xf32>
    %155 = arith.index_cast %c1_i32 : i32 to index
    %c0_81 = arith.constant 0 : index
    %c0_82 = arith.constant 0 : index
    %156 = vector.load %arg14[%155, %c0_81, %c0_82] : memref<8x8x128xf32, #tpu.memory_space<vmem>>, vector<1x8x128xf32>
    %157 = vector.shape_cast %156 : vector<1x8x128xf32> to vector<8x128xf32>
    %158 = vector.shape_cast %154 : vector<8x128xf32> to vector<1x8x128xf32>
    tpu.vector_store %arg14[%155, %c0_81, %c0_82], %158 {strides = array<i32>} : memref<8x8x128xf32, #tpu.memory_space<vmem>>, vector<1x8x128xf32>,
    %c2_i32 = arith.constant 2 : i32
    %cst_83 = arith.constant dense<0.000000e+00> : vector<8x128xf32>
    %159 = tpu.matmul %132, %30, %cst_83 {dimension_numbers = #tpu.dot_dimension_numbers<[1], [0], [0], [1], [0, 0, 1, 1], [], []>} : vector<8x128xf32>, vector<128x128xf32>, vector<8x128xf32> -> vector<8x128xf32>
    %cst_84 = arith.constant dense<0.000000e+00> : vector<8x128xf32>
    %160 = tpu.matmul %132, %32, %cst_84 {dimension_numbers = #tpu.dot_dimension_numbers<[1], [0], [0], [1], [0, 0, 1, 1], [], []>} : vector<8x128xf32>, vector<128x128xf32>, vector<8x128xf32> -> vector<8x128xf32>
    %cst_85 = arith.constant dense<0.000000e+00> : vector<8x128xf32>
    %161 = tpu.matmul %132, %34, %cst_85 {dimension_numbers = #tpu.dot_dimension_numbers<[1], [0], [0], [1], [0, 0, 1, 1], [], []>} : vector<8x128xf32>, vector<128x128xf32>, vector<8x128xf32> -> vector<8x128xf32>
    %162 = arith.index_cast %c2_i32 : i32 to index
    %c0_86 = arith.constant 0 : index
    %c0_87 = arith.constant 0 : index
    %163 = vector.load %arg15[%162, %c0_86, %c0_87] : memref<8x8x128xf32, #tpu.memory_space<vmem>>, vector<1x8x128xf32>
    %164 = vector.shape_cast %163 : vector<1x8x128xf32> to vector<8x128xf32>
    %165 = arith.addf %164, %159 : vector<8x128xf32>
    %166 = arith.negf %165 : vector<8x128xf32>
    %167 = math.exp %166 : vector<8x128xf32>
    %cst_88 = arith.constant 1.000000e+00 : f32
    %168 = vector.broadcast %cst_88 : f32 to vector<8x128xf32>
    %169 = arith.addf %168, %167 : vector<8x128xf32>
    %170 = arith.divf %168, %169 : vector<8x128xf32>
    %171 = arith.index_cast %c2_i32 : i32 to index
    %c0_89 = arith.constant 0 : index
    %c0_90 = arith.constant 0 : index
    %172 = vector.load %arg16[%171, %c0_89, %c0_90] : memref<8x8x128xf32, #tpu.memory_space<vmem>>, vector<1x8x128xf32>
    %173 = vector.shape_cast %172 : vector<1x8x128xf32> to vector<8x128xf32>
    %174 = arith.addf %173, %160 : vector<8x128xf32>
    %175 = arith.negf %174 : vector<8x128xf32>
    %176 = math.exp %175 : vector<8x128xf32>
    %cst_91 = arith.constant 1.000000e+00 : f32
    %177 = vector.broadcast %cst_91 : f32 to vector<8x128xf32>
    %178 = arith.addf %177, %176 : vector<8x128xf32>
    %179 = arith.divf %177, %178 : vector<8x128xf32>
    %180 = arith.index_cast %c2_i32 : i32 to index
    %c0_92 = arith.constant 0 : index
    %c0_93 = arith.constant 0 : index
    %181 = vector.load %arg17[%180, %c0_92, %c0_93] : memref<8x8x128xf32, #tpu.memory_space<vmem>>, vector<1x8x128xf32>
    %182 = vector.shape_cast %181 : vector<1x8x128xf32> to vector<8x128xf32>
    %183 = vector.broadcast %35 : vector<1x128xf32> to vector<8x128xf32>
    %184 = arith.addf %161, %183 : vector<8x128xf32>
    %185 = arith.mulf %170, %184 : vector<8x128xf32>
    %186 = arith.addf %182, %185 : vector<8x128xf32>
    %187 = math.tanh %186 : vector<8x128xf32>
    %cst_94 = arith.constant 1.000000e+00 : f32
    %188 = vector.broadcast %cst_94 : f32 to vector<8x128xf32>
    %189 = arith.subf %188, %179 : vector<8x128xf32>
    %190 = arith.mulf %189, %187 : vector<8x128xf32>
    %191 = arith.mulf %179, %132 : vector<8x128xf32>
    %192 = arith.addf %190, %191 : vector<8x128xf32>
    %cst_95 = arith.constant dense<0.000000e+00> : vector<8xf32>
    %193 = vector.multi_reduction <add>, %192, %cst_95 [1] : vector<8x128xf32> to vector<8xf32>
    %194 = vector.shape_cast %193 : vector<8xf32> to vector<8x1xf32>
    %cst_96 = arith.constant 1.562500e-02 : f32
    %195 = vector.broadcast %cst_96 : f32 to vector<8x1xf32>
    %196 = arith.mulf %194, %195 : vector<8x1xf32>
    %197 = arith.mulf %192, %192 : vector<8x128xf32>
    %cst_97 = arith.constant dense<0.000000e+00> : vector<8xf32>
    %198 = vector.multi_reduction <add>, %197, %cst_97 [1] : vector<8x128xf32> to vector<8xf32>
    %199 = vector.shape_cast %198 : vector<8xf32> to vector<8x1xf32>
    %cst_98 = arith.constant 1.562500e-02 : f32
    %200 = vector.broadcast %cst_98 : f32 to vector<8x1xf32>
    %201 = arith.mulf %199, %200 : vector<8x1xf32>
    %202 = arith.mulf %196, %196 : vector<8x1xf32>
    %203 = arith.subf %201, %202 : vector<8x1xf32>
    %204 = vector.broadcast %196 : vector<8x1xf32> to vector<8x128xf32>
    %205 = arith.subf %192, %204 : vector<8x128xf32>
    %cst_99 = arith.constant 9.99999974E-6 : f32
    %206 = vector.broadcast %cst_99 : f32 to vector<8x1xf32>
    %207 = arith.addf %203, %206 : vector<8x1xf32>
    %208 = math.rsqrt %207 : vector<8x1xf32>
    %209 = vector.broadcast %208 : vector<8x1xf32> to vector<8x128xf32>
    %210 = arith.mulf %205, %209 : vector<8x128xf32>
    %211 = vector.broadcast %36 : vector<1x128xf32> to vector<8x128xf32>
    %212 = arith.mulf %210, %211 : vector<8x128xf32>
    %213 = vector.broadcast %37 : vector<1x128xf32> to vector<8x128xf32>
    %214 = arith.addf %212, %213 : vector<8x128xf32>
    %215 = arith.index_cast %c2_i32 : i32 to index
    %c0_100 = arith.constant 0 : index
    %c0_101 = arith.constant 0 : index
    %216 = vector.load %arg14[%215, %c0_100, %c0_101] : memref<8x8x128xf32, #tpu.memory_space<vmem>>, vector<1x8x128xf32>
    %217 = vector.shape_cast %216 : vector<1x8x128xf32> to vector<8x128xf32>
    %218 = vector.shape_cast %214 : vector<8x128xf32> to vector<1x8x128xf32>
    tpu.vector_store %arg14[%215, %c0_100, %c0_101], %218 {strides = array<i32>} : memref<8x8x128xf32, #tpu.memory_space<vmem>>, vector<1x8x128xf32>,
    %c3_i32 = arith.constant 3 : i32
    %cst_102 = arith.constant dense<0.000000e+00> : vector<8x128xf32>
    %219 = tpu.matmul %192, %30, %cst_102 {dimension_numbers = #tpu.dot_dimension_numbers<[1], [0], [0], [1], [0, 0, 1, 1], [], []>} : vector<8x128xf32>, vector<128x128xf32>, vector<8x128xf32> -> vector<8x128xf32>
    %cst_103 = arith.constant dense<0.000000e+00> : vector<8x128xf32>
    %220 = tpu.matmul %192, %32, %cst_103 {dimension_numbers = #tpu.dot_dimension_numbers<[1], [0], [0], [1], [0, 0, 1, 1], [], []>} : vector<8x128xf32>, vector<128x128xf32>, vector<8x128xf32> -> vector<8x128xf32>
    %cst_104 = arith.constant dense<0.000000e+00> : vector<8x128xf32>
    %221 = tpu.matmul %192, %34, %cst_104 {dimension_numbers = #tpu.dot_dimension_numbers<[1], [0], [0], [1], [0, 0, 1, 1], [], []>} : vector<8x128xf32>, vector<128x128xf32>, vector<8x128xf32> -> vector<8x128xf32>
    %222 = arith.index_cast %c3_i32 : i32 to index
    %c0_105 = arith.constant 0 : index
    %c0_106 = arith.constant 0 : index
    %223 = vector.load %arg15[%222, %c0_105, %c0_106] : memref<8x8x128xf32, #tpu.memory_space<vmem>>, vector<1x8x128xf32>
    %224 = vector.shape_cast %223 : vector<1x8x128xf32> to vector<8x128xf32>
    %225 = arith.addf %224, %219 : vector<8x128xf32>
    %226 = arith.negf %225 : vector<8x128xf32>
    %227 = math.exp %226 : vector<8x128xf32>
    %cst_107 = arith.constant 1.000000e+00 : f32
    %228 = vector.broadcast %cst_107 : f32 to vector<8x128xf32>
    %229 = arith.addf %228, %227 : vector<8x128xf32>
    %230 = arith.divf %228, %229 : vector<8x128xf32>
    %231 = arith.index_cast %c3_i32 : i32 to index
    %c0_108 = arith.constant 0 : index
    %c0_109 = arith.constant 0 : index
    %232 = vector.load %arg16[%231, %c0_108, %c0_109] : memref<8x8x128xf32, #tpu.memory_space<vmem>>, vector<1x8x128xf32>
    %233 = vector.shape_cast %232 : vector<1x8x128xf32> to vector<8x128xf32>
    %234 = arith.addf %233, %220 : vector<8x128xf32>
    %235 = arith.negf %234 : vector<8x128xf32>
    %236 = math.exp %235 : vector<8x128xf32>
    %cst_110 = arith.constant 1.000000e+00 : f32
    %237 = vector.broadcast %cst_110 : f32 to vector<8x128xf32>
    %238 = arith.addf %237, %236 : vector<8x128xf32>
    %239 = arith.divf %237, %238 : vector<8x128xf32>
    %240 = arith.index_cast %c3_i32 : i32 to index
    %c0_111 = arith.constant 0 : index
    %c0_112 = arith.constant 0 : index
    %241 = vector.load %arg17[%240, %c0_111, %c0_112] : memref<8x8x128xf32, #tpu.memory_space<vmem>>, vector<1x8x128xf32>
    %242 = vector.shape_cast %241 : vector<1x8x128xf32> to vector<8x128xf32>
    %243 = vector.broadcast %35 : vector<1x128xf32> to vector<8x128xf32>
    %244 = arith.addf %221, %243 : vector<8x128xf32>
    %245 = arith.mulf %230, %244 : vector<8x128xf32>
    %246 = arith.addf %242, %245 : vector<8x128xf32>
    %247 = math.tanh %246 : vector<8x128xf32>
    %cst_113 = arith.constant 1.000000e+00 : f32
    %248 = vector.broadcast %cst_113 : f32 to vector<8x128xf32>
    %249 = arith.subf %248, %239 : vector<8x128xf32>
    %250 = arith.mulf %249, %247 : vector<8x128xf32>
    %251 = arith.mulf %239, %192 : vector<8x128xf32>
    %252 = arith.addf %250, %251 : vector<8x128xf32>
    %cst_114 = arith.constant dense<0.000000e+00> : vector<8xf32>
    %253 = vector.multi_reduction <add>, %252, %cst_114 [1] : vector<8x128xf32> to vector<8xf32>
    %254 = vector.shape_cast %253 : vector<8xf32> to vector<8x1xf32>
    %cst_115 = arith.constant 1.562500e-02 : f32
    %255 = vector.broadcast %cst_115 : f32 to vector<8x1xf32>
    %256 = arith.mulf %254, %255 : vector<8x1xf32>
    %257 = arith.mulf %252, %252 : vector<8x128xf32>
    %cst_116 = arith.constant dense<0.000000e+00> : vector<8xf32>
    %258 = vector.multi_reduction <add>, %257, %cst_116 [1] : vector<8x128xf32> to vector<8xf32>
    %259 = vector.shape_cast %258 : vector<8xf32> to vector<8x1xf32>
    %cst_117 = arith.constant 1.562500e-02 : f32
    %260 = vector.broadcast %cst_117 : f32 to vector<8x1xf32>
    %261 = arith.mulf %259, %260 : vector<8x1xf32>
    %262 = arith.mulf %256, %256 : vector<8x1xf32>
    %263 = arith.subf %261, %262 : vector<8x1xf32>
    %264 = vector.broadcast %256 : vector<8x1xf32> to vector<8x128xf32>
    %265 = arith.subf %252, %264 : vector<8x128xf32>
    %cst_118 = arith.constant 9.99999974E-6 : f32
    %266 = vector.broadcast %cst_118 : f32 to vector<8x1xf32>
    %267 = arith.addf %263, %266 : vector<8x1xf32>
    %268 = math.rsqrt %267 : vector<8x1xf32>
    %269 = vector.broadcast %268 : vector<8x1xf32> to vector<8x128xf32>
    %270 = arith.mulf %265, %269 : vector<8x128xf32>
    %271 = vector.broadcast %36 : vector<1x128xf32> to vector<8x128xf32>
    %272 = arith.mulf %270, %271 : vector<8x128xf32>
    %273 = vector.broadcast %37 : vector<1x128xf32> to vector<8x128xf32>
    %274 = arith.addf %272, %273 : vector<8x128xf32>
    %275 = arith.index_cast %c3_i32 : i32 to index
    %c0_119 = arith.constant 0 : index
    %c0_120 = arith.constant 0 : index
    %276 = vector.load %arg14[%275, %c0_119, %c0_120] : memref<8x8x128xf32, #tpu.memory_space<vmem>>, vector<1x8x128xf32>
    %277 = vector.shape_cast %276 : vector<1x8x128xf32> to vector<8x128xf32>
    %278 = vector.shape_cast %274 : vector<8x128xf32> to vector<1x8x128xf32>
    tpu.vector_store %arg14[%275, %c0_119, %c0_120], %278 {strides = array<i32>} : memref<8x8x128xf32, #tpu.memory_space<vmem>>, vector<1x8x128xf32>,
    %c4_i32 = arith.constant 4 : i32
    %cst_121 = arith.constant dense<0.000000e+00> : vector<8x128xf32>
    %279 = tpu.matmul %252, %30, %cst_121 {dimension_numbers = #tpu.dot_dimension_numbers<[1], [0], [0], [1], [0, 0, 1, 1], [], []>} : vector<8x128xf32>, vector<128x128xf32>, vector<8x128xf32> -> vector<8x128xf32>
    %cst_122 = arith.constant dense<0.000000e+00> : vector<8x128xf32>
    %280 = tpu.matmul %252, %32, %cst_122 {dimension_numbers = #tpu.dot_dimension_numbers<[1], [0], [0], [1], [0, 0, 1, 1], [], []>} : vector<8x128xf32>, vector<128x128xf32>, vector<8x128xf32> -> vector<8x128xf32>
    %cst_123 = arith.constant dense<0.000000e+00> : vector<8x128xf32>
    %281 = tpu.matmul %252, %34, %cst_123 {dimension_numbers = #tpu.dot_dimension_numbers<[1], [0], [0], [1], [0, 0, 1, 1], [], []>} : vector<8x128xf32>, vector<128x128xf32>, vector<8x128xf32> -> vector<8x128xf32>
    %282 = arith.index_cast %c4_i32 : i32 to index
    %c0_124 = arith.constant 0 : index
    %c0_125 = arith.constant 0 : index
    %283 = vector.load %arg15[%282, %c0_124, %c0_125] : memref<8x8x128xf32, #tpu.memory_space<vmem>>, vector<1x8x128xf32>
    %284 = vector.shape_cast %283 : vector<1x8x128xf32> to vector<8x128xf32>
    %285 = arith.addf %284, %279 : vector<8x128xf32>
    %286 = arith.negf %285 : vector<8x128xf32>
    %287 = math.exp %286 : vector<8x128xf32>
    %cst_126 = arith.constant 1.000000e+00 : f32
    %288 = vector.broadcast %cst_126 : f32 to vector<8x128xf32>
    %289 = arith.addf %288, %287 : vector<8x128xf32>
    %290 = arith.divf %288, %289 : vector<8x128xf32>
    %291 = arith.index_cast %c4_i32 : i32 to index
    %c0_127 = arith.constant 0 : index
    %c0_128 = arith.constant 0 : index
    %292 = vector.load %arg16[%291, %c0_127, %c0_128] : memref<8x8x128xf32, #tpu.memory_space<vmem>>, vector<1x8x128xf32>
    %293 = vector.shape_cast %292 : vector<1x8x128xf32> to vector<8x128xf32>
    %294 = arith.addf %293, %280 : vector<8x128xf32>
    %295 = arith.negf %294 : vector<8x128xf32>
    %296 = math.exp %295 : vector<8x128xf32>
    %cst_129 = arith.constant 1.000000e+00 : f32
    %297 = vector.broadcast %cst_129 : f32 to vector<8x128xf32>
    %298 = arith.addf %297, %296 : vector<8x128xf32>
    %299 = arith.divf %297, %298 : vector<8x128xf32>
    %300 = arith.index_cast %c4_i32 : i32 to index
    %c0_130 = arith.constant 0 : index
    %c0_131 = arith.constant 0 : index
    %301 = vector.load %arg17[%300, %c0_130, %c0_131] : memref<8x8x128xf32, #tpu.memory_space<vmem>>, vector<1x8x128xf32>
    %302 = vector.shape_cast %301 : vector<1x8x128xf32> to vector<8x128xf32>
    %303 = vector.broadcast %35 : vector<1x128xf32> to vector<8x128xf32>
    %304 = arith.addf %281, %303 : vector<8x128xf32>
    %305 = arith.mulf %290, %304 : vector<8x128xf32>
    %306 = arith.addf %302, %305 : vector<8x128xf32>
    %307 = math.tanh %306 : vector<8x128xf32>
    %cst_132 = arith.constant 1.000000e+00 : f32
    %308 = vector.broadcast %cst_132 : f32 to vector<8x128xf32>
    %309 = arith.subf %308, %299 : vector<8x128xf32>
    %310 = arith.mulf %309, %307 : vector<8x128xf32>
    %311 = arith.mulf %299, %252 : vector<8x128xf32>
    %312 = arith.addf %310, %311 : vector<8x128xf32>
    %cst_133 = arith.constant dense<0.000000e+00> : vector<8xf32>
    %313 = vector.multi_reduction <add>, %312, %cst_133 [1] : vector<8x128xf32> to vector<8xf32>
    %314 = vector.shape_cast %313 : vector<8xf32> to vector<8x1xf32>
    %cst_134 = arith.constant 1.562500e-02 : f32
    %315 = vector.broadcast %cst_134 : f32 to vector<8x1xf32>
    %316 = arith.mulf %314, %315 : vector<8x1xf32>
    %317 = arith.mulf %312, %312 : vector<8x128xf32>
    %cst_135 = arith.constant dense<0.000000e+00> : vector<8xf32>
    %318 = vector.multi_reduction <add>, %317, %cst_135 [1] : vector<8x128xf32> to vector<8xf32>
    %319 = vector.shape_cast %318 : vector<8xf32> to vector<8x1xf32>
    %cst_136 = arith.constant 1.562500e-02 : f32
    %320 = vector.broadcast %cst_136 : f32 to vector<8x1xf32>
    %321 = arith.mulf %319, %320 : vector<8x1xf32>
    %322 = arith.mulf %316, %316 : vector<8x1xf32>
    %323 = arith.subf %321, %322 : vector<8x1xf32>
    %324 = vector.broadcast %316 : vector<8x1xf32> to vector<8x128xf32>
    %325 = arith.subf %312, %324 : vector<8x128xf32>
    %cst_137 = arith.constant 9.99999974E-6 : f32
    %326 = vector.broadcast %cst_137 : f32 to vector<8x1xf32>
    %327 = arith.addf %323, %326 : vector<8x1xf32>
    %328 = math.rsqrt %327 : vector<8x1xf32>
    %329 = vector.broadcast %328 : vector<8x1xf32> to vector<8x128xf32>
    %330 = arith.mulf %325, %329 : vector<8x128xf32>
    %331 = vector.broadcast %36 : vector<1x128xf32> to vector<8x128xf32>
    %332 = arith.mulf %330, %331 : vector<8x128xf32>
    %333 = vector.broadcast %37 : vector<1x128xf32> to vector<8x128xf32>
    %334 = arith.addf %332, %333 : vector<8x128xf32>
    %335 = arith.index_cast %c4_i32 : i32 to index
    %c0_138 = arith.constant 0 : index
    %c0_139 = arith.constant 0 : index
    %336 = vector.load %arg14[%335, %c0_138, %c0_139] : memref<8x8x128xf32, #tpu.memory_space<vmem>>, vector<1x8x128xf32>
    %337 = vector.shape_cast %336 : vector<1x8x128xf32> to vector<8x128xf32>
    %338 = vector.shape_cast %334 : vector<8x128xf32> to vector<1x8x128xf32>
    tpu.vector_store %arg14[%335, %c0_138, %c0_139], %338 {strides = array<i32>} : memref<8x8x128xf32, #tpu.memory_space<vmem>>, vector<1x8x128xf32>,
    %c5_i32 = arith.constant 5 : i32
    %cst_140 = arith.constant dense<0.000000e+00> : vector<8x128xf32>
    %339 = tpu.matmul %312, %30, %cst_140 {dimension_numbers = #tpu.dot_dimension_numbers<[1], [0], [0], [1], [0, 0, 1, 1], [], []>} : vector<8x128xf32>, vector<128x128xf32>, vector<8x128xf32> -> vector<8x128xf32>
    %cst_141 = arith.constant dense<0.000000e+00> : vector<8x128xf32>
    %340 = tpu.matmul %312, %32, %cst_141 {dimension_numbers = #tpu.dot_dimension_numbers<[1], [0], [0], [1], [0, 0, 1, 1], [], []>} : vector<8x128xf32>, vector<128x128xf32>, vector<8x128xf32> -> vector<8x128xf32>
    %cst_142 = arith.constant dense<0.000000e+00> : vector<8x128xf32>
    %341 = tpu.matmul %312, %34, %cst_142 {dimension_numbers = #tpu.dot_dimension_numbers<[1], [0], [0], [1], [0, 0, 1, 1], [], []>} : vector<8x128xf32>, vector<128x128xf32>, vector<8x128xf32> -> vector<8x128xf32>
    %342 = arith.index_cast %c5_i32 : i32 to index
    %c0_143 = arith.constant 0 : index
    %c0_144 = arith.constant 0 : index
    %343 = vector.load %arg15[%342, %c0_143, %c0_144] : memref<8x8x128xf32, #tpu.memory_space<vmem>>, vector<1x8x128xf32>
    %344 = vector.shape_cast %343 : vector<1x8x128xf32> to vector<8x128xf32>
    %345 = arith.addf %344, %339 : vector<8x128xf32>
    %346 = arith.negf %345 : vector<8x128xf32>
    %347 = math.exp %346 : vector<8x128xf32>
    %cst_145 = arith.constant 1.000000e+00 : f32
    %348 = vector.broadcast %cst_145 : f32 to vector<8x128xf32>
    %349 = arith.addf %348, %347 : vector<8x128xf32>
    %350 = arith.divf %348, %349 : vector<8x128xf32>
    %351 = arith.index_cast %c5_i32 : i32 to index
    %c0_146 = arith.constant 0 : index
    %c0_147 = arith.constant 0 : index
    %352 = vector.load %arg16[%351, %c0_146, %c0_147] : memref<8x8x128xf32, #tpu.memory_space<vmem>>, vector<1x8x128xf32>
    %353 = vector.shape_cast %352 : vector<1x8x128xf32> to vector<8x128xf32>
    %354 = arith.addf %353, %340 : vector<8x128xf32>
    %355 = arith.negf %354 : vector<8x128xf32>
    %356 = math.exp %355 : vector<8x128xf32>
    %cst_148 = arith.constant 1.000000e+00 : f32
    %357 = vector.broadcast %cst_148 : f32 to vector<8x128xf32>
    %358 = arith.addf %357, %356 : vector<8x128xf32>
    %359 = arith.divf %357, %358 : vector<8x128xf32>
    %360 = arith.index_cast %c5_i32 : i32 to index
    %c0_149 = arith.constant 0 : index
    %c0_150 = arith.constant 0 : index
    %361 = vector.load %arg17[%360, %c0_149, %c0_150] : memref<8x8x128xf32, #tpu.memory_space<vmem>>, vector<1x8x128xf32>
    %362 = vector.shape_cast %361 : vector<1x8x128xf32> to vector<8x128xf32>
    %363 = vector.broadcast %35 : vector<1x128xf32> to vector<8x128xf32>
    %364 = arith.addf %341, %363 : vector<8x128xf32>
    %365 = arith.mulf %350, %364 : vector<8x128xf32>
    %366 = arith.addf %362, %365 : vector<8x128xf32>
    %367 = math.tanh %366 : vector<8x128xf32>
    %cst_151 = arith.constant 1.000000e+00 : f32
    %368 = vector.broadcast %cst_151 : f32 to vector<8x128xf32>
    %369 = arith.subf %368, %359 : vector<8x128xf32>
    %370 = arith.mulf %369, %367 : vector<8x128xf32>
    %371 = arith.mulf %359, %312 : vector<8x128xf32>
    %372 = arith.addf %370, %371 : vector<8x128xf32>
    %cst_152 = arith.constant dense<0.000000e+00> : vector<8xf32>
    %373 = vector.multi_reduction <add>, %372, %cst_152 [1] : vector<8x128xf32> to vector<8xf32>
    %374 = vector.shape_cast %373 : vector<8xf32> to vector<8x1xf32>
    %cst_153 = arith.constant 1.562500e-02 : f32
    %375 = vector.broadcast %cst_153 : f32 to vector<8x1xf32>
    %376 = arith.mulf %374, %375 : vector<8x1xf32>
    %377 = arith.mulf %372, %372 : vector<8x128xf32>
    %cst_154 = arith.constant dense<0.000000e+00> : vector<8xf32>
    %378 = vector.multi_reduction <add>, %377, %cst_154 [1] : vector<8x128xf32> to vector<8xf32>
    %379 = vector.shape_cast %378 : vector<8xf32> to vector<8x1xf32>
    %cst_155 = arith.constant 1.562500e-02 : f32
    %380 = vector.broadcast %cst_155 : f32 to vector<8x1xf32>
    %381 = arith.mulf %379, %380 : vector<8x1xf32>
    %382 = arith.mulf %376, %376 : vector<8x1xf32>
    %383 = arith.subf %381, %382 : vector<8x1xf32>
    %384 = vector.broadcast %376 : vector<8x1xf32> to vector<8x128xf32>
    %385 = arith.subf %372, %384 : vector<8x128xf32>
    %cst_156 = arith.constant 9.99999974E-6 : f32
    %386 = vector.broadcast %cst_156 : f32 to vector<8x1xf32>
    %387 = arith.addf %383, %386 : vector<8x1xf32>
    %388 = math.rsqrt %387 : vector<8x1xf32>
    %389 = vector.broadcast %388 : vector<8x1xf32> to vector<8x128xf32>
    %390 = arith.mulf %385, %389 : vector<8x128xf32>
    %391 = vector.broadcast %36 : vector<1x128xf32> to vector<8x128xf32>
    %392 = arith.mulf %390, %391 : vector<8x128xf32>
    %393 = vector.broadcast %37 : vector<1x128xf32> to vector<8x128xf32>
    %394 = arith.addf %392, %393 : vector<8x128xf32>
    %395 = arith.index_cast %c5_i32 : i32 to index
    %c0_157 = arith.constant 0 : index
    %c0_158 = arith.constant 0 : index
    %396 = vector.load %arg14[%395, %c0_157, %c0_158] : memref<8x8x128xf32, #tpu.memory_space<vmem>>, vector<1x8x128xf32>
    %397 = vector.shape_cast %396 : vector<1x8x128xf32> to vector<8x128xf32>
    %398 = vector.shape_cast %394 : vector<8x128xf32> to vector<1x8x128xf32>
    tpu.vector_store %arg14[%395, %c0_157, %c0_158], %398 {strides = array<i32>} : memref<8x8x128xf32, #tpu.memory_space<vmem>>, vector<1x8x128xf32>,
    %c6_i32 = arith.constant 6 : i32
    %cst_159 = arith.constant dense<0.000000e+00> : vector<8x128xf32>
    %399 = tpu.matmul %372, %30, %cst_159 {dimension_numbers = #tpu.dot_dimension_numbers<[1], [0], [0], [1], [0, 0, 1, 1], [], []>} : vector<8x128xf32>, vector<128x128xf32>, vector<8x128xf32> -> vector<8x128xf32>
    %cst_160 = arith.constant dense<0.000000e+00> : vector<8x128xf32>
    %400 = tpu.matmul %372, %32, %cst_160 {dimension_numbers = #tpu.dot_dimension_numbers<[1], [0], [0], [1], [0, 0, 1, 1], [], []>} : vector<8x128xf32>, vector<128x128xf32>, vector<8x128xf32> -> vector<8x128xf32>
    %cst_161 = arith.constant dense<0.000000e+00> : vector<8x128xf32>
    %401 = tpu.matmul %372, %34, %cst_161 {dimension_numbers = #tpu.dot_dimension_numbers<[1], [0], [0], [1], [0, 0, 1, 1], [], []>} : vector<8x128xf32>, vector<128x128xf32>, vector<8x128xf32> -> vector<8x128xf32>
    %402 = arith.index_cast %c6_i32 : i32 to index
    %c0_162 = arith.constant 0 : index
    %c0_163 = arith.constant 0 : index
    %403 = vector.load %arg15[%402, %c0_162, %c0_163] : memref<8x8x128xf32, #tpu.memory_space<vmem>>, vector<1x8x128xf32>
    %404 = vector.shape_cast %403 : vector<1x8x128xf32> to vector<8x128xf32>
    %405 = arith.addf %404, %399 : vector<8x128xf32>
    %406 = arith.negf %405 : vector<8x128xf32>
    %407 = math.exp %406 : vector<8x128xf32>
    %cst_164 = arith.constant 1.000000e+00 : f32
    %408 = vector.broadcast %cst_164 : f32 to vector<8x128xf32>
    %409 = arith.addf %408, %407 : vector<8x128xf32>
    %410 = arith.divf %408, %409 : vector<8x128xf32>
    %411 = arith.index_cast %c6_i32 : i32 to index
    %c0_165 = arith.constant 0 : index
    %c0_166 = arith.constant 0 : index
    %412 = vector.load %arg16[%411, %c0_165, %c0_166] : memref<8x8x128xf32, #tpu.memory_space<vmem>>, vector<1x8x128xf32>
    %413 = vector.shape_cast %412 : vector<1x8x128xf32> to vector<8x128xf32>
    %414 = arith.addf %413, %400 : vector<8x128xf32>
    %415 = arith.negf %414 : vector<8x128xf32>
    %416 = math.exp %415 : vector<8x128xf32>
    %cst_167 = arith.constant 1.000000e+00 : f32
    %417 = vector.broadcast %cst_167 : f32 to vector<8x128xf32>
    %418 = arith.addf %417, %416 : vector<8x128xf32>
    %419 = arith.divf %417, %418 : vector<8x128xf32>
    %420 = arith.index_cast %c6_i32 : i32 to index
    %c0_168 = arith.constant 0 : index
    %c0_169 = arith.constant 0 : index
    %421 = vector.load %arg17[%420, %c0_168, %c0_169] : memref<8x8x128xf32, #tpu.memory_space<vmem>>, vector<1x8x128xf32>
    %422 = vector.shape_cast %421 : vector<1x8x128xf32> to vector<8x128xf32>
    %423 = vector.broadcast %35 : vector<1x128xf32> to vector<8x128xf32>
    %424 = arith.addf %401, %423 : vector<8x128xf32>
    %425 = arith.mulf %410, %424 : vector<8x128xf32>
    %426 = arith.addf %422, %425 : vector<8x128xf32>
    %427 = math.tanh %426 : vector<8x128xf32>
    %cst_170 = arith.constant 1.000000e+00 : f32
    %428 = vector.broadcast %cst_170 : f32 to vector<8x128xf32>
    %429 = arith.subf %428, %419 : vector<8x128xf32>
    %430 = arith.mulf %429, %427 : vector<8x128xf32>
    %431 = arith.mulf %419, %372 : vector<8x128xf32>
    %432 = arith.addf %430, %431 : vector<8x128xf32>
    %cst_171 = arith.constant dense<0.000000e+00> : vector<8xf32>
    %433 = vector.multi_reduction <add>, %432, %cst_171 [1] : vector<8x128xf32> to vector<8xf32>
    %434 = vector.shape_cast %433 : vector<8xf32> to vector<8x1xf32>
    %cst_172 = arith.constant 1.562500e-02 : f32
    %435 = vector.broadcast %cst_172 : f32 to vector<8x1xf32>
    %436 = arith.mulf %434, %435 : vector<8x1xf32>
    %437 = arith.mulf %432, %432 : vector<8x128xf32>
    %cst_173 = arith.constant dense<0.000000e+00> : vector<8xf32>
    %438 = vector.multi_reduction <add>, %437, %cst_173 [1] : vector<8x128xf32> to vector<8xf32>
    %439 = vector.shape_cast %438 : vector<8xf32> to vector<8x1xf32>
    %cst_174 = arith.constant 1.562500e-02 : f32
    %440 = vector.broadcast %cst_174 : f32 to vector<8x1xf32>
    %441 = arith.mulf %439, %440 : vector<8x1xf32>
    %442 = arith.mulf %436, %436 : vector<8x1xf32>
    %443 = arith.subf %441, %442 : vector<8x1xf32>
    %444 = vector.broadcast %436 : vector<8x1xf32> to vector<8x128xf32>
    %445 = arith.subf %432, %444 : vector<8x128xf32>
    %cst_175 = arith.constant 9.99999974E-6 : f32
    %446 = vector.broadcast %cst_175 : f32 to vector<8x1xf32>
    %447 = arith.addf %443, %446 : vector<8x1xf32>
    %448 = math.rsqrt %447 : vector<8x1xf32>
    %449 = vector.broadcast %448 : vector<8x1xf32> to vector<8x128xf32>
    %450 = arith.mulf %445, %449 : vector<8x128xf32>
    %451 = vector.broadcast %36 : vector<1x128xf32> to vector<8x128xf32>
    %452 = arith.mulf %450, %451 : vector<8x128xf32>
    %453 = vector.broadcast %37 : vector<1x128xf32> to vector<8x128xf32>
    %454 = arith.addf %452, %453 : vector<8x128xf32>
    %455 = arith.index_cast %c6_i32 : i32 to index
    %c0_176 = arith.constant 0 : index
    %c0_177 = arith.constant 0 : index
    %456 = vector.load %arg14[%455, %c0_176, %c0_177] : memref<8x8x128xf32, #tpu.memory_space<vmem>>, vector<1x8x128xf32>
    %457 = vector.shape_cast %456 : vector<1x8x128xf32> to vector<8x128xf32>
    %458 = vector.shape_cast %454 : vector<8x128xf32> to vector<1x8x128xf32>
    tpu.vector_store %arg14[%455, %c0_176, %c0_177], %458 {strides = array<i32>} : memref<8x8x128xf32, #tpu.memory_space<vmem>>, vector<1x8x128xf32>,
    %c7_i32 = arith.constant 7 : i32
    %cst_178 = arith.constant dense<0.000000e+00> : vector<8x128xf32>
    %459 = tpu.matmul %432, %30, %cst_178 {dimension_numbers = #tpu.dot_dimension_numbers<[1], [0], [0], [1], [0, 0, 1, 1], [], []>} : vector<8x128xf32>, vector<128x128xf32>, vector<8x128xf32> -> vector<8x128xf32>
    %cst_179 = arith.constant dense<0.000000e+00> : vector<8x128xf32>
    %460 = tpu.matmul %432, %32, %cst_179 {dimension_numbers = #tpu.dot_dimension_numbers<[1], [0], [0], [1], [0, 0, 1, 1], [], []>} : vector<8x128xf32>, vector<128x128xf32>, vector<8x128xf32> -> vector<8x128xf32>
    %cst_180 = arith.constant dense<0.000000e+00> : vector<8x128xf32>
    %461 = tpu.matmul %432, %34, %cst_180 {dimension_numbers = #tpu.dot_dimension_numbers<[1], [0], [0], [1], [0, 0, 1, 1], [], []>} : vector<8x128xf32>, vector<128x128xf32>, vector<8x128xf32> -> vector<8x128xf32>
    %462 = arith.index_cast %c7_i32 : i32 to index
    %c0_181 = arith.constant 0 : index
    %c0_182 = arith.constant 0 : index
    %463 = vector.load %arg15[%462, %c0_181, %c0_182] : memref<8x8x128xf32, #tpu.memory_space<vmem>>, vector<1x8x128xf32>
    %464 = vector.shape_cast %463 : vector<1x8x128xf32> to vector<8x128xf32>
    %465 = arith.addf %464, %459 : vector<8x128xf32>
    %466 = arith.negf %465 : vector<8x128xf32>
    %467 = math.exp %466 : vector<8x128xf32>
    %cst_183 = arith.constant 1.000000e+00 : f32
    %468 = vector.broadcast %cst_183 : f32 to vector<8x128xf32>
    %469 = arith.addf %468, %467 : vector<8x128xf32>
    %470 = arith.divf %468, %469 : vector<8x128xf32>
    %471 = arith.index_cast %c7_i32 : i32 to index
    %c0_184 = arith.constant 0 : index
    %c0_185 = arith.constant 0 : index
    %472 = vector.load %arg16[%471, %c0_184, %c0_185] : memref<8x8x128xf32, #tpu.memory_space<vmem>>, vector<1x8x128xf32>
    %473 = vector.shape_cast %472 : vector<1x8x128xf32> to vector<8x128xf32>
    %474 = arith.addf %473, %460 : vector<8x128xf32>
    %475 = arith.negf %474 : vector<8x128xf32>
    %476 = math.exp %475 : vector<8x128xf32>
    %cst_186 = arith.constant 1.000000e+00 : f32
    %477 = vector.broadcast %cst_186 : f32 to vector<8x128xf32>
    %478 = arith.addf %477, %476 : vector<8x128xf32>
    %479 = arith.divf %477, %478 : vector<8x128xf32>
    %480 = arith.index_cast %c7_i32 : i32 to index
    %c0_187 = arith.constant 0 : index
    %c0_188 = arith.constant 0 : index
    %481 = vector.load %arg17[%480, %c0_187, %c0_188] : memref<8x8x128xf32, #tpu.memory_space<vmem>>, vector<1x8x128xf32>
    %482 = vector.shape_cast %481 : vector<1x8x128xf32> to vector<8x128xf32>
    %483 = vector.broadcast %35 : vector<1x128xf32> to vector<8x128xf32>
    %484 = arith.addf %461, %483 : vector<8x128xf32>
    %485 = arith.mulf %470, %484 : vector<8x128xf32>
    %486 = arith.addf %482, %485 : vector<8x128xf32>
    %487 = math.tanh %486 : vector<8x128xf32>
    %cst_189 = arith.constant 1.000000e+00 : f32
    %488 = vector.broadcast %cst_189 : f32 to vector<8x128xf32>
    %489 = arith.subf %488, %479 : vector<8x128xf32>
    %490 = arith.mulf %489, %487 : vector<8x128xf32>
    %491 = arith.mulf %479, %432 : vector<8x128xf32>
    %492 = arith.addf %490, %491 : vector<8x128xf32>
    %cst_190 = arith.constant dense<0.000000e+00> : vector<8xf32>
    %493 = vector.multi_reduction <add>, %492, %cst_190 [1] : vector<8x128xf32> to vector<8xf32>
    %494 = vector.shape_cast %493 : vector<8xf32> to vector<8x1xf32>
    %cst_191 = arith.constant 1.562500e-02 : f32
    %495 = vector.broadcast %cst_191 : f32 to vector<8x1xf32>
    %496 = arith.mulf %494, %495 : vector<8x1xf32>
    %497 = arith.mulf %492, %492 : vector<8x128xf32>
    %cst_192 = arith.constant dense<0.000000e+00> : vector<8xf32>
    %498 = vector.multi_reduction <add>, %497, %cst_192 [1] : vector<8x128xf32> to vector<8xf32>
    %499 = vector.shape_cast %498 : vector<8xf32> to vector<8x1xf32>
    %cst_193 = arith.constant 1.562500e-02 : f32
    %500 = vector.broadcast %cst_193 : f32 to vector<8x1xf32>
    %501 = arith.mulf %499, %500 : vector<8x1xf32>
    %502 = arith.mulf %496, %496 : vector<8x1xf32>
    %503 = arith.subf %501, %502 : vector<8x1xf32>
    %504 = vector.broadcast %496 : vector<8x1xf32> to vector<8x128xf32>
    %505 = arith.subf %492, %504 : vector<8x128xf32>
    %cst_194 = arith.constant 9.99999974E-6 : f32
    %506 = vector.broadcast %cst_194 : f32 to vector<8x1xf32>
    %507 = arith.addf %503, %506 : vector<8x1xf32>
    %508 = math.rsqrt %507 : vector<8x1xf32>
    %509 = vector.broadcast %508 : vector<8x1xf32> to vector<8x128xf32>
    %510 = arith.mulf %505, %509 : vector<8x128xf32>
    %511 = vector.broadcast %36 : vector<1x128xf32> to vector<8x128xf32>
    %512 = arith.mulf %510, %511 : vector<8x128xf32>
    %513 = vector.broadcast %37 : vector<1x128xf32> to vector<8x128xf32>
    %514 = arith.addf %512, %513 : vector<8x128xf32>
    %515 = arith.index_cast %c7_i32 : i32 to index
    %c0_195 = arith.constant 0 : index
    %c0_196 = arith.constant 0 : index
    %516 = vector.load %arg14[%515, %c0_195, %c0_196] : memref<8x8x128xf32, #tpu.memory_space<vmem>>, vector<1x8x128xf32>
    %517 = vector.shape_cast %516 : vector<1x8x128xf32> to vector<8x128xf32>
    %518 = vector.shape_cast %514 : vector<8x128xf32> to vector<1x8x128xf32>
    tpu.vector_store %arg14[%515, %c0_195, %c0_196], %518 {strides = array<i32>} : memref<8x8x128xf32, #tpu.memory_space<vmem>>, vector<1x8x128xf32>,
    %c8_i32 = arith.constant 8 : i32
    %c0_197 = arith.constant 0 : index
    %c0_198 = arith.constant 0 : index
    %c0_199 = arith.constant 0 : index
    %519 = vector.load %arg14[%c0_197, %c0_198, %c0_199] : memref<8x8x128xf32, #tpu.memory_space<vmem>>, vector<8x8x128xf32>
    %520 = vector.shape_cast %519 : vector<8x8x128xf32> to vector<64x128xf32>
    %c0_200 = arith.constant 0 : index
    %c0_201 = arith.constant 0 : index
    %c0_202 = arith.constant 0 : index
    %521 = vector.load %arg8[%c0_200, %c0_201, %c0_202] : memref<3x128x128xf32, #tpu.memory_space<vmem>>, vector<1x128x128xf32>
    %522 = vector.shape_cast %521 : vector<1x128x128xf32> to vector<128x128xf32>
    %cst_203 = arith.constant dense<0.000000e+00> : vector<64x128xf32>
    %523 = tpu.matmul %520, %522, %cst_203 {dimension_numbers = #tpu.dot_dimension_numbers<[1], [0], [0], [1], [0, 0, 1, 1], [], []>} : vector<64x128xf32>, vector<128x128xf32>, vector<64x128xf32> -> vector<64x128xf32>
    %c0_204 = arith.constant 0 : index
    %c0_205 = arith.constant 0 : index
    %c0_206 = arith.constant 0 : index
    %524 = vector.load %arg10[%c0_204, %c0_205, %c0_206] : memref<3x1x128xf32, #tpu.memory_space<vmem>>, vector<1x1x128xf32>
    %525 = vector.shape_cast %524 : vector<1x1x128xf32> to vector<1x128xf32>
    %526 = vector.broadcast %525 : vector<1x128xf32> to vector<64x128xf32>
    %527 = arith.addf %523, %526 : vector<64x128xf32>
    %528 = vector.shape_cast %527 : vector<64x128xf32> to vector<8x8x128xf32>
    %c0_207 = arith.constant 0 : index
    %c0_208 = arith.constant 0 : index
    %c0_209 = arith.constant 0 : index
    %529 = vector.load %arg15[%c0_207, %c0_208, %c0_209] : memref<8x8x128xf32, #tpu.memory_space<vmem>>, vector<8x8x128xf32>
    tpu.vector_store %arg15[%c0_207, %c0_208, %c0_209], %528 {strides = array<i32>} : memref<8x8x128xf32, #tpu.memory_space<vmem>>, vector<8x8x128xf32>,
    %c1_210 = arith.constant 1 : index
    %c0_211 = arith.constant 0 : index
    %c0_212 = arith.constant 0 : index
    %530 = vector.load %arg8[%c1_210, %c0_211, %c0_212] : memref<3x128x128xf32, #tpu.memory_space<vmem>>, vector<1x128x128xf32>
    %531 = vector.shape_cast %530 : vector<1x128x128xf32> to vector<128x128xf32>
    %cst_213 = arith.constant dense<0.000000e+00> : vector<64x128xf32>
    %532 = tpu.matmul %520, %531, %cst_213 {dimension_numbers = #tpu.dot_dimension_numbers<[1], [0], [0], [1], [0, 0, 1, 1], [], []>} : vector<64x128xf32>, vector<128x128xf32>, vector<64x128xf32> -> vector<64x128xf32>
    %c1_214 = arith.constant 1 : index
    %c0_215 = arith.constant 0 : index
    %c0_216 = arith.constant 0 : index
    %533 = vector.load %arg10[%c1_214, %c0_215, %c0_216] : memref<3x1x128xf32, #tpu.memory_space<vmem>>, vector<1x1x128xf32>
    %534 = vector.shape_cast %533 : vector<1x1x128xf32> to vector<1x128xf32>
    %535 = vector.broadcast %534 : vector<1x128xf32> to vector<64x128xf32>
    %536 = arith.addf %532, %535 : vector<64x128xf32>
    %537 = vector.shape_cast %536 : vector<64x128xf32> to vector<8x8x128xf32>
    %c0_217 = arith.constant 0 : index
    %c0_218 = arith.constant 0 : index
    %c0_219 = arith.constant 0 : index
    %538 = vector.load %arg16[%c0_217, %c0_218, %c0_219] : memref<8x8x128xf32, #tpu.memory_space<vmem>>, vector<8x8x128xf32>
    tpu.vector_store %arg16[%c0_217, %c0_218, %c0_219], %537 {strides = array<i32>} : memref<8x8x128xf32, #tpu.memory_space<vmem>>, vector<8x8x128xf32>,
    %c2_220 = arith.constant 2 : index
    %c0_221 = arith.constant 0 : index
    %c0_222 = arith.constant 0 : index
    %539 = vector.load %arg8[%c2_220, %c0_221, %c0_222] : memref<3x128x128xf32, #tpu.memory_space<vmem>>, vector<1x128x128xf32>
    %540 = vector.shape_cast %539 : vector<1x128x128xf32> to vector<128x128xf32>
    %cst_223 = arith.constant dense<0.000000e+00> : vector<64x128xf32>
    %541 = tpu.matmul %520, %540, %cst_223 {dimension_numbers = #tpu.dot_dimension_numbers<[1], [0], [0], [1], [0, 0, 1, 1], [], []>} : vector<64x128xf32>, vector<128x128xf32>, vector<64x128xf32> -> vector<64x128xf32>
    %c2_224 = arith.constant 2 : index
    %c0_225 = arith.constant 0 : index
    %c0_226 = arith.constant 0 : index
    %542 = vector.load %arg10[%c2_224, %c0_225, %c0_226] : memref<3x1x128xf32, #tpu.memory_space<vmem>>, vector<1x1x128xf32>
    %543 = vector.shape_cast %542 : vector<1x1x128xf32> to vector<1x128xf32>
    %544 = vector.broadcast %543 : vector<1x128xf32> to vector<64x128xf32>
    %545 = arith.addf %541, %544 : vector<64x128xf32>
    %546 = vector.shape_cast %545 : vector<64x128xf32> to vector<8x8x128xf32>
    %c0_227 = arith.constant 0 : index
    %c0_228 = arith.constant 0 : index
    %c0_229 = arith.constant 0 : index
    %547 = vector.load %arg17[%c0_227, %c0_228, %c0_229] : memref<8x8x128xf32, #tpu.memory_space<vmem>>, vector<8x8x128xf32>
    tpu.vector_store %arg17[%c0_227, %c0_228, %c0_229], %546 {strides = array<i32>} : memref<8x8x128xf32, #tpu.memory_space<vmem>>, vector<8x8x128xf32>,
    %c0_230 = arith.constant 0 : index
    %c0_231 = arith.constant 0 : index
    %c0_232 = arith.constant 0 : index
    %548 = vector.load %arg9[%c0_230, %c0_231, %c0_232] : memref<3x128x128xf32, #tpu.memory_space<vmem>>, vector<1x128x128xf32>
    %549 = vector.shape_cast %548 : vector<1x128x128xf32> to vector<128x128xf32>
    %c1_233 = arith.constant 1 : index
    %c0_234 = arith.constant 0 : index
    %c0_235 = arith.constant 0 : index
    %550 = vector.load %arg9[%c1_233, %c0_234, %c0_235] : memref<3x128x128xf32, #tpu.memory_space<vmem>>, vector<1x128x128xf32>
    %551 = vector.shape_cast %550 : vector<1x128x128xf32> to vector<128x128xf32>
    %c2_236 = arith.constant 2 : index
    %c0_237 = arith.constant 0 : index
    %c0_238 = arith.constant 0 : index
    %552 = vector.load %arg9[%c2_236, %c0_237, %c0_238] : memref<3x128x128xf32, #tpu.memory_space<vmem>>, vector<1x128x128xf32>
    %553 = vector.shape_cast %552 : vector<1x128x128xf32> to vector<128x128xf32>
    %c0_239 = arith.constant 0 : index
    %c0_240 = arith.constant 0 : index
    %554 = vector.load %arg11[%c0_239, %c0_240] : memref<1x128xf32, #tpu.memory_space<vmem>>, vector<1x128xf32>
    %c0_241 = arith.constant 0 : index
    %c0_242 = arith.constant 0 : index
    %555 = vector.load %arg12[%c0_241, %c0_242] : memref<1x128xf32, #tpu.memory_space<vmem>>, vector<1x128xf32>
    %c0_243 = arith.constant 0 : index
    %c0_244 = arith.constant 0 : index
    %556 = vector.load %arg13[%c0_243, %c0_244] : memref<1x128xf32, #tpu.memory_space<vmem>>, vector<1x128xf32>
    %cst_245 = arith.constant 0.000000e+00 : f32
    %557 = vector.broadcast %cst_245 : f32 to vector<8x128xf32>
    %c0_i32_246 = arith.constant 0 : i32
    %cst_247 = arith.constant dense<0.000000e+00> : vector<8x128xf32>
    %558 = tpu.matmul %557, %549, %cst_247 {dimension_numbers = #tpu.dot_dimension_numbers<[1], [0], [0], [1], [0, 0, 1, 1], [], []>} : vector<8x128xf32>, vector<128x128xf32>, vector<8x128xf32> -> vector<8x128xf32>
    %cst_248 = arith.constant dense<0.000000e+00> : vector<8x128xf32>
    %559 = tpu.matmul %557, %551, %cst_248 {dimension_numbers = #tpu.dot_dimension_numbers<[1], [0], [0], [1], [0, 0, 1, 1], [], []>} : vector<8x128xf32>, vector<128x128xf32>, vector<8x128xf32> -> vector<8x128xf32>
    %cst_249 = arith.constant dense<0.000000e+00> : vector<8x128xf32>
    %560 = tpu.matmul %557, %553, %cst_249 {dimension_numbers = #tpu.dot_dimension_numbers<[1], [0], [0], [1], [0, 0, 1, 1], [], []>} : vector<8x128xf32>, vector<128x128xf32>, vector<8x128xf32> -> vector<8x128xf32>
    %561 = arith.index_cast %c0_i32_246 : i32 to index
    %c0_250 = arith.constant 0 : index
    %c0_251 = arith.constant 0 : index
    %562 = vector.load %arg15[%561, %c0_250, %c0_251] : memref<8x8x128xf32, #tpu.memory_space<vmem>>, vector<1x8x128xf32>
    %563 = vector.shape_cast %562 : vector<1x8x128xf32> to vector<8x128xf32>
    %564 = arith.addf %563, %558 : vector<8x128xf32>
    %565 = arith.negf %564 : vector<8x128xf32>
    %566 = math.exp %565 : vector<8x128xf32>
    %cst_252 = arith.constant 1.000000e+00 : f32
    %567 = vector.broadcast %cst_252 : f32 to vector<8x128xf32>
    %568 = arith.addf %567, %566 : vector<8x128xf32>
    %569 = arith.divf %567, %568 : vector<8x128xf32>
    %570 = arith.index_cast %c0_i32_246 : i32 to index
    %c0_253 = arith.constant 0 : index
    %c0_254 = arith.constant 0 : index
    %571 = vector.load %arg16[%570, %c0_253, %c0_254] : memref<8x8x128xf32, #tpu.memory_space<vmem>>, vector<1x8x128xf32>
    %572 = vector.shape_cast %571 : vector<1x8x128xf32> to vector<8x128xf32>
    %573 = arith.addf %572, %559 : vector<8x128xf32>
    %574 = arith.negf %573 : vector<8x128xf32>
    %575 = math.exp %574 : vector<8x128xf32>
    %cst_255 = arith.constant 1.000000e+00 : f32
    %576 = vector.broadcast %cst_255 : f32 to vector<8x128xf32>
    %577 = arith.addf %576, %575 : vector<8x128xf32>
    %578 = arith.divf %576, %577 : vector<8x128xf32>
    %579 = arith.index_cast %c0_i32_246 : i32 to index
    %c0_256 = arith.constant 0 : index
    %c0_257 = arith.constant 0 : index
    %580 = vector.load %arg17[%579, %c0_256, %c0_257] : memref<8x8x128xf32, #tpu.memory_space<vmem>>, vector<1x8x128xf32>
    %581 = vector.shape_cast %580 : vector<1x8x128xf32> to vector<8x128xf32>
    %582 = vector.broadcast %554 : vector<1x128xf32> to vector<8x128xf32>
    %583 = arith.addf %560, %582 : vector<8x128xf32>
    %584 = arith.mulf %569, %583 : vector<8x128xf32>
    %585 = arith.addf %581, %584 : vector<8x128xf32>
    %586 = math.tanh %585 : vector<8x128xf32>
    %cst_258 = arith.constant 1.000000e+00 : f32
    %587 = vector.broadcast %cst_258 : f32 to vector<8x128xf32>
    %588 = arith.subf %587, %578 : vector<8x128xf32>
    %589 = arith.mulf %588, %586 : vector<8x128xf32>
    %590 = arith.mulf %578, %557 : vector<8x128xf32>
    %591 = arith.addf %589, %590 : vector<8x128xf32>
    %cst_259 = arith.constant dense<0.000000e+00> : vector<8xf32>
    %592 = vector.multi_reduction <add>, %591, %cst_259 [1] : vector<8x128xf32> to vector<8xf32>
    %593 = vector.shape_cast %592 : vector<8xf32> to vector<8x1xf32>
    %cst_260 = arith.constant 1.562500e-02 : f32
    %594 = vector.broadcast %cst_260 : f32 to vector<8x1xf32>
    %595 = arith.mulf %593, %594 : vector<8x1xf32>
    %596 = arith.mulf %591, %591 : vector<8x128xf32>
    %cst_261 = arith.constant dense<0.000000e+00> : vector<8xf32>
    %597 = vector.multi_reduction <add>, %596, %cst_261 [1] : vector<8x128xf32> to vector<8xf32>
    %598 = vector.shape_cast %597 : vector<8xf32> to vector<8x1xf32>
    %cst_262 = arith.constant 1.562500e-02 : f32
    %599 = vector.broadcast %cst_262 : f32 to vector<8x1xf32>
    %600 = arith.mulf %598, %599 : vector<8x1xf32>
    %601 = arith.mulf %595, %595 : vector<8x1xf32>
    %602 = arith.subf %600, %601 : vector<8x1xf32>
    %603 = vector.broadcast %595 : vector<8x1xf32> to vector<8x128xf32>
    %604 = arith.subf %591, %603 : vector<8x128xf32>
    %cst_263 = arith.constant 9.99999974E-6 : f32
    %605 = vector.broadcast %cst_263 : f32 to vector<8x1xf32>
    %606 = arith.addf %602, %605 : vector<8x1xf32>
    %607 = math.rsqrt %606 : vector<8x1xf32>
    %608 = vector.broadcast %607 : vector<8x1xf32> to vector<8x128xf32>
    %609 = arith.mulf %604, %608 : vector<8x128xf32>
    %610 = vector.broadcast %555 : vector<1x128xf32> to vector<8x128xf32>
    %611 = arith.mulf %609, %610 : vector<8x128xf32>
    %612 = vector.broadcast %556 : vector<1x128xf32> to vector<8x128xf32>
    %613 = arith.addf %611, %612 : vector<8x128xf32>
    %614 = arith.index_cast %c0_i32_246 : i32 to index
    %c0_264 = arith.constant 0 : index
    %c0_265 = arith.constant 0 : index
    %615 = vector.load %arg14[%614, %c0_264, %c0_265] : memref<8x8x128xf32, #tpu.memory_space<vmem>>, vector<1x8x128xf32>
    %616 = vector.shape_cast %615 : vector<1x8x128xf32> to vector<8x128xf32>
    %617 = vector.shape_cast %613 : vector<8x128xf32> to vector<1x8x128xf32>
    tpu.vector_store %arg14[%614, %c0_264, %c0_265], %617 {strides = array<i32>} : memref<8x8x128xf32, #tpu.memory_space<vmem>>, vector<1x8x128xf32>,
    %c1_i32_266 = arith.constant 1 : i32
    %cst_267 = arith.constant dense<0.000000e+00> : vector<8x128xf32>
    %618 = tpu.matmul %591, %549, %cst_267 {dimension_numbers = #tpu.dot_dimension_numbers<[1], [0], [0], [1], [0, 0, 1, 1], [], []>} : vector<8x128xf32>, vector<128x128xf32>, vector<8x128xf32> -> vector<8x128xf32>
    %cst_268 = arith.constant dense<0.000000e+00> : vector<8x128xf32>
    %619 = tpu.matmul %591, %551, %cst_268 {dimension_numbers = #tpu.dot_dimension_numbers<[1], [0], [0], [1], [0, 0, 1, 1], [], []>} : vector<8x128xf32>, vector<128x128xf32>, vector<8x128xf32> -> vector<8x128xf32>
    %cst_269 = arith.constant dense<0.000000e+00> : vector<8x128xf32>
    %620 = tpu.matmul %591, %553, %cst_269 {dimension_numbers = #tpu.dot_dimension_numbers<[1], [0], [0], [1], [0, 0, 1, 1], [], []>} : vector<8x128xf32>, vector<128x128xf32>, vector<8x128xf32> -> vector<8x128xf32>
    %621 = arith.index_cast %c1_i32_266 : i32 to index
    %c0_270 = arith.constant 0 : index
    %c0_271 = arith.constant 0 : index
    %622 = vector.load %arg15[%621, %c0_270, %c0_271] : memref<8x8x128xf32, #tpu.memory_space<vmem>>, vector<1x8x128xf32>
    %623 = vector.shape_cast %622 : vector<1x8x128xf32> to vector<8x128xf32>
    %624 = arith.addf %623, %618 : vector<8x128xf32>
    %625 = arith.negf %624 : vector<8x128xf32>
    %626 = math.exp %625 : vector<8x128xf32>
    %cst_272 = arith.constant 1.000000e+00 : f32
    %627 = vector.broadcast %cst_272 : f32 to vector<8x128xf32>
    %628 = arith.addf %627, %626 : vector<8x128xf32>
    %629 = arith.divf %627, %628 : vector<8x128xf32>
    %630 = arith.index_cast %c1_i32_266 : i32 to index
    %c0_273 = arith.constant 0 : index
    %c0_274 = arith.constant 0 : index
    %631 = vector.load %arg16[%630, %c0_273, %c0_274] : memref<8x8x128xf32, #tpu.memory_space<vmem>>, vector<1x8x128xf32>
    %632 = vector.shape_cast %631 : vector<1x8x128xf32> to vector<8x128xf32>
    %633 = arith.addf %632, %619 : vector<8x128xf32>
    %634 = arith.negf %633 : vector<8x128xf32>
    %635 = math.exp %634 : vector<8x128xf32>
    %cst_275 = arith.constant 1.000000e+00 : f32
    %636 = vector.broadcast %cst_275 : f32 to vector<8x128xf32>
    %637 = arith.addf %636, %635 : vector<8x128xf32>
    %638 = arith.divf %636, %637 : vector<8x128xf32>
    %639 = arith.index_cast %c1_i32_266 : i32 to index
    %c0_276 = arith.constant 0 : index
    %c0_277 = arith.constant 0 : index
    %640 = vector.load %arg17[%639, %c0_276, %c0_277] : memref<8x8x128xf32, #tpu.memory_space<vmem>>, vector<1x8x128xf32>
    %641 = vector.shape_cast %640 : vector<1x8x128xf32> to vector<8x128xf32>
    %642 = vector.broadcast %554 : vector<1x128xf32> to vector<8x128xf32>
    %643 = arith.addf %620, %642 : vector<8x128xf32>
    %644 = arith.mulf %629, %643 : vector<8x128xf32>
    %645 = arith.addf %641, %644 : vector<8x128xf32>
    %646 = math.tanh %645 : vector<8x128xf32>
    %cst_278 = arith.constant 1.000000e+00 : f32
    %647 = vector.broadcast %cst_278 : f32 to vector<8x128xf32>
    %648 = arith.subf %647, %638 : vector<8x128xf32>
    %649 = arith.mulf %648, %646 : vector<8x128xf32>
    %650 = arith.mulf %638, %591 : vector<8x128xf32>
    %651 = arith.addf %649, %650 : vector<8x128xf32>
    %cst_279 = arith.constant dense<0.000000e+00> : vector<8xf32>
    %652 = vector.multi_reduction <add>, %651, %cst_279 [1] : vector<8x128xf32> to vector<8xf32>
    %653 = vector.shape_cast %652 : vector<8xf32> to vector<8x1xf32>
    %cst_280 = arith.constant 1.562500e-02 : f32
    %654 = vector.broadcast %cst_280 : f32 to vector<8x1xf32>
    %655 = arith.mulf %653, %654 : vector<8x1xf32>
    %656 = arith.mulf %651, %651 : vector<8x128xf32>
    %cst_281 = arith.constant dense<0.000000e+00> : vector<8xf32>
    %657 = vector.multi_reduction <add>, %656, %cst_281 [1] : vector<8x128xf32> to vector<8xf32>
    %658 = vector.shape_cast %657 : vector<8xf32> to vector<8x1xf32>
    %cst_282 = arith.constant 1.562500e-02 : f32
    %659 = vector.broadcast %cst_282 : f32 to vector<8x1xf32>
    %660 = arith.mulf %658, %659 : vector<8x1xf32>
    %661 = arith.mulf %655, %655 : vector<8x1xf32>
    %662 = arith.subf %660, %661 : vector<8x1xf32>
    %663 = vector.broadcast %655 : vector<8x1xf32> to vector<8x128xf32>
    %664 = arith.subf %651, %663 : vector<8x128xf32>
    %cst_283 = arith.constant 9.99999974E-6 : f32
    %665 = vector.broadcast %cst_283 : f32 to vector<8x1xf32>
    %666 = arith.addf %662, %665 : vector<8x1xf32>
    %667 = math.rsqrt %666 : vector<8x1xf32>
    %668 = vector.broadcast %667 : vector<8x1xf32> to vector<8x128xf32>
    %669 = arith.mulf %664, %668 : vector<8x128xf32>
    %670 = vector.broadcast %555 : vector<1x128xf32> to vector<8x128xf32>
    %671 = arith.mulf %669, %670 : vector<8x128xf32>
    %672 = vector.broadcast %556 : vector<1x128xf32> to vector<8x128xf32>
    %673 = arith.addf %671, %672 : vector<8x128xf32>
    %674 = arith.index_cast %c1_i32_266 : i32 to index
    %c0_284 = arith.constant 0 : index
    %c0_285 = arith.constant 0 : index
    %675 = vector.load %arg14[%674, %c0_284, %c0_285] : memref<8x8x128xf32, #tpu.memory_space<vmem>>, vector<1x8x128xf32>
    %676 = vector.shape_cast %675 : vector<1x8x128xf32> to vector<8x128xf32>
    %677 = vector.shape_cast %673 : vector<8x128xf32> to vector<1x8x128xf32>
    tpu.vector_store %arg14[%674, %c0_284, %c0_285], %677 {strides = array<i32>} : memref<8x8x128xf32, #tpu.memory_space<vmem>>, vector<1x8x128xf32>,
    %c2_i32_286 = arith.constant 2 : i32
    %cst_287 = arith.constant dense<0.000000e+00> : vector<8x128xf32>
    %678 = tpu.matmul %651, %549, %cst_287 {dimension_numbers = #tpu.dot_dimension_numbers<[1], [0], [0], [1], [0, 0, 1, 1], [], []>} : vector<8x128xf32>, vector<128x128xf32>, vector<8x128xf32> -> vector<8x128xf32>
    %cst_288 = arith.constant dense<0.000000e+00> : vector<8x128xf32>
    %679 = tpu.matmul %651, %551, %cst_288 {dimension_numbers = #tpu.dot_dimension_numbers<[1], [0], [0], [1], [0, 0, 1, 1], [], []>} : vector<8x128xf32>, vector<128x128xf32>, vector<8x128xf32> -> vector<8x128xf32>
    %cst_289 = arith.constant dense<0.000000e+00> : vector<8x128xf32>
    %680 = tpu.matmul %651, %553, %cst_289 {dimension_numbers = #tpu.dot_dimension_numbers<[1], [0], [0], [1], [0, 0, 1, 1], [], []>} : vector<8x128xf32>, vector<128x128xf32>, vector<8x128xf32> -> vector<8x128xf32>
    %681 = arith.index_cast %c2_i32_286 : i32 to index
    %c0_290 = arith.constant 0 : index
    %c0_291 = arith.constant 0 : index
    %682 = vector.load %arg15[%681, %c0_290, %c0_291] : memref<8x8x128xf32, #tpu.memory_space<vmem>>, vector<1x8x128xf32>
    %683 = vector.shape_cast %682 : vector<1x8x128xf32> to vector<8x128xf32>
    %684 = arith.addf %683, %678 : vector<8x128xf32>
    %685 = arith.negf %684 : vector<8x128xf32>
    %686 = math.exp %685 : vector<8x128xf32>
    %cst_292 = arith.constant 1.000000e+00 : f32
    %687 = vector.broadcast %cst_292 : f32 to vector<8x128xf32>
    %688 = arith.addf %687, %686 : vector<8x128xf32>
    %689 = arith.divf %687, %688 : vector<8x128xf32>
    %690 = arith.index_cast %c2_i32_286 : i32 to index
    %c0_293 = arith.constant 0 : index
    %c0_294 = arith.constant 0 : index
    %691 = vector.load %arg16[%690, %c0_293, %c0_294] : memref<8x8x128xf32, #tpu.memory_space<vmem>>, vector<1x8x128xf32>
    %692 = vector.shape_cast %691 : vector<1x8x128xf32> to vector<8x128xf32>
    %693 = arith.addf %692, %679 : vector<8x128xf32>
    %694 = arith.negf %693 : vector<8x128xf32>
    %695 = math.exp %694 : vector<8x128xf32>
    %cst_295 = arith.constant 1.000000e+00 : f32
    %696 = vector.broadcast %cst_295 : f32 to vector<8x128xf32>
    %697 = arith.addf %696, %695 : vector<8x128xf32>
    %698 = arith.divf %696, %697 : vector<8x128xf32>
    %699 = arith.index_cast %c2_i32_286 : i32 to index
    %c0_296 = arith.constant 0 : index
    %c0_297 = arith.constant 0 : index
    %700 = vector.load %arg17[%699, %c0_296, %c0_297] : memref<8x8x128xf32, #tpu.memory_space<vmem>>, vector<1x8x128xf32>
    %701 = vector.shape_cast %700 : vector<1x8x128xf32> to vector<8x128xf32>
    %702 = vector.broadcast %554 : vector<1x128xf32> to vector<8x128xf32>
    %703 = arith.addf %680, %702 : vector<8x128xf32>
    %704 = arith.mulf %689, %703 : vector<8x128xf32>
    %705 = arith.addf %701, %704 : vector<8x128xf32>
    %706 = math.tanh %705 : vector<8x128xf32>
    %cst_298 = arith.constant 1.000000e+00 : f32
    %707 = vector.broadcast %cst_298 : f32 to vector<8x128xf32>
    %708 = arith.subf %707, %698 : vector<8x128xf32>
    %709 = arith.mulf %708, %706 : vector<8x128xf32>
    %710 = arith.mulf %698, %651 : vector<8x128xf32>
    %711 = arith.addf %709, %710 : vector<8x128xf32>
    %cst_299 = arith.constant dense<0.000000e+00> : vector<8xf32>
    %712 = vector.multi_reduction <add>, %711, %cst_299 [1] : vector<8x128xf32> to vector<8xf32>
    %713 = vector.shape_cast %712 : vector<8xf32> to vector<8x1xf32>
    %cst_300 = arith.constant 1.562500e-02 : f32
    %714 = vector.broadcast %cst_300 : f32 to vector<8x1xf32>
    %715 = arith.mulf %713, %714 : vector<8x1xf32>
    %716 = arith.mulf %711, %711 : vector<8x128xf32>
    %cst_301 = arith.constant dense<0.000000e+00> : vector<8xf32>
    %717 = vector.multi_reduction <add>, %716, %cst_301 [1] : vector<8x128xf32> to vector<8xf32>
    %718 = vector.shape_cast %717 : vector<8xf32> to vector<8x1xf32>
    %cst_302 = arith.constant 1.562500e-02 : f32
    %719 = vector.broadcast %cst_302 : f32 to vector<8x1xf32>
    %720 = arith.mulf %718, %719 : vector<8x1xf32>
    %721 = arith.mulf %715, %715 : vector<8x1xf32>
    %722 = arith.subf %720, %721 : vector<8x1xf32>
    %723 = vector.broadcast %715 : vector<8x1xf32> to vector<8x128xf32>
    %724 = arith.subf %711, %723 : vector<8x128xf32>
    %cst_303 = arith.constant 9.99999974E-6 : f32
    %725 = vector.broadcast %cst_303 : f32 to vector<8x1xf32>
    %726 = arith.addf %722, %725 : vector<8x1xf32>
    %727 = math.rsqrt %726 : vector<8x1xf32>
    %728 = vector.broadcast %727 : vector<8x1xf32> to vector<8x128xf32>
    %729 = arith.mulf %724, %728 : vector<8x128xf32>
    %730 = vector.broadcast %555 : vector<1x128xf32> to vector<8x128xf32>
    %731 = arith.mulf %729, %730 : vector<8x128xf32>
    %732 = vector.broadcast %556 : vector<1x128xf32> to vector<8x128xf32>
    %733 = arith.addf %731, %732 : vector<8x128xf32>
    %734 = arith.index_cast %c2_i32_286 : i32 to index
    %c0_304 = arith.constant 0 : index
    %c0_305 = arith.constant 0 : index
    %735 = vector.load %arg14[%734, %c0_304, %c0_305] : memref<8x8x128xf32, #tpu.memory_space<vmem>>, vector<1x8x128xf32>
    %736 = vector.shape_cast %735 : vector<1x8x128xf32> to vector<8x128xf32>
    %737 = vector.shape_cast %733 : vector<8x128xf32> to vector<1x8x128xf32>
    tpu.vector_store %arg14[%734, %c0_304, %c0_305], %737 {strides = array<i32>} : memref<8x8x128xf32, #tpu.memory_space<vmem>>, vector<1x8x128xf32>,
    %c3_i32_306 = arith.constant 3 : i32
    %cst_307 = arith.constant dense<0.000000e+00> : vector<8x128xf32>
    %738 = tpu.matmul %711, %549, %cst_307 {dimension_numbers = #tpu.dot_dimension_numbers<[1], [0], [0], [1], [0, 0, 1, 1], [], []>} : vector<8x128xf32>, vector<128x128xf32>, vector<8x128xf32> -> vector<8x128xf32>
    %cst_308 = arith.constant dense<0.000000e+00> : vector<8x128xf32>
    %739 = tpu.matmul %711, %551, %cst_308 {dimension_numbers = #tpu.dot_dimension_numbers<[1], [0], [0], [1], [0, 0, 1, 1], [], []>} : vector<8x128xf32>, vector<128x128xf32>, vector<8x128xf32> -> vector<8x128xf32>
    %cst_309 = arith.constant dense<0.000000e+00> : vector<8x128xf32>
    %740 = tpu.matmul %711, %553, %cst_309 {dimension_numbers = #tpu.dot_dimension_numbers<[1], [0], [0], [1], [0, 0, 1, 1], [], []>} : vector<8x128xf32>, vector<128x128xf32>, vector<8x128xf32> -> vector<8x128xf32>
    %741 = arith.index_cast %c3_i32_306 : i32 to index
    %c0_310 = arith.constant 0 : index
    %c0_311 = arith.constant 0 : index
    %742 = vector.load %arg15[%741, %c0_310, %c0_311] : memref<8x8x128xf32, #tpu.memory_space<vmem>>, vector<1x8x128xf32>
    %743 = vector.shape_cast %742 : vector<1x8x128xf32> to vector<8x128xf32>
    %744 = arith.addf %743, %738 : vector<8x128xf32>
    %745 = arith.negf %744 : vector<8x128xf32>
    %746 = math.exp %745 : vector<8x128xf32>
    %cst_312 = arith.constant 1.000000e+00 : f32
    %747 = vector.broadcast %cst_312 : f32 to vector<8x128xf32>
    %748 = arith.addf %747, %746 : vector<8x128xf32>
    %749 = arith.divf %747, %748 : vector<8x128xf32>
    %750 = arith.index_cast %c3_i32_306 : i32 to index
    %c0_313 = arith.constant 0 : index
    %c0_314 = arith.constant 0 : index
    %751 = vector.load %arg16[%750, %c0_313, %c0_314] : memref<8x8x128xf32, #tpu.memory_space<vmem>>, vector<1x8x128xf32>
    %752 = vector.shape_cast %751 : vector<1x8x128xf32> to vector<8x128xf32>
    %753 = arith.addf %752, %739 : vector<8x128xf32>
    %754 = arith.negf %753 : vector<8x128xf32>
    %755 = math.exp %754 : vector<8x128xf32>
    %cst_315 = arith.constant 1.000000e+00 : f32
    %756 = vector.broadcast %cst_315 : f32 to vector<8x128xf32>
    %757 = arith.addf %756, %755 : vector<8x128xf32>
    %758 = arith.divf %756, %757 : vector<8x128xf32>
    %759 = arith.index_cast %c3_i32_306 : i32 to index
    %c0_316 = arith.constant 0 : index
    %c0_317 = arith.constant 0 : index
    %760 = vector.load %arg17[%759, %c0_316, %c0_317] : memref<8x8x128xf32, #tpu.memory_space<vmem>>, vector<1x8x128xf32>
    %761 = vector.shape_cast %760 : vector<1x8x128xf32> to vector<8x128xf32>
    %762 = vector.broadcast %554 : vector<1x128xf32> to vector<8x128xf32>
    %763 = arith.addf %740, %762 : vector<8x128xf32>
    %764 = arith.mulf %749, %763 : vector<8x128xf32>
    %765 = arith.addf %761, %764 : vector<8x128xf32>
    %766 = math.tanh %765 : vector<8x128xf32>
    %cst_318 = arith.constant 1.000000e+00 : f32
    %767 = vector.broadcast %cst_318 : f32 to vector<8x128xf32>
    %768 = arith.subf %767, %758 : vector<8x128xf32>
    %769 = arith.mulf %768, %766 : vector<8x128xf32>
    %770 = arith.mulf %758, %711 : vector<8x128xf32>
    %771 = arith.addf %769, %770 : vector<8x128xf32>
    %cst_319 = arith.constant dense<0.000000e+00> : vector<8xf32>
    %772 = vector.multi_reduction <add>, %771, %cst_319 [1] : vector<8x128xf32> to vector<8xf32>
    %773 = vector.shape_cast %772 : vector<8xf32> to vector<8x1xf32>
    %cst_320 = arith.constant 1.562500e-02 : f32
    %774 = vector.broadcast %cst_320 : f32 to vector<8x1xf32>
    %775 = arith.mulf %773, %774 : vector<8x1xf32>
    %776 = arith.mulf %771, %771 : vector<8x128xf32>
    %cst_321 = arith.constant dense<0.000000e+00> : vector<8xf32>
    %777 = vector.multi_reduction <add>, %776, %cst_321 [1] : vector<8x128xf32> to vector<8xf32>
    %778 = vector.shape_cast %777 : vector<8xf32> to vector<8x1xf32>
    %cst_322 = arith.constant 1.562500e-02 : f32
    %779 = vector.broadcast %cst_322 : f32 to vector<8x1xf32>
    %780 = arith.mulf %778, %779 : vector<8x1xf32>
    %781 = arith.mulf %775, %775 : vector<8x1xf32>
    %782 = arith.subf %780, %781 : vector<8x1xf32>
    %783 = vector.broadcast %775 : vector<8x1xf32> to vector<8x128xf32>
    %784 = arith.subf %771, %783 : vector<8x128xf32>
    %cst_323 = arith.constant 9.99999974E-6 : f32
    %785 = vector.broadcast %cst_323 : f32 to vector<8x1xf32>
    %786 = arith.addf %782, %785 : vector<8x1xf32>
    %787 = math.rsqrt %786 : vector<8x1xf32>
    %788 = vector.broadcast %787 : vector<8x1xf32> to vector<8x128xf32>
    %789 = arith.mulf %784, %788 : vector<8x128xf32>
    %790 = vector.broadcast %555 : vector<1x128xf32> to vector<8x128xf32>
    %791 = arith.mulf %789, %790 : vector<8x128xf32>
    %792 = vector.broadcast %556 : vector<1x128xf32> to vector<8x128xf32>
    %793 = arith.addf %791, %792 : vector<8x128xf32>
    %794 = arith.index_cast %c3_i32_306 : i32 to index
    %c0_324 = arith.constant 0 : index
    %c0_325 = arith.constant 0 : index
    %795 = vector.load %arg14[%794, %c0_324, %c0_325] : memref<8x8x128xf32, #tpu.memory_space<vmem>>, vector<1x8x128xf32>
    %796 = vector.shape_cast %795 : vector<1x8x128xf32> to vector<8x128xf32>
    %797 = vector.shape_cast %793 : vector<8x128xf32> to vector<1x8x128xf32>
    tpu.vector_store %arg14[%794, %c0_324, %c0_325], %797 {strides = array<i32>} : memref<8x8x128xf32, #tpu.memory_space<vmem>>, vector<1x8x128xf32>,
    %c4_i32_326 = arith.constant 4 : i32
    %cst_327 = arith.constant dense<0.000000e+00> : vector<8x128xf32>
    %798 = tpu.matmul %771, %549, %cst_327 {dimension_numbers = #tpu.dot_dimension_numbers<[1], [0], [0], [1], [0, 0, 1, 1], [], []>} : vector<8x128xf32>, vector<128x128xf32>, vector<8x128xf32> -> vector<8x128xf32>
    %cst_328 = arith.constant dense<0.000000e+00> : vector<8x128xf32>
    %799 = tpu.matmul %771, %551, %cst_328 {dimension_numbers = #tpu.dot_dimension_numbers<[1], [0], [0], [1], [0, 0, 1, 1], [], []>} : vector<8x128xf32>, vector<128x128xf32>, vector<8x128xf32> -> vector<8x128xf32>
    %cst_329 = arith.constant dense<0.000000e+00> : vector<8x128xf32>
    %800 = tpu.matmul %771, %553, %cst_329 {dimension_numbers = #tpu.dot_dimension_numbers<[1], [0], [0], [1], [0, 0, 1, 1], [], []>} : vector<8x128xf32>, vector<128x128xf32>, vector<8x128xf32> -> vector<8x128xf32>
    %801 = arith.index_cast %c4_i32_326 : i32 to index
    %c0_330 = arith.constant 0 : index
    %c0_331 = arith.constant 0 : index
    %802 = vector.load %arg15[%801, %c0_330, %c0_331] : memref<8x8x128xf32, #tpu.memory_space<vmem>>, vector<1x8x128xf32>
    %803 = vector.shape_cast %802 : vector<1x8x128xf32> to vector<8x128xf32>
    %804 = arith.addf %803, %798 : vector<8x128xf32>
    %805 = arith.negf %804 : vector<8x128xf32>
    %806 = math.exp %805 : vector<8x128xf32>
    %cst_332 = arith.constant 1.000000e+00 : f32
    %807 = vector.broadcast %cst_332 : f32 to vector<8x128xf32>
    %808 = arith.addf %807, %806 : vector<8x128xf32>
    %809 = arith.divf %807, %808 : vector<8x128xf32>
    %810 = arith.index_cast %c4_i32_326 : i32 to index
    %c0_333 = arith.constant 0 : index
    %c0_334 = arith.constant 0 : index
    %811 = vector.load %arg16[%810, %c0_333, %c0_334] : memref<8x8x128xf32, #tpu.memory_space<vmem>>, vector<1x8x128xf32>
    %812 = vector.shape_cast %811 : vector<1x8x128xf32> to vector<8x128xf32>
    %813 = arith.addf %812, %799 : vector<8x128xf32>
    %814 = arith.negf %813 : vector<8x128xf32>
    %815 = math.exp %814 : vector<8x128xf32>
    %cst_335 = arith.constant 1.000000e+00 : f32
    %816 = vector.broadcast %cst_335 : f32 to vector<8x128xf32>
    %817 = arith.addf %816, %815 : vector<8x128xf32>
    %818 = arith.divf %816, %817 : vector<8x128xf32>
    %819 = arith.index_cast %c4_i32_326 : i32 to index
    %c0_336 = arith.constant 0 : index
    %c0_337 = arith.constant 0 : index
    %820 = vector.load %arg17[%819, %c0_336, %c0_337] : memref<8x8x128xf32, #tpu.memory_space<vmem>>, vector<1x8x128xf32>
    %821 = vector.shape_cast %820 : vector<1x8x128xf32> to vector<8x128xf32>
    %822 = vector.broadcast %554 : vector<1x128xf32> to vector<8x128xf32>
    %823 = arith.addf %800, %822 : vector<8x128xf32>
    %824 = arith.mulf %809, %823 : vector<8x128xf32>
    %825 = arith.addf %821, %824 : vector<8x128xf32>
    %826 = math.tanh %825 : vector<8x128xf32>
    %cst_338 = arith.constant 1.000000e+00 : f32
    %827 = vector.broadcast %cst_338 : f32 to vector<8x128xf32>
    %828 = arith.subf %827, %818 : vector<8x128xf32>
    %829 = arith.mulf %828, %826 : vector<8x128xf32>
    %830 = arith.mulf %818, %771 : vector<8x128xf32>
    %831 = arith.addf %829, %830 : vector<8x128xf32>
    %cst_339 = arith.constant dense<0.000000e+00> : vector<8xf32>
    %832 = vector.multi_reduction <add>, %831, %cst_339 [1] : vector<8x128xf32> to vector<8xf32>
    %833 = vector.shape_cast %832 : vector<8xf32> to vector<8x1xf32>
    %cst_340 = arith.constant 1.562500e-02 : f32
    %834 = vector.broadcast %cst_340 : f32 to vector<8x1xf32>
    %835 = arith.mulf %833, %834 : vector<8x1xf32>
    %836 = arith.mulf %831, %831 : vector<8x128xf32>
    %cst_341 = arith.constant dense<0.000000e+00> : vector<8xf32>
    %837 = vector.multi_reduction <add>, %836, %cst_341 [1] : vector<8x128xf32> to vector<8xf32>
    %838 = vector.shape_cast %837 : vector<8xf32> to vector<8x1xf32>
    %cst_342 = arith.constant 1.562500e-02 : f32
    %839 = vector.broadcast %cst_342 : f32 to vector<8x1xf32>
    %840 = arith.mulf %838, %839 : vector<8x1xf32>
    %841 = arith.mulf %835, %835 : vector<8x1xf32>
    %842 = arith.subf %840, %841 : vector<8x1xf32>
    %843 = vector.broadcast %835 : vector<8x1xf32> to vector<8x128xf32>
    %844 = arith.subf %831, %843 : vector<8x128xf32>
    %cst_343 = arith.constant 9.99999974E-6 : f32
    %845 = vector.broadcast %cst_343 : f32 to vector<8x1xf32>
    %846 = arith.addf %842, %845 : vector<8x1xf32>
    %847 = math.rsqrt %846 : vector<8x1xf32>
    %848 = vector.broadcast %847 : vector<8x1xf32> to vector<8x128xf32>
    %849 = arith.mulf %844, %848 : vector<8x128xf32>
    %850 = vector.broadcast %555 : vector<1x128xf32> to vector<8x128xf32>
    %851 = arith.mulf %849, %850 : vector<8x128xf32>
    %852 = vector.broadcast %556 : vector<1x128xf32> to vector<8x128xf32>
    %853 = arith.addf %851, %852 : vector<8x128xf32>
    %854 = arith.index_cast %c4_i32_326 : i32 to index
    %c0_344 = arith.constant 0 : index
    %c0_345 = arith.constant 0 : index
    %855 = vector.load %arg14[%854, %c0_344, %c0_345] : memref<8x8x128xf32, #tpu.memory_space<vmem>>, vector<1x8x128xf32>
    %856 = vector.shape_cast %855 : vector<1x8x128xf32> to vector<8x128xf32>
    %857 = vector.shape_cast %853 : vector<8x128xf32> to vector<1x8x128xf32>
    tpu.vector_store %arg14[%854, %c0_344, %c0_345], %857 {strides = array<i32>} : memref<8x8x128xf32, #tpu.memory_space<vmem>>, vector<1x8x128xf32>,
    %c5_i32_346 = arith.constant 5 : i32
    %cst_347 = arith.constant dense<0.000000e+00> : vector<8x128xf32>
    %858 = tpu.matmul %831, %549, %cst_347 {dimension_numbers = #tpu.dot_dimension_numbers<[1], [0], [0], [1], [0, 0, 1, 1], [], []>} : vector<8x128xf32>, vector<128x128xf32>, vector<8x128xf32> -> vector<8x128xf32>
    %cst_348 = arith.constant dense<0.000000e+00> : vector<8x128xf32>
    %859 = tpu.matmul %831, %551, %cst_348 {dimension_numbers = #tpu.dot_dimension_numbers<[1], [0], [0], [1], [0, 0, 1, 1], [], []>} : vector<8x128xf32>, vector<128x128xf32>, vector<8x128xf32> -> vector<8x128xf32>
    %cst_349 = arith.constant dense<0.000000e+00> : vector<8x128xf32>
    %860 = tpu.matmul %831, %553, %cst_349 {dimension_numbers = #tpu.dot_dimension_numbers<[1], [0], [0], [1], [0, 0, 1, 1], [], []>} : vector<8x128xf32>, vector<128x128xf32>, vector<8x128xf32> -> vector<8x128xf32>
    %861 = arith.index_cast %c5_i32_346 : i32 to index
    %c0_350 = arith.constant 0 : index
    %c0_351 = arith.constant 0 : index
    %862 = vector.load %arg15[%861, %c0_350, %c0_351] : memref<8x8x128xf32, #tpu.memory_space<vmem>>, vector<1x8x128xf32>
    %863 = vector.shape_cast %862 : vector<1x8x128xf32> to vector<8x128xf32>
    %864 = arith.addf %863, %858 : vector<8x128xf32>
    %865 = arith.negf %864 : vector<8x128xf32>
    %866 = math.exp %865 : vector<8x128xf32>
    %cst_352 = arith.constant 1.000000e+00 : f32
    %867 = vector.broadcast %cst_352 : f32 to vector<8x128xf32>
    %868 = arith.addf %867, %866 : vector<8x128xf32>
    %869 = arith.divf %867, %868 : vector<8x128xf32>
    %870 = arith.index_cast %c5_i32_346 : i32 to index
    %c0_353 = arith.constant 0 : index
    %c0_354 = arith.constant 0 : index
    %871 = vector.load %arg16[%870, %c0_353, %c0_354] : memref<8x8x128xf32, #tpu.memory_space<vmem>>, vector<1x8x128xf32>
    %872 = vector.shape_cast %871 : vector<1x8x128xf32> to vector<8x128xf32>
    %873 = arith.addf %872, %859 : vector<8x128xf32>
    %874 = arith.negf %873 : vector<8x128xf32>
    %875 = math.exp %874 : vector<8x128xf32>
    %cst_355 = arith.constant 1.000000e+00 : f32
    %876 = vector.broadcast %cst_355 : f32 to vector<8x128xf32>
    %877 = arith.addf %876, %875 : vector<8x128xf32>
    %878 = arith.divf %876, %877 : vector<8x128xf32>
    %879 = arith.index_cast %c5_i32_346 : i32 to index
    %c0_356 = arith.constant 0 : index
    %c0_357 = arith.constant 0 : index
    %880 = vector.load %arg17[%879, %c0_356, %c0_357] : memref<8x8x128xf32, #tpu.memory_space<vmem>>, vector<1x8x128xf32>
    %881 = vector.shape_cast %880 : vector<1x8x128xf32> to vector<8x128xf32>
    %882 = vector.broadcast %554 : vector<1x128xf32> to vector<8x128xf32>
    %883 = arith.addf %860, %882 : vector<8x128xf32>
    %884 = arith.mulf %869, %883 : vector<8x128xf32>
    %885 = arith.addf %881, %884 : vector<8x128xf32>
    %886 = math.tanh %885 : vector<8x128xf32>
    %cst_358 = arith.constant 1.000000e+00 : f32
    %887 = vector.broadcast %cst_358 : f32 to vector<8x128xf32>
    %888 = arith.subf %887, %878 : vector<8x128xf32>
    %889 = arith.mulf %888, %886 : vector<8x128xf32>
    %890 = arith.mulf %878, %831 : vector<8x128xf32>
    %891 = arith.addf %889, %890 : vector<8x128xf32>
    %cst_359 = arith.constant dense<0.000000e+00> : vector<8xf32>
    %892 = vector.multi_reduction <add>, %891, %cst_359 [1] : vector<8x128xf32> to vector<8xf32>
    %893 = vector.shape_cast %892 : vector<8xf32> to vector<8x1xf32>
    %cst_360 = arith.constant 1.562500e-02 : f32
    %894 = vector.broadcast %cst_360 : f32 to vector<8x1xf32>
    %895 = arith.mulf %893, %894 : vector<8x1xf32>
    %896 = arith.mulf %891, %891 : vector<8x128xf32>
    %cst_361 = arith.constant dense<0.000000e+00> : vector<8xf32>
    %897 = vector.multi_reduction <add>, %896, %cst_361 [1] : vector<8x128xf32> to vector<8xf32>
    %898 = vector.shape_cast %897 : vector<8xf32> to vector<8x1xf32>
    %cst_362 = arith.constant 1.562500e-02 : f32
    %899 = vector.broadcast %cst_362 : f32 to vector<8x1xf32>
    %900 = arith.mulf %898, %899 : vector<8x1xf32>
    %901 = arith.mulf %895, %895 : vector<8x1xf32>
    %902 = arith.subf %900, %901 : vector<8x1xf32>
    %903 = vector.broadcast %895 : vector<8x1xf32> to vector<8x128xf32>
    %904 = arith.subf %891, %903 : vector<8x128xf32>
    %cst_363 = arith.constant 9.99999974E-6 : f32
    %905 = vector.broadcast %cst_363 : f32 to vector<8x1xf32>
    %906 = arith.addf %902, %905 : vector<8x1xf32>
    %907 = math.rsqrt %906 : vector<8x1xf32>
    %908 = vector.broadcast %907 : vector<8x1xf32> to vector<8x128xf32>
    %909 = arith.mulf %904, %908 : vector<8x128xf32>
    %910 = vector.broadcast %555 : vector<1x128xf32> to vector<8x128xf32>
    %911 = arith.mulf %909, %910 : vector<8x128xf32>
    %912 = vector.broadcast %556 : vector<1x128xf32> to vector<8x128xf32>
    %913 = arith.addf %911, %912 : vector<8x128xf32>
    %914 = arith.index_cast %c5_i32_346 : i32 to index
    %c0_364 = arith.constant 0 : index
    %c0_365 = arith.constant 0 : index
    %915 = vector.load %arg14[%914, %c0_364, %c0_365] : memref<8x8x128xf32, #tpu.memory_space<vmem>>, vector<1x8x128xf32>
    %916 = vector.shape_cast %915 : vector<1x8x128xf32> to vector<8x128xf32>
    %917 = vector.shape_cast %913 : vector<8x128xf32> to vector<1x8x128xf32>
    tpu.vector_store %arg14[%914, %c0_364, %c0_365], %917 {strides = array<i32>} : memref<8x8x128xf32, #tpu.memory_space<vmem>>, vector<1x8x128xf32>,
    %c6_i32_366 = arith.constant 6 : i32
    %cst_367 = arith.constant dense<0.000000e+00> : vector<8x128xf32>
    %918 = tpu.matmul %891, %549, %cst_367 {dimension_numbers = #tpu.dot_dimension_numbers<[1], [0], [0], [1], [0, 0, 1, 1], [], []>} : vector<8x128xf32>, vector<128x128xf32>, vector<8x128xf32> -> vector<8x128xf32>
    %cst_368 = arith.constant dense<0.000000e+00> : vector<8x128xf32>
    %919 = tpu.matmul %891, %551, %cst_368 {dimension_numbers = #tpu.dot_dimension_numbers<[1], [0], [0], [1], [0, 0, 1, 1], [], []>} : vector<8x128xf32>, vector<128x128xf32>, vector<8x128xf32> -> vector<8x128xf32>
    %cst_369 = arith.constant dense<0.000000e+00> : vector<8x128xf32>
    %920 = tpu.matmul %891, %553, %cst_369 {dimension_numbers = #tpu.dot_dimension_numbers<[1], [0], [0], [1], [0, 0, 1, 1], [], []>} : vector<8x128xf32>, vector<128x128xf32>, vector<8x128xf32> -> vector<8x128xf32>
    %921 = arith.index_cast %c6_i32_366 : i32 to index
    %c0_370 = arith.constant 0 : index
    %c0_371 = arith.constant 0 : index
    %922 = vector.load %arg15[%921, %c0_370, %c0_371] : memref<8x8x128xf32, #tpu.memory_space<vmem>>, vector<1x8x128xf32>
    %923 = vector.shape_cast %922 : vector<1x8x128xf32> to vector<8x128xf32>
    %924 = arith.addf %923, %918 : vector<8x128xf32>
    %925 = arith.negf %924 : vector<8x128xf32>
    %926 = math.exp %925 : vector<8x128xf32>
    %cst_372 = arith.constant 1.000000e+00 : f32
    %927 = vector.broadcast %cst_372 : f32 to vector<8x128xf32>
    %928 = arith.addf %927, %926 : vector<8x128xf32>
    %929 = arith.divf %927, %928 : vector<8x128xf32>
    %930 = arith.index_cast %c6_i32_366 : i32 to index
    %c0_373 = arith.constant 0 : index
    %c0_374 = arith.constant 0 : index
    %931 = vector.load %arg16[%930, %c0_373, %c0_374] : memref<8x8x128xf32, #tpu.memory_space<vmem>>, vector<1x8x128xf32>
    %932 = vector.shape_cast %931 : vector<1x8x128xf32> to vector<8x128xf32>
    %933 = arith.addf %932, %919 : vector<8x128xf32>
    %934 = arith.negf %933 : vector<8x128xf32>
    %935 = math.exp %934 : vector<8x128xf32>
    %cst_375 = arith.constant 1.000000e+00 : f32
    %936 = vector.broadcast %cst_375 : f32 to vector<8x128xf32>
    %937 = arith.addf %936, %935 : vector<8x128xf32>
    %938 = arith.divf %936, %937 : vector<8x128xf32>
    %939 = arith.index_cast %c6_i32_366 : i32 to index
    %c0_376 = arith.constant 0 : index
    %c0_377 = arith.constant 0 : index
    %940 = vector.load %arg17[%939, %c0_376, %c0_377] : memref<8x8x128xf32, #tpu.memory_space<vmem>>, vector<1x8x128xf32>
    %941 = vector.shape_cast %940 : vector<1x8x128xf32> to vector<8x128xf32>
    %942 = vector.broadcast %554 : vector<1x128xf32> to vector<8x128xf32>
    %943 = arith.addf %920, %942 : vector<8x128xf32>
    %944 = arith.mulf %929, %943 : vector<8x128xf32>
    %945 = arith.addf %941, %944 : vector<8x128xf32>
    %946 = math.tanh %945 : vector<8x128xf32>
    %cst_378 = arith.constant 1.000000e+00 : f32
    %947 = vector.broadcast %cst_378 : f32 to vector<8x128xf32>
    %948 = arith.subf %947, %938 : vector<8x128xf32>
    %949 = arith.mulf %948, %946 : vector<8x128xf32>
    %950 = arith.mulf %938, %891 : vector<8x128xf32>
    %951 = arith.addf %949, %950 : vector<8x128xf32>
    %cst_379 = arith.constant dense<0.000000e+00> : vector<8xf32>
    %952 = vector.multi_reduction <add>, %951, %cst_379 [1] : vector<8x128xf32> to vector<8xf32>
    %953 = vector.shape_cast %952 : vector<8xf32> to vector<8x1xf32>
    %cst_380 = arith.constant 1.562500e-02 : f32
    %954 = vector.broadcast %cst_380 : f32 to vector<8x1xf32>
    %955 = arith.mulf %953, %954 : vector<8x1xf32>
    %956 = arith.mulf %951, %951 : vector<8x128xf32>
    %cst_381 = arith.constant dense<0.000000e+00> : vector<8xf32>
    %957 = vector.multi_reduction <add>, %956, %cst_381 [1] : vector<8x128xf32> to vector<8xf32>
    %958 = vector.shape_cast %957 : vector<8xf32> to vector<8x1xf32>
    %cst_382 = arith.constant 1.562500e-02 : f32
    %959 = vector.broadcast %cst_382 : f32 to vector<8x1xf32>
    %960 = arith.mulf %958, %959 : vector<8x1xf32>
    %961 = arith.mulf %955, %955 : vector<8x1xf32>
    %962 = arith.subf %960, %961 : vector<8x1xf32>
    %963 = vector.broadcast %955 : vector<8x1xf32> to vector<8x128xf32>
    %964 = arith.subf %951, %963 : vector<8x128xf32>
    %cst_383 = arith.constant 9.99999974E-6 : f32
    %965 = vector.broadcast %cst_383 : f32 to vector<8x1xf32>
    %966 = arith.addf %962, %965 : vector<8x1xf32>
    %967 = math.rsqrt %966 : vector<8x1xf32>
    %968 = vector.broadcast %967 : vector<8x1xf32> to vector<8x128xf32>
    %969 = arith.mulf %964, %968 : vector<8x128xf32>
    %970 = vector.broadcast %555 : vector<1x128xf32> to vector<8x128xf32>
    %971 = arith.mulf %969, %970 : vector<8x128xf32>
    %972 = vector.broadcast %556 : vector<1x128xf32> to vector<8x128xf32>
    %973 = arith.addf %971, %972 : vector<8x128xf32>
    %974 = arith.index_cast %c6_i32_366 : i32 to index
    %c0_384 = arith.constant 0 : index
    %c0_385 = arith.constant 0 : index
    %975 = vector.load %arg14[%974, %c0_384, %c0_385] : memref<8x8x128xf32, #tpu.memory_space<vmem>>, vector<1x8x128xf32>
    %976 = vector.shape_cast %975 : vector<1x8x128xf32> to vector<8x128xf32>
    %977 = vector.shape_cast %973 : vector<8x128xf32> to vector<1x8x128xf32>
    tpu.vector_store %arg14[%974, %c0_384, %c0_385], %977 {strides = array<i32>} : memref<8x8x128xf32, #tpu.memory_space<vmem>>, vector<1x8x128xf32>,
    %c7_i32_386 = arith.constant 7 : i32
    %cst_387 = arith.constant dense<0.000000e+00> : vector<8x128xf32>
    %978 = tpu.matmul %951, %549, %cst_387 {dimension_numbers = #tpu.dot_dimension_numbers<[1], [0], [0], [1], [0, 0, 1, 1], [], []>} : vector<8x128xf32>, vector<128x128xf32>, vector<8x128xf32> -> vector<8x128xf32>
    %cst_388 = arith.constant dense<0.000000e+00> : vector<8x128xf32>
    %979 = tpu.matmul %951, %551, %cst_388 {dimension_numbers = #tpu.dot_dimension_numbers<[1], [0], [0], [1], [0, 0, 1, 1], [], []>} : vector<8x128xf32>, vector<128x128xf32>, vector<8x128xf32> -> vector<8x128xf32>
    %cst_389 = arith.constant dense<0.000000e+00> : vector<8x128xf32>
    %980 = tpu.matmul %951, %553, %cst_389 {dimension_numbers = #tpu.dot_dimension_numbers<[1], [0], [0], [1], [0, 0, 1, 1], [], []>} : vector<8x128xf32>, vector<128x128xf32>, vector<8x128xf32> -> vector<8x128xf32>
    %981 = arith.index_cast %c7_i32_386 : i32 to index
    %c0_390 = arith.constant 0 : index
    %c0_391 = arith.constant 0 : index
    %982 = vector.load %arg15[%981, %c0_390, %c0_391] : memref<8x8x128xf32, #tpu.memory_space<vmem>>, vector<1x8x128xf32>
    %983 = vector.shape_cast %982 : vector<1x8x128xf32> to vector<8x128xf32>
    %984 = arith.addf %983, %978 : vector<8x128xf32>
    %985 = arith.negf %984 : vector<8x128xf32>
    %986 = math.exp %985 : vector<8x128xf32>
    %cst_392 = arith.constant 1.000000e+00 : f32
    %987 = vector.broadcast %cst_392 : f32 to vector<8x128xf32>
    %988 = arith.addf %987, %986 : vector<8x128xf32>
    %989 = arith.divf %987, %988 : vector<8x128xf32>
    %990 = arith.index_cast %c7_i32_386 : i32 to index
    %c0_393 = arith.constant 0 : index
    %c0_394 = arith.constant 0 : index
    %991 = vector.load %arg16[%990, %c0_393, %c0_394] : memref<8x8x128xf32, #tpu.memory_space<vmem>>, vector<1x8x128xf32>
    %992 = vector.shape_cast %991 : vector<1x8x128xf32> to vector<8x128xf32>
    %993 = arith.addf %992, %979 : vector<8x128xf32>
    %994 = arith.negf %993 : vector<8x128xf32>
    %995 = math.exp %994 : vector<8x128xf32>
    %cst_395 = arith.constant 1.000000e+00 : f32
    %996 = vector.broadcast %cst_395 : f32 to vector<8x128xf32>
    %997 = arith.addf %996, %995 : vector<8x128xf32>
    %998 = arith.divf %996, %997 : vector<8x128xf32>
    %999 = arith.index_cast %c7_i32_386 : i32 to index
    %c0_396 = arith.constant 0 : index
    %c0_397 = arith.constant 0 : index
    %1000 = vector.load %arg17[%999, %c0_396, %c0_397] : memref<8x8x128xf32, #tpu.memory_space<vmem>>, vector<1x8x128xf32>
    %1001 = vector.shape_cast %1000 : vector<1x8x128xf32> to vector<8x128xf32>
    %1002 = vector.broadcast %554 : vector<1x128xf32> to vector<8x128xf32>
    %1003 = arith.addf %980, %1002 : vector<8x128xf32>
    %1004 = arith.mulf %989, %1003 : vector<8x128xf32>
    %1005 = arith.addf %1001, %1004 : vector<8x128xf32>
    %1006 = math.tanh %1005 : vector<8x128xf32>
    %cst_398 = arith.constant 1.000000e+00 : f32
    %1007 = vector.broadcast %cst_398 : f32 to vector<8x128xf32>
    %1008 = arith.subf %1007, %998 : vector<8x128xf32>
    %1009 = arith.mulf %1008, %1006 : vector<8x128xf32>
    %1010 = arith.mulf %998, %951 : vector<8x128xf32>
    %1011 = arith.addf %1009, %1010 : vector<8x128xf32>
    %cst_399 = arith.constant dense<0.000000e+00> : vector<8xf32>
    %1012 = vector.multi_reduction <add>, %1011, %cst_399 [1] : vector<8x128xf32> to vector<8xf32>
    %1013 = vector.shape_cast %1012 : vector<8xf32> to vector<8x1xf32>
    %cst_400 = arith.constant 1.562500e-02 : f32
    %1014 = vector.broadcast %cst_400 : f32 to vector<8x1xf32>
    %1015 = arith.mulf %1013, %1014 : vector<8x1xf32>
    %1016 = arith.mulf %1011, %1011 : vector<8x128xf32>
    %cst_401 = arith.constant dense<0.000000e+00> : vector<8xf32>
    %1017 = vector.multi_reduction <add>, %1016, %cst_401 [1] : vector<8x128xf32> to vector<8xf32>
    %1018 = vector.shape_cast %1017 : vector<8xf32> to vector<8x1xf32>
    %cst_402 = arith.constant 1.562500e-02 : f32
    %1019 = vector.broadcast %cst_402 : f32 to vector<8x1xf32>
    %1020 = arith.mulf %1018, %1019 : vector<8x1xf32>
    %1021 = arith.mulf %1015, %1015 : vector<8x1xf32>
    %1022 = arith.subf %1020, %1021 : vector<8x1xf32>
    %1023 = vector.broadcast %1015 : vector<8x1xf32> to vector<8x128xf32>
    %1024 = arith.subf %1011, %1023 : vector<8x128xf32>
    %cst_403 = arith.constant 9.99999974E-6 : f32
    %1025 = vector.broadcast %cst_403 : f32 to vector<8x1xf32>
    %1026 = arith.addf %1022, %1025 : vector<8x1xf32>
    %1027 = math.rsqrt %1026 : vector<8x1xf32>
    %1028 = vector.broadcast %1027 : vector<8x1xf32> to vector<8x128xf32>
    %1029 = arith.mulf %1024, %1028 : vector<8x128xf32>
    %1030 = vector.broadcast %555 : vector<1x128xf32> to vector<8x128xf32>
    %1031 = arith.mulf %1029, %1030 : vector<8x128xf32>
    %1032 = vector.broadcast %556 : vector<1x128xf32> to vector<8x128xf32>
    %1033 = arith.addf %1031, %1032 : vector<8x128xf32>
    %1034 = arith.index_cast %c7_i32_386 : i32 to index
    %c0_404 = arith.constant 0 : index
    %c0_405 = arith.constant 0 : index
    %1035 = vector.load %arg14[%1034, %c0_404, %c0_405] : memref<8x8x128xf32, #tpu.memory_space<vmem>>, vector<1x8x128xf32>
    %1036 = vector.shape_cast %1035 : vector<1x8x128xf32> to vector<8x128xf32>
    %1037 = vector.shape_cast %1033 : vector<8x128xf32> to vector<1x8x128xf32>
    tpu.vector_store %arg14[%1034, %c0_404, %c0_405], %1037 {strides = array<i32>} : memref<8x8x128xf32, #tpu.memory_space<vmem>>, vector<1x8x128xf32>,
    %c8_i32_406 = arith.constant 8 : i32
    return
  }
  func.func @transform_0(%arg0: i32) -> (i32, i32, i32) {
    %c0_i32 = arith.constant 0 : i32
    %c0_i32_0 = arith.constant 0 : i32
    %c0_i32_1 = arith.constant 0 : i32
    return %c0_i32, %arg0, %c0_i32_0 : i32, i32, i32
  }
  func.func @transform_1(%arg0: i32) -> (i32, i32, i32) {
    %c0_i32 = arith.constant 0 : i32
    %c0_i32_0 = arith.constant 0 : i32
    %c0_i32_1 = arith.constant 0 : i32
    %c0_i32_2 = arith.constant 0 : i32
    return %c0_i32, %c0_i32_0, %c0_i32_1 : i32, i32, i32
  }
  func.func @transform_2(%arg0: i32) -> (i32, i32, i32) {
    %c0_i32 = arith.constant 0 : i32
    %c0_i32_0 = arith.constant 0 : i32
    %c0_i32_1 = arith.constant 0 : i32
    %c0_i32_2 = arith.constant 0 : i32
    return %c0_i32, %c0_i32_0, %c0_i32_1 : i32, i32, i32
  }
  func.func @transform_3(%arg0: i32) -> (i32, i32, i32) {
    %c0_i32 = arith.constant 0 : i32
    %c0_i32_0 = arith.constant 0 : i32
    %c0_i32_1 = arith.constant 0 : i32
    %c0_i32_2 = arith.constant 0 : i32
    return %c0_i32, %c0_i32_0, %c0_i32_1 : i32, i32, i32
  }
  func.func @transform_4(%arg0: i32) -> (i32, i32) {
    %c0_i32 = arith.constant 0 : i32
    %c0_i32_0 = arith.constant 0 : i32
    %c0_i32_1 = arith.constant 0 : i32
    return %c0_i32, %c0_i32_0 : i32, i32
  }
  func.func @transform_5(%arg0: i32) -> (i32, i32) {
    %c0_i32 = arith.constant 0 : i32
    %c0_i32_0 = arith.constant 0 : i32
    %c0_i32_1 = arith.constant 0 : i32
    return %c0_i32, %c0_i32_0 : i32, i32
  }
  func.func @transform_6(%arg0: i32) -> (i32, i32) {
    %c0_i32 = arith.constant 0 : i32
    %c0_i32_0 = arith.constant 0 : i32
    %c0_i32_1 = arith.constant 0 : i32
    return %c0_i32, %c0_i32_0 : i32, i32
  }
  func.func @transform_7(%arg0: i32) -> (i32, i32, i32) {
    %c0_i32 = arith.constant 0 : i32
    %c0_i32_0 = arith.constant 0 : i32
    %c0_i32_1 = arith.constant 0 : i32
    %c0_i32_2 = arith.constant 0 : i32
    return %c0_i32, %c0_i32_0, %c0_i32_1 : i32, i32, i32
  }
  func.func @transform_8(%arg0: i32) -> (i32, i32, i32) {
    %c0_i32 = arith.constant 0 : i32
    %c0_i32_0 = arith.constant 0 : i32
    %c0_i32_1 = arith.constant 0 : i32
    %c0_i32_2 = arith.constant 0 : i32
    return %c0_i32, %c0_i32_0, %c0_i32_1 : i32, i32, i32
  }
  func.func @transform_9(%arg0: i32) -> (i32, i32, i32) {
    %c0_i32 = arith.constant 0 : i32
    %c0_i32_0 = arith.constant 0 : i32
    %c0_i32_1 = arith.constant 0 : i32
    %c0_i32_2 = arith.constant 0 : i32
    return %c0_i32, %c0_i32_0, %c0_i32_1 : i32, i32, i32
  }
  func.func @transform_10(%arg0: i32) -> (i32, i32) {
    %c0_i32 = arith.constant 0 : i32
    %c0_i32_0 = arith.constant 0 : i32
    %c0_i32_1 = arith.constant 0 : i32
    return %c0_i32, %c0_i32_0 : i32, i32
  }
  func.func @transform_11(%arg0: i32) -> (i32, i32) {
    %c0_i32 = arith.constant 0 : i32
    %c0_i32_0 = arith.constant 0 : i32
    %c0_i32_1 = arith.constant 0 : i32
    return %c0_i32, %c0_i32_0 : i32, i32
  }
  func.func @transform_12(%arg0: i32) -> (i32, i32) {
    %c0_i32 = arith.constant 0 : i32
    %c0_i32_0 = arith.constant 0 : i32
    %c0_i32_1 = arith.constant 0 : i32
    return %c0_i32, %c0_i32_0 : i32, i32
  }
  func.func @transform_13(%arg0: i32) -> (i32, i32, i32) {
    %c0_i32 = arith.constant 0 : i32
    %c0_i32_0 = arith.constant 0 : i32
    %c0_i32_1 = arith.constant 0 : i32
    return %c0_i32, %arg0, %c0_i32_0 : i32, i32, i32
  }
}

</mosaic_0001>

<bundles_post_ra>
// kernel: tpu_custom_call.1
= control target key start
LH: loop header
LB: loop body
LE: loop exit
PB: predicated region body
PF: predicated region fallthrough
CT: control target
= control target key end

     0   :  { %18 = vsyncpa [#allocation6], 0  ;;  %s5350_s0 = inlined_call_operand.hbm [shape: f32[8,8,128], index: 0, kind: input, shape index: {}]   ;;  %s5351_s1 = inlined_call_operand.hbm [shape: f32[3,128,128], index: 1, kind: input, shape index: {}]   ;;  %s5352_s2 = inlined_call_operand.hbm [shape: f32[3,128,128], index: 2, kind: input, shape index: {}]   ;;  %s5353_s3 = inlined_call_operand.hbm [shape: f32[3,1,128], index: 3, kind: input, shape index: {}]   ;;  %s5354_s4 = inlined_call_operand.vmem [shape: f32[1,128], index: 4, kind: input, shape index: {}]   ;;  %s5355_s5 = inlined_call_operand.vmem [shape: f32[1,128], index: 5, kind: input, shape index: {}]   ;;  %s5356_s6 = inlined_call_operand.hbm [shape: f32[1,128], index: 6, kind: input, shape index: {}]   ;;  %s5357_s7 = inlined_call_operand.hbm [shape: f32[3,128,128], index: 7, kind: input, shape index: {}]   ;;  %s5358_s8 = inlined_call_operand.hbm [shape: f32[3,128,128], index: 8, kind: input, shape index: {}]   ;;  %s5359_s9 = inlined_call_operand.vmem [shape: f32[3,1,128], index: 9, kind: input, shape index: {}]   ;;  %s5360_s10 = inlined_call_operand.vmem [shape: f32[1,128], index: 10, kind: input, shape index: {}]   ;;  %s5361_s11 = inlined_call_operand.vmem [shape: f32[1,128], index: 11, kind: input, shape index: {}]   ;;  %s5362_s12 = inlined_call_operand.vmem [shape: f32[1,128], index: 12, kind: input, shape index: {}]   ;;  %s5363_s13 = inlined_call_operand.hbm [shape: f32[8,8,128], index: 13, kind: output, shape index: {}]  }
   0x1   :  { %19 = vsyncpa [#allocation9], 0 }
   0x2   :  { %20 = vsyncpa [#allocation12], 0 }
   0x3   :  { %21 = vsyncpa [#allocation15], 0 }
   0x4   :  { %22 = vsyncpa [#allocation7], 0  ;;  %s40_s27 = sshll.u32 %s5351_s1, 4  ;;  %s3484_s28 = smov [#allocation8]   ;;  %s41_s27 = int_to_ptr.hbm [resolvable:$true] %s40_s27 }
   0x5   :  { %s42_s29 = sshll.u32 %s3484_s28, 4  ;;  %s66_s15 = sshll.u32 %s5353_s3, 4  ;;  %s43_s29 = int_to_ptr.vmem [resolvable:$true] %s42_s29  ;;  %s67_s15 = int_to_ptr.hbm [resolvable:$true] %s66_s15 }
   0x6   :  { %s3485_s16 = smov 128   ;;  %s3486_s17 = smov 8  }
   0x7   :  { %48 = dma.hbm_to_vmem [thread:$0]  %s41_s27, 6144, %s43_s29, [#allocation9], %s3485_s16, %s3485_s16, %s3486_s17  }
   0x8   :  { %s3487_s18 = smov [#allocation11]   ;;  %s3488_s20 = smov 16  }
   0x9   :  { %s68_s19 = sshll.u32 %s3487_s18, 4  ;;  %s3489_s1 = smov 1   ;;  %s69_s19 = int_to_ptr.vmem [resolvable:$true] %s68_s19 }
   0xa   :  { %74 = dma.hbm_to_vmem [thread:$0]  %s67_s15, 48, %s69_s19, [#allocation12], %s3488_s20, %s3488_s20, %s3489_s1  }
   0xb   :  { %s94_s23 = sshll.u32 %s5357_s7, 4  ;;  %s3490_s24 = smov [#allocation14]   ;;  %s95_s23 = int_to_ptr.hbm [resolvable:$true] %s94_s23 }
   0xc   :  { %s96_s3 = sshll.u32 %s3490_s24, 4  ;;  %s27_s28 = sshll.u32 %s5350_s0, 4  ;;  %s97_s3 = int_to_ptr.vmem [resolvable:$true] %s96_s3  ;;  %s28_s28 = int_to_ptr.hbm [resolvable:$true] %s27_s28 }
   0xd   :  { %102 = dma.hbm_to_vmem [thread:$0]  %s95_s23, 6144, %s97_s3, [#allocation15], %s3485_s16, %s3485_s16, %s3486_s17  }
   0xe   :  { %s3491_s27 = smov [#allocation5]   ;;  %s53_s15 = sshll.u32 %s5352_s2, 4  ;;  %s54_s15 = int_to_ptr.hbm [resolvable:$true] %s53_s15 }
   0xf   :  { %s29_s29 = sshll.u32 %s3491_s27, 4  ;;  %s84_s0 = sshll.u32 %s5356_s6, 4  ;;  %s30_s29 = int_to_ptr.vmem [resolvable:$true] %s29_s29  ;;  %s85_s0 = int_to_ptr.hbm [resolvable:$true] %s84_s0 }
  0x10   :  { %35 = dma.hbm_to_vmem [thread:$0]  %s28_s28, 1024, %s30_s29, [#allocation6], %s3485_s16, %s3485_s16, %s3486_s17  }
  0x11   :  { %s3492_s19 = smov [#allocation10]   ;;  %s3493_s1 = smov [#allocation13]  }
  0x12   :  { %s55_s20 = sshll.u32 %s3492_s19, 4  ;;  %s86_s2 = sshll.u32 %s3493_s1, 4  ;;  %s56_s20 = int_to_ptr.vmem [resolvable:$true] %s55_s20  ;;  %s87_s2 = int_to_ptr.vmem [resolvable:$true] %s86_s2 }
  0x13   :  { %61 = dma.hbm_to_vmem [thread:$0]  %s54_s15, 6144, %s56_s20, [#allocation9], %s3485_s16, %s3485_s16, %s3486_s17  }
  0x14   :  { %s107_s23 = sshll.u32 %s5358_s8, 4  ;;  %s3494_s24 = smov [#allocation16]   ;;  %s108_s23 = int_to_ptr.hbm [resolvable:$true] %s107_s23 }
  0x15   :  { %89 = dma.hbm_to_vmem [thread:$0]  %s85_s0, 16, %s87_s2, [#allocation12]  }
  0x16   :  { %s109_s3 = sshll.u32 %s3494_s24, 4  ;;  %s110_s3 = int_to_ptr.vmem [resolvable:$true] %s109_s3 }
  0x17   :  { %115 = dma.hbm_to_vmem [thread:$0]  %s108_s23, 6144, %s110_s3, [#allocation15], %s3485_s16, %s3485_s16, %s3486_s17  }
  0x18   :  { %3474 = dma.done.wait [#allocation6], 1024  }
  0x19   :  { %3475 = vsyncadd [#allocation6], 4294966272 }
  0x1a   :  { %3476 = dma.done.wait [#allocation9], 12288  }
  0x1b   :  { %3477 = vsyncadd [#allocation9], 4294955008 }
  0x1c   :  { %3478 = dma.done.wait [#allocation12], 64  }
  0x1d   :  { %3479 = vsyncadd [#allocation12], 4294967232 }
  0x1e   :  { %3480 = dma.done.wait [#allocation15], 12288  }
  0x1f   :  { %3481 = vsyncadd [#allocation15], 4294955008  ;;  %v175_v0 = vld [vmem:[#allocation8 + $0x78] sm:$0xff]  ;;  %v174_v2 = vld [vmem:[#allocation8 + $0x70] sm:$0xff]  ;;  %v5364_v47 = vmov 0.0  }
  0x20   :  { %v3603_v1 = vld [vmem:[#allocation10 + $0x78] sm:$0xff]  ;;  %180 = vmatpush.msra.mxu0 %v175_v0  ;;  %v3606_v3 = vld [vmem:[#allocation10 + $0x70] sm:$0xff]  ;;  %v173_v4 = vld [vmem:[#allocation8 + $0x68] sm:$0xff] }
  0x21   :  { %424 = vmatpush.msra.mxu3 %v3603_v1  ;;  %v3608_v5 = vld [vmem:[#allocation10 + $0x68] sm:$0xff]  ;;  %v172_v6 = vld [vmem:[#allocation8 + $0x60] sm:$0xff]  ;;  %v171_v8 = vld [vmem:[#allocation8 + $0x58] sm:$0xff] }
  0x22   :  { %181 = vmatpush.msra.mxu0 %v174_v2  ;;  %v3611_v7 = vld [vmem:[#allocation10 + $0x60] sm:$0xff]  ;;  %v3614_v9 = vld [vmem:[#allocation10 + $0x58] sm:$0xff]  ;;  %v170_v10 = vld [vmem:[#allocation8 + $0x50] sm:$0xff] }
  0x23   :  { %425 = vmatpush.msra.mxu3 %v3606_v3  ;;  %v3617_v11 = vld [vmem:[#allocation10 + $0x50] sm:$0xff]  ;;  %v169_v12 = vld [vmem:[#allocation8 + $0x48] sm:$0xff]  ;;  %v168_v14 = vld [vmem:[#allocation8 + $0x40] sm:$0xff] }
  0x24   :  { %182 = vmatpush.msra.mxu0 %v173_v4  ;;  %v3620_v13 = vld [vmem:[#allocation10 + $0x48] sm:$0xff]  ;;  %v3623_v15 = vld [vmem:[#allocation10 + $0x40] sm:$0xff]  ;;  %v245_v16 = vld [vmem:[#allocation8 + $0xf8] sm:$0xff] }
  0x25   :  { %426 = vmatpush.msra.mxu3 %v3608_v5  ;;  %v244_v17 = vld [vmem:[#allocation8 + $0xf0] sm:$0xff]  ;;  %v167_v18 = vld [vmem:[#allocation8 + $0x38] sm:$0xff]  ;;  %251 = vmatpush.msra.mxu1 %v245_v16  ;;  %v243_v20 = vld [vmem:[#allocation8 + $0xe8] sm:$0xff] }
  0x26   :  { %183 = vmatpush.msra.mxu0 %v172_v6  ;;  %v3626_v19 = vld [vmem:[#allocation10 + $0x38] sm:$0xff]  ;;  %v166_v21 = vld [vmem:[#allocation8 + $0x30] sm:$0xff]  ;;  %v242_v23 = vld [vmem:[#allocation8 + $0xe0] sm:$0xff] }
  0x27   :  { %427 = vmatpush.msra.mxu3 %v3611_v7  ;;  %v3629_v22 = vld [vmem:[#allocation10 + $0x30] sm:$0xff]  ;;  %252 = vmatpush.msra.mxu1 %v244_v17  ;;  %v165_v24 = vld [vmem:[#allocation8 + $0x28] sm:$0xff]  ;;  %v164_v26 = vld [vmem:[#allocation8 + $0x20] sm:$0xff] }
  0x28   :  { %184 = vmatpush.msra.mxu0 %v171_v8  ;;  %v3632_v25 = vld [vmem:[#allocation10 + $0x28] sm:$0xff]  ;;  %v3635_v27 = vld [vmem:[#allocation10 + $0x20] sm:$0xff]  ;;  %v241_v28 = vld [vmem:[#allocation8 + $0xd8] sm:$0xff] }
  0x29   :  { %428 = vmatpush.msra.mxu3 %v3614_v9  ;;  %253 = vmatpush.msra.mxu1 %v243_v20  ;;  %v163_v29 = vld [vmem:[#allocation8 + $0x18] sm:$0xff]  ;;  %v240_v31 = vld [vmem:[#allocation8 + $0xd0] sm:$0xff]  ;;  %v239_v32 = vld [vmem:[#allocation8 + $0xc8] sm:$0xff] }
  0x2a   :  { %185 = vmatpush.msra.mxu0 %v170_v10  ;;  %v3638_v30 = vld [vmem:[#allocation10 + $0x18] sm:$0xff]  ;;  %v162_v33 = vld [vmem:[#allocation8 + $0x10] sm:$0xff]  ;;  %v161_v35 = vld [vmem:[#allocation8 + $0x8] sm:$0xff] }
  0x2b   :  { %429 = vmatpush.msra.mxu3 %v3617_v11  ;;  %254 = vmatpush.msra.mxu1 %v242_v23  ;;  %v3641_v34 = vld [vmem:[#allocation10 + $0x10] sm:$0xff]  ;;  %v3644_v36 = vld [vmem:[#allocation10 + $0x8] sm:$0xff]  ;;  %v238_v37 = vld [vmem:[#allocation8 + $0xc0] sm:$0xff] }
  0x2c   :  { %186 = vmatpush.msra.mxu0 %v169_v12  ;;  %5415 = vst [vmem:[#allocation23_spill] sm:$0xff] %v3641_v34  ;;  %v237_v38 = vld [vmem:[#allocation8 + $0xb8] sm:$0xff]  ;;  %v160_v39 = vld [vmem:[#allocation8] sm:$0xff]  ;;  %v236_v45 = vld [vmem:[#allocation8 + $0xb0] sm:$0xff] }
  0x2d   :  { %430 = vmatpush.msra.mxu3 %v3620_v13  ;;  %255 = vmatpush.msra.mxu1 %v241_v28  ;;  %5416 = vst [vmem:[#allocation24_spill] sm:$0xff] %v3644_v36  ;;  %v3647_v40 = vld [vmem:[#allocation10] sm:$0xff]  ;;  %v316_v42 = vld [vmem:[#allocation8 + $0x178] sm:$0xff]  ;;  %v315_v46 = vld [vmem:[#allocation8 + $0x170] sm:$0xff] }
  0x2e   :  { %187 = vmatpush.msra.mxu0 %v168_v14  ;;  %5417 = vst [vmem:[#allocation25_spill] sm:$0xff] %v3647_v40  ;;  %v3650_v41 = vld [vmem:[#allocation5] sm:$0xff]  ;;  %v3652_v43 = vld [vmem:[#allocation10 + $0xf8] sm:$0xff]  ;;  %322 = vmatpush.msra.mxu2 %v316_v42  ;;  %v3659_v48 = vld [vmem:[#allocation10 + $0xf0] sm:$0xff] }
  0x2f   :  { %431 = vmatpush.msra.mxu3 %v3623_v15  ;;  %256 = vmatpush.msra.mxu1 %v240_v31  ;;  %v3654_v44 = vld [vmem:[#allocation10 + $0x178] sm:$0xff]  ;;  %v3661_v49 = vld [vmem:[#allocation10 + $0x170] sm:$0xff]  ;;  %v235_v50 = vld [vmem:[#allocation8 + $0xa8] sm:$0xff] }
  0x30   :  { %188 = vmatpush.msra.mxu0 %v167_v18  ;;  %v314_v51 = vld [vmem:[#allocation8 + $0x168] sm:$0xff]  ;;  %323 = vmatpush.msra.mxu2 %v315_v46  ;;  %v234_v54 = vld [vmem:[#allocation8 + $0xa0] sm:$0xff]  ;;  %v233_v59 = vld [vmem:[#allocation8 + $0x98] sm:$0xff] }
  0x31   :  { %432 = vmatpush.msra.mxu3 %v3626_v19  ;;  %257 = vmatpush.msra.mxu1 %v239_v32  ;;  %v3665_v52 = vld [vmem:[#allocation10 + $0xe8] sm:$0xff]  ;;  %v313_v55 = vld [vmem:[#allocation8 + $0x160] sm:$0xff]  ;;  %v3679_v60 = vld [vmem:[#allocation10 + $0xd8] sm:$0xff] }
  0x32   :  { %189 = vmatpush.msra.mxu0 %v166_v21  ;;  %v3667_v53 = vld [vmem:[#allocation10 + $0x168] sm:$0xff]  ;;  %v3671_v56 = vld [vmem:[#allocation10 + $0xe0] sm:$0xff]  ;;  %324 = vmatpush.msra.mxu2 %v314_v51  ;;  %v3681_v61 = vld [vmem:[#allocation10 + $0x158] sm:$0xff] }
  0x33   :  { %433 = vmatpush.msra.mxu3 %v3629_v22  ;;  %258 = vmatpush.msra.mxu1 %v238_v37  ;;  %v3673_v57 = vld [vmem:[#allocation10 + $0x160] sm:$0xff]  ;;  %v3676_v58 = vld [vmem:[#allocation5 + $0x8] sm:$0xff]  ;;  %v232_v62 = vld [vmem:[#allocation8 + $0x90] sm:$0xff] }
  0x34   :  { %190 = vmatpush.msra.mxu0 %v165_v24  ;;  %325 = vmatpush.msra.mxu2 %v313_v55  ;;  %v312_v63 = vld [vmem:[#allocation8 + $0x158] sm:$0xff]  ;;  %v3686_v0 = vld [vmem:[#allocation10 + $0xd0] sm:$0xff]  ;;  %v231_v4 = vld [vmem:[#allocation8 + $0x88] sm:$0xff] }
  0x35   :  { %434 = vmatpush.msra.mxu3 %v3632_v25  ;;  %259 = vmatpush.msra.mxu1 %v237_v38  ;;  %v3688_v2 = vld [vmem:[#allocation10 + $0x150] sm:$0xff]  ;;  %v3692_v8 = vld [vmem:[#allocation10 + $0xc8] sm:$0xff]  ;;  %v230_v12 = vld [vmem:[#allocation8 + $0x80] sm:$0xff] }
  0x36   :  { %191 = vmatpush.msra.mxu0 %v164_v26  ;;  %v311_v6 = vld [vmem:[#allocation8 + $0x150] sm:$0xff]  ;;  %v3694_v10 = vld [vmem:[#allocation10 + $0x148] sm:$0xff]  ;;  %326 = vmatpush.msra.mxu2 %v312_v63  ;;  %v3698_v16 = vld [vmem:[#allocation10 + $0xc0] sm:$0xff] }
  0x37   :  { %435 = vmatpush.msra.mxu3 %v3635_v27  ;;  %260 = vmatpush.msra.mxu1 %v236_v45  ;;  %v310_v14 = vld [vmem:[#allocation8 + $0x148] sm:$0xff]  ;;  %v3700_v17 = vld [vmem:[#allocation10 + $0x140] sm:$0xff]  ;;  %v3703_v18 = vld [vmem:[#allocation5 + $0x10] sm:$0xff] }
  0x38   :  { %192 = vmatpush.msra.mxu0 %v163_v29  ;;  %327 = vmatpush.msra.mxu2 %v311_v6  ;;  %v3706_v20 = vld [vmem:[#allocation10 + $0xb8] sm:$0xff]  ;;  %v309_v23 = vld [vmem:[#allocation8 + $0x140] sm:$0xff]  ;;  %v3713_v24 = vld [vmem:[#allocation10 + $0xb0] sm:$0xff] }
  0x39   :  { %436 = vmatpush.msra.mxu3 %v3638_v30  ;;  %261 = vmatpush.msra.mxu1 %v235_v50  ;;  %v3708_v21 = vld [vmem:[#allocation10 + $0x138] sm:$0xff]  ;;  %v3716_v26 = vld [vmem:[#allocation10 + $0x130] sm:$0xff]  ;;  %v3720_v29 = vld [vmem:[#allocation10 + $0xa8] sm:$0xff] }
  0x3a   :  { %193 = vmatpush.msra.mxu0 %v162_v33  ;;  %328 = vmatpush.msra.mxu2 %v310_v14  ;;  %v308_v28 = vld [vmem:[#allocation8 + $0x138] sm:$0xff]  ;;  %v3722_v31 = vld [vmem:[#allocation10 + $0x128] sm:$0xff]  ;;  %v307_v32 = vld [vmem:[#allocation8 + $0x130] sm:$0xff] }
  0x3b   :  { %437 = vmatpush.msra.mxu3 %v3641_v34  ;;  %262 = vmatpush.msra.mxu1 %v234_v54  ;;  %v3727_v33 = vld [vmem:[#allocation10 + $0xa0] sm:$0xff]  ;;  %v3733_v37 = vld [vmem:[#allocation5 + $0x18] sm:$0xff]  ;;  %v306_v38 = vld [vmem:[#allocation8 + $0x128] sm:$0xff] }
  0x3c   :  { %194 = vmatpush.msra.mxu0 %v161_v35  ;;  %329 = vmatpush.msra.mxu2 %v309_v23  ;;  %v3729_v35 = vld [vmem:[#allocation10 + $0x120] sm:$0xff]  ;;  %v3738_v42 = vld [vmem:[#allocation10 + $0x118] sm:$0xff]  ;;  %v3744_v46 = vld [vmem:[#allocation10 + $0x90] sm:$0xff] }
  0x3d   :  { %438 = vmatpush.msra.mxu3 %v3644_v36  ;;  %263 = vmatpush.msra.mxu1 %v233_v59  ;;  %v305_v45 = vld [vmem:[#allocation8 + $0x120] sm:$0xff]  ;;  %5418 = vst [vmem:[#allocation26_spill] sm:$0xff] %v3744_v46  ;;  %v3746_v50 = vld [vmem:[#allocation10 + $0x110] sm:$0xff]  ;;  %v304_v51 = vld [vmem:[#allocation8 + $0x118] sm:$0xff] }
  0x3e   :  { %195 = vmatpush.msra.mxu0 %v160_v39  ;;  %330 = vmatpush.msra.mxu2 %v308_v28  ;;  %v3736_v39 = vld [vmem:[#allocation10 + $0x98] sm:$0xff]  ;;  %v3750_v54 = vld [vmem:[#allocation10 + $0x88] sm:$0xff]  ;;  %v303_v59 = vld [vmem:[#allocation8 + $0x110] sm:$0xff] }
  0x3f   :  { %439 = vmatpush.msra.mxu3 %v3647_v40  ;;  %196 = vmatmul.f32.vlgmr.msra.gmra.mxu0 %v3650_v41  ;;  %5419 = vst [vmem:[#allocation27_spill] sm:$0xff] %v3750_v54  ;;  %v3752_v55 = vld [vmem:[#allocation10 + $0x108] sm:$0xff]  ;;  %v3759_v63 = vld [vmem:[#allocation10 + $0x100] sm:$0xff] }
  0x40   :  { %440 = vmatmul.f32.vlgmr.msra.gmra.mxu3 %v5364_v47  ;;  %510 = vmatpush.msrb.mxu0 %v3654_v44  ;;  %5420 = vst [vmem:[#allocation28_spill] sm:$0xff] %v3752_v55  ;;  %v302_v6 = vld [vmem:[#allocation8 + $0x108] sm:$0xff]  ;;  %v3920_v28 = vld [vmem:[#allocation11] ss:$0 sm:$0xff] }
  0x41   :  { %444 = vmatpush.msrb.mxu3 %v3652_v43  ;;  %264 = vmatpush.msra.mxu1 %v232_v62  ;;  %v3757_v62 = vld [vmem:[#allocation10 + $0x80] sm:$0xff]  ;;  %5422 = vst [vmem:[#allocation30_spill] sm:$0xff] %v3759_v63  ;;  %v3777_v14 = vld [vmem:[#allocation5 + $0x28] sm:$0xff] }
  0x42   :  { %511 = vmatpush.msrb.mxu0 %v3661_v49  ;;  %331 = vmatpush.msra.mxu2 %v307_v32  ;;  %5421 = vst [vmem:[#allocation29_spill] sm:$0xff] %v3757_v62 }
  0x43   :  { %445 = vmatpush.msrb.mxu3 %v3659_v48  ;;  %265 = vmatpush.msra.mxu1 %v231_v4  ;;  %v3763_v4 = vld [vmem:[#allocation5 + $0x20] sm:$0xff]  ;;  %5424 = vst [vmem:[#allocation32_spill] sm:$0xff] %v3920_v28 }
  0x44   :  { %512 = vmatpush.msrb.mxu0 %v3667_v53  ;;  %332 = vmatpush.msra.mxu2 %v306_v38 }
  0x45   :  { %446 = vmatpush.msrb.mxu3 %v3665_v52  ;;  %266 = vmatpush.msra.mxu1 %v230_v12  ;;  %v301_v12 = vld [vmem:[#allocation8 + $0x100] sm:$0xff] }
  0x46   :  { %513 = vmatpush.msrb.mxu0 %v3673_v57  ;;  %267 = vmatmul.f32.vlgmr.msra.gmra.mxu1 %v3650_v41 }
  0x47   :  { %447 = vmatpush.msrb.mxu3 %v3671_v56  ;;  %199 = vmatmul.f32.gmra.mxu0 %v3676_v58 }
  0x48   :  { %514 = vmatpush.msrb.mxu0 %v3681_v61  ;;  %568 = vmatpush.msrb.mxu1 %v3603_v1 }
  0x49   :  { %448 = vmatpush.msrb.mxu3 %v3679_v60  ;;  %333 = vmatpush.msra.mxu2 %v305_v45 }
  0x4a   :  { %515 = vmatpush.msrb.mxu0 %v3688_v2  ;;  %569 = vmatpush.msrb.mxu1 %v3606_v3 }
  0x4b   :  { %449 = vmatpush.msrb.mxu3 %v3686_v0  ;;  %334 = vmatpush.msra.mxu2 %v304_v51 }
  0x4c   :  { %516 = vmatpush.msrb.mxu0 %v3694_v10  ;;  %570 = vmatpush.msrb.mxu1 %v3608_v5 }
  0x4d   :  { %450 = vmatpush.msrb.mxu3 %v3692_v8  ;;  %335 = vmatpush.msra.mxu2 %v303_v59 }
  0x4e   :  { %517 = vmatpush.msrb.mxu0 %v3700_v17  ;;  %270 = vmatmul.f32.gmra.mxu1 %v3676_v58 }
  0x4f   :  { %451 = vmatpush.msrb.mxu3 %v3698_v16  ;;  %202 = vmatmul.f32.gmra.mxu0 %v3703_v18 }
  0x50   :  { %518 = vmatpush.msrb.mxu0 %v3708_v21  ;;  %571 = vmatpush.msrb.mxu1 %v3611_v7 }
  0x51   :  { %452 = vmatpush.msrb.mxu3 %v3706_v20  ;;  %336 = vmatpush.msra.mxu2 %v302_v6 }
  0x52   :  { %519 = vmatpush.msrb.mxu0 %v3716_v26  ;;  %572 = vmatpush.msrb.mxu1 %v3614_v9 }
  0x53   :  { %453 = vmatpush.msrb.mxu3 %v3713_v24  ;;  %337 = vmatpush.msra.mxu2 %v301_v12  ;;  %v3928_v12 = vld [vmem:[#allocation11 + $0x1] ss:$0 sm:$0xff] }
  0x54   :  { %520 = vmatpush.msrb.mxu0 %v3722_v31  ;;  %573 = vmatpush.msrb.mxu1 %v3617_v11  ;;  %5427 = vst [vmem:[#allocation35_spill] sm:$0xff] %v3928_v12 }
  0x55   :  { %454 = vmatpush.msrb.mxu3 %v3720_v29  ;;  %338 = vmatmul.f32.vlgmr.msra.gmra.mxu2 %v3650_v41  ;;  %v3795_v41 = vld [vmem:[#allocation5 + $0x30] sm:$0xff] }
  0x56   :  { %521 = vmatpush.msrb.mxu0 %v3729_v35  ;;  %273 = vmatmul.f32.gmra.mxu1 %v3703_v18 }
  0x57   :  { %455 = vmatpush.msrb.mxu3 %v3727_v33  ;;  %205 = vmatmul.f32.gmra.mxu0 %v3733_v37 }
  0x58   :  { %522 = vmatpush.msrb.mxu0 %v3738_v42  ;;  %574 = vmatpush.msrb.mxu1 %v3620_v13 }
  0x59   :  { %456 = vmatpush.msrb.mxu3 %v3736_v39  ;;  %588 = vmatpush.msrb.mxu2 %v3652_v43 }
  0x5a   :  { %523 = vmatpush.msrb.mxu0 %v3746_v50  ;;  %575 = vmatpush.msrb.mxu1 %v3623_v15 }
  0x5b   :  { %457 = vmatpush.msrb.mxu3 %v3744_v46  ;;  %589 = vmatpush.msrb.mxu2 %v3659_v48 }
  0x5c   :  { %524 = vmatpush.msrb.mxu0 %v3752_v55  ;;  %576 = vmatpush.msrb.mxu1 %v3626_v19 }
  0x5d   :  { %458 = vmatpush.msrb.mxu3 %v3750_v54  ;;  %590 = vmatpush.msrb.mxu2 %v3665_v52 }
  0x5e   :  { %525 = vmatpush.msrb.mxu0 %v3759_v63  ;;  %577 = vmatpush.msrb.mxu1 %v3629_v22 }
  0x5f   :  { %459 = vmatpush.msrb.mxu3 %v3757_v62  ;;  %208 = vmatmul.f32.gmra.mxu0 %v3763_v4 }
  0x60   :  { %460 = vmatmul.f32.vlgmr.msrb.gmra.mxu3 %v5364_v47  ;;  %707 = vmatpush.msra.mxu0 %v3603_v1 }
  0x61   :  { %654 = vmatpush.msra.mxu3 %v3654_v44  ;;  %276 = vmatmul.f32.gmra.mxu1 %v3733_v37 }
  0x62   :  { %591 = vmatpush.msrb.mxu2 %v3671_v56  ;;  %578 = vmatpush.msrb.mxu1 %v3632_v25 }
  0x63   :  { %655 = vmatpush.msra.mxu3 %v3661_v49  ;;  %341 = vmatmul.f32.gmra.mxu2 %v3676_v58  ;;  %v3813_v58 = vld [vmem:[#allocation5 + $0x38] sm:$0xff] }
  0x64   :  { %592 = vmatpush.msrb.mxu2 %v3679_v60  ;;  %579 = vmatpush.msrb.mxu1 %v3635_v27 }
  0x65   :  { %656 = vmatpush.msra.mxu3 %v3667_v53  ;;  %708 = vmatpush.msra.mxu0 %v3606_v3 }
  0x66   :  { %593 = vmatpush.msrb.mxu2 %v3686_v0  ;;  %580 = vmatpush.msrb.mxu1 %v3638_v30 }
  0x67   :  { %211 = vmatmul.f32.gmra.mxu0 %v3777_v14  ;;  %657 = vmatpush.msra.mxu3 %v3673_v57 }
  0x68   :  { %594 = vmatpush.msrb.mxu2 %v3692_v8  ;;  %581 = vmatpush.msrb.mxu1 %v3641_v34 }
  0x69   :  { %658 = vmatpush.msra.mxu3 %v3681_v61  ;;  %279 = vmatmul.f32.gmra.mxu1 %v3763_v4 }
  0x6a   :  { %595 = vmatpush.msrb.mxu2 %v3698_v16  ;;  %582 = vmatpush.msrb.mxu1 %v3644_v36 }
  0x6b   :  { %659 = vmatpush.msra.mxu3 %v3688_v2  ;;  %344 = vmatmul.f32.gmra.mxu2 %v3703_v18 }
  0x6c   :  { %596 = vmatpush.msrb.mxu2 %v3706_v20  ;;  %583 = vmatpush.msrb.mxu1 %v3647_v40 }
  0x6d   :  { %660 = vmatpush.msra.mxu3 %v3694_v10  ;;  %709 = vmatpush.msra.mxu0 %v3608_v5 }
  0x6e   :  { %727 = vmatpush.msra.mxu1 %v3652_v43  ;;  %597 = vmatpush.msrb.mxu2 %v3713_v24 }
  0x6f   :  { %214 = vmatmul.f32.gmra.mxu0 %v3795_v41  ;;  %661 = vmatpush.msra.mxu3 %v3700_v17 }
  0x70   :  { %598 = vmatpush.msrb.mxu2 %v3720_v29  ;;  %728 = vmatpush.msra.mxu1 %v3659_v48 }
  0x71   :  { %662 = vmatpush.msra.mxu3 %v3708_v21  ;;  %282 = vmatmul.f32.gmra.mxu1 %v3777_v14 }
  0x72   :  { %599 = vmatpush.msrb.mxu2 %v3727_v33  ;;  %729 = vmatpush.msra.mxu1 %v3665_v52 }
  0x73   :  { %663 = vmatpush.msra.mxu3 %v3716_v26  ;;  %347 = vmatmul.f32.gmra.mxu2 %v3733_v37 }
  0x74   :  { %600 = vmatpush.msrb.mxu2 %v3736_v39  ;;  %710 = vmatpush.msra.mxu0 %v3611_v7 }
  0x75   :  { %664 = vmatpush.msra.mxu3 %v3722_v31  ;;  %730 = vmatpush.msra.mxu1 %v3671_v56 }
  0x76   :  { %601 = vmatpush.msrb.mxu2 %v3744_v46  ;;  %711 = vmatpush.msra.mxu0 %v3614_v9 }
  0x77   :  { %217 = vmatmul.f32.gmra.mxu0 %v3813_v58  ;;  %665 = vmatpush.msra.mxu3 %v3729_v35 }
  0x78   :  { %602 = vmatpush.msrb.mxu2 %v3750_v54  ;;  %731 = vmatpush.msra.mxu1 %v3679_v60 }
  0x79   :  { %666 = vmatpush.msra.mxu3 %v3738_v42  ;;  %285 = vmatmul.f32.gmra.mxu1 %v3795_v41 }
  0x7a   :  { %712 = vmatpush.msra.mxu0 %v3617_v11  ;;  %603 = vmatpush.msrb.mxu2 %v3757_v62 }
  0x7b   :  { %667 = vmatpush.msra.mxu3 %v3746_v50  ;;  %732 = vmatpush.msra.mxu1 %v3686_v0 }
  0x7c   :  { %350 = vmatmul.f32.gmra.mxu2 %v3763_v4  ;;  %713 = vmatpush.msra.mxu0 %v3620_v13 }
  0x7d   :  { %668 = vmatpush.msra.mxu3 %v3752_v55  ;;  %793 = vmatpush.msra.mxu2 %v3654_v44 }
  0x7e   :  { %733 = vmatpush.msra.mxu1 %v3692_v8  ;;  %714 = vmatpush.msra.mxu0 %v3623_v15 }
  0x7f   :  { %526 = vmatmul.f32.vlgmr.msrb.gmra.mxu0 %v5364_v47  ;;  %669 = vmatpush.msra.mxu3 %v3759_v63 }
  0x80   :  { %794 = vmatpush.msra.mxu2 %v3661_v49  ;;  %734 = vmatpush.msra.mxu1 %v3698_v16 }
  0x81   :  { %846 = vmatpush.msrb.mxu3 %v3603_v1  ;;  %715 = vmatpush.msra.mxu0 %v3626_v19 }
  0x82   :  { %795 = vmatpush.msra.mxu2 %v3667_v53  ;;  %735 = vmatpush.msra.mxu1 %v3706_v20 }
  0x83   :  { %847 = vmatpush.msrb.mxu3 %v3606_v3  ;;  %288 = vmatmul.f32.gmra.mxu1 %v3813_v58 }
  0x84   :  { %716 = vmatpush.msra.mxu0 %v3629_v22  ;;  %796 = vmatpush.msra.mxu2 %v3673_v57 }
  0x85   :  { %736 = vmatpush.msra.mxu1 %v3713_v24  ;;  %353 = vmatmul.f32.gmra.mxu2 %v3777_v14 }
  0x86   :  { %717 = vmatpush.msra.mxu0 %v3632_v25  ;;  %797 = vmatpush.msra.mxu2 %v3681_v61 }
  0x87   :  { %737 = vmatpush.msra.mxu1 %v3720_v29  ;;  %848 = vmatpush.msrb.mxu3 %v3608_v5 }
  0x88   :  { %718 = vmatpush.msra.mxu0 %v3635_v27  ;;  %798 = vmatpush.msra.mxu2 %v3688_v2 }
  0x89   :  { %738 = vmatpush.msra.mxu1 %v3727_v33  ;;  %849 = vmatpush.msrb.mxu3 %v3611_v7 }
  0x8a   :  { %719 = vmatpush.msra.mxu0 %v3638_v30  ;;  %799 = vmatpush.msra.mxu2 %v3694_v10 }
  0x8b   :  { %739 = vmatpush.msra.mxu1 %v3736_v39  ;;  %850 = vmatpush.msrb.mxu3 %v3614_v9 }
  0x8c   :  { %720 = vmatpush.msra.mxu0 %v3641_v34  ;;  %800 = vmatpush.msra.mxu2 %v3700_v17 }
  0x8d   :  { %740 = vmatpush.msra.mxu1 %v3744_v46  ;;  %356 = vmatmul.f32.gmra.mxu2 %v3795_v41 }
  0x8e   :  { %721 = vmatpush.msra.mxu0 %v3644_v36  ;;  %801 = vmatpush.msra.mxu2 %v3708_v21 }
  0x8f   :  { %741 = vmatpush.msra.mxu1 %v3750_v54  ;;  %851 = vmatpush.msrb.mxu3 %v3617_v11 }
  0x90   :  { %722 = vmatpush.msra.mxu0 %v3647_v40  ;;  %802 = vmatpush.msra.mxu2 %v3716_v26 }
  0x91   :  { %742 = vmatpush.msra.mxu1 %v3757_v62  ;;  %852 = vmatpush.msrb.mxu3 %v3620_v13 }
  0x92   :  { %866 = vmatpush.msrb.mxu0 %v3652_v43  ;;  %803 = vmatpush.msra.mxu2 %v3722_v31 }
  0x93   :  { %853 = vmatpush.msrb.mxu3 %v3623_v15 }
  0x94   :  { %867 = vmatpush.msrb.mxu0 %v3659_v48  ;;  %804 = vmatpush.msra.mxu2 %v3729_v35 }
  0x95   :  { %359 = vmatmul.f32.gmra.mxu2 %v3813_v58  ;;  %854 = vmatpush.msrb.mxu3 %v3626_v19 }
  0x96   :  { %868 = vmatpush.msrb.mxu0 %v3665_v52  ;;  %805 = vmatpush.msra.mxu2 %v3738_v42 }
  0x97   :  { %855 = vmatpush.msrb.mxu3 %v3629_v22 }
  0x98   :  { %869 = vmatpush.msrb.mxu0 %v3671_v56  ;;  %806 = vmatpush.msra.mxu2 %v3746_v50 }
  0x99   :  { %856 = vmatpush.msrb.mxu3 %v3632_v25 }
  0x9a   :  { %870 = vmatpush.msrb.mxu0 %v3679_v60  ;;  %807 = vmatpush.msra.mxu2 %v3752_v55 }
  0x9b   :  { %857 = vmatpush.msrb.mxu3 %v3635_v27 }
  0x9c   :  { %871 = vmatpush.msrb.mxu0 %v3686_v0  ;;  %808 = vmatpush.msra.mxu2 %v3759_v63 }
  0x9d   :  { %858 = vmatpush.msrb.mxu3 %v3638_v30 }
  0x9e   :  { %872 = vmatpush.msrb.mxu0 %v3692_v8 }
  0x9f   :  { %859 = vmatpush.msrb.mxu3 %v3641_v34 }
  0xa0   :  { %873 = vmatpush.msrb.mxu0 %v3698_v16 }
  0xa1   :  { %860 = vmatpush.msrb.mxu3 %v3644_v36 }
  0xa2   :  { %874 = vmatpush.msrb.mxu0 %v3706_v20 }
  0xa3   :  { %861 = vmatpush.msrb.mxu3 %v3647_v40 }
  0xa4   :  { %875 = vmatpush.msrb.mxu0 %v3713_v24 }
  0xa6   :  { %876 = vmatpush.msrb.mxu0 %v3720_v29 }
  0xa8   :  { %877 = vmatpush.msrb.mxu0 %v3727_v33 }
  0xaa   :  { %878 = vmatpush.msrb.mxu0 %v3736_v39 }
  0xac   :  { %879 = vmatpush.msrb.mxu0 %v3744_v46 }
  0xae   :  { %880 = vmatpush.msrb.mxu0 %v3750_v54 }
  0xb0   :  { %881 = vmatpush.msrb.mxu0 %v3757_v62 }
  0xbc   :  { %v197_v18 = vpop.f32.mrf.mxu0 }
  0xbd   :  { %v198_v37 = vadd.f32 %v3920_v28, %v197_v18 }
  0xc3   :  { %v441_v32 = vpop.f32.mrf.mxu3  ;;  %v268_v41 = vpop.f32.mrf.mxu1 }
  0xc4   :  { %v3918_v23 = vpop.f32.mrf.mxu0  ;;  %v465_v45 = vadd.f32 %v441_v32, %v198_v37  ;;  %v269_v18 = vadd.f32 %v3928_v12, %v268_v41 }
  0xc5   :  { %5423 = vst [vmem:[#allocation31_spill] sm:$0xff] %v3918_v23 }
  0xc6   :  { %v2924_v51 = vmul.f32 -1.442695, %v465_v45 }
  0xc8   :  { %2983 = vpow2.f32 %v2924_v51 }
  0xcc   :  { %v3923_v38 = vpop.f32.mrf.mxu0 }
  0xcd   :  { %5425 = vst [vmem:[#allocation33_spill] sm:$0xff] %v3923_v38 }
  0xce   :  { %v2984_v6 = vpop.eup %2983 }
  0xcf   :  { %v469_v47 = vadd.f32 1.0, %v2984_v6 }
  0xd1   :  { %2985 = vrcp.f32 %v469_v47  ;;  %vm475_vm1 = vweird.f32 %v469_v47 }
  0xd4   :  { %v206_v59 = vpop.f32.mrf.mxu0 }
  0xd5   :  { %v3926_v4 = vadd.f32 %v3920_v28, %v206_v59 }
  0xd7   :  { %5426 = vst [vmem:[#allocation34_spill] sm:$0xff] %v3926_v4  ;;  %v2986_v59 = vpop.eup %2985 }
  0xd8   :  { %v471_v4 = vmul.f32 %v2986_v59, %v469_v47  ;;  %vm476_vm0 = vweird.f32 %v2986_v59 }
  0xd9   :  { %vm477_vm2 = vmor %vm475_vm1, %vm476_vm0 }
  0xda   :  { %v472_v6 = vsub.f32 1.0, %v471_v4  ;;  %v339_v4 = vpop.f32.mrf.mxu2 }
  0xdc   :  { %v209_v14 = vpop.f32.mrf.mxu0  ;;  %v473_v41 = vmul.f32 %v2986_v59, %v472_v6 }
  0xdd   :  { %v3931_v58 = vadd.f32 %v3920_v28, %v209_v14 }
  0xdf   :  { %5428 = vst [vmem:[#allocation36_spill] sm:$0xff] %v3931_v58 }
  0xe3   :  { %v461_v38 = vpop.f32.mrf.mxu3 }
  0xe4   :  { %v486_v32 = vadd.f32 %v461_v38, %v269_v18  ;;  %v212_v37 = vpop.f32.mrf.mxu0 }
  0xe5   :  { %v3935_v51 = vadd.f32 %v3920_v28, %v212_v37  ;;  %v474_v37 = vadd.f32 %v2986_v59, %v473_v41 }
  0xe6   :  { %v2925_v45 = vmul.f32 -1.442695, %v486_v32 }
  0xe7   :  { %5429 = vst [vmem:[#allocation37_spill] sm:$0xff] %v3935_v51  ;;  %v481_v51 = vand.u32 2147483648, %v469_v47 }
  0xe8   :  { %2987 = vpow2.f32 %v2925_v45  ;;  %v479_v45 = vand.u32 2147483647, %v469_v47 }
  0xea   :  { %vm480_vm3 = vcmp.eq.f32.partialorder %v479_v45, 8.507059e+37 }
  0xec   :  { %v215_v23 = vpop.f32.mrf.mxu0 }
  0xed   :  { %v3938_v40 = vadd.f32 %v3920_v28, %v215_v23  ;;  %v3946_v23 = vld [vmem:[%s5354_s4] ss:$0 sm:$0xff] }
  0xee   :  { %v2988_v62 = vpop.eup %2987 }
  0xef   :  { %5430 = vst [vmem:[#allocation38_spill] sm:$0xff] %v3938_v40  ;;  %v490_v14 = vadd.f32 1.0, %v2988_v62  ;;  %v3948_v62 = vld [vmem:[#allocation11 + $0x2] ss:$0 sm:$0xff] }
  0xf1   :  { %2989 = vrcp.f32 %v490_v14  ;;  %vm496_vm4 = vweird.f32 %v490_v14  ;;  %v502_v63 = vand.u32 2147483648, %v490_v14  ;;  %v500_v36 = vand.u32 2147483647, %v490_v14 }
  0xf3   :  { %v503_v34 = vor.u32 1.1754944e-38, %v502_v63  ;;  %vm501_vm7 = vcmp.eq.f32.partialorder %v500_v36, 8.507059e+37 }
  0xf4   :  { %v218_v58 = vpop.f32.mrf.mxu0 }
  0xf5   :  { %v3941_v38 = vadd.f32 %v3920_v28, %v218_v58  ;;  %v478_v58 = vsel %vm477_vm2, %v2986_v59, %v474_v37  ;;  %v340_v28 = vadd.f32 %v3948_v62, %v339_v4 }
  0xf7   :  { %5431 = vst [vmem:[#allocation39_spill] sm:$0xff] %v3941_v38  ;;  %v2990_v18 = vpop.eup %2989  ;;  %v482_v38 = vor.u32 1.1754944e-38, %v481_v51 }
  0xf8   :  { %v492_v32 = vmul.f32 %v2990_v18, %v490_v14  ;;  %vm497_vm5 = vweird.f32 %v2990_v18 }
  0xf9   :  { %v483_v47 = vsel %vm480_vm3, %v482_v38, %v478_v58  ;;  %vm498_vm6 = vmor %vm496_vm4, %vm497_vm5 }
  0xfa   :  { %v493_v12 = vsub.f32 1.0, %v492_v32 }
  0xfc   :  { %v494_v6 = vmul.f32 %v2990_v18, %v493_v12  ;;  %v527_v40 = vpop.f32.mrf.mxu0 }
  0xfd   :  { %v528_v41 = vadd.f32 %v3946_v23, %v527_v40 }
  0xfe   :  { %v495_v32 = vadd.f32 %v2990_v18, %v494_v6 }
  0xff   :  { %v530_v54 = vmul.f32 %v528_v41, %v483_v47  ;;  %v5449_v41 = vld [vmem:[#allocation31_spill] sm:$0xff] }
 0x100   :  { %v499_v46 = vsel %vm498_vm6, %v2990_v18, %v495_v32  ;;  %v5450_v32 = vld [vmem:[#allocation32_spill] sm:$0xff] }
 0x101   :  { %v531_v55 = vadd.f32 %v530_v54, %v340_v28  ;;  %v504_v12 = vsel %vm501_vm7, %v503_v34, %v499_v46  ;;  %v201_v47 = vadd.f32 %v5450_v32, %v5449_v41 }
 0x102   :  { %v533_v51 = vsub.f32 1.0, %v504_v12  ;;  %v535_v40 = vmul.f32 0.0, %v504_v12 }
 0x103   :  { %2991 = vtanh.f32 %v531_v55 }
 0x109   :  { %v2992_v59 = vpop.eup %2991 }
 0x10a   :  { %v534_v37 = vmul.f32 %v2992_v59, %v533_v51 }
 0x10c   :  { %v3952_v45 = vadd.f32 %v535_v40, %v534_v37 }
 0x10e   :  { %537 = vadd.xlane.f32.xlu0 %v3952_v45  ;;  %584 = vmatmul.f32.vlgmr.msrb.gmra.mxu1 %v3952_v45  ;;  %v540_v34 = vmul.f32 %v3952_v45, %v3952_v45 }
 0x10f   :  { %604 = vmatmul.f32.vlgmr.msrb.gmra.mxu2 %v3952_v45  ;;  %670 = vmatmul.f32.vlgmr.msra.gmra.mxu3 %v3952_v45 }
 0x110   :  { %932 = vmatpush.msrb.mxu1 %v3654_v44  ;;  %985 = vmatpush.msrb.mxu2 %v3603_v1  ;;  %v5432_v1 = vld [vmem:[#allocation23_spill] sm:$0xff] }
 0x111   :  { %1005 = vmatpush.msra.mxu3 %v3652_v43 }
 0x112   :  { %933 = vmatpush.msrb.mxu1 %v3661_v49  ;;  %986 = vmatpush.msrb.mxu2 %v3606_v3  ;;  %v5433_v3 = vld [vmem:[#allocation26_spill] sm:$0xff] }
 0x113   :  { %1006 = vmatpush.msra.mxu3 %v3659_v48 }
 0x114   :  { %934 = vmatpush.msrb.mxu1 %v3667_v53  ;;  %987 = vmatpush.msrb.mxu2 %v3608_v5  ;;  %v5434_v5 = vld [vmem:[#allocation28_spill] sm:$0xff] }
 0x115   :  { %1007 = vmatpush.msra.mxu3 %v3665_v52 }
 0x116   :  { %541 = vadd.xlane.f32.xlu0 %v540_v34  ;;  %935 = vmatpush.msrb.mxu1 %v3673_v57 }
 0x117   :  { %988 = vmatpush.msrb.mxu2 %v3611_v7  ;;  %1008 = vmatpush.msra.mxu3 %v3671_v56  ;;  %v5435_v7 = vld [vmem:[#allocation24_spill] sm:$0xff] }
 0x118   :  { %936 = vmatpush.msrb.mxu1 %v3681_v61 }
 0x119   :  { %989 = vmatpush.msrb.mxu2 %v3614_v9  ;;  %1009 = vmatpush.msra.mxu3 %v3679_v60  ;;  %v5436_v9 = vld [vmem:[#allocation27_spill] sm:$0xff] }
 0x11a   :  { %937 = vmatpush.msrb.mxu1 %v3688_v2 }
 0x11b   :  { %990 = vmatpush.msrb.mxu2 %v3617_v11  ;;  %1010 = vmatpush.msra.mxu3 %v3686_v0  ;;  %v5437_v11 = vld [vmem:[#allocation30_spill] sm:$0xff] }
 0x11c   :  { %938 = vmatpush.msrb.mxu1 %v3694_v10 }
 0x11d   :  { %991 = vmatpush.msrb.mxu2 %v3620_v13  ;;  %1011 = vmatpush.msra.mxu3 %v3692_v8  ;;  %v5438_v13 = vld [vmem:[#allocation25_spill] sm:$0xff] }
 0x11e   :  { %939 = vmatpush.msrb.mxu1 %v3700_v17 }
 0x11f   :  { %992 = vmatpush.msrb.mxu2 %v3623_v15  ;;  %1012 = vmatpush.msra.mxu3 %v3698_v16  ;;  %v5439_v15 = vld [vmem:[#allocation29_spill] sm:$0xff] }
 0x120   :  { %940 = vmatpush.msrb.mxu1 %v3708_v21 }
 0x121   :  { %993 = vmatpush.msrb.mxu2 %v3626_v19  ;;  %1013 = vmatpush.msra.mxu3 %v3706_v20  ;;  %v271_v19 = vpop.f32.mrf.mxu1 }
 0x122   :  { %941 = vmatpush.msrb.mxu1 %v3716_v26 }
 0x123   :  { %994 = vmatpush.msrb.mxu2 %v3629_v22  ;;  %1014 = vmatpush.msra.mxu3 %v3713_v24  ;;  %v4008_v22 = vpop.f32.mrf.mxu2 }
 0x124   :  { %942 = vmatpush.msrb.mxu1 %v3722_v31 }
 0x125   :  { %995 = vmatpush.msrb.mxu2 %v3632_v25  ;;  %1015 = vmatpush.msra.mxu3 %v3720_v29 }
 0x126   :  { %943 = vmatpush.msrb.mxu1 %v3729_v35 }
 0x127   :  { %996 = vmatpush.msrb.mxu2 %v3635_v27  ;;  %1016 = vmatpush.msra.mxu3 %v3727_v33 }
 0x128   :  { %944 = vmatpush.msrb.mxu1 %v3738_v42 }
 0x129   :  { %997 = vmatpush.msrb.mxu2 %v3638_v30  ;;  %1017 = vmatpush.msra.mxu3 %v3736_v39  ;;  %v4010_v25 = vpop.f32.mrf.mxu1 }
 0x12a   :  { %945 = vmatpush.msrb.mxu1 %v3746_v50 }
 0x12b   :  { %998 = vmatpush.msrb.mxu2 %v5432_v1  ;;  %1018 = vmatpush.msra.mxu3 %v5433_v3  ;;  %v4012_v27 = vpop.f32.mrf.mxu2 }
 0x12c   :  { %946 = vmatpush.msrb.mxu1 %v5434_v5 }
 0x12d   :  { %999 = vmatpush.msrb.mxu2 %v5435_v7  ;;  %1019 = vmatpush.msra.mxu3 %v5436_v9  ;;  %v5451_v7 = vld [vmem:[#allocation35_spill] sm:$0xff] }
 0x12e   :  { %947 = vmatpush.msrb.mxu1 %v5437_v11 }
 0x12f   :  { %1000 = vmatpush.msrb.mxu2 %v5438_v13  ;;  %1020 = vmatpush.msra.mxu3 %v5439_v15  ;;  %v272_v13 = vadd.f32 %v5451_v7, %v271_v19 }
 0x131   :  { %v4014_v30 = vpop.f32.mrf.mxu1 }
 0x133   :  { %v4016_v36 = vpop.f32.mrf.mxu2 }
 0x134   :  { %5440 = vst [vmem:[#allocation23_spill] sm:$0xff] %v4016_v36 }
 0x139   :  { %v4018_v46 = vpop.f32.mrf.mxu1 }
 0x13a   :  { %5441 = vst [vmem:[#allocation26_spill] sm:$0xff] %v4018_v46 }
 0x13b   :  { %v4020_v54 = vpop.f32.mrf.mxu2 }
 0x13c   :  { %5442 = vst [vmem:[#allocation28_spill] sm:$0xff] %v4020_v54 }
 0x141   :  { %v4022_v55 = vpop.f32.mrf.mxu1 }
 0x142   :  { %5443 = vst [vmem:[#allocation24_spill] sm:$0xff] %v4022_v55 }
 0x143   :  { %v4024_v63 = vpop.f32.mrf.mxu2 }
 0x144   :  { %5444 = vst [vmem:[#allocation27_spill] sm:$0xff] %v4024_v63 }
 0x149   :  { %v4026_v28 = vpop.f32.mrf.mxu1 }
 0x14a   :  { %5445 = vst [vmem:[#allocation30_spill] sm:$0xff] %v4026_v28 }
 0x14b   :  { %v4028_v14 = vpop.f32.mrf.mxu2 }
 0x14c   :  { %5446 = vst [vmem:[#allocation25_spill] sm:$0xff] %v4028_v14 }
 0x151   :  { %v4030_v18 = vpop.f32.mrf.mxu1 }
 0x152   :  { %5447 = vst [vmem:[#allocation29_spill] sm:$0xff] %v4030_v18 }
 0x153   :  { %v4032_v6 = vpop.f32.mrf.mxu2 }
 0x154   :  { %5448 = vst [vmem:[#allocation40_spill] sm:$0xff] %v4032_v6 }
 0x181   :  { %v538_v38 = vpop.xlane.xlu0 %537 }
 0x182   :  { %v539_v4 = vmul.f32 0.015625, %v538_v38 }
 0x184   :  { %v544_v12 = vmul.f32 %v539_v4, %v539_v4  ;;  %v546_v19 = vsub.f32 %v3952_v45, %v539_v4 }
 0x189   :  { %v542_v58 = vpop.xlane.xlu0 %541 }
 0x18a   :  { %v543_v51 = vmul.f32 0.015625, %v542_v58 }
 0x18b   :  { %v585_v59 = vpop.f32.mrf.mxu1 }
 0x18c   :  { %v545_v37 = vsub.f32 %v543_v51, %v544_v12  ;;  %v610_v40 = vadd.f32 %v585_v59, %v201_v47 }
 0x18e   :  { %v547_v34 = vadd.f32 1e-05, %v545_v37  ;;  %v2926_v1 = vmul.f32 -1.442695, %v610_v40 }
 0x190   :  { %2993 = vrsqrt.f32 %v547_v34  ;;  %vm554_vm9 = vweird.f32 %v547_v34 }
 0x191   :  { %2995 = vpow2.f32 %v2926_v1 }
 0x192   :  { %v605_v14 = vpop.f32.mrf.mxu2 }
 0x193   :  { %v632_v18 = vadd.f32 %v605_v14, %v272_v13  ;;  %v2975_v14 = vld [vmem:[%s5355_s5] ss:$0 sm:$0xff] }
 0x195   :  { %v2927_v38 = vmul.f32 -1.442695, %v632_v18 }
 0x196   :  { %v2994_v28 = vpop.eup %2993 }
 0x197   :  { %v2996_v6 = vpop.eup %2995  ;;  %v549_v63 = vmul.f32 %v2994_v28, %v547_v34  ;;  %2997 = vpow2.f32 %v2927_v38  ;;  %vm555_vm8 = vweird.f32 %v2994_v28 }
 0x198   :  { %v614_v55 = vadd.f32 1.0, %v2996_v6  ;;  %vm556_vm10 = vmor %vm554_vm9, %vm555_vm8 }
 0x199   :  { %v550_v41 = vmul.f32 %v2994_v28, %v549_v63  ;;  %v2976_v63 = vld [vmem:[#allocation13] ss:$0 sm:$0xff] }
 0x19a   :  { %2999 = vrcp.f32 %v614_v55  ;;  %v626_v13 = vand.u32 2147483648, %v614_v55  ;;  %vm620_vm12 = vweird.f32 %v614_v55 }
 0x19b   :  { %v551_v58 = vmul.f32 0.5, %v550_v41 }
 0x19c   :  { %v627_v46 = vor.u32 1.1754944e-38, %v626_v13 }
 0x19d   :  { %v2998_v54 = vpop.eup %2997  ;;  %v552_v12 = vsub.f32 1.5, %v551_v58  ;;  %v671_v58 = vpop.f32.mrf.mxu3 }
 0x19e   :  { %v636_v47 = vadd.f32 1.0, %v2998_v54  ;;  %v624_v54 = vand.u32 2147483647, %v614_v55 }
 0x19f   :  { %v553_v51 = vmul.f32 %v2994_v28, %v552_v12 }
 0x1a0   :  { %v3000_v59 = vpop.eup %2999  ;;  %3001 = vrcp.f32 %v636_v47  ;;  %vm625_vm14 = vcmp.eq.f32.partialorder %v624_v54, 8.507059e+37  ;;  %vm642_vm0 = vweird.f32 %v636_v47 }
 0x1a1   :  { %v557_v18 = vsel %vm556_vm10, %v2994_v28, %v553_v51  ;;  %v616_v6 = vmul.f32 %v3000_v59, %v614_v55  ;;  %vm621_vm11 = vweird.f32 %v3000_v59  ;;  %v672_v51 = vadd.f32 %v3946_v23, %v671_v58 }
 0x1a2   :  { %v558_v37 = vmul.f32 %v557_v18, %v546_v19  ;;  %vm622_vm13 = vmor %vm620_vm12, %vm621_vm11  ;;  %v343_v19 = vadd.f32 %v3948_v62, %v4008_v22 }
 0x1a3   :  { %v617_v40 = vsub.f32 1.0, %v616_v6  ;;  %v648_v6 = vand.u32 2147483648, %v636_v47 }
 0x1a4   :  { %v562_v1 = vmul.f32 %v2975_v14, %v558_v37  ;;  %v646_v37 = vand.u32 2147483647, %v636_v47 }
 0x1a5   :  { %v618_v38 = vmul.f32 %v3000_v59, %v617_v40 }
 0x1a6   :  { %v3002_v34 = vpop.eup %3001  ;;  %v566_v41 = vadd.f32 %v2976_v63, %v562_v1  ;;  %v649_v1 = vor.u32 1.1754944e-38, %v648_v6  ;;  %vm647_vm2 = vcmp.eq.f32.partialorder %v646_v37, 8.507059e+37 }
 0x1a7   :  { %v638_v4 = vmul.f32 %v3002_v34, %v636_v47  ;;  %v619_v12 = vadd.f32 %v3000_v59, %v618_v38  ;;  %vm643_vm15 = vweird.f32 %v3002_v34 }
 0x1a8   :  { %567 = vst [vmem:[#allocation17] sm:$0xff] %v566_v41  ;;  %vm644_vm1 = vmor %vm642_vm0, %vm643_vm15 }
 0x1a9   :  { %v639_v36 = vsub.f32 1.0, %v638_v4  ;;  %v623_v28 = vsel %vm622_vm13, %v3000_v59, %v619_v12 }
 0x1aa   :  { %v628_v14 = vsel %vm625_vm14, %v627_v46, %v623_v28 }
 0x1ab   :  { %v640_v18 = vmul.f32 %v3002_v34, %v639_v36  ;;  %v674_v63 = vmul.f32 %v672_v51, %v628_v14  ;;  %v4052_v36 = vld [vmem:[#allocation10 + $0x78] sm:$0xff] }
 0x1ad   :  { %v641_v40 = vadd.f32 %v3002_v34, %v640_v18  ;;  %v675_v55 = vadd.f32 %v674_v63, %v343_v19  ;;  %v346_v63 = vadd.f32 %v3948_v62, %v4012_v27  ;;  %v4147_v27 = vld [vmem:[#allocation10 + $0x178] sm:$0xff] }
 0x1af   :  { %v645_v13 = vsel %vm644_vm1, %v3002_v34, %v641_v40  ;;  %3003 = vtanh.f32 %v675_v55 }
 0x1b0   :  { %v650_v59 = vsel %vm647_vm2, %v649_v1, %v645_v13 }
 0x1b1   :  { %v677_v38 = vsub.f32 1.0, %v650_v59  ;;  %v679_v22 = vmul.f32 %v650_v59, %v3952_v45  ;;  %v4057_v45 = vld [vmem:[#allocation10 + $0x70] sm:$0xff] }
 0x1b5   :  { %v3004_v54 = vpop.eup %3003 }
 0x1b6   :  { %v678_v41 = vmul.f32 %v3004_v54, %v677_v38 }
 0x1b8   :  { %v4045_v46 = vadd.f32 %v679_v22, %v678_v41 }
 0x1ba   :  { %5452 = vst [vmem:[#allocation31_spill] sm:$0xff] %v4045_v46  ;;  %681 = vadd.xlane.f32.xlu1 %v4045_v46  ;;  %723 = vmatmul.f32.vlgmr.msra.gmra.mxu0 %v4045_v46  ;;  %v684_v47 = vmul.f32 %v4045_v46, %v4045_v46 }
 0x1bb   :  { %743 = vmatmul.f32.vlgmr.msra.gmra.mxu1 %v4045_v46  ;;  %809 = vmatmul.f32.vlgmr.msra.gmra.mxu2 %v4045_v46 }
 0x1bc   :  { %1071 = vmatpush.msra.mxu0 %v3654_v44  ;;  %1124 = vmatpush.msra.mxu1 %v4052_v36  ;;  %v4064_v44 = vld [vmem:[#allocation10 + $0x68] sm:$0xff] }
 0x1bd   :  { %1144 = vmatpush.msra.mxu2 %v3652_v43  ;;  %v4069_v43 = vld [vmem:[#allocation10 + $0x60] sm:$0xff] }
 0x1be   :  { %1072 = vmatpush.msra.mxu0 %v3661_v49  ;;  %1125 = vmatpush.msra.mxu1 %v4057_v45  ;;  %v4079_v49 = vld [vmem:[#allocation10 + $0x50] sm:$0xff] }
 0x1bf   :  { %1145 = vmatpush.msra.mxu2 %v3659_v48  ;;  %v4074_v48 = vld [vmem:[#allocation10 + $0x58] sm:$0xff] }
 0x1c0   :  { %1073 = vmatpush.msra.mxu0 %v3667_v53  ;;  %1126 = vmatpush.msra.mxu1 %v4064_v44  ;;  %v4089_v53 = vld [vmem:[#allocation10 + $0x40] sm:$0xff] }
 0x1c1   :  { %1146 = vmatpush.msra.mxu2 %v3665_v52  ;;  %v4084_v52 = vld [vmem:[#allocation10 + $0x48] sm:$0xff] }
 0x1c2   :  { %685 = vadd.xlane.f32.xlu1 %v684_v47  ;;  %1074 = vmatpush.msra.mxu0 %v3673_v57  ;;  %v4099_v57 = vld [vmem:[#allocation10 + $0x30] sm:$0xff] }
 0x1c3   :  { %1127 = vmatpush.msra.mxu1 %v4069_v43  ;;  %1147 = vmatpush.msra.mxu2 %v3671_v56  ;;  %v4094_v56 = vld [vmem:[#allocation10 + $0x38] sm:$0xff] }
 0x1c4   :  { %1075 = vmatpush.msra.mxu0 %v3681_v61  ;;  %v4109_v61 = vld [vmem:[#allocation10 + $0x20] sm:$0xff] }
 0x1c5   :  { %1128 = vmatpush.msra.mxu1 %v4074_v48  ;;  %1148 = vmatpush.msra.mxu2 %v3679_v60  ;;  %v4104_v60 = vld [vmem:[#allocation10 + $0x28] sm:$0xff] }
 0x1c6   :  { %1076 = vmatpush.msra.mxu0 %v3688_v2  ;;  %v4119_v2 = vld [vmem:[#allocation10 + $0x10] sm:$0xff] }
 0x1c7   :  { %1129 = vmatpush.msra.mxu1 %v4079_v49  ;;  %1149 = vmatpush.msra.mxu2 %v3686_v0  ;;  %v4114_v0 = vld [vmem:[#allocation10 + $0x18] sm:$0xff]  ;;  %5453 = vst [vmem:[#allocation32_spill] sm:$0xff] %v4119_v2 }
 0x1c8   :  { %1077 = vmatpush.msra.mxu0 %v3694_v10  ;;  %v4129_v10 = vld [vmem:[#allocation10] sm:$0xff] }
 0x1c9   :  { %1130 = vmatpush.msra.mxu1 %v4084_v52  ;;  %1150 = vmatpush.msra.mxu2 %v3692_v8  ;;  %v4124_v8 = vld [vmem:[#allocation10 + $0x8] sm:$0xff]  ;;  %5455 = vst [vmem:[#allocation42_spill] sm:$0xff] %v4129_v10 }
 0x1ca   :  { %1078 = vmatpush.msra.mxu0 %v3700_v17  ;;  %5454 = vst [vmem:[#allocation41_spill] sm:$0xff] %v4124_v8 }
 0x1cb   :  { %1131 = vmatpush.msra.mxu1 %v4089_v53  ;;  %1151 = vmatpush.msra.mxu2 %v3698_v16  ;;  %v5456_v16 = vld [vmem:[#allocation33_spill] sm:$0xff] }
 0x1cc   :  { %1079 = vmatpush.msra.mxu0 %v3708_v21  ;;  %v204_v17 = vadd.f32 %v5450_v32, %v5456_v16 }
 0x1cd   :  { %1132 = vmatpush.msra.mxu1 %v4094_v56  ;;  %1152 = vmatpush.msra.mxu2 %v3706_v20  ;;  %v275_v20 = vadd.f32 %v5451_v7, %v4010_v25 }
 0x1ce   :  { %1080 = vmatpush.msra.mxu0 %v3716_v26 }
 0x1cf   :  { %1133 = vmatpush.msra.mxu1 %v4099_v57  ;;  %1153 = vmatpush.msra.mxu2 %v3713_v24 }
 0x1d0   :  { %1081 = vmatpush.msra.mxu0 %v3722_v31 }
 0x1d1   :  { %1134 = vmatpush.msra.mxu1 %v4104_v60  ;;  %1154 = vmatpush.msra.mxu2 %v3720_v29 }
 0x1d2   :  { %1082 = vmatpush.msra.mxu0 %v3729_v35 }
 0x1d3   :  { %1135 = vmatpush.msra.mxu1 %v4109_v61  ;;  %1155 = vmatpush.msra.mxu2 %v3727_v33 }
 0x1d4   :  { %1083 = vmatpush.msra.mxu0 %v3738_v42 }
 0x1d5   :  { %1136 = vmatpush.msra.mxu1 %v4114_v0  ;;  %1156 = vmatpush.msra.mxu2 %v3736_v39 }
 0x1d6   :  { %1084 = vmatpush.msra.mxu0 %v3746_v50 }
 0x1d7   :  { %1137 = vmatpush.msra.mxu1 %v4119_v2  ;;  %1157 = vmatpush.msra.mxu2 %v5433_v3 }
 0x1d8   :  { %1085 = vmatpush.msra.mxu0 %v5434_v5 }
 0x1d9   :  { %1138 = vmatpush.msra.mxu1 %v4124_v8  ;;  %1158 = vmatpush.msra.mxu2 %v5436_v9 }
 0x1da   :  { %1086 = vmatpush.msra.mxu0 %v5437_v11 }
 0x1db   :  { %1139 = vmatpush.msra.mxu1 %v4129_v10  ;;  %1159 = vmatpush.msra.mxu2 %v5439_v15 }
 0x237   :  { %v724_v21 = vpop.f32.mrf.mxu0 }
 0x238   :  { %v749_v24 = vadd.f32 %v724_v21, %v204_v17  ;;  %v744_v26 = vpop.f32.mrf.mxu1  ;;  %v4151_v17 = vld [vmem:[#allocation10 + $0xf8] sm:$0xff]  ;;  %v4158_v21 = vld [vmem:[#allocation10 + $0xf0] sm:$0xff] }
 0x239   :  { %v771_v29 = vadd.f32 %v744_v26, %v275_v20  ;;  %v4154_v20 = vld [vmem:[#allocation10 + $0x170] sm:$0xff]  ;;  %v4163_v26 = vld [vmem:[#allocation10 + $0x168] sm:$0xff] }
 0x23a   :  { %v2928_v31 = vmul.f32 -1.442695, %v749_v24 }
 0x23b   :  { %v2929_v33 = vmul.f32 -1.442695, %v771_v29  ;;  %v4167_v29 = vld [vmem:[#allocation10 + $0xe8] sm:$0xff] }
 0x23c   :  { %3005 = vpow2.f32 %v2928_v31  ;;  %v4170_v31 = vld [vmem:[#allocation10 + $0x160] sm:$0xff] }
 0x23d   :  { %3007 = vpow2.f32 %v2929_v33  ;;  %v4174_v33 = vld [vmem:[#allocation10 + $0xe0] sm:$0xff] }
 0x23e   :  { %v810_v12 = vpop.f32.mrf.mxu2 }
 0x23f   :  { %v811_v14 = vadd.f32 %v3946_v23, %v810_v12  ;;  %v4226_v12 = vld [vmem:[#allocation10 + $0x120] sm:$0xff] }
 0x242   :  { %v3006_v35 = vpop.eup %3005 }
 0x243   :  { %v3008_v39 = vpop.eup %3007  ;;  %v753_v42 = vadd.f32 1.0, %v3006_v35  ;;  %v4177_v35 = vld [vmem:[#allocation10 + $0x158] sm:$0xff] }
 0x244   :  { %v775_v50 = vadd.f32 1.0, %v3008_v39  ;;  %v4181_v39 = vld [vmem:[#allocation10 + $0xd8] sm:$0xff] }
 0x245   :  { %3009 = vrcp.f32 %v753_v42  ;;  %v765_v32 = vand.u32 2147483648, %v753_v42  ;;  %v763_v58 = vand.u32 2147483647, %v753_v42  ;;  %vm759_vm4 = vweird.f32 %v753_v42 }
 0x246   :  { %3011 = vrcp.f32 %v775_v50  ;;  %v787_v37 = vand.u32 2147483648, %v775_v50  ;;  %vm781_vm8 = vweird.f32 %v775_v50  ;;  %v785_v55 = vand.u32 2147483647, %v775_v50 }
 0x247   :  { %v766_v51 = vor.u32 1.1754944e-38, %v765_v32  ;;  %vm764_vm6 = vcmp.eq.f32.partialorder %v763_v58, 8.507059e+37  ;;  %v4212_v32 = vld [vmem:[#allocation10 + $0x130] sm:$0xff]  ;;  %v4219_v58 = vld [vmem:[#allocation10 + $0x128] sm:$0xff] }
 0x248   :  { %v788_v59 = vor.u32 1.1754944e-38, %v787_v37  ;;  %vm786_vm10 = vcmp.eq.f32.partialorder %v785_v55, 8.507059e+37  ;;  %v4254_v37 = vld [vmem:[#allocation10 + $0x100] sm:$0xff]  ;;  %v278_v55 = vadd.f32 %v5451_v7, %v4014_v30 }
 0x249   :  { %5460 = vst [vmem:[#allocation45_spill] sm:$0xff] %v4254_v37 }
 0x24b   :  { %v3010_v3 = vpop.eup %3009 }
 0x24c   :  { %v3012_v5 = vpop.eup %3011  ;;  %v755_v9 = vmul.f32 %v3010_v3, %v753_v42  ;;  %vm760_vm3 = vweird.f32 %v3010_v3  ;;  %v4184_v42 = vld [vmem:[#allocation10 + $0x150] sm:$0xff] }
 0x24d   :  { %v777_v11 = vmul.f32 %v3012_v5, %v775_v50  ;;  %vm761_vm5 = vmor %vm759_vm4, %vm760_vm3  ;;  %vm782_vm7 = vweird.f32 %v3012_v5  ;;  %v4188_v50 = vld [vmem:[#allocation10 + $0xd0] sm:$0xff] }
 0x24e   :  { %v756_v15 = vsub.f32 1.0, %v755_v9  ;;  %vm783_vm9 = vmor %vm781_vm8, %vm782_vm7  ;;  %v4198_v9 = vld [vmem:[#allocation10 + $0x140] sm:$0xff] }
 0x24f   :  { %v778_v25 = vsub.f32 1.0, %v777_v11  ;;  %v4202_v11 = vld [vmem:[#allocation10 + $0xc0] sm:$0xff] }
 0x250   :  { %v757_v34 = vmul.f32 %v3010_v3, %v756_v15  ;;  %v4205_v15 = vld [vmem:[#allocation10 + $0x138] sm:$0xff] }
 0x251   :  { %v779_v4 = vmul.f32 %v3012_v5, %v778_v25  ;;  %v4209_v25 = vld [vmem:[#allocation10 + $0xb8] sm:$0xff] }
 0x252   :  { %v758_v28 = vadd.f32 %v3010_v3, %v757_v34  ;;  %v4216_v34 = vld [vmem:[#allocation10 + $0xb0] sm:$0xff] }
 0x253   :  { %v780_v18 = vadd.f32 %v3012_v5, %v779_v4  ;;  %v4223_v4 = vld [vmem:[#allocation10 + $0xa8] sm:$0xff] }
 0x254   :  { %v762_v19 = vsel %vm761_vm5, %v3010_v3, %v758_v28  ;;  %v4191_v3 = vld [vmem:[#allocation10 + $0x148] sm:$0xff]  ;;  %v4230_v28 = vld [vmem:[#allocation10 + $0xa0] sm:$0xff] }
 0x255   :  { %v767_v6 = vsel %vm764_vm6, %v766_v51, %v762_v19  ;;  %v784_v13 = vsel %vm783_vm9, %v3012_v5, %v780_v18  ;;  %v4195_v5 = vld [vmem:[#allocation10 + $0xc8] sm:$0xff]  ;;  %v4233_v51 = vld [vmem:[#allocation10 + $0x118] sm:$0xff]  ;;  %v4244_v18 = vld [vmem:[#allocation10 + $0x90] sm:$0xff] }
 0x256   :  { %v813_v40 = vmul.f32 %v811_v14, %v767_v6  ;;  %v789_v38 = vsel %vm786_vm10, %v788_v59, %v784_v13  ;;  %v4237_v19 = vld [vmem:[#allocation10 + $0x98] sm:$0xff]  ;;  %v4240_v14 = vld [vmem:[#allocation10 + $0x110] sm:$0xff]  ;;  %5457 = vst [vmem:[#allocation33_spill] sm:$0xff] %v4244_v18  ;;  %v4247_v6 = vld [vmem:[#allocation10 + $0x108] sm:$0xff] }
 0x257   :  { %v816_v54 = vsub.f32 1.0, %v789_v38  ;;  %v818_v47 = vmul.f32 %v789_v38, %v4045_v46  ;;  %5458 = vst [vmem:[#allocation43_spill] sm:$0xff] %v4247_v6 }
 0x258   :  { %v814_v1 = vadd.f32 %v813_v40, %v346_v63  ;;  %v4251_v63 = vld [vmem:[#allocation10 + $0x88] sm:$0xff]  ;;  %v4258_v40 = vld [vmem:[#allocation10 + $0x80] sm:$0xff] }
 0x259   :  { %5459 = vst [vmem:[#allocation44_spill] sm:$0xff] %v4251_v63 }
 0x25a   :  { %3013 = vtanh.f32 %v814_v1  ;;  %5461 = vst [vmem:[#allocation46_spill] sm:$0xff] %v4258_v40 }
 0x260   :  { %v3014_v41 = vpop.eup %3013 }
 0x261   :  { %v817_v22 = vmul.f32 %v3014_v41, %v816_v54  ;;  %v5462_v54 = vld [vmem:[#allocation34_spill] sm:$0xff] }
 0x263   :  { %v4141_v16 = vadd.f32 %v818_v47, %v817_v22 }
 0x265   :  { %820 = vadd.xlane.f32.xlu2 %v4141_v16  ;;  %862 = vmatmul.f32.vlgmr.msrb.gmra.mxu3 %v4141_v16  ;;  %v823_v24 = vmul.f32 %v4141_v16, %v4141_v16 }
 0x266   :  { %882 = vmatmul.f32.vlgmr.msrb.gmra.mxu0 %v4141_v16  ;;  %948 = vmatmul.f32.vlgmr.msrb.gmra.mxu1 %v4141_v16 }
 0x267   :  { %1210 = vmatpush.msrb.mxu3 %v4147_v27  ;;  %1263 = vmatpush.msrb.mxu0 %v4052_v36 }
 0x268   :  { %1283 = vmatpush.msrb.mxu1 %v4151_v17 }
 0x269   :  { %1211 = vmatpush.msrb.mxu3 %v4154_v20  ;;  %1264 = vmatpush.msrb.mxu0 %v4057_v45 }
 0x26a   :  { %1284 = vmatpush.msrb.mxu1 %v4158_v21 }
 0x26b   :  { %1212 = vmatpush.msrb.mxu3 %v4163_v26  ;;  %1265 = vmatpush.msrb.mxu0 %v4064_v44 }
 0x26c   :  { %1285 = vmatpush.msrb.mxu1 %v4167_v29 }
 0x26d   :  { %824 = vadd.xlane.f32.xlu2 %v823_v24  ;;  %1213 = vmatpush.msrb.mxu3 %v4170_v31 }
 0x26e   :  { %1266 = vmatpush.msrb.mxu0 %v4069_v43  ;;  %1286 = vmatpush.msrb.mxu1 %v4174_v33 }
 0x26f   :  { %1214 = vmatpush.msrb.mxu3 %v4177_v35 }
 0x270   :  { %1267 = vmatpush.msrb.mxu0 %v4074_v48  ;;  %1287 = vmatpush.msrb.mxu1 %v4181_v39 }
 0x271   :  { %1215 = vmatpush.msrb.mxu3 %v4184_v42 }
 0x272   :  { %1268 = vmatpush.msrb.mxu0 %v4079_v49  ;;  %1288 = vmatpush.msrb.mxu1 %v4188_v50 }
 0x273   :  { %1216 = vmatpush.msrb.mxu3 %v4191_v3 }
 0x274   :  { %1269 = vmatpush.msrb.mxu0 %v4084_v52  ;;  %1289 = vmatpush.msrb.mxu1 %v4195_v5 }
 0x275   :  { %1217 = vmatpush.msrb.mxu3 %v4198_v9 }
 0x276   :  { %1270 = vmatpush.msrb.mxu0 %v4089_v53  ;;  %1290 = vmatpush.msrb.mxu1 %v4202_v11 }
 0x277   :  { %1218 = vmatpush.msrb.mxu3 %v4205_v15 }
 0x278   :  { %1271 = vmatpush.msrb.mxu0 %v4094_v56  ;;  %1291 = vmatpush.msrb.mxu1 %v4209_v25 }
 0x279   :  { %1219 = vmatpush.msrb.mxu3 %v4212_v32 }
 0x27a   :  { %1272 = vmatpush.msrb.mxu0 %v4099_v57  ;;  %1292 = vmatpush.msrb.mxu1 %v4216_v34 }
 0x27b   :  { %1220 = vmatpush.msrb.mxu3 %v4219_v58 }
 0x27c   :  { %1273 = vmatpush.msrb.mxu0 %v4104_v60  ;;  %1293 = vmatpush.msrb.mxu1 %v4223_v4 }
 0x27d   :  { %1221 = vmatpush.msrb.mxu3 %v4226_v12 }
 0x27e   :  { %1274 = vmatpush.msrb.mxu0 %v4109_v61  ;;  %1294 = vmatpush.msrb.mxu1 %v4230_v28 }
 0x27f   :  { %1222 = vmatpush.msrb.mxu3 %v4233_v51 }
 0x280   :  { %1275 = vmatpush.msrb.mxu0 %v4114_v0  ;;  %1295 = vmatpush.msrb.mxu1 %v4237_v19 }
 0x281   :  { %1223 = vmatpush.msrb.mxu3 %v4240_v14 }
 0x282   :  { %1276 = vmatpush.msrb.mxu0 %v4119_v2  ;;  %1296 = vmatpush.msrb.mxu1 %v4244_v18  ;;  %v5463_v18 = vld [vmem:[#allocation23_spill] sm:$0xff] }
 0x283   :  { %1224 = vmatpush.msrb.mxu3 %v4247_v6 }
 0x284   :  { %1277 = vmatpush.msrb.mxu0 %v4124_v8  ;;  %1297 = vmatpush.msrb.mxu1 %v4251_v63 }
 0x285   :  { %1225 = vmatpush.msrb.mxu3 %v4254_v37 }
 0x286   :  { %1278 = vmatpush.msrb.mxu0 %v4129_v10  ;;  %1298 = vmatpush.msrb.mxu1 %v4258_v40 }
 0x2e3   :  { %v883_v1 = vpop.f32.mrf.mxu0 }
 0x2e4   :  { %v910_v13 = vadd.f32 %v883_v1, %v278_v55 }
 0x2e6   :  { %v2931_v59 = vmul.f32 -1.442695, %v910_v13 }
 0x2e8   :  { %3015 = vpow2.f32 %v2931_v59  ;;  %v863_v38 = vpop.f32.mrf.mxu3 }
 0x2e9   :  { %v888_v41 = vadd.f32 %v863_v38, %v5462_v54  ;;  %v949_v38 = vpop.f32.mrf.mxu1 }
 0x2eb   :  { %v2930_v22 = vmul.f32 -1.442695, %v888_v41 }
 0x2ed   :  { %3017 = vpow2.f32 %v2930_v22  ;;  %v950_v22 = vadd.f32 %v3946_v23, %v949_v38 }
 0x2ee   :  { %v3016_v47 = vpop.eup %3015 }
 0x2ef   :  { %v914_v24 = vadd.f32 1.0, %v3016_v47 }
 0x2f1   :  { %3019 = vrcp.f32 %v914_v24  ;;  %vm920_vm0 = vweird.f32 %v914_v24  ;;  %v924_v2 = vand.u32 2147483647, %v914_v24 }
 0x2f3   :  { %v3018_v46 = vpop.eup %3017  ;;  %vm925_vm2 = vcmp.eq.f32.partialorder %v924_v2, 8.507059e+37  ;;  %v5474_v2 = vld [vmem:[#allocation36_spill] sm:$0xff] }
 0x2f4   :  { %v892_v10 = vadd.f32 1.0, %v3018_v46 }
 0x2f6   :  { %3021 = vrcp.f32 %v892_v10  ;;  %v904_v55 = vand.u32 2147483648, %v892_v10  ;;  %v902_v13 = vand.u32 2147483647, %v892_v10  ;;  %vm898_vm12 = vweird.f32 %v892_v10 }
 0x2f7   :  { %v3020_v37 = vpop.eup %3019 }
 0x2f8   :  { %v916_v40 = vmul.f32 %v3020_v37, %v914_v24  ;;  %v905_v41 = vor.u32 1.1754944e-38, %v904_v55  ;;  %vm903_vm14 = vcmp.eq.f32.partialorder %v902_v13, 8.507059e+37  ;;  %vm921_vm15 = vweird.f32 %v3020_v37 }
 0x2f9   :  { %vm922_vm1 = vmor %vm920_vm0, %vm921_vm15 }
 0x2fa   :  { %v917_v30 = vsub.f32 1.0, %v916_v40  ;;  %v926_v40 = vand.u32 2147483648, %v914_v24 }
 0x2fc   :  { %v3022_v63 = vpop.eup %3021  ;;  %v918_v59 = vmul.f32 %v3020_v37, %v917_v30 }
 0x2fd   :  { %v894_v8 = vmul.f32 %v3022_v63, %v892_v10  ;;  %vm899_vm11 = vweird.f32 %v3022_v63  ;;  %v927_v10 = vor.u32 1.1754944e-38, %v926_v40 }
 0x2fe   :  { %vm900_vm13 = vmor %vm898_vm12, %vm899_vm11  ;;  %v919_v47 = vadd.f32 %v3020_v37, %v918_v59 }
 0x2ff   :  { %v895_v7 = vsub.f32 1.0, %v894_v8  ;;  %v349_v8 = vadd.f32 %v3948_v62, %v5463_v18 }
 0x301   :  { %v896_v1 = vmul.f32 %v3022_v63, %v895_v7 }
 0x303   :  { %v897_v54 = vadd.f32 %v3022_v63, %v896_v1  ;;  %v923_v1 = vsel %vm922_vm1, %v3020_v37, %v919_v47 }
 0x304   :  { %v928_v55 = vsel %vm925_vm2, %v927_v10, %v923_v1  ;;  %v5475_v10 = vld [vmem:[#allocation28_spill] sm:$0xff] }
 0x305   :  { %v901_v46 = vsel %vm900_vm13, %v3022_v63, %v897_v54  ;;  %v955_v38 = vsub.f32 1.0, %v928_v55  ;;  %v957_v13 = vmul.f32 %v928_v55, %v4141_v16  ;;  %v352_v55 = vadd.f32 %v3948_v62, %v5475_v10 }
 0x306   :  { %v906_v6 = vsel %vm903_vm14, %v905_v41, %v901_v46 }
 0x307   :  { %v952_v7 = vmul.f32 %v950_v22, %v906_v6 }
 0x309   :  { %v953_v30 = vadd.f32 %v952_v7, %v349_v8 }
 0x30b   :  { %3023 = vtanh.f32 %v953_v30 }
 0x311   :  { %v3024_v63 = vpop.eup %3023 }
 0x312   :  { %v956_v59 = vmul.f32 %v3024_v63, %v955_v38 }
 0x314   :  { %v4268_v54 = vadd.f32 %v957_v13, %v956_v59 }
 0x316   :  { %1001 = vmatmul.f32.vlgmr.msrb.gmra.mxu2 %v4268_v54  ;;  %1021 = vmatmul.f32.vlgmr.msra.gmra.mxu3 %v4268_v54  ;;  %v962_v18 = vmul.f32 %v4268_v54, %v4268_v54 }
 0x317   :  { %1087 = vmatmul.f32.vlgmr.msra.gmra.mxu0 %v4268_v54  ;;  %959 = vadd.xlane.f32.xlu0 %v4268_v54 }
 0x318   :  { %963 = vadd.xlane.f32.xlu1 %v962_v18  ;;  %1349 = vmatpush.msrb.mxu2 %v4147_v27 }
 0x319   :  { %1402 = vmatpush.msra.mxu3 %v4052_v36  ;;  %1422 = vmatpush.msra.mxu0 %v4151_v17  ;;  %v5464_v36 = vld [vmem:[#allocation32_spill] sm:$0xff] }
 0x31a   :  { %1350 = vmatpush.msrb.mxu2 %v4154_v20 }
 0x31b   :  { %1403 = vmatpush.msra.mxu3 %v4057_v45  ;;  %1423 = vmatpush.msra.mxu0 %v4158_v21  ;;  %v5465_v45 = vld [vmem:[#allocation33_spill] sm:$0xff] }
 0x31c   :  { %1351 = vmatpush.msrb.mxu2 %v4163_v26 }
 0x31d   :  { %1404 = vmatpush.msra.mxu3 %v4064_v44  ;;  %1424 = vmatpush.msra.mxu0 %v4167_v29  ;;  %v5466_v44 = vld [vmem:[#allocation43_spill] sm:$0xff] }
 0x31e   :  { %1352 = vmatpush.msrb.mxu2 %v4170_v31 }
 0x31f   :  { %1405 = vmatpush.msra.mxu3 %v4069_v43  ;;  %1425 = vmatpush.msra.mxu0 %v4174_v33  ;;  %v5467_v43 = vld [vmem:[#allocation41_spill] sm:$0xff] }
 0x320   :  { %1353 = vmatpush.msrb.mxu2 %v4177_v35 }
 0x321   :  { %1406 = vmatpush.msra.mxu3 %v4074_v48  ;;  %1426 = vmatpush.msra.mxu0 %v4181_v39  ;;  %v5468_v48 = vld [vmem:[#allocation44_spill] sm:$0xff] }
 0x322   :  { %1354 = vmatpush.msrb.mxu2 %v4184_v42 }
 0x323   :  { %1407 = vmatpush.msra.mxu3 %v4079_v49  ;;  %1427 = vmatpush.msra.mxu0 %v4188_v50  ;;  %v5469_v49 = vld [vmem:[#allocation45_spill] sm:$0xff] }
 0x324   :  { %1355 = vmatpush.msrb.mxu2 %v4191_v3 }
 0x325   :  { %1408 = vmatpush.msra.mxu3 %v4084_v52  ;;  %1428 = vmatpush.msra.mxu0 %v4195_v5  ;;  %v5470_v52 = vld [vmem:[#allocation42_spill] sm:$0xff] }
 0x326   :  { %1356 = vmatpush.msrb.mxu2 %v4198_v9 }
 0x327   :  { %1409 = vmatpush.msra.mxu3 %v4089_v53  ;;  %1429 = vmatpush.msra.mxu0 %v4202_v11  ;;  %v5471_v53 = vld [vmem:[#allocation46_spill] sm:$0xff] }
 0x328   :  { %1357 = vmatpush.msrb.mxu2 %v4205_v15 }
 0x329   :  { %1410 = vmatpush.msra.mxu3 %v4094_v56  ;;  %1430 = vmatpush.msra.mxu0 %v4209_v25  ;;  %v5472_v56 = vld [vmem:[#allocation26_spill] sm:$0xff] }
 0x32a   :  { %1358 = vmatpush.msrb.mxu2 %v4212_v32 }
 0x32b   :  { %1411 = vmatpush.msra.mxu3 %v4099_v57  ;;  %1431 = vmatpush.msra.mxu0 %v4216_v34  ;;  %v5473_v57 = vld [vmem:[#allocation35_spill] sm:$0xff] }
 0x32c   :  { %1359 = vmatpush.msrb.mxu2 %v4219_v58 }
 0x32d   :  { %1412 = vmatpush.msra.mxu3 %v4104_v60  ;;  %1432 = vmatpush.msra.mxu0 %v4223_v4  ;;  %v281_v60 = vadd.f32 %v5473_v57, %v5472_v56 }
 0x32e   :  { %1360 = vmatpush.msrb.mxu2 %v4226_v12 }
 0x32f   :  { %1413 = vmatpush.msra.mxu3 %v4109_v61  ;;  %1433 = vmatpush.msra.mxu0 %v4230_v28 }
 0x330   :  { %1361 = vmatpush.msrb.mxu2 %v4233_v51 }
 0x331   :  { %1414 = vmatpush.msra.mxu3 %v4114_v0  ;;  %1434 = vmatpush.msra.mxu0 %v4237_v19 }
 0x332   :  { %1362 = vmatpush.msrb.mxu2 %v4240_v14 }
 0x333   :  { %1415 = vmatpush.msra.mxu3 %v5464_v36  ;;  %1435 = vmatpush.msra.mxu0 %v5465_v45 }
 0x334   :  { %1363 = vmatpush.msrb.mxu2 %v5466_v44 }
 0x335   :  { %1416 = vmatpush.msra.mxu3 %v5467_v43  ;;  %1436 = vmatpush.msra.mxu0 %v5468_v48 }
 0x336   :  { %1364 = vmatpush.msrb.mxu2 %v5469_v49 }
 0x337   :  { %1417 = vmatpush.msra.mxu3 %v5470_v52  ;;  %1437 = vmatpush.msra.mxu0 %v5471_v53 }
 0x394   :  { %v1088_v22 = vpop.f32.mrf.mxu0 }
 0x395   :  { %v1089_v40 = vadd.f32 %v3946_v23, %v1088_v22 }
 0x399   :  { %v1002_v61 = vpop.f32.mrf.mxu2  ;;  %v1022_v0 = vpop.f32.mrf.mxu3 }
 0x39a   :  { %v1027_v17 = vadd.f32 %v1002_v61, %v5474_v2  ;;  %v1049_v21 = vadd.f32 %v1022_v0, %v281_v60  ;;  %v1557_v60 = vld [vmem:[#allocation14 + $0x40] sm:$0xff]  ;;  %v1556_v2 = vld [vmem:[#allocation14 + $0x38] sm:$0xff] }
 0x39c   :  { %v2932_v29 = vmul.f32 -1.442695, %v1027_v17  ;;  %v2933_v33 = vmul.f32 -1.442695, %v1049_v21 }
 0x39e   :  { %3025 = vpow2.f32 %v2932_v29  ;;  %v1555_v29 = vld [vmem:[#allocation14 + $0x30] sm:$0xff] }
 0x39f   :  { %3027 = vpow2.f32 %v2933_v33 }
 0x3a4   :  { %v3026_v39 = vpop.eup %3025 }
 0x3a5   :  { %v3028_v50 = vpop.eup %3027  ;;  %v1031_v5 = vadd.f32 1.0, %v3026_v39 }
 0x3a6   :  { %v1053_v11 = vadd.f32 1.0, %v3028_v50 }
 0x3a7   :  { %3029 = vrcp.f32 %v1031_v5  ;;  %v1043_v6 = vand.u32 2147483648, %v1031_v5  ;;  %v1041_v41 = vand.u32 2147483647, %v1031_v5  ;;  %vm1037_vm4 = vweird.f32 %v1031_v5 }
 0x3a8   :  { %3031 = vrcp.f32 %v1053_v11  ;;  %v1065_v63 = vand.u32 2147483648, %v1053_v11  ;;  %vm1059_vm8 = vweird.f32 %v1053_v11  ;;  %v1063_v13 = vand.u32 2147483647, %v1053_v11 }
 0x3a9   :  { %v1044_v8 = vor.u32 1.1754944e-38, %v1043_v6  ;;  %vm1042_vm6 = vcmp.eq.f32.partialorder %v1041_v41, 8.507059e+37  ;;  %v1551_v6 = vld [vmem:[#allocation14 + $0x10] sm:$0xff]  ;;  %v960_v41 = vpop.xlane.xlu0 %959 }
 0x3aa   :  { %v1066_v36 = vor.u32 1.1754944e-38, %v1065_v63  ;;  %vm1064_vm10 = vcmp.eq.f32.partialorder %v1063_v13, 8.507059e+37 }
 0x3ad   :  { %v3030_v25 = vpop.eup %3029 }
 0x3ae   :  { %v3032_v34 = vpop.eup %3031  ;;  %v1033_v4 = vmul.f32 %v3030_v25, %v1031_v5  ;;  %vm1038_vm3 = vweird.f32 %v3030_v25  ;;  %v1554_v5 = vld [vmem:[#allocation14 + $0x28] sm:$0xff] }
 0x3af   :  { %v1055_v28 = vmul.f32 %v3032_v34, %v1053_v11  ;;  %vm1039_vm5 = vmor %vm1037_vm4, %vm1038_vm3  ;;  %vm1060_vm7 = vweird.f32 %v3032_v34  ;;  %v1553_v11 = vld [vmem:[#allocation14 + $0x20] sm:$0xff] }
 0x3b0   :  { %v1034_v19 = vsub.f32 1.0, %v1033_v4  ;;  %vm1061_vm9 = vmor %vm1059_vm8, %vm1060_vm7 }
 0x3b1   :  { %v1056_v37 = vsub.f32 1.0, %v1055_v28  ;;  %v1552_v28 = vld [vmem:[#allocation14 + $0x18] sm:$0xff] }
 0x3b2   :  { %v1035_v24 = vmul.f32 %v3030_v25, %v1034_v19 }
 0x3b3   :  { %v1057_v46 = vmul.f32 %v3032_v34, %v1056_v37 }
 0x3b4   :  { %v1036_v47 = vadd.f32 %v3030_v25, %v1035_v24 }
 0x3b5   :  { %v1058_v1 = vadd.f32 %v3032_v34, %v1057_v46 }
 0x3b6   :  { %v1040_v7 = vsel %vm1039_vm5, %v3030_v25, %v1036_v47  ;;  %v1550_v47 = vld [vmem:[#allocation14 + $0x8] sm:$0xff] }
 0x3b7   :  { %v1045_v30 = vsel %vm1042_vm6, %v1044_v8, %v1040_v7  ;;  %v1062_v18 = vsel %vm1061_vm9, %v3032_v34, %v1058_v1  ;;  %v4370_v7 = vmul.f32 0.015625, %v960_v41 }
 0x3b8   :  { %v1091_v38 = vmul.f32 %v1089_v40, %v1045_v30  ;;  %v1067_v45 = vsel %vm1064_vm10, %v1066_v36, %v1062_v18  ;;  %v1549_v30 = vld [vmem:[#allocation14] sm:$0xff] }
 0x3b9   :  { %v1094_v23 = vsub.f32 1.0, %v1067_v45  ;;  %v1096_v52 = vmul.f32 %v1067_v45, %v4268_v54  ;;  %v966_v63 = vmul.f32 %v4370_v7, %v4370_v7 }
 0x3ba   :  { %v1092_v59 = vadd.f32 %v1091_v38, %v352_v55 }
 0x3bc   :  { %3033 = vtanh.f32 %v1092_v59 }
 0x3c2   :  { %v3034_v43 = vpop.eup %3033 }
 0x3c3   :  { %v1095_v48 = vmul.f32 %v3034_v43, %v1094_v23 }
 0x3c5   :  { %v4331_v53 = vadd.f32 %v1096_v52, %v1095_v48 }
 0x3c7   :  { %1140 = vmatmul.f32.vlgmr.msra.gmra.mxu1 %v4331_v53  ;;  %1160 = vmatmul.f32.vlgmr.msra.gmra.mxu2 %v4331_v53  ;;  %v1101_v62 = vmul.f32 %v4331_v53, %v4331_v53 }
 0x3c8   :  { %1226 = vmatmul.f32.vlgmr.msrb.gmra.mxu3 %v4331_v53  ;;  %1098 = vadd.xlane.f32.xlu2 %v4331_v53 }
 0x3c9   :  { %1102 = vadd.xlane.f32.xlu0 %v1101_v62  ;;  %1488 = vmatpush.msra.mxu1 %v4147_v27  ;;  %v1564_v27 = vld [vmem:[#allocation14 + $0x78] sm:$0xff] }
 0x3ca   :  { %1569 = vmatpush.msra.mxu2 %v1564_v27 }
 0x3cb   :  { %1489 = vmatpush.msra.mxu1 %v4154_v20  ;;  %v1563_v20 = vld [vmem:[#allocation14 + $0x70] sm:$0xff] }
 0x3cc   :  { %1570 = vmatpush.msra.mxu2 %v1563_v20 }
 0x3cd   :  { %1490 = vmatpush.msra.mxu1 %v4163_v26  ;;  %v682_v26 = vpop.xlane.xlu1 %681 }
 0x3ce   :  { %v4360_v61 = vmul.f32 0.015625, %v682_v26 }
 0x3cf   :  { %1491 = vmatpush.msra.mxu1 %v4170_v31  ;;  %v1562_v31 = vld [vmem:[#allocation14 + $0x68] sm:$0xff] }
 0x3d0   :  { %1571 = vmatpush.msra.mxu2 %v1562_v31  ;;  %v688_v39 = vmul.f32 %v4360_v61, %v4360_v61 }
 0x3d1   :  { %1492 = vmatpush.msra.mxu1 %v4177_v35  ;;  %v1561_v35 = vld [vmem:[#allocation14 + $0x60] sm:$0xff] }
 0x3d2   :  { %1572 = vmatpush.msra.mxu2 %v1561_v35 }
 0x3d3   :  { %1493 = vmatpush.msra.mxu1 %v4184_v42 }
 0x3d5   :  { %1494 = vmatpush.msra.mxu1 %v4191_v3  ;;  %v1560_v3 = vld [vmem:[#allocation14 + $0x58] sm:$0xff]  ;;  %v686_v56 = vpop.xlane.xlu1 %685 }
 0x3d6   :  { %1573 = vmatpush.msra.mxu2 %v1560_v3  ;;  %v687_v17 = vmul.f32 0.015625, %v686_v56  ;;  %v4385_v3 = vld [vmem:[%s5354_s4] ss:$0 sm:$0xff] }
 0x3d7   :  { %1495 = vmatpush.msra.mxu1 %v4198_v9  ;;  %v5476_v9 = vld [vmem:[#allocation37_spill] sm:$0xff] }
 0x3d8   :  { %v689_v25 = vsub.f32 %v687_v17, %v688_v39 }
 0x3d9   :  { %1496 = vmatpush.msra.mxu1 %v4205_v15 }
 0x3da   :  { %v4366_v24 = vadd.f32 1e-05, %v689_v25 }
 0x3db   :  { %1497 = vmatpush.msra.mxu1 %v4212_v32  ;;  %v1559_v32 = vld [vmem:[#allocation14 + $0x50] sm:$0xff] }
 0x3dc   :  { %1574 = vmatpush.msra.mxu2 %v1559_v32  ;;  %v5478_v32 = vld [vmem:[#allocation27_spill] sm:$0xff]  ;;  %vm698_vm4 = vweird.f32 %v4366_v24 }
 0x3dd   :  { %1498 = vmatpush.msra.mxu1 %v4219_v58  ;;  %v821_v58 = vpop.xlane.xlu2 %820  ;;  %v964_v1 = vpop.xlane.xlu1 %963 }
 0x3de   :  { %v4364_v4 = vmul.f32 0.015625, %v821_v58  ;;  %v965_v13 = vmul.f32 0.015625, %v964_v1 }
 0x3df   :  { %1499 = vmatpush.msra.mxu1 %v4226_v12 }
 0x3e0   :  { %v827_v22 = vmul.f32 %v4364_v4, %v4364_v4  ;;  %v967_v27 = vsub.f32 %v965_v13, %v966_v63 }
 0x3e1   :  { %1500 = vmatpush.msra.mxu1 %v4233_v51  ;;  %v1558_v51 = vld [vmem:[#allocation14 + $0x48] sm:$0xff] }
 0x3e2   :  { %1575 = vmatpush.msra.mxu2 %v1558_v51 }
 0x3e3   :  { %1501 = vmatpush.msra.mxu1 %v4240_v14  ;;  %v4356_v14 = vld [vmem:[#allocation11 + $0x1] ss:$0 sm:$0xff] }
 0x3e4   :  { %1576 = vmatpush.msra.mxu2 %v1557_v60 }
 0x3e5   :  { %1502 = vmatpush.msra.mxu1 %v5466_v44  ;;  %v5477_v44 = vld [vmem:[#allocation24_spill] sm:$0xff]  ;;  %v825_v34 = vpop.xlane.xlu2 %824 }
 0x3e6   :  { %1577 = vmatpush.msra.mxu2 %v1556_v2  ;;  %v826_v19 = vmul.f32 0.015625, %v825_v34 }
 0x3e7   :  { %1503 = vmatpush.msra.mxu1 %v5469_v49  ;;  %v284_v49 = vadd.f32 %v4356_v14, %v5477_v44 }
 0x3e8   :  { %1578 = vmatpush.msra.mxu2 %v1555_v29  ;;  %v828_v40 = vsub.f32 %v826_v19, %v827_v22 }
 0x3ea   :  { %1579 = vmatpush.msra.mxu2 %v1554_v5  ;;  %v4373_v38 = vadd.f32 1e-05, %v828_v40 }
 0x3ec   :  { %1580 = vmatpush.msra.mxu2 %v1553_v11  ;;  %vm837_vm7 = vweird.f32 %v4373_v38 }
 0x3ee   :  { %1581 = vmatpush.msra.mxu2 %v1552_v28 }
 0x3f0   :  { %1582 = vmatpush.msra.mxu2 %v1551_v6 }
 0x3f2   :  { %1583 = vmatpush.msra.mxu2 %v1550_v47 }
 0x3f4   :  { %1584 = vmatpush.msra.mxu2 %v1549_v30 }
 0x43b   :  { %v1099_v18 = vpop.xlane.xlu2 %1098 }
 0x43c   :  { %v4380_v20 = vmul.f32 0.015625, %v1099_v18  ;;  %v1103_v31 = vpop.xlane.xlu0 %1102  ;;  %v5479_v18 = vld [vmem:[#allocation31_spill] sm:$0xff] }
 0x43d   :  { %v1104_v60 = vmul.f32 0.015625, %v1103_v31  ;;  %v829_v31 = vsub.f32 %v4141_v16, %v4364_v4  ;;  %v968_v16 = vsub.f32 %v4268_v54, %v4370_v7 }
 0x43e   :  { %v1105_v2 = vmul.f32 %v4380_v20, %v4380_v20 }
 0x440   :  { %v1106_v5 = vsub.f32 %v1104_v60, %v1105_v2  ;;  %v1107_v60 = vsub.f32 %v4331_v53, %v4380_v20  ;;  %v4464_v20 = vld [vmem:[#allocation16 + $0x60] sm:$0xff] }
 0x442   :  { %v1108_v6 = vadd.f32 1e-05, %v1106_v5  ;;  %v1705_v5 = vld [vmem:[#allocation14 + $0x178] sm:$0xff] }
 0x444   :  { %v1141_v42 = vpop.f32.mrf.mxu1 }
 0x445   :  { %v1166_v15 = vadd.f32 %v1141_v42, %v5476_v9 }
 0x447   :  { %v2934_v12 = vmul.f32 -1.442695, %v1166_v15  ;;  %v4388_v15 = vld [vmem:[#allocation11 + $0x2] ss:$0 sm:$0xff] }
 0x448   :  { %v355_v58 = vadd.f32 %v4388_v15, %v5478_v32 }
 0x449   :  { %3035 = vpow2.f32 %v2934_v12 }
 0x44a   :  { %v1161_v57 = vpop.f32.mrf.mxu2 }
 0x44b   :  { %v1188_v0 = vadd.f32 %v1161_v57, %v284_v49  ;;  %v1227_v43 = vpop.f32.mrf.mxu3  ;;  %v4394_v57 = vadd.f32 1e-05, %v967_v27 }
 0x44c   :  { %v1228_v9 = vadd.f32 %v4385_v3, %v1227_v43 }
 0x44d   :  { %v2935_v21 = vmul.f32 -1.442695, %v1188_v0  ;;  %vm976_vm10 = vweird.f32 %v4394_v57 }
 0x44f   :  { %v3036_v33 = vpop.eup %3035  ;;  %3037 = vpow2.f32 %v2935_v21 }
 0x450   :  { %v1170_v50 = vadd.f32 1.0, %v3036_v33 }
 0x452   :  { %3039 = vrcp.f32 %v1170_v50  ;;  %v1182_v59 = vand.u32 2147483648, %v1170_v50  ;;  %v1180_v45 = vand.u32 2147483647, %v1170_v50  ;;  %vm1176_vm12 = vweird.f32 %v1170_v50 }
 0x454   :  { %v1183_v26 = vor.u32 1.1754944e-38, %v1182_v59  ;;  %vm1181_vm14 = vcmp.eq.f32.partialorder %v1180_v45, 8.507059e+37 }
 0x455   :  { %v3038_v37 = vpop.eup %3037 }
 0x456   :  { %v1192_v46 = vadd.f32 1.0, %v3038_v37 }
 0x458   :  { %v3040_v8 = vpop.eup %3039  ;;  %3041 = vrcp.f32 %v1192_v46  ;;  %v1204_v49 = vand.u32 2147483648, %v1192_v46  ;;  %v1202_v0 = vand.u32 2147483647, %v1192_v46  ;;  %vm1198_vm0 = vweird.f32 %v1192_v46 }
 0x459   :  { %3043 = vrsqrt.f32 %v4366_v24  ;;  %v1172_v10 = vmul.f32 %v3040_v8, %v1170_v50  ;;  %vm1177_vm11 = vweird.f32 %v3040_v8 }
 0x45a   :  { %3045 = vrsqrt.f32 %v4373_v38  ;;  %vm1178_vm13 = vmor %vm1176_vm12, %vm1177_vm11  ;;  %v1205_v39 = vor.u32 1.1754944e-38, %v1204_v49  ;;  %vm1203_vm2 = vcmp.eq.f32.partialorder %v1202_v0, 8.507059e+37 }
 0x45b   :  { %v1173_v55 = vsub.f32 1.0, %v1172_v10 }
 0x45d   :  { %v1174_v36 = vmul.f32 %v3040_v8, %v1173_v55 }
 0x45e   :  { %v3042_v23 = vpop.eup %3041 }
 0x45f   :  { %v4377_v48 = vpop.eup %3043  ;;  %v1194_v52 = vmul.f32 %v3042_v23, %v1192_v46  ;;  %v1175_v62 = vadd.f32 %v3040_v8, %v1174_v36  ;;  %vm1199_vm15 = vweird.f32 %v3042_v23  ;;  %v690_v36 = vsub.f32 %v5479_v18, %v4360_v61  ;;  %v1701_v18 = vld [vmem:[#allocation14 + $0x158] sm:$0xff] }
 0x460   :  { %v693_v12 = vmul.f32 %v4377_v48, %v4366_v24  ;;  %v3046_v29 = vpop.eup %3045  ;;  %vm1200_vm1 = vmor %vm1198_vm0, %vm1199_vm15  ;;  %vm699_vm3 = vweird.f32 %v4377_v48  ;;  %v4424_v24 = vld [vmem:[%s5355_s5] ss:$0 sm:$0xff]  ;;  %s2908_s5 = sshll.u32 %s5363_s13, 4  ;;  %s2909_s5 = int_to_ptr.hbm [resolvable:$true] %s2908_s5 }
 0x461   :  { %v1195_v35 = vsub.f32 1.0, %v1194_v52  ;;  %v1179_v42 = vsel %vm1178_vm13, %v3040_v8, %v1175_v62  ;;  %v832_v34 = vmul.f32 %v3046_v29, %v4373_v38  ;;  %vm700_vm5 = vmor %vm698_vm4, %vm699_vm3  ;;  %vm838_vm6 = vweird.f32 %v3046_v29  ;;  %v4417_v62 = vld [vmem:[#allocation17] sm:$0xff] }
 0x462   :  { %v1184_v51 = vsel %vm1181_vm14, %v1183_v26, %v1179_v42  ;;  %v694_v33 = vmul.f32 %v4377_v48, %v693_v12  ;;  %vm839_vm8 = vmor %vm837_vm7, %vm838_vm6  ;;  %vm1115_vm13 = vweird.f32 %v1108_v6 }
 0x463   :  { %v1196_v44 = vmul.f32 %v3042_v23, %v1195_v35  ;;  %v1230_v56 = vmul.f32 %v1228_v9, %v1184_v51  ;;  %v833_v41 = vmul.f32 %v3046_v29, %v832_v34  ;;  %v4429_v35 = vld [vmem:[#allocation13] ss:$0 sm:$0xff] }
 0x464   :  { %v695_v25 = vmul.f32 0.5, %v694_v33 }
 0x465   :  { %v1197_v17 = vadd.f32 %v3042_v23, %v1196_v44  ;;  %v1231_v21 = vadd.f32 %v1230_v56, %v355_v58  ;;  %v834_v30 = vmul.f32 0.5, %v833_v41  ;;  %v1632_v41 = vld [vmem:[#allocation14 + $0xe8] sm:$0xff] }
 0x466   :  { %v696_v37 = vsub.f32 1.5, %v695_v25 }
 0x467   :  { %v1201_v50 = vsel %vm1200_vm1, %v3042_v23, %v1197_v17  ;;  %3047 = vtanh.f32 %v1231_v21  ;;  %v835_v63 = vsub.f32 1.5, %v834_v30  ;;  %v4455_v17 = vld [vmem:[#allocation16 + $0x78] sm:$0xff]  ;;  %v4458_v21 = vld [vmem:[#allocation16 + $0x70] sm:$0xff]  ;;  %v1702_v30 = vld [vmem:[#allocation14 + $0x160] sm:$0xff] }
 0x468   :  { %3049 = vrsqrt.f32 %v4394_v57  ;;  %v1206_v11 = vsel %vm1203_vm2, %v1205_v39, %v1201_v50  ;;  %v697_v40 = vmul.f32 %v4377_v48, %v696_v37  ;;  %v1634_v50 = vld [vmem:[#allocation14 + $0xf8] sm:$0xff] }
 0x469   :  { %v1233_v28 = vsub.f32 1.0, %v1206_v11  ;;  %v1235_v46 = vmul.f32 %v1206_v11, %v4331_v53  ;;  %3051 = vrsqrt.f32 %v1108_v6  ;;  %v836_v23 = vmul.f32 %v3046_v29, %v835_v63  ;;  %v4461_v53 = vld [vmem:[#allocation16 + $0x68] sm:$0xff]  ;;  %v4469_v11 = vld [vmem:[#allocation16 + $0x58] sm:$0xff]  ;;  %1640 = vmatpush.msrb.mxu3 %v1634_v50 }
 0x46a   :  { %v701_v55 = vsel %vm700_vm5, %v4377_v48, %v697_v40  ;;  %v1631_v40 = vld [vmem:[#allocation14 + $0xe0] sm:$0xff] }
 0x46b   :  { %v702_v45 = vmul.f32 %v701_v55, %v690_v36  ;;  %v840_v61 = vsel %vm839_vm8, %v3046_v29, %v836_v23  ;;  %v4488_v36 = vld [vmem:[#allocation16 + $0x38] sm:$0xff] }
 0x46c   :  { %v841_v38 = vmul.f32 %v840_v61, %v829_v31  ;;  %v4492_v61 = vld [vmem:[#allocation16 + $0x30] sm:$0xff]  ;;  %v1628_v31 = vld [vmem:[#allocation14 + $0xc8] sm:$0xff] }
 0x46d   :  { %v3048_v19 = vpop.eup %3047  ;;  %v703_v48 = vmul.f32 %v4424_v24, %v702_v45  ;;  %v5481_v45 = vld [vmem:[#allocation38_spill] sm:$0xff] }
 0x46e   :  { %v1234_v22 = vmul.f32 %v3048_v19, %v1233_v28  ;;  %v3050_v47 = vpop.eup %3049  ;;  %v842_v58 = vmul.f32 %v4424_v24, %v841_v38  ;;  %v1633_v28 = vld [vmem:[#allocation14 + $0xf0] sm:$0xff]  ;;  %v1699_v38 = vld [vmem:[#allocation14 + $0x148] sm:$0xff] }
 0x46f   :  { %v971_v1 = vmul.f32 %v3050_v47, %v4394_v57  ;;  %v3052_v59 = vpop.eup %3051  ;;  %v4432_v42 = vadd.f32 %v4429_v35, %v703_v48  ;;  %vm977_vm9 = vweird.f32 %v3050_v47  ;;  %v1704_v19 = vld [vmem:[#allocation14 + $0x170] sm:$0xff]  ;;  %1641 = vmatpush.msrb.mxu3 %v1633_v28  ;;  %v4508_v28 = vld [vmem:[#allocation16 + $0x8] sm:$0xff] }
 0x470   :  { %v4402_v8 = vadd.f32 %v1235_v46, %v1234_v22  ;;  %v1110_v52 = vmul.f32 %v3052_v59, %v1108_v6  ;;  %vm978_vm11 = vmor %vm976_vm10, %vm977_vm9  ;;  %v4440_v4 = vadd.f32 %v4429_v35, %v842_v58  ;;  %vm1116_vm12 = vweird.f32 %v3052_v59  ;;  %v4474_v6 = vld [vmem:[#allocation16 + $0x50] sm:$0xff]  ;;  %v1703_v22 = vld [vmem:[#allocation14 + $0x168] sm:$0xff] }
 0x471   :  { %v972_v13 = vmul.f32 %v3050_v47, %v971_v1  ;;  %vm1117_vm14 = vmor %vm1115_vm13, %vm1116_vm12  ;;  %v4477_v46 = vld [vmem:[#allocation16 + $0x48] sm:$0xff]  ;;  %1642 = vmatpush.msrb.mxu3 %v1632_v41  ;;  %v4482_v1 = vld [vmem:[#allocation16 + $0x40] sm:$0xff] }
 0x472   :  { %1279 = vmatmul.f32.vlgmr.msrb.gmra.mxu0 %v4402_v8  ;;  %1299 = vmatmul.f32.vlgmr.msrb.gmra.mxu1 %v4402_v8  ;;  %v1240_v10 = vmul.f32 %v4402_v8, %v4402_v8  ;;  %v1111_v26 = vmul.f32 %v3052_v59, %v1110_v52  ;;  %v1629_v52 = vld [vmem:[#allocation14 + $0xd0] sm:$0xff]  ;;  %v1627_v58 = vld [vmem:[#allocation14 + $0xc0] sm:$0xff] }
 0x473   :  { %1365 = vmatmul.f32.vlgmr.msrb.gmra.mxu2 %v4402_v8  ;;  %1237 = vadd.xlane.f32.xlu1 %v4402_v8  ;;  %v973_v43 = vmul.f32 0.5, %v972_v13  ;;  %v1700_v48 = vld [vmem:[#allocation14 + $0x150] sm:$0xff]  ;;  %v1623_v41 = vld [vmem:[#allocation14 + $0xa0] sm:$0xff] }
 0x474   :  { %1241 = vadd.xlane.f32.xlu2 %v1240_v10  ;;  %v1112_v32 = vmul.f32 0.5, %v1111_v26  ;;  %1813 = vmatpush.msrb.mxu1 %v4455_v17  ;;  %v5480_v10 = vld [vmem:[#allocation30_spill] sm:$0xff] }
 0x475   :  { %v974_v27 = vsub.f32 1.5, %v973_v43  ;;  %1711 = vmatpush.msrb.mxu0 %v1705_v5  ;;  %v287_v55 = vadd.f32 %v4356_v14, %v5480_v10  ;;  %1643 = vmatpush.msrb.mxu3 %v1631_v40  ;;  %v4512_v40 = vld [vmem:[#allocation16] sm:$0xff] }
 0x476   :  { %v1113_v51 = vsub.f32 1.5, %v1112_v32  ;;  %1814 = vmatpush.msrb.mxu1 %v4458_v21 }
 0x477   :  { %v975_v9 = vmul.f32 %v3050_v47, %v974_v27  ;;  %1712 = vmatpush.msrb.mxu0 %v1704_v19 }
 0x478   :  { %v1114_v49 = vmul.f32 %v3052_v59, %v1113_v51  ;;  %1815 = vmatpush.msrb.mxu1 %v4461_v53  ;;  %v4498_v51 = vld [vmem:[#allocation16 + $0x20] sm:$0xff] }
 0x479   :  { %v979_v12 = vsel %vm978_vm11, %v3050_v47, %v975_v9  ;;  %1713 = vmatpush.msrb.mxu0 %v1703_v22  ;;  %v4495_v9 = vld [vmem:[#allocation16 + $0x28] sm:$0xff]  ;;  %v1694_v22 = vld [vmem:[#allocation14 + $0x120] sm:$0xff] }
 0x47a   :  { %v980_v44 = vmul.f32 %v979_v12, %v968_v16  ;;  %v1118_v57 = vsel %vm1117_vm14, %v3052_v59, %v1114_v49  ;;  %1816 = vmatpush.msrb.mxu1 %v4464_v20  ;;  %v1630_v59 = vld [vmem:[#allocation14 + $0xd8] sm:$0xff]  ;;  %v1698_v12 = vld [vmem:[#allocation14 + $0x140] sm:$0xff] }
 0x47b   :  { %1585 = vmatmul.f32.vlgmr.msra.gmra.mxu2 %v4417_v62  ;;  %v1119_v54 = vmul.f32 %v1118_v57, %v1107_v60  ;;  %1714 = vmatpush.msrb.mxu0 %v1702_v30  ;;  %v1697_v49 = vld [vmem:[#allocation14 + $0x138] sm:$0xff]  ;;  %v1625_v60 = vld [vmem:[#allocation14 + $0xb0] sm:$0xff] }
 0x47c   :  { %v981_v56 = vmul.f32 %v4424_v24, %v980_v44  ;;  %1817 = vmatpush.msrb.mxu1 %v4469_v11  ;;  %1644 = vmatpush.msrb.mxu3 %v1630_v59  ;;  %v1626_v44 = vld [vmem:[#allocation14 + $0xb8] sm:$0xff] }
 0x47d   :  { %v1120_v7 = vmul.f32 %v4424_v24, %v1119_v54  ;;  %1715 = vmatpush.msrb.mxu0 %v1701_v18  ;;  %v4502_v57 = vld [vmem:[#allocation16 + $0x18] sm:$0xff]  ;;  %v1696_v54 = vld [vmem:[#allocation14 + $0x130] sm:$0xff] }
 0x47e   :  { %v4447_v0 = vadd.f32 %v4429_v35, %v981_v56  ;;  %1818 = vmatpush.msrb.mxu1 %v4474_v6  ;;  %1645 = vmatpush.msrb.mxu3 %v1629_v52  ;;  %v1621_v18 = vld [vmem:[#allocation14 + $0x90] sm:$0xff]  ;;  %v1691_v52 = vld [vmem:[#allocation14 + $0x108] sm:$0xff] }
 0x47f   :  { %v4452_v2 = vadd.f32 %v4429_v35, %v1120_v7  ;;  %1716 = vmatpush.msrb.mxu0 %v1700_v48  ;;  %v4505_v7 = vld [vmem:[#allocation16 + $0x10] sm:$0xff] }
 0x480   :  { %1819 = vmatpush.msrb.mxu1 %v4477_v46  ;;  %1646 = vmatpush.msrb.mxu3 %v1628_v31  ;;  %v1619_v31 = vld [vmem:[#allocation14 + $0x80] sm:$0xff] }
 0x481   :  { %1717 = vmatpush.msrb.mxu0 %v1699_v38  ;;  %v1690_v38 = vld [vmem:[#allocation14 + $0x100] sm:$0xff] }
 0x482   :  { %1820 = vmatpush.msrb.mxu1 %v4482_v1  ;;  %1647 = vmatpush.msrb.mxu3 %v1627_v58 }
 0x483   :  { %1588 = vmatmul.f32.gmra.mxu2 %v4432_v42  ;;  %1718 = vmatpush.msrb.mxu0 %v1698_v12 }
 0x484   :  { %1821 = vmatpush.msrb.mxu1 %v4488_v36  ;;  %1648 = vmatpush.msrb.mxu3 %v1626_v44 }
 0x485   :  { %1719 = vmatpush.msrb.mxu0 %v1697_v49 }
 0x486   :  { %1822 = vmatpush.msrb.mxu1 %v4492_v61  ;;  %1649 = vmatpush.msrb.mxu3 %v1625_v60 }
 0x487   :  { %1720 = vmatpush.msrb.mxu0 %v1696_v54 }
 0x488   :  { %1823 = vmatpush.msrb.mxu1 %v4495_v9 }
 0x48a   :  { %1824 = vmatpush.msrb.mxu1 %v4498_v51 }
 0x48b   :  { %1591 = vmatmul.f32.gmra.mxu2 %v4440_v4 }
 0x48c   :  { %1825 = vmatpush.msrb.mxu1 %v4502_v57 }
 0x48e   :  { %1826 = vmatpush.msrb.mxu1 %v4505_v7 }
 0x490   :  { %1827 = vmatpush.msrb.mxu1 %v4508_v28 }
 0x492   :  { %1828 = vmatpush.msrb.mxu1 %v4512_v40 }
 0x493   :  { %1594 = vmatmul.f32.gmra.mxu2 %v4447_v0 }
 0x49b   :  { %1597 = vmatmul.f32.gmra.mxu2 %v4452_v2 }
 0x4e6   :  { %v1238_v29 = vpop.xlane.xlu1 %1237 }
 0x4e7   :  { %v4467_v33 = vmul.f32 0.015625, %v1238_v29  ;;  %v1242_v39 = vpop.xlane.xlu2 %1241 }
 0x4e8   :  { %v1243_v25 = vmul.f32 0.015625, %v1242_v39 }
 0x4e9   :  { %v1244_v34 = vmul.f32 %v4467_v33, %v4467_v33  ;;  %v1246_v10 = vsub.f32 %v4402_v8, %v4467_v33 }
 0x4eb   :  { %v1245_v37 = vsub.f32 %v1243_v25, %v1244_v34  ;;  %v1624_v25 = vld [vmem:[#allocation14 + $0xa8] sm:$0xff] }
 0x4ec   :  { %v1695_v34 = vld [vmem:[#allocation14 + $0x128] sm:$0xff]  ;;  %1650 = vmatpush.msrb.mxu3 %v1624_v25 }
 0x4ed   :  { %v4479_v47 = vadd.f32 1e-05, %v1245_v37  ;;  %1721 = vmatpush.msrb.mxu0 %v1695_v34  ;;  %v5482_v34 = vld [vmem:[#allocation25_spill] sm:$0xff] }
 0x4ee   :  { %1651 = vmatpush.msrb.mxu3 %v1623_v41 }
 0x4ef   :  { %3053 = vrsqrt.f32 %v4479_v47  ;;  %v1280_v63 = vpop.f32.mrf.mxu0  ;;  %v1300_v13 = vpop.f32.mrf.mxu1  ;;  %vm1254_vm0 = vweird.f32 %v4479_v47  ;;  %1722 = vmatpush.msrb.mxu0 %v1694_v22 }
 0x4f0   :  { %v1305_v23 = vadd.f32 %v1280_v63, %v5481_v45  ;;  %v1327_v43 = vadd.f32 %v1300_v13, %v287_v55  ;;  %v1622_v55 = vld [vmem:[#allocation14 + $0x98] sm:$0xff]  ;;  %v1692_v45 = vld [vmem:[#allocation14 + $0x110] sm:$0xff] }
 0x4f1   :  { %v1693_v63 = vld [vmem:[#allocation14 + $0x118] sm:$0xff]  ;;  %1652 = vmatpush.msrb.mxu3 %v1622_v55 }
 0x4f2   :  { %v2936_v27 = vmul.f32 -1.442695, %v1305_v23  ;;  %v2937_v26 = vmul.f32 -1.442695, %v1327_v43  ;;  %1723 = vmatpush.msrb.mxu0 %v1693_v63  ;;  %v1620_v43 = vld [vmem:[#allocation14 + $0x88] sm:$0xff] }
 0x4f3   :  { %1653 = vmatpush.msrb.mxu3 %v1621_v18 }
 0x4f4   :  { %3055 = vpow2.f32 %v2936_v27  ;;  %1724 = vmatpush.msrb.mxu0 %v1692_v45 }
 0x4f5   :  { %v3054_v32 = vpop.eup %3053  ;;  %3057 = vpow2.f32 %v2937_v26  ;;  %1654 = vmatpush.msrb.mxu3 %v1620_v43  ;;  %v4544_v43 = vld [vmem:[#allocation16 + $0xf0] sm:$0xff] }
 0x4f6   :  { %v1249_v16 = vmul.f32 %v3054_v32, %v4479_v47  ;;  %vm1255_vm15 = vweird.f32 %v3054_v32  ;;  %1725 = vmatpush.msrb.mxu0 %v1691_v52  ;;  %v4552_v52 = vld [vmem:[#allocation16 + $0xe0] sm:$0xff] }
 0x4f7   :  { %vm1256_vm1 = vmor %vm1254_vm0, %vm1255_vm15  ;;  %1655 = vmatpush.msrb.mxu3 %v1619_v31  ;;  %v4569_v31 = vld [vmem:[#allocation16 + $0xc8] sm:$0xff] }
 0x4f8   :  { %v1250_v56 = vmul.f32 %v3054_v32, %v1249_v16  ;;  %1726 = vmatpush.msrb.mxu0 %v1690_v38  ;;  %v4574_v38 = vld [vmem:[#allocation16 + $0xc0] sm:$0xff] }
 0x4fa   :  { %v3056_v29 = vpop.eup %3055  ;;  %v1251_v39 = vmul.f32 0.5, %v1250_v56  ;;  %v1366_v56 = vpop.f32.mrf.mxu2 }
 0x4fb   :  { %v3058_v50 = vpop.eup %3057  ;;  %v1309_v5 = vadd.f32 1.0, %v3056_v29 }
 0x4fc   :  { %v1252_v19 = vsub.f32 1.5, %v1251_v39  ;;  %v4510_v37 = vadd.f32 1.0, %v3058_v50  ;;  %v1367_v39 = vadd.f32 %v4385_v3, %v1366_v56 }
 0x4fd   :  { %3059 = vrcp.f32 %v1309_v5  ;;  %v1321_v12 = vand.u32 2147483648, %v1309_v5  ;;  %v1319_v44 = vand.u32 2147483647, %v1309_v5  ;;  %vm1315_vm3 = vweird.f32 %v1309_v5 }
 0x4fe   :  { %v1253_v30 = vmul.f32 %v3054_v32, %v1252_v19  ;;  %3061 = vrcp.f32 %v4510_v37  ;;  %v358_v19 = vadd.f32 %v4388_v15, %v5482_v34  ;;  %v1343_v41 = vand.u32 2147483648, %v4510_v37 }
 0x4ff   :  { %v1322_v54 = vor.u32 1.1754944e-38, %v1321_v12  ;;  %vm1320_vm5 = vcmp.eq.f32.partialorder %v1319_v44, 8.507059e+37  ;;  %vm1337_vm7 = vweird.f32 %v4510_v37  ;;  %v4595_v12 = vld [vmem:[#allocation16 + $0xa0] sm:$0xff]  ;;  %v4611_v44 = vld [vmem:[#allocation16 + $0x88] sm:$0xff] }
 0x500   :  { %v1257_v13 = vsel %vm1256_vm1, %v3054_v32, %v1253_v30  ;;  %v1341_v30 = vand.u32 2147483647, %v4510_v37  ;;  %v1344_v55 = vor.u32 1.1754944e-38, %v1343_v41 }
 0x501   :  { %v1258_v59 = vmul.f32 %v1257_v13, %v1246_v10 }
 0x502   :  { %vm1342_vm9 = vcmp.eq.f32.partialorder %v1341_v30, 8.507059e+37  ;;  %v5485_v30 = vld [vmem:[#allocation39_spill] sm:$0xff] }
 0x503   :  { %v3060_v47 = vpop.eup %3059  ;;  %v1259_v23 = vmul.f32 %v4424_v24, %v1258_v59 }
 0x504   :  { %v3062_v33 = vpop.eup %3061  ;;  %v1311_v48 = vmul.f32 %v3060_v47, %v1309_v5  ;;  %vm1316_vm2 = vweird.f32 %v3060_v47 }
 0x505   :  { %v4523_v27 = vadd.f32 %v4429_v35, %v1259_v23  ;;  %v1333_v26 = vmul.f32 %v3062_v33, %v4510_v37  ;;  %vm1317_vm4 = vmor %vm1315_vm3, %vm1316_vm2  ;;  %vm1338_vm6 = vweird.f32 %v3062_v33  ;;  %v4536_v23 = vld [vmem:[#allocation16 + $0xf8] sm:$0xff] }
 0x506   :  { %v1312_v32 = vsub.f32 1.0, %v1311_v48  ;;  %vm1339_vm8 = vmor %vm1337_vm7, %vm1338_vm6  ;;  %v5483_v48 = vmov 0.0  }
 0x507   :  { %v1334_v58 = vsub.f32 1.0, %v1333_v26  ;;  %1600 = vmatmul.f32.gmra.mxu2 %v4523_v27  ;;  %v4565_v26 = vld [vmem:[#allocation16 + $0xd0] sm:$0xff] }
 0x508   :  { %v1313_v16 = vmul.f32 %v3060_v47, %v1312_v32  ;;  %v4585_v32 = vld [vmem:[#allocation16 + $0xb0] sm:$0xff] }
 0x509   :  { %v1335_v49 = vmul.f32 %v3062_v33, %v1334_v58  ;;  %v4590_v58 = vld [vmem:[#allocation16 + $0xa8] sm:$0xff] }
 0x50a   :  { %v1314_v60 = vadd.f32 %v3060_v47, %v1313_v16  ;;  %v4606_v16 = vld [vmem:[#allocation16 + $0x90] sm:$0xff] }
 0x50b   :  { %v1336_v50 = vadd.f32 %v3062_v33, %v1335_v49  ;;  %v4616_v49 = vld [vmem:[#allocation16 + $0x80] sm:$0xff] }
 0x50c   :  { %v1318_v29 = vsel %vm1317_vm4, %v3060_v47, %v1314_v60 }
 0x50d   :  { %v1323_v25 = vsel %vm1320_vm5, %v1322_v54, %v1318_v29  ;;  %v1340_v10 = vsel %vm1339_vm8, %v3062_v33, %v1336_v50  ;;  %v4557_v33 = vld [vmem:[#allocation16 + $0xd8] sm:$0xff]  ;;  %v5484_v29 = vld [vmem:[#allocation29_spill] sm:$0xff] }
 0x50e   :  { %v1369_v22 = vmul.f32 %v1367_v39, %v1323_v25  ;;  %v1345_v63 = vsel %vm1342_vm9, %v1344_v55, %v1340_v10  ;;  %v290_v39 = vadd.f32 %v4356_v14, %v5484_v29 }
 0x50f   :  { %v1372_v13 = vsub.f32 1.0, %v1345_v63  ;;  %v1374_v45 = vmul.f32 %v1345_v63, %v4402_v8  ;;  %v4547_v8 = vld [vmem:[#allocation16 + $0xe8] sm:$0xff] }
 0x510   :  { %v1370_v5 = vadd.f32 %v1369_v22, %v358_v19 }
 0x512   :  { %3063 = vtanh.f32 %v1370_v5 }
 0x518   :  { %v3064_v59 = vpop.eup %3063 }
 0x519   :  { %v1373_v18 = vmul.f32 %v3064_v59, %v1372_v13 }
 0x51b   :  { %v4534_v47 = vadd.f32 %v1374_v45, %v1373_v18 }
 0x51d   :  { %1418 = vmatmul.f32.vlgmr.msra.gmra.mxu3 %v4534_v47  ;;  %1438 = vmatmul.f32.vlgmr.msra.gmra.mxu0 %v4534_v47  ;;  %v1379_v37 = vmul.f32 %v4534_v47, %v4534_v47 }
 0x51e   :  { %1504 = vmatmul.f32.vlgmr.msra.gmra.mxu1 %v4534_v47  ;;  %1376 = vadd.xlane.f32.xlu0 %v4534_v47 }
 0x51f   :  { %1833 = vmatpush.msra.mxu1 %v4536_v23  ;;  %1380 = vadd.xlane.f32.xlu1 %v1379_v37 }
 0x520   :  { %1957 = vmatpush.msra.mxu3 %v4455_v17  ;;  %1977 = vmatpush.msra.mxu0 %v4536_v23 }
 0x521   :  { %1834 = vmatpush.msra.mxu1 %v4544_v43 }
 0x522   :  { %1958 = vmatpush.msra.mxu3 %v4458_v21  ;;  %1978 = vmatpush.msra.mxu0 %v4544_v43 }
 0x523   :  { %1835 = vmatpush.msra.mxu1 %v4547_v8 }
 0x524   :  { %1959 = vmatpush.msra.mxu3 %v4461_v53  ;;  %1979 = vmatpush.msra.mxu0 %v4547_v8 }
 0x525   :  { %1836 = vmatpush.msra.mxu1 %v4552_v52  ;;  %1656 = vmatmul.f32.vlgmr.msrb.gmra.mxu3 %v4417_v62 }
 0x526   :  { %1727 = vmatmul.f32.vlgmr.msrb.gmra.mxu0 %v4417_v62  ;;  %1829 = vmatmul.f32.vlgmr.msrb.gmra.mxu1 %v5483_v48  ;;  %v4579_v62 = vld [vmem:[#allocation16 + $0xb8] sm:$0xff] }
 0x527   :  { %1837 = vmatpush.msra.mxu1 %v4557_v33  ;;  %1960 = vmatpush.msra.mxu3 %v4464_v20 }
 0x528   :  { %1980 = vmatpush.msra.mxu0 %v4552_v52 }
 0x529   :  { %1838 = vmatpush.msra.mxu1 %v4565_v26  ;;  %1961 = vmatpush.msra.mxu3 %v4469_v11 }
 0x52a   :  { %1981 = vmatpush.msra.mxu0 %v4557_v33 }
 0x52b   :  { %1839 = vmatpush.msra.mxu1 %v4569_v31  ;;  %1962 = vmatpush.msra.mxu3 %v4474_v6 }
 0x52c   :  { %1982 = vmatpush.msra.mxu0 %v4565_v26 }
 0x52d   :  { %1840 = vmatpush.msra.mxu1 %v4574_v38  ;;  %1659 = vmatmul.f32.gmra.mxu3 %v4432_v42 }
 0x52e   :  { %1730 = vmatmul.f32.gmra.mxu0 %v4432_v42  ;;  %1963 = vmatpush.msra.mxu3 %v4477_v46  ;;  %v4600_v42 = vld [vmem:[#allocation16 + $0x98] sm:$0xff] }
 0x52f   :  { %1841 = vmatpush.msra.mxu1 %v4579_v62  ;;  %1983 = vmatpush.msra.mxu0 %v4569_v31 }
 0x530   :  { %1964 = vmatpush.msra.mxu3 %v4482_v1 }
 0x531   :  { %1842 = vmatpush.msra.mxu1 %v4585_v32  ;;  %1984 = vmatpush.msra.mxu0 %v4574_v38 }
 0x532   :  { %1965 = vmatpush.msra.mxu3 %v4488_v36 }
 0x533   :  { %1843 = vmatpush.msra.mxu1 %v4590_v58  ;;  %1985 = vmatpush.msra.mxu0 %v4579_v62 }
 0x534   :  { %1966 = vmatpush.msra.mxu3 %v4492_v61 }
 0x535   :  { %1844 = vmatpush.msra.mxu1 %v4595_v12  ;;  %1662 = vmatmul.f32.gmra.mxu3 %v4440_v4 }
 0x536   :  { %1733 = vmatmul.f32.gmra.mxu0 %v4440_v4  ;;  %1967 = vmatpush.msra.mxu3 %v4495_v9 }
 0x537   :  { %1845 = vmatpush.msra.mxu1 %v4600_v42  ;;  %1986 = vmatpush.msra.mxu0 %v4585_v32 }
 0x538   :  { %1968 = vmatpush.msra.mxu3 %v4498_v51 }
 0x539   :  { %1846 = vmatpush.msra.mxu1 %v4606_v16  ;;  %1987 = vmatpush.msra.mxu0 %v4590_v58 }
 0x53a   :  { %1969 = vmatpush.msra.mxu3 %v4502_v57 }
 0x53b   :  { %1847 = vmatpush.msra.mxu1 %v4611_v44  ;;  %1988 = vmatpush.msra.mxu0 %v4595_v12 }
 0x53c   :  { %1970 = vmatpush.msra.mxu3 %v4505_v7 }
 0x53d   :  { %1848 = vmatpush.msra.mxu1 %v4616_v49  ;;  %1665 = vmatmul.f32.gmra.mxu3 %v4447_v0 }
 0x53e   :  { %1849 = vmatmul.f32.vlgmr.msra.gmra.mxu1 %v5483_v48  ;;  %1736 = vmatmul.f32.gmra.mxu0 %v4447_v0 }
 0x53f   :  { %1971 = vmatpush.msra.mxu3 %v4508_v28  ;;  %1989 = vmatpush.msra.mxu0 %v4600_v42 }
 0x541   :  { %1990 = vmatpush.msra.mxu0 %v4606_v16  ;;  %1972 = vmatpush.msra.mxu3 %v4512_v40 }
 0x543   :  { %2112 = vmatpush.msrb.mxu3 %v4536_v23  ;;  %1991 = vmatpush.msra.mxu0 %v4611_v44 }
 0x545   :  { %2113 = vmatpush.msrb.mxu3 %v4544_v43  ;;  %1992 = vmatpush.msra.mxu0 %v4616_v49 }
 0x546   :  { %1668 = vmatmul.f32.gmra.mxu3 %v4452_v2  ;;  %1739 = vmatmul.f32.gmra.mxu0 %v4452_v2 }
 0x547   :  { %2114 = vmatpush.msrb.mxu3 %v4547_v8 }
 0x549   :  { %2115 = vmatpush.msrb.mxu3 %v4552_v52 }
 0x54b   :  { %2116 = vmatpush.msrb.mxu3 %v4557_v33 }
 0x54d   :  { %2117 = vmatpush.msrb.mxu3 %v4565_v26 }
 0x54e   :  { %1671 = vmatmul.f32.gmra.mxu3 %v4523_v27  ;;  %1742 = vmatmul.f32.gmra.mxu0 %v4523_v27 }
 0x54f   :  { %2118 = vmatpush.msrb.mxu3 %v4569_v31 }
 0x551   :  { %2119 = vmatpush.msrb.mxu3 %v4574_v38 }
 0x553   :  { %2120 = vmatpush.msrb.mxu3 %v4579_v62 }
 0x555   :  { %2121 = vmatpush.msrb.mxu3 %v4585_v32 }
 0x557   :  { %2122 = vmatpush.msrb.mxu3 %v4590_v58 }
 0x559   :  { %2123 = vmatpush.msrb.mxu3 %v4595_v12 }
 0x55b   :  { %2124 = vmatpush.msrb.mxu3 %v4600_v42 }
 0x55d   :  { %2125 = vmatpush.msrb.mxu3 %v4606_v16 }
 0x55f   :  { %2126 = vmatpush.msrb.mxu3 %v4611_v44 }
 0x561   :  { %2127 = vmatpush.msrb.mxu3 %v4616_v49 }
 0x591   :  { %v1377_v4 = vpop.xlane.xlu0 %1376 }
 0x592   :  { %v1378_v0 = vmul.f32 0.015625, %v1377_v4  ;;  %v1381_v2 = vpop.xlane.xlu1 %1380 }
 0x593   :  { %v1382_v27 = vmul.f32 0.015625, %v1381_v2 }
 0x594   :  { %v1383_v56 = vmul.f32 %v1378_v0, %v1378_v0  ;;  %v1385_v14 = vsub.f32 %v4534_v47, %v1378_v0 }
 0x596   :  { %v1384_v60 = vsub.f32 %v1382_v27, %v1383_v56 }
 0x598   :  { %v1386_v54 = vadd.f32 1e-05, %v1384_v60 }
 0x59a   :  { %3065 = vrsqrt.f32 %v1386_v54  ;;  %v1439_v50 = vpop.f32.mrf.mxu0  ;;  %vm1393_vm11 = vweird.f32 %v1386_v54 }
 0x59b   :  { %v1466_v25 = vadd.f32 %v1439_v50, %v290_v39 }
 0x59d   :  { %v2939_v34 = vmul.f32 -1.442695, %v1466_v25 }
 0x59f   :  { %3067 = vpow2.f32 %v2939_v34  ;;  %v4658_v34 = vld [vmem:[#allocation16 + $0x178] sm:$0xff] }
 0x5a0   :  { %v3066_v19 = vpop.eup %3065  ;;  %v1419_v41 = vpop.f32.mrf.mxu3  ;;  %1899 = vmatpush.msrb.mxu2 %v4658_v34  ;;  %2040 = vmatpush.msrb.mxu1 %v4658_v34 }
 0x5a1   :  { %v1388_v22 = vmul.f32 %v3066_v19, %v1386_v54  ;;  %v1444_v5 = vadd.f32 %v1419_v41, %v5485_v30  ;;  %vm1394_vm10 = vweird.f32 %v3066_v19  ;;  %2175 = vmatpush.msrb.mxu0 %v4658_v34  ;;  %v1505_v30 = vpop.f32.mrf.mxu1 }
 0x5a2   :  { %vm1395_vm12 = vmor %vm1393_vm11, %vm1394_vm10 }
 0x5a3   :  { %v1389_v10 = vmul.f32 %v3066_v19, %v1388_v22  ;;  %v2938_v55 = vmul.f32 -1.442695, %v1444_v5 }
 0x5a5   :  { %v3068_v63 = vpop.eup %3067  ;;  %v1390_v13 = vmul.f32 0.5, %v1389_v10  ;;  %3069 = vpow2.f32 %v2938_v55 }
 0x5a6   :  { %v1470_v59 = vadd.f32 1.0, %v3068_v63  ;;  %v1506_v63 = vadd.f32 %v4385_v3, %v1505_v30  ;;  %v4696_v30 = vld [vmem:[#allocation16 + $0x148] sm:$0xff] }
 0x5a7   :  { %v1391_v18 = vsub.f32 1.5, %v1390_v13 }
 0x5a8   :  { %3071 = vrcp.f32 %v1470_v59  ;;  %vm1476_vm2 = vweird.f32 %v1470_v59 }
 0x5a9   :  { %v1392_v45 = vmul.f32 %v3066_v19, %v1391_v18 }
 0x5ab   :  { %v3070_v37 = vpop.eup %3069  ;;  %v1396_v4 = vsel %vm1395_vm12, %v3066_v19, %v1392_v45 }
 0x5ac   :  { %v1397_v2 = vmul.f32 %v1396_v4, %v1385_v14  ;;  %v1448_v27 = vadd.f32 1.0, %v3070_v37  ;;  %v5486_v14 = vld [vmem:[#allocation40_spill] sm:$0xff]  ;;  %v1482_v4 = vand.u32 2147483648, %v1470_v59 }
 0x5ad   :  { %v361_v37 = vadd.f32 %v4388_v15, %v5486_v14  ;;  %v4723_v14 = vld [vmem:[#allocation16 + $0x118] sm:$0xff] }
 0x5ae   :  { %v1398_v56 = vmul.f32 %v4424_v24, %v1397_v2  ;;  %3073 = vrcp.f32 %v1448_v27  ;;  %v3072_v60 = vpop.eup %3071  ;;  %v1460_v19 = vand.u32 2147483648, %v1448_v27  ;;  %v1458_v22 = vand.u32 2147483647, %v1448_v27 }
 0x5af   :  { %v1472_v39 = vmul.f32 %v3072_v60, %v1470_v59  ;;  %vm1454_vm14 = vweird.f32 %v1448_v27  ;;  %vm1477_vm1 = vweird.f32 %v3072_v60 }
 0x5b0   :  { %v1399_v29 = vadd.f32 %v4429_v35, %v1398_v56  ;;  %v1461_v55 = vor.u32 1.1754944e-38, %v1460_v19  ;;  %vm1459_vm0 = vcmp.eq.f32.partialorder %v1458_v22, 8.507059e+37  ;;  %v1480_v56 = vand.u32 2147483647, %v1470_v59  ;;  %vm1478_vm3 = vmor %vm1476_vm2, %vm1477_vm1  ;;  %v4672_v59 = vld [vmem:[#allocation16 + $0x170] sm:$0xff] }
 0x5b1   :  { %v1473_v25 = vsub.f32 1.0, %v1472_v39  ;;  %1900 = vmatpush.msrb.mxu2 %v4672_v59  ;;  %2041 = vmatpush.msrb.mxu1 %v4672_v59  ;;  %v4692_v22 = vld [vmem:[#allocation16 + $0x150] sm:$0xff] }
 0x5b2   :  { %1603 = vmatmul.f32.gmra.mxu2 %v1399_v29  ;;  %1674 = vmatmul.f32.gmra.mxu3 %v1399_v29  ;;  %vm1481_vm4 = vcmp.eq.f32.partialorder %v1480_v56, 8.507059e+37  ;;  %v4728_v56 = vld [vmem:[#allocation16 + $0x110] sm:$0xff] }
 0x5b3   :  { %1745 = vmatmul.f32.gmra.mxu0 %v1399_v29  ;;  %v1474_v5 = vmul.f32 %v3072_v60, %v1473_v25  ;;  %5487 = vst [vmem:[#allocation34_spill] sm:$0xff] %v4728_v56 }
 0x5b4   :  { %v3074_v50 = vpop.eup %3073  ;;  %2176 = vmatpush.msrb.mxu0 %v4672_v59 }
 0x5b5   :  { %v1450_v54 = vmul.f32 %v3074_v50, %v1448_v27  ;;  %vm1455_vm13 = vweird.f32 %v3074_v50  ;;  %v1475_v45 = vadd.f32 %v3072_v60, %v1474_v5  ;;  %v1483_v27 = vor.u32 1.1754944e-38, %v1482_v4  ;;  %v4701_v5 = vld [vmem:[#allocation16 + $0x140] sm:$0xff] }
 0x5b6   :  { %vm1456_vm15 = vmor %vm1454_vm14, %vm1455_vm13 }
 0x5b7   :  { %v1451_v0 = vsub.f32 1.0, %v1450_v54  ;;  %v1479_v39 = vsel %vm1478_vm3, %v3072_v60, %v1475_v45  ;;  %v4674_v60 = vld [vmem:[#allocation16 + $0x168] sm:$0xff] }
 0x5b8   :  { %v1484_v54 = vsel %vm1481_vm4, %v1483_v27, %v1479_v39  ;;  %1901 = vmatpush.msrb.mxu2 %v4674_v60  ;;  %2042 = vmatpush.msrb.mxu1 %v4674_v60  ;;  %v4733_v39 = vld [vmem:[#allocation16 + $0x108] sm:$0xff] }
 0x5b9   :  { %v1452_v41 = vmul.f32 %v3074_v50, %v1451_v0  ;;  %v1511_v3 = vsub.f32 1.0, %v1484_v54  ;;  %v1513_v0 = vmul.f32 %v1484_v54, %v4534_v47  ;;  %2177 = vmatpush.msrb.mxu0 %v4674_v60  ;;  %v4682_v47 = vld [vmem:[#allocation16 + $0x160] sm:$0xff]  ;;  %5488 = vst [vmem:[#allocation23_spill] sm:$0xff] %v4733_v39 }
 0x5ba   :  { %1902 = vmatpush.msrb.mxu2 %v4682_v47  ;;  %2043 = vmatpush.msrb.mxu1 %v4682_v47  ;;  %v4738_v54 = vld [vmem:[#allocation16 + $0x100] sm:$0xff] }
 0x5bb   :  { %v1453_v10 = vadd.f32 %v3074_v50, %v1452_v41  ;;  %2178 = vmatpush.msrb.mxu0 %v4682_v47  ;;  %v4687_v41 = vld [vmem:[#allocation16 + $0x158] sm:$0xff]  ;;  %5489 = vst [vmem:[#allocation32_spill] sm:$0xff] %v4738_v54 }
 0x5bc   :  { %1903 = vmatpush.msrb.mxu2 %v4687_v41  ;;  %2044 = vmatpush.msrb.mxu1 %v4687_v41 }
 0x5bd   :  { %v1457_v13 = vsel %vm1456_vm15, %v3074_v50, %v1453_v10  ;;  %2179 = vmatpush.msrb.mxu0 %v4687_v41  ;;  %v4706_v10 = vld [vmem:[#allocation16 + $0x138] sm:$0xff] }
 0x5be   :  { %v1462_v18 = vsel %vm1459_vm0, %v1461_v55, %v1457_v13  ;;  %1904 = vmatpush.msrb.mxu2 %v4692_v22  ;;  %2045 = vmatpush.msrb.mxu1 %v4692_v22  ;;  %v4711_v55 = vld [vmem:[#allocation16 + $0x130] sm:$0xff]  ;;  %v4718_v13 = vld [vmem:[#allocation16 + $0x120] sm:$0xff] }
 0x5bf   :  { %v1508_v2 = vmul.f32 %v1506_v63, %v1462_v18  ;;  %2180 = vmatpush.msrb.mxu0 %v4692_v22  ;;  %v4716_v63 = vld [vmem:[#allocation16 + $0x128] sm:$0xff] }
 0x5c0   :  { %1905 = vmatpush.msrb.mxu2 %v4696_v30  ;;  %2046 = vmatpush.msrb.mxu1 %v4696_v30 }
 0x5c1   :  { %v1509_v29 = vadd.f32 %v1508_v2, %v361_v37  ;;  %2181 = vmatpush.msrb.mxu0 %v4696_v30 }
 0x5c2   :  { %1906 = vmatpush.msrb.mxu2 %v4701_v5  ;;  %2047 = vmatpush.msrb.mxu1 %v4701_v5 }
 0x5c3   :  { %3075 = vtanh.f32 %v1509_v29  ;;  %2182 = vmatpush.msrb.mxu0 %v4701_v5 }
 0x5c4   :  { %1907 = vmatpush.msrb.mxu2 %v4706_v10  ;;  %2048 = vmatpush.msrb.mxu1 %v4706_v10 }
 0x5c5   :  { %2183 = vmatpush.msrb.mxu0 %v4706_v10 }
 0x5c6   :  { %1908 = vmatpush.msrb.mxu2 %v4711_v55  ;;  %2049 = vmatpush.msrb.mxu1 %v4711_v55 }
 0x5c7   :  { %2184 = vmatpush.msrb.mxu0 %v4711_v55 }
 0x5c8   :  { %1909 = vmatpush.msrb.mxu2 %v4716_v63  ;;  %2050 = vmatpush.msrb.mxu1 %v4716_v63 }
 0x5c9   :  { %v3076_v25 = vpop.eup %3075  ;;  %2185 = vmatpush.msrb.mxu0 %v4716_v63 }
 0x5ca   :  { %v1512_v50 = vmul.f32 %v3076_v25, %v1511_v3  ;;  %1910 = vmatpush.msrb.mxu2 %v4718_v13  ;;  %2051 = vmatpush.msrb.mxu1 %v4718_v13 }
 0x5cb   :  { %2186 = vmatpush.msrb.mxu0 %v4718_v13 }
 0x5cc   :  { %v4667_v19 = vadd.f32 %v1513_v0, %v1512_v50  ;;  %1911 = vmatpush.msrb.mxu2 %v4723_v14  ;;  %2052 = vmatpush.msrb.mxu1 %v4723_v14 }
 0x5cd   :  { %2187 = vmatpush.msrb.mxu0 %v4723_v14 }
 0x5ce   :  { %1515 = vadd.xlane.f32.xlu2 %v4667_v19  ;;  %v1518_v15 = vmul.f32 %v4667_v19, %v4667_v19  ;;  %1912 = vmatpush.msrb.mxu2 %v4728_v56 }
 0x5cf   :  { %2053 = vmatpush.msrb.mxu1 %v4728_v56  ;;  %2188 = vmatpush.msrb.mxu0 %v4728_v56 }
 0x5d0   :  { %1519 = vadd.xlane.f32.xlu0 %v1518_v15  ;;  %1913 = vmatpush.msrb.mxu2 %v4733_v39 }
 0x5d1   :  { %2054 = vmatpush.msrb.mxu1 %v4733_v39  ;;  %2189 = vmatpush.msrb.mxu0 %v4733_v39 }
 0x5d2   :  { %1914 = vmatpush.msrb.mxu2 %v4738_v54 }
 0x5d3   :  { %2055 = vmatpush.msrb.mxu1 %v4738_v54  ;;  %2190 = vmatpush.msrb.mxu0 %v4738_v54 }
 0x5d4   :  { %2092 = vmatpush.msra.mxu2 %v4455_v17 }
 0x5d5   :  { %2227 = vmatpush.msra.mxu1 %v4455_v17 }
 0x5d6   :  { %2093 = vmatpush.msra.mxu2 %v4458_v21 }
 0x5d7   :  { %2228 = vmatpush.msra.mxu1 %v4458_v21 }
 0x5d8   :  { %2094 = vmatpush.msra.mxu2 %v4461_v53 }
 0x5d9   :  { %2229 = vmatpush.msra.mxu1 %v4461_v53 }
 0x5da   :  { %2095 = vmatpush.msra.mxu2 %v4464_v20 }
 0x5db   :  { %2230 = vmatpush.msra.mxu1 %v4464_v20 }
 0x5dc   :  { %2096 = vmatpush.msra.mxu2 %v4469_v11 }
 0x5dd   :  { %2231 = vmatpush.msra.mxu1 %v4469_v11 }
 0x5de   :  { %2097 = vmatpush.msra.mxu2 %v4474_v6 }
 0x5df   :  { %2232 = vmatpush.msra.mxu1 %v4474_v6 }
 0x5e0   :  { %2098 = vmatpush.msra.mxu2 %v4477_v46 }
 0x5e1   :  { %2233 = vmatpush.msra.mxu1 %v4477_v46 }
 0x5e2   :  { %2099 = vmatpush.msra.mxu2 %v4482_v1 }
 0x5e3   :  { %2234 = vmatpush.msra.mxu1 %v4482_v1  ;;  %v4804_v1 = vld [vmem:[%s5359_s9] ss:$0 sm:$0xff] }
 0x5e4   :  { %2100 = vmatpush.msra.mxu2 %v4488_v36 }
 0x5e5   :  { %2235 = vmatpush.msra.mxu1 %v4488_v36 }
 0x5e6   :  { %2101 = vmatpush.msra.mxu2 %v4492_v61 }
 0x5e7   :  { %2236 = vmatpush.msra.mxu1 %v4492_v61  ;;  %v1830_v61 = vpop.f32.mrf.mxu1 }
 0x5e8   :  { %2102 = vmatpush.msra.mxu2 %v4495_v9 }
 0x5e9   :  { %2237 = vmatpush.msra.mxu1 %v4495_v9 }
 0x5ea   :  { %2103 = vmatpush.msra.mxu2 %v4498_v51 }
 0x5eb   :  { %2238 = vmatpush.msra.mxu1 %v4498_v51 }
 0x5ec   :  { %2104 = vmatpush.msra.mxu2 %v4502_v57 }
 0x5ed   :  { %2239 = vmatpush.msra.mxu1 %v4502_v57  ;;  %v4812_v57 = vld [vmem:[%s5359_s9 + $0x1] ss:$0 sm:$0xff] }
 0x5ee   :  { %2105 = vmatpush.msra.mxu2 %v4505_v7  ;;  %5490 = vst [vmem:[#allocation33_spill] sm:$0xff] %v4812_v57 }
 0x5ef   :  { %2240 = vmatpush.msra.mxu1 %v4505_v7  ;;  %v1657_v7 = vpop.f32.mrf.mxu3 }
 0x5f0   :  { %2106 = vmatpush.msra.mxu2 %v4508_v28 }
 0x5f1   :  { %2241 = vmatpush.msra.mxu1 %v4508_v28 }
 0x5f2   :  { %2107 = vmatpush.msra.mxu2 %v4512_v40 }
 0x5f3   :  { %2242 = vmatpush.msra.mxu1 %v4512_v40  ;;  %v1850_v40 = vpop.f32.mrf.mxu1 }
 0x641   :  { %v1516_v18 = vpop.xlane.xlu2 %1515 }
 0x642   :  { %v1517_v45 = vmul.f32 0.015625, %v1516_v18 }
 0x643   :  { %v1520_v37 = vpop.xlane.xlu0 %1519 }
 0x644   :  { %v1522_v4 = vmul.f32 %v1517_v45, %v1517_v45  ;;  %v1521_v2 = vmul.f32 0.015625, %v1520_v37  ;;  %v1524_v53 = vsub.f32 %v4667_v19, %v1517_v45  ;;  %v1658_v19 = vadd.f32 %v4812_v57, %v1657_v7 }
 0x646   :  { %v1523_v29 = vsub.f32 %v1521_v2, %v1522_v4  ;;  %v1875_v15 = vadd.f32 %v1850_v40, %v1658_v19 }
 0x648   :  { %v1525_v27 = vadd.f32 1e-05, %v1523_v29  ;;  %v2943_v18 = vmul.f32 -1.442695, %v1875_v15 }
 0x64a   :  { %3077 = vrsqrt.f32 %v1525_v27  ;;  %vm1532_vm6 = vweird.f32 %v1525_v27 }
 0x650   :  { %v3078_v3 = vpop.eup %3077 }
 0x651   :  { %v1527_v25 = vmul.f32 %v3078_v3, %v1525_v27  ;;  %vm1533_vm5 = vweird.f32 %v3078_v3 }
 0x652   :  { %vm1534_vm7 = vmor %vm1532_vm6, %vm1533_vm5 }
 0x653   :  { %v1528_v50 = vmul.f32 %v3078_v3, %v1527_v25 }
 0x655   :  { %v1529_v0 = vmul.f32 0.5, %v1528_v50 }
 0x657   :  { %v1530_v17 = vsub.f32 1.5, %v1529_v0 }
 0x659   :  { %v1531_v21 = vmul.f32 %v3078_v3, %v1530_v17 }
 0x65b   :  { %v1535_v20 = vsel %vm1534_vm7, %v3078_v3, %v1531_v21 }
 0x65c   :  { %v1536_v11 = vmul.f32 %v1535_v20, %v1524_v53 }
 0x65e   :  { %v1537_v6 = vmul.f32 %v4424_v24, %v1536_v11  ;;  %v1586_v24 = vpop.f32.mrf.mxu2 }
 0x65f   :  { %v1587_v9 = vadd.f32 %v4804_v1, %v1586_v24 }
 0x660   :  { %v1538_v46 = vadd.f32 %v4429_v35, %v1537_v6 }
 0x661   :  { %v1854_v51 = vadd.f32 %v1830_v61, %v1587_v9  ;;  %v4828_v61 = vld [vmem:[%s5360_s10] ss:$0 sm:$0xff] }
 0x662   :  { %1606 = vmatmul.f32.gmra.mxu2 %v1538_v46  ;;  %1677 = vmatmul.f32.gmra.mxu3 %v1538_v46 }
 0x663   :  { %1748 = vmatmul.f32.gmra.mxu0 %v1538_v46  ;;  %v2942_v28 = vmul.f32 -1.442695, %v1854_v51  ;;  %v4833_v51 = vld [vmem:[%s5359_s9 + $0x2] ss:$0 sm:$0xff] }
 0x665   :  { %3079 = vpow2.f32 %v2942_v28  ;;  %v1728_v28 = vpop.f32.mrf.mxu0 }
 0x666   :  { %v4799_v35 = vpop.f32.mrf.mxu2  ;;  %3081 = vpow2.f32 %v2943_v18 }
 0x66a   :  { %1915 = vmatmul.f32.vlgmr.msrb.gmra.mxu2 %v5483_v48 }
 0x66b   :  { %2247 = vmatpush.msrb.mxu2 %v4536_v23  ;;  %v3080_v45 = vpop.eup %3079 }
 0x66c   :  { %v1858_v4 = vadd.f32 1.0, %v3080_v45  ;;  %v3082_v2 = vpop.eup %3081 }
 0x66d   :  { %2248 = vmatpush.msrb.mxu2 %v4544_v43  ;;  %v1879_v27 = vadd.f32 1.0, %v3082_v2 }
 0x66e   :  { %v4806_v36 = vpop.f32.mrf.mxu2  ;;  %3083 = vrcp.f32 %v1858_v4  ;;  %v1870_v46 = vand.u32 2147483648, %v1858_v4  ;;  %vm1864_vm9 = vweird.f32 %v1858_v4  ;;  %v1868_v24 = vand.u32 2147483647, %v1858_v4 }
 0x66f   :  { %2249 = vmatpush.msrb.mxu2 %v4547_v8  ;;  %3085 = vrcp.f32 %v1879_v27  ;;  %v1891_v2 = vand.u32 2147483648, %v1879_v27  ;;  %vm1885_vm13 = vweird.f32 %v1879_v27 }
 0x670   :  { %v1871_v40 = vor.u32 1.1754944e-38, %v1870_v46  ;;  %vm1869_vm11 = vcmp.eq.f32.partialorder %v1868_v24, 8.507059e+37 }
 0x671   :  { %2250 = vmatpush.msrb.mxu2 %v4552_v52 }
 0x673   :  { %2251 = vmatpush.msrb.mxu2 %v4557_v33 }
 0x674   :  { %v3084_v3 = vpop.eup %3083 }
 0x675   :  { %2252 = vmatpush.msrb.mxu2 %v4565_v26  ;;  %v1860_v25 = vmul.f32 %v3084_v3, %v1858_v4  ;;  %v3086_v0 = vpop.eup %3085  ;;  %vm1865_vm8 = vweird.f32 %v3084_v3  ;;  %v1729_v4 = vadd.f32 %v4833_v51, %v1728_v28  ;;  %v4856_v28 = vld [vmem:[#allocation16 + $0x68] sm:$0xff] }
 0x676   :  { %v4814_v48 = vpop.f32.mrf.mxu2  ;;  %v1881_v21 = vmul.f32 %v3086_v0, %v1879_v27  ;;  %vm1866_vm10 = vmor %vm1864_vm9, %vm1865_vm8  ;;  %vm1886_vm12 = vweird.f32 %v3086_v0 }
 0x677   :  { %2253 = vmatpush.msrb.mxu2 %v4569_v31  ;;  %5491 = vst [vmem:[#allocation43_spill] sm:$0xff] %v4814_v48  ;;  %v1861_v17 = vsub.f32 1.0, %v1860_v25  ;;  %vm1887_vm14 = vmor %vm1885_vm13, %vm1886_vm12 }
 0x678   :  { %v1882_v11 = vsub.f32 1.0, %v1881_v21 }
 0x679   :  { %2254 = vmatpush.msrb.mxu2 %v4574_v38  ;;  %v1862_v53 = vmul.f32 %v3084_v3, %v1861_v17  ;;  %v1889_v17 = vand.u32 2147483647, %v1879_v27 }
 0x67a   :  { %v1883_v9 = vmul.f32 %v3086_v0, %v1882_v11  ;;  %v1892_v11 = vor.u32 1.1754944e-38, %v1891_v2 }
 0x67b   :  { %2255 = vmatpush.msrb.mxu2 %v4579_v62  ;;  %v1863_v6 = vadd.f32 %v3084_v3, %v1862_v53  ;;  %vm1890_vm15 = vcmp.eq.f32.partialorder %v1889_v17, 8.507059e+37 }
 0x67c   :  { %v1884_v18 = vadd.f32 %v3086_v0, %v1883_v9 }
 0x67d   :  { %2256 = vmatpush.msrb.mxu2 %v4585_v32  ;;  %v1867_v7 = vsel %vm1866_vm10, %v3084_v3, %v1863_v6 }
 0x67e   :  { %v4817_v37 = vpop.f32.mrf.mxu2  ;;  %v1872_v45 = vsel %vm1869_vm11, %v1871_v40, %v1867_v7  ;;  %v1888_v53 = vsel %vm1887_vm14, %v3086_v0, %v1884_v18  ;;  %v4846_v0 = vld [vmem:[#allocation16 + $0x78] sm:$0xff]  ;;  %v4851_v7 = vld [vmem:[#allocation16 + $0x70] sm:$0xff]  ;;  %v4861_v40 = vld [vmem:[#allocation16 + $0x60] sm:$0xff] }
 0x67f   :  { %2257 = vmatpush.msrb.mxu2 %v4590_v58  ;;  %5492 = vst [vmem:[#allocation41_spill] sm:$0xff] %v4817_v37  ;;  %v1893_v3 = vsel %vm1890_vm15, %v1892_v11, %v1888_v53 }
 0x680   :  { %v1922_v6 = vsub.f32 1.0, %v1893_v3 }
 0x681   :  { %2258 = vmatpush.msrb.mxu2 %v4595_v12 }
 0x683   :  { %2259 = vmatpush.msrb.mxu2 %v4600_v42 }
 0x685   :  { %2260 = vmatpush.msrb.mxu2 %v4606_v16 }
 0x686   :  { %v4819_v29 = vpop.f32.mrf.mxu2 }
 0x687   :  { %2261 = vmatpush.msrb.mxu2 %v4611_v44  ;;  %5493 = vst [vmem:[#allocation44_spill] sm:$0xff] %v4819_v29 }
 0x689   :  { %2262 = vmatpush.msrb.mxu2 %v4616_v49 }
 0x68e   :  { %v4821_v50 = vpop.f32.mrf.mxu2 }
 0x68f   :  { %5494 = vst [vmem:[#allocation45_spill] sm:$0xff] %v4821_v50 }
 0x6e5   :  { %v4823_v20 = vpop.f32.mrf.mxu2 }
 0x6e6   :  { %5495 = vst [vmem:[#allocation42_spill] sm:$0xff] %v4823_v20 }
 0x6ed   :  { %v1916_v19 = vpop.f32.mrf.mxu2 }
 0x6ee   :  { %v1917_v15 = vadd.f32 %v4828_v61, %v1916_v19  ;;  %v1924_v19 = vmul.f32 0.0, %v1893_v3 }
 0x6f0   :  { %v1919_v25 = vmul.f32 %v1917_v15, %v1872_v45  ;;  %v1660_v15 = vpop.f32.mrf.mxu3 }
 0x6f1   :  { %v1661_v50 = vadd.f32 %v4812_v57, %v1660_v15 }
 0x6f2   :  { %v1920_v21 = vadd.f32 %v1919_v25, %v1729_v4 }
 0x6f4   :  { %3087 = vtanh.f32 %v1920_v21 }
 0x6f8   :  { %v4929_v18 = vpop.f32.mrf.mxu3 }
 0x6fa   :  { %v3088_v46 = vpop.eup %3087 }
 0x6fb   :  { %v1923_v24 = vmul.f32 %v3088_v46, %v1922_v6 }
 0x6fd   :  { %v4837_v9 = vadd.f32 %v1924_v19, %v1923_v24 }
 0x6ff   :  { %1926 = vadd.xlane.f32.xlu1 %v4837_v9  ;;  %1973 = vmatmul.f32.vlgmr.msra.gmra.mxu3 %v4837_v9  ;;  %v1929_v27 = vmul.f32 %v4837_v9, %v4837_v9 }
 0x700   :  { %1993 = vmatmul.f32.vlgmr.msra.gmra.mxu0 %v4837_v9  ;;  %2056 = vmatmul.f32.vlgmr.msrb.gmra.mxu1 %v4837_v9  ;;  %v4933_v4 = vpop.f32.mrf.mxu3 }
 0x701   :  { %1930 = vadd.xlane.f32.xlu0 %v1929_v27  ;;  %2310 = vmatpush.msra.mxu3 %v4658_v34  ;;  %5501 = vst [vmem:[#allocation37_spill] sm:$0xff] %v4933_v4 }
 0x702   :  { %2362 = vmatpush.msra.mxu0 %v4846_v0  ;;  %2382 = vmatpush.msrb.mxu1 %v4536_v23  ;;  %v4866_v23 = vld [vmem:[#allocation16 + $0x58] sm:$0xff] }
 0x703   :  { %2311 = vmatpush.msra.mxu3 %v4672_v59 }
 0x704   :  { %2363 = vmatpush.msra.mxu0 %v4851_v7  ;;  %2383 = vmatpush.msrb.mxu1 %v4544_v43  ;;  %v4871_v43 = vld [vmem:[#allocation16 + $0x50] sm:$0xff] }
 0x705   :  { %2312 = vmatpush.msra.mxu3 %v4674_v60 }
 0x706   :  { %2364 = vmatpush.msra.mxu0 %v4856_v28  ;;  %2384 = vmatpush.msrb.mxu1 %v4547_v8  ;;  %v4876_v8 = vld [vmem:[#allocation16 + $0x48] sm:$0xff] }
 0x707   :  { %2313 = vmatpush.msra.mxu3 %v4682_v47 }
 0x708   :  { %2365 = vmatpush.msra.mxu0 %v4861_v40  ;;  %2385 = vmatpush.msrb.mxu1 %v4552_v52  ;;  %v4881_v52 = vld [vmem:[#allocation16 + $0x40] sm:$0xff]  ;;  %v4937_v2 = vpop.f32.mrf.mxu3 }
 0x709   :  { %2314 = vmatpush.msra.mxu3 %v4687_v41  ;;  %5503 = vst [vmem:[#allocation27_spill] sm:$0xff] %v4937_v2 }
 0x70a   :  { %2366 = vmatpush.msra.mxu0 %v4866_v23  ;;  %2386 = vmatpush.msrb.mxu1 %v4557_v33  ;;  %v4886_v33 = vld [vmem:[#allocation16 + $0x38] sm:$0xff] }
 0x70b   :  { %2315 = vmatpush.msra.mxu3 %v4692_v22 }
 0x70c   :  { %2367 = vmatpush.msra.mxu0 %v4871_v43  ;;  %2387 = vmatpush.msrb.mxu1 %v4565_v26  ;;  %v4891_v26 = vld [vmem:[#allocation16 + $0x30] sm:$0xff] }
 0x70d   :  { %2316 = vmatpush.msra.mxu3 %v4696_v30 }
 0x70e   :  { %2368 = vmatpush.msra.mxu0 %v4876_v8  ;;  %2388 = vmatpush.msrb.mxu1 %v4569_v31  ;;  %v4896_v31 = vld [vmem:[#allocation16 + $0x28] sm:$0xff] }
 0x70f   :  { %2317 = vmatpush.msra.mxu3 %v4701_v5 }
 0x710   :  { %2369 = vmatpush.msra.mxu0 %v4881_v52  ;;  %2389 = vmatpush.msrb.mxu1 %v4574_v38  ;;  %v4901_v38 = vld [vmem:[#allocation16 + $0x20] sm:$0xff]  ;;  %v4941_v17 = vpop.f32.mrf.mxu3 }
 0x711   :  { %2318 = vmatpush.msra.mxu3 %v4706_v10  ;;  %5505 = vst [vmem:[#allocation30_spill] sm:$0xff] %v4941_v17 }
 0x712   :  { %2370 = vmatpush.msra.mxu0 %v4886_v33  ;;  %2390 = vmatpush.msrb.mxu1 %v4579_v62  ;;  %v4906_v62 = vld [vmem:[#allocation16 + $0x18] sm:$0xff] }
 0x713   :  { %2319 = vmatpush.msra.mxu3 %v4711_v55  ;;  %5496 = vst [vmem:[#allocation46_spill] sm:$0xff] %v4906_v62 }
 0x714   :  { %2371 = vmatpush.msra.mxu0 %v4891_v26  ;;  %2391 = vmatpush.msrb.mxu1 %v4585_v32  ;;  %v4911_v32 = vld [vmem:[#allocation16 + $0x10] sm:$0xff] }
 0x715   :  { %2320 = vmatpush.msra.mxu3 %v4716_v63  ;;  %5497 = vst [vmem:[#allocation26_spill] sm:$0xff] %v4911_v32 }
 0x716   :  { %2372 = vmatpush.msra.mxu0 %v4896_v31  ;;  %2392 = vmatpush.msrb.mxu1 %v4590_v58  ;;  %v4916_v58 = vld [vmem:[#allocation16 + $0x8] sm:$0xff] }
 0x717   :  { %2321 = vmatpush.msra.mxu3 %v4718_v13  ;;  %5498 = vst [vmem:[#allocation35_spill] sm:$0xff] %v4916_v58 }
 0x718   :  { %2373 = vmatpush.msra.mxu0 %v4901_v38  ;;  %2393 = vmatpush.msrb.mxu1 %v4595_v12  ;;  %v4921_v12 = vld [vmem:[#allocation16] sm:$0xff]  ;;  %v4945_v21 = vpop.f32.mrf.mxu3 }
 0x719   :  { %2322 = vmatpush.msra.mxu3 %v4723_v14  ;;  %5499 = vst [vmem:[#allocation36_spill] sm:$0xff] %v4921_v12 }
 0x71a   :  { %2374 = vmatpush.msra.mxu0 %v4906_v62  ;;  %2394 = vmatpush.msrb.mxu1 %v4600_v42  ;;  %v4925_v42 = vpop.f32.mrf.mxu0  ;;  %5507 = vst [vmem:[#allocation25_spill] sm:$0xff] %v4945_v21  ;;  %v1590_v21 = vadd.f32 %v4804_v1, %v4799_v35  ;;  %v4958_v35 = vld [vmem:[%s5361_s11] ss:$0 sm:$0xff] }
 0x71b   :  { %2323 = vmatpush.msra.mxu3 %v4728_v56 }
 0x71c   :  { %2375 = vmatpush.msra.mxu0 %v4911_v32  ;;  %2395 = vmatpush.msrb.mxu1 %v4606_v16 }
 0x71d   :  { %2324 = vmatpush.msra.mxu3 %v4733_v39 }
 0x71e   :  { %2376 = vmatpush.msra.mxu0 %v4916_v58  ;;  %2396 = vmatpush.msrb.mxu1 %v4611_v44 }
 0x71f   :  { %2325 = vmatpush.msra.mxu3 %v4738_v54 }
 0x720   :  { %2377 = vmatpush.msra.mxu0 %v4921_v12  ;;  %2397 = vmatpush.msrb.mxu1 %v4616_v49  ;;  %v4949_v20 = vpop.f32.mrf.mxu3 }
 0x721   :  { %5509 = vst [vmem:[#allocation39_spill] sm:$0xff] %v4949_v20 }
 0x722   :  { %v4927_v16 = vpop.f32.mrf.mxu0 }
 0x72a   :  { %v4931_v45 = vpop.f32.mrf.mxu0 }
 0x72b   :  { %5500 = vst [vmem:[#allocation28_spill] sm:$0xff] %v4931_v45 }
 0x732   :  { %v4935_v44 = vpop.f32.mrf.mxu0 }
 0x733   :  { %5502 = vst [vmem:[#allocation24_spill] sm:$0xff] %v4935_v44 }
 0x73a   :  { %v4939_v25 = vpop.f32.mrf.mxu0 }
 0x73b   :  { %5504 = vst [vmem:[#allocation31_spill] sm:$0xff] %v4939_v25 }
 0x742   :  { %v4943_v49 = vpop.f32.mrf.mxu0 }
 0x743   :  { %5506 = vst [vmem:[#allocation38_spill] sm:$0xff] %v4943_v49 }
 0x74a   :  { %v4947_v6 = vpop.f32.mrf.mxu0 }
 0x74b   :  { %5508 = vst [vmem:[#allocation29_spill] sm:$0xff] %v4947_v6 }
 0x772   :  { %v1927_v53 = vpop.xlane.xlu1 %1926 }
 0x773   :  { %v1928_v11 = vmul.f32 0.015625, %v1927_v53 }
 0x774   :  { %v1931_v3 = vpop.xlane.xlu0 %1930 }
 0x775   :  { %v1933_v46 = vmul.f32 %v1928_v11, %v1928_v11  ;;  %v1932_v24 = vmul.f32 0.015625, %v1931_v3 }
 0x777   :  { %v1934_v19 = vsub.f32 %v1932_v24, %v1933_v46 }
 0x779   :  { %v1936_v27 = vadd.f32 1e-05, %v1934_v19 }
 0x77b   :  { %3089 = vrsqrt.f32 %v1936_v27  ;;  %vm1943_vm1 = vweird.f32 %v1936_v27 }
 0x77d   :  { %v1994_v25 = vpop.f32.mrf.mxu0  ;;  %v2057_v45 = vpop.f32.mrf.mxu1 }
 0x77e   :  { %v2019_v29 = vadd.f32 %v1994_v25, %v1661_v50 }
 0x780   :  { %v2945_v17 = vmul.f32 -1.442695, %v2019_v29  ;;  %v1935_v29 = vsub.f32 %v4837_v9, %v1928_v11 }
 0x781   :  { %v3090_v49 = vpop.eup %3089 }
 0x782   :  { %v1938_v53 = vmul.f32 %v3090_v49, %v1936_v27  ;;  %3091 = vpow2.f32 %v2945_v17  ;;  %v1974_v44 = vpop.f32.mrf.mxu3  ;;  %vm1944_vm0 = vweird.f32 %v3090_v49 }
 0x783   :  { %v1998_v6 = vadd.f32 %v1974_v44, %v1590_v21  ;;  %vm1945_vm2 = vmor %vm1943_vm1, %vm1944_vm0 }
 0x784   :  { %v1939_v2 = vmul.f32 %v3090_v49, %v1938_v53 }
 0x785   :  { %v2944_v3 = vmul.f32 -1.442695, %v1998_v6 }
 0x786   :  { %v1940_v46 = vmul.f32 0.5, %v1939_v2  ;;  %v4963_v2 = vld [vmem:[%s5362_s12] ss:$0 sm:$0xff] }
 0x787   :  { %3093 = vpow2.f32 %v2944_v3 }
 0x788   :  { %v3092_v24 = vpop.eup %3091  ;;  %v1941_v19 = vsub.f32 1.5, %v1940_v46 }
 0x789   :  { %v2023_v20 = vadd.f32 1.0, %v3092_v24 }
 0x78a   :  { %v1942_v15 = vmul.f32 %v3090_v49, %v1941_v19 }
 0x78b   :  { %3095 = vrcp.f32 %v2023_v20  ;;  %vm2029_vm8 = vweird.f32 %v2023_v20  ;;  %v2033_v4 = vand.u32 2147483647, %v2023_v20 }
 0x78c   :  { %v1946_v50 = vsel %vm1945_vm2, %v3090_v49, %v1942_v15 }
 0x78d   :  { %v3094_v44 = vpop.eup %3093  ;;  %v1947_v25 = vmul.f32 %v1946_v50, %v1935_v29  ;;  %vm2034_vm10 = vcmp.eq.f32.partialorder %v2033_v4, 8.507059e+37  ;;  %v4991_v4 = vld [vmem:[#allocation16 + $0xe8] sm:$0xff] }
 0x78e   :  { %v2002_v17 = vadd.f32 1.0, %v3094_v44  ;;  %v2058_v44 = vadd.f32 %v4828_v61, %v2057_v45 }
 0x78f   :  { %v1951_v21 = vmul.f32 %v4958_v35, %v1947_v25 }
 0x790   :  { %3097 = vrcp.f32 %v2002_v17  ;;  %v2014_v24 = vand.u32 2147483648, %v2002_v17  ;;  %v2012_v15 = vand.u32 2147483647, %v2002_v17  ;;  %vm2008_vm4 = vweird.f32 %v2002_v17 }
 0x791   :  { %v3096_v11 = vpop.eup %3095  ;;  %v1955_v6 = vadd.f32 %v4963_v2, %v1951_v21 }
 0x792   :  { %v2025_v27 = vmul.f32 %v3096_v11, %v2023_v20  ;;  %v2015_v50 = vor.u32 1.1754944e-38, %v2014_v24  ;;  %vm2013_vm6 = vcmp.eq.f32.partialorder %v2012_v15, 8.507059e+37  ;;  %vm2030_vm7 = vweird.f32 %v3096_v11 }
 0x793   :  { %1956 = vst [vmem:[#allocation17] sm:$0xff] %v1955_v6  ;;  %vm2031_vm9 = vmor %vm2029_vm8, %vm2030_vm7 }
 0x794   :  { %v2026_v46 = vsub.f32 1.0, %v2025_v27  ;;  %v1732_v27 = vadd.f32 %v4833_v51, %v4925_v42  ;;  %v4986_v42 = vld [vmem:[#allocation16 + $0xf0] sm:$0xff] }
 0x796   :  { %v3098_v53 = vpop.eup %3097  ;;  %v2027_v37 = vmul.f32 %v3096_v11, %v2026_v46 }
 0x797   :  { %v2004_v3 = vmul.f32 %v3098_v53, %v2002_v17  ;;  %vm2009_vm3 = vweird.f32 %v3098_v53 }
 0x798   :  { %vm2010_vm5 = vmor %vm2008_vm4, %vm2009_vm3  ;;  %v2028_v21 = vadd.f32 %v3096_v11, %v2027_v37 }
 0x799   :  { %v2005_v49 = vsub.f32 1.0, %v2004_v3  ;;  %v2035_v3 = vand.u32 2147483648, %v2023_v20 }
 0x79b   :  { %v2006_v19 = vmul.f32 %v3098_v53, %v2005_v49  ;;  %v2036_v17 = vor.u32 1.1754944e-38, %v2035_v3  ;;  %v5036_v3 = vld [vmem:[#allocation16 + $0xa0] sm:$0xff] }
 0x79d   :  { %v2007_v29 = vadd.f32 %v3098_v53, %v2006_v19  ;;  %v2032_v19 = vsel %vm2031_vm9, %v3096_v11, %v2028_v21  ;;  %v5001_v11 = vld [vmem:[#allocation16 + $0xd8] sm:$0xff] }
 0x79e   :  { %v2037_v24 = vsel %vm2034_vm10, %v2036_v17, %v2032_v19  ;;  %v5021_v21 = vld [vmem:[#allocation16 + $0xb8] sm:$0xff]  ;;  %v5051_v19 = vld [vmem:[#allocation16 + $0x88] sm:$0xff]  ;;  %v5056_v17 = vld [vmem:[#allocation16 + $0x80] sm:$0xff] }
 0x79f   :  { %v2011_v25 = vsel %vm2010_vm5, %v3098_v53, %v2007_v29  ;;  %v2063_v45 = vsub.f32 1.0, %v2037_v24  ;;  %v2065_v37 = vmul.f32 %v2037_v24, %v4837_v9  ;;  %v4981_v9 = vld [vmem:[#allocation16 + $0xf8] sm:$0xff]  ;;  %5512 = vst [vmem:[#allocation48_spill] sm:$0xff] %v5051_v19 }
 0x7a0   :  { %v2016_v6 = vsel %vm2013_vm6, %v2015_v50, %v2011_v25  ;;  %v5006_v50 = vld [vmem:[#allocation16 + $0xd0] sm:$0xff]  ;;  %v5016_v25 = vld [vmem:[#allocation16 + $0xc0] sm:$0xff]  ;;  %5513 = vst [vmem:[#allocation49_spill] sm:$0xff] %v5056_v17 }
 0x7a1   :  { %v2060_v49 = vmul.f32 %v2058_v44, %v2016_v6  ;;  %v5011_v44 = vld [vmem:[#allocation16 + $0xc8] sm:$0xff]  ;;  %v5026_v6 = vld [vmem:[#allocation16 + $0xb0] sm:$0xff] }
 0x7a3   :  { %v2061_v46 = vadd.f32 %v2060_v49, %v1732_v27  ;;  %v5031_v27 = vld [vmem:[#allocation16 + $0xa8] sm:$0xff]  ;;  %v5041_v49 = vld [vmem:[#allocation16 + $0x98] sm:$0xff] }
 0x7a4   :  { %5510 = vst [vmem:[#allocation40_spill] sm:$0xff] %v5041_v49 }
 0x7a5   :  { %3099 = vtanh.f32 %v2061_v46  ;;  %v5046_v46 = vld [vmem:[#allocation16 + $0x90] sm:$0xff] }
 0x7a6   :  { %5511 = vst [vmem:[#allocation47_spill] sm:$0xff] %v5046_v46 }
 0x7ab   :  { %v3100_v53 = vpop.eup %3099 }
 0x7ac   :  { %v2064_v15 = vmul.f32 %v3100_v53, %v2063_v45 }
 0x7ae   :  { %v4971_v29 = vadd.f32 %v2065_v37, %v2064_v15 }
 0x7b0   :  { %2067 = vadd.xlane.f32.xlu2 %v4971_v29  ;;  %2108 = vmatmul.f32.vlgmr.msra.gmra.mxu2 %v4971_v29  ;;  %v2070_v20 = vmul.f32 %v4971_v29, %v4971_v29 }
 0x7b1   :  { %2128 = vmatmul.f32.vlgmr.msrb.gmra.mxu3 %v4971_v29  ;;  %2191 = vmatmul.f32.vlgmr.msrb.gmra.mxu0 %v4971_v29 }
 0x7b2   :  { %2071 = vadd.xlane.f32.xlu1 %v2070_v20  ;;  %2445 = vmatpush.msra.mxu2 %v4658_v34  ;;  %v4996_v34 = vld [vmem:[#allocation16 + $0xe0] sm:$0xff] }
 0x7b3   :  { %2497 = vmatpush.msrb.mxu3 %v4846_v0  ;;  %2517 = vmatpush.msrb.mxu0 %v4981_v9 }
 0x7b4   :  { %2446 = vmatpush.msra.mxu2 %v4672_v59 }
 0x7b5   :  { %2498 = vmatpush.msrb.mxu3 %v4851_v7  ;;  %2518 = vmatpush.msrb.mxu0 %v4986_v42 }
 0x7b6   :  { %2447 = vmatpush.msra.mxu2 %v4674_v60 }
 0x7b7   :  { %2499 = vmatpush.msrb.mxu3 %v4856_v28  ;;  %2519 = vmatpush.msrb.mxu0 %v4991_v4 }
 0x7b8   :  { %2448 = vmatpush.msra.mxu2 %v4682_v47 }
 0x7b9   :  { %2500 = vmatpush.msrb.mxu3 %v4861_v40  ;;  %2520 = vmatpush.msrb.mxu0 %v4996_v34 }
 0x7ba   :  { %2449 = vmatpush.msra.mxu2 %v4687_v41 }
 0x7bb   :  { %2501 = vmatpush.msrb.mxu3 %v4866_v23  ;;  %2521 = vmatpush.msrb.mxu0 %v5001_v11 }
 0x7bc   :  { %2450 = vmatpush.msra.mxu2 %v4692_v22 }
 0x7bd   :  { %2502 = vmatpush.msrb.mxu3 %v4871_v43  ;;  %2522 = vmatpush.msrb.mxu0 %v5006_v50 }
 0x7be   :  { %2451 = vmatpush.msra.mxu2 %v4696_v30 }
 0x7bf   :  { %2503 = vmatpush.msrb.mxu3 %v4876_v8  ;;  %2523 = vmatpush.msrb.mxu0 %v5011_v44 }
 0x7c0   :  { %2452 = vmatpush.msra.mxu2 %v4701_v5 }
 0x7c1   :  { %2504 = vmatpush.msrb.mxu3 %v4881_v52  ;;  %2524 = vmatpush.msrb.mxu0 %v5016_v25 }
 0x7c2   :  { %2453 = vmatpush.msra.mxu2 %v4706_v10 }
 0x7c3   :  { %2505 = vmatpush.msrb.mxu3 %v4886_v33  ;;  %2525 = vmatpush.msrb.mxu0 %v5021_v21 }
 0x7c4   :  { %2454 = vmatpush.msra.mxu2 %v4711_v55 }
 0x7c5   :  { %2506 = vmatpush.msrb.mxu3 %v4891_v26  ;;  %2526 = vmatpush.msrb.mxu0 %v5026_v6 }
 0x7c6   :  { %2455 = vmatpush.msra.mxu2 %v4716_v63 }
 0x7c7   :  { %2507 = vmatpush.msrb.mxu3 %v4896_v31  ;;  %2527 = vmatpush.msrb.mxu0 %v5031_v27 }
 0x7c8   :  { %2456 = vmatpush.msra.mxu2 %v4718_v13 }
 0x7c9   :  { %2508 = vmatpush.msrb.mxu3 %v4901_v38  ;;  %2528 = vmatpush.msrb.mxu0 %v5036_v3 }
 0x7ca   :  { %2457 = vmatpush.msra.mxu2 %v4723_v14 }
 0x7cb   :  { %2509 = vmatpush.msrb.mxu3 %v4906_v62  ;;  %2529 = vmatpush.msrb.mxu0 %v5041_v49 }
 0x7cc   :  { %2458 = vmatpush.msra.mxu2 %v4728_v56 }
 0x7cd   :  { %2510 = vmatpush.msrb.mxu3 %v4911_v32  ;;  %2530 = vmatpush.msrb.mxu0 %v5046_v46 }
 0x7ce   :  { %2459 = vmatpush.msra.mxu2 %v4733_v39 }
 0x7cf   :  { %2511 = vmatpush.msrb.mxu3 %v4916_v58  ;;  %2531 = vmatpush.msrb.mxu0 %v5051_v19  ;;  %v1593_v19 = vadd.f32 %v4804_v1, %v4806_v36 }
 0x7d0   :  { %2460 = vmatpush.msra.mxu2 %v4738_v54  ;;  %v1664_v54 = vadd.f32 %v4812_v57, %v4929_v18 }
 0x7d1   :  { %2512 = vmatpush.msrb.mxu3 %v4921_v12  ;;  %2532 = vmatpush.msrb.mxu0 %v5056_v17 }
 0x823   :  { %v2068_v24 = vpop.xlane.xlu2 %2067 }
 0x824   :  { %v2069_v45 = vmul.f32 0.015625, %v2068_v24 }
 0x825   :  { %v2072_v53 = vpop.xlane.xlu1 %2071 }
 0x826   :  { %v2074_v37 = vmul.f32 %v2069_v45, %v2069_v45  ;;  %v2073_v15 = vmul.f32 0.015625, %v2072_v53  ;;  %v2076_v36 = vsub.f32 %v4971_v29, %v2069_v45 }
 0x828   :  { %v2075_v20 = vsub.f32 %v2073_v15, %v2074_v37 }
 0x82a   :  { %v2077_v48 = vadd.f32 1e-05, %v2075_v20 }
 0x82c   :  { %3101 = vrsqrt.f32 %v2077_v48  ;;  %vm2084_vm12 = vweird.f32 %v2077_v48 }
 0x832   :  { %v3102_v58 = vpop.eup %3101 }
 0x833   :  { %v2079_v12 = vmul.f32 %v3102_v58, %v2077_v48  ;;  %v2109_v39 = vpop.f32.mrf.mxu2  ;;  %vm2085_vm11 = vweird.f32 %v3102_v58 }
 0x834   :  { %v2133_v46 = vadd.f32 %v2109_v39, %v1593_v19  ;;  %v2129_v32 = vpop.f32.mrf.mxu3  ;;  %vm2086_vm13 = vmor %vm2084_vm12, %vm2085_vm11 }
 0x835   :  { %v2080_v17 = vmul.f32 %v3102_v58, %v2079_v12  ;;  %v2154_v56 = vadd.f32 %v2129_v32, %v1664_v54 }
 0x836   :  { %v2946_v24 = vmul.f32 -1.442695, %v2133_v46 }
 0x837   :  { %v2081_v49 = vmul.f32 0.5, %v2080_v17  ;;  %v2947_v62 = vmul.f32 -1.442695, %v2154_v56 }
 0x838   :  { %3103 = vpow2.f32 %v2946_v24  ;;  %v2192_v24 = vpop.f32.mrf.mxu0 }
 0x839   :  { %v2082_v53 = vsub.f32 1.5, %v2081_v49  ;;  %3105 = vpow2.f32 %v2947_v62 }
 0x83b   :  { %v2083_v37 = vmul.f32 %v3102_v58, %v2082_v53 }
 0x83d   :  { %v2087_v15 = vsel %vm2086_vm13, %v3102_v58, %v2083_v37 }
 0x83e   :  { %v3104_v18 = vpop.eup %3103  ;;  %v2088_v20 = vmul.f32 %v2087_v15, %v2076_v36  ;;  %v2193_v36 = vadd.f32 %v4828_v61, %v2192_v24 }
 0x83f   :  { %v3106_v57 = vpop.eup %3105  ;;  %v2137_v39 = vadd.f32 1.0, %v3104_v18 }
 0x840   :  { %v2089_v12 = vmul.f32 %v4958_v35, %v2088_v20  ;;  %v2158_v54 = vadd.f32 1.0, %v3106_v57 }
 0x841   :  { %3107 = vrcp.f32 %v2137_v39  ;;  %v2149_v19 = vand.u32 2147483648, %v2137_v39  ;;  %v2147_v45 = vand.u32 2147483647, %v2137_v39  ;;  %vm2143_vm15 = vweird.f32 %v2137_v39 }
 0x842   :  { %v2090_v56 = vadd.f32 %v4963_v2, %v2089_v12  ;;  %3109 = vrcp.f32 %v2158_v54  ;;  %v1735_v12 = vadd.f32 %v4833_v51, %v4927_v16  ;;  %vm2164_vm3 = vweird.f32 %v2158_v54 }
 0x843   :  { %v2150_v57 = vor.u32 1.1754944e-38, %v2149_v19  ;;  %vm2148_vm1 = vcmp.eq.f32.partialorder %v2147_v45, 8.507059e+37 }
 0x844   :  { %2091 = vst [vmem:[#allocation17 + $0x8] sm:$0xff] %v2090_v56 }
 0x847   :  { %v3108_v32 = vpop.eup %3107 }
 0x848   :  { %v3110_v62 = vpop.eup %3109  ;;  %v2139_v49 = vmul.f32 %v3108_v32, %v2137_v39  ;;  %vm2144_vm14 = vweird.f32 %v3108_v32 }
 0x849   :  { %v2160_v48 = vmul.f32 %v3110_v62, %v2158_v54  ;;  %vm2145_vm0 = vmor %vm2143_vm15, %vm2144_vm14  ;;  %vm2165_vm2 = vweird.f32 %v3110_v62 }
 0x84a   :  { %v2140_v46 = vsub.f32 1.0, %v2139_v49  ;;  %v2170_v49 = vand.u32 2147483648, %v2158_v54  ;;  %vm2166_vm4 = vmor %vm2164_vm3, %vm2165_vm2 }
 0x84b   :  { %v2161_v17 = vsub.f32 1.0, %v2160_v48  ;;  %v2168_v48 = vand.u32 2147483647, %v2158_v54  ;;  %v5078_v54 = vld [vmem:[#allocation16 + $0x178] sm:$0xff] }
 0x84c   :  { %v2141_v58 = vmul.f32 %v3108_v32, %v2140_v46  ;;  %v2171_v39 = vor.u32 1.1754944e-38, %v2170_v49 }
 0x84d   :  { %v2162_v53 = vmul.f32 %v3110_v62, %v2161_v17  ;;  %vm2169_vm5 = vcmp.eq.f32.partialorder %v2168_v48, 8.507059e+37  ;;  %v5526_v48 = vld [vmem:[#allocation37_spill] sm:$0xff] }
 0x84e   :  { %v2142_v37 = vadd.f32 %v3108_v32, %v2141_v58 }
 0x84f   :  { %v2163_v20 = vadd.f32 %v3110_v62, %v2162_v53 }
 0x850   :  { %v2146_v15 = vsel %vm2145_vm0, %v3108_v32, %v2142_v37 }
 0x851   :  { %v2151_v18 = vsel %vm2148_vm1, %v2150_v57, %v2146_v15  ;;  %v2167_v17 = vsel %vm2166_vm4, %v3110_v62, %v2163_v20 }
 0x852   :  { %v2195_v56 = vmul.f32 %v2193_v36, %v2151_v18  ;;  %v2172_v19 = vsel %vm2169_vm5, %v2171_v39, %v2167_v17  ;;  %v5525_v18 = vld [vmem:[#allocation43_spill] sm:$0xff] }
 0x853   :  { %v2198_v58 = vsub.f32 1.0, %v2172_v19  ;;  %v2200_v24 = vmul.f32 %v2172_v19, %v4971_v29  ;;  %v1596_v20 = vadd.f32 %v4804_v1, %v5525_v18 }
 0x854   :  { %v2196_v46 = vadd.f32 %v2195_v56, %v1735_v12 }
 0x856   :  { %3111 = vtanh.f32 %v2196_v46  ;;  %v5527_v46 = vld [vmem:[#allocation33_spill] sm:$0xff] }
 0x857   :  { %v1667_v17 = vadd.f32 %v5527_v46, %v5526_v48 }
 0x85c   :  { %v3112_v32 = vpop.eup %3111 }
 0x85d   :  { %v2199_v45 = vmul.f32 %v3112_v32, %v2198_v58 }
 0x85f   :  { %v5070_v53 = vadd.f32 %v2200_v24, %v2199_v45 }
 0x861   :  { %2243 = vmatmul.f32.vlgmr.msra.gmra.mxu1 %v5070_v53  ;;  %2263 = vmatmul.f32.vlgmr.msrb.gmra.mxu2 %v5070_v53  ;;  %v2205_v16 = vmul.f32 %v5070_v53, %v5070_v53 }
 0x862   :  { %2326 = vmatmul.f32.vlgmr.msra.gmra.mxu3 %v5070_v53  ;;  %2202 = vadd.xlane.f32.xlu0 %v5070_v53 }
 0x863   :  { %2206 = vadd.xlane.f32.xlu2 %v2205_v16  ;;  %2580 = vmatpush.msra.mxu1 %v5078_v54 }
 0x864   :  { %2632 = vmatpush.msrb.mxu2 %v4846_v0  ;;  %2652 = vmatpush.msra.mxu3 %v4981_v9 }
 0x865   :  { %2581 = vmatpush.msra.mxu1 %v4672_v59  ;;  %v5514_v59 = vld [vmem:[#allocation46_spill] sm:$0xff] }
 0x866   :  { %2633 = vmatpush.msrb.mxu2 %v4851_v7  ;;  %2653 = vmatpush.msra.mxu3 %v4986_v42 }
 0x867   :  { %2582 = vmatpush.msra.mxu1 %v4674_v60  ;;  %v5515_v60 = vld [vmem:[#allocation40_spill] sm:$0xff] }
 0x868   :  { %2634 = vmatpush.msrb.mxu2 %v4856_v28  ;;  %2654 = vmatpush.msra.mxu3 %v4991_v4 }
 0x869   :  { %2583 = vmatpush.msra.mxu1 %v4682_v47  ;;  %v5516_v47 = vld [vmem:[#allocation34_spill] sm:$0xff] }
 0x86a   :  { %2635 = vmatpush.msrb.mxu2 %v4861_v40  ;;  %2655 = vmatpush.msra.mxu3 %v4996_v34 }
 0x86b   :  { %2584 = vmatpush.msra.mxu1 %v4687_v41  ;;  %v5517_v41 = vld [vmem:[#allocation26_spill] sm:$0xff] }
 0x86c   :  { %2636 = vmatpush.msrb.mxu2 %v4866_v23  ;;  %2656 = vmatpush.msra.mxu3 %v5001_v11 }
 0x86d   :  { %2585 = vmatpush.msra.mxu1 %v4692_v22  ;;  %v5518_v22 = vld [vmem:[#allocation47_spill] sm:$0xff] }
 0x86e   :  { %2637 = vmatpush.msrb.mxu2 %v4871_v43  ;;  %2657 = vmatpush.msra.mxu3 %v5006_v50 }
 0x86f   :  { %2586 = vmatpush.msra.mxu1 %v4696_v30  ;;  %v5519_v30 = vld [vmem:[#allocation23_spill] sm:$0xff] }
 0x870   :  { %2638 = vmatpush.msrb.mxu2 %v4876_v8  ;;  %2658 = vmatpush.msra.mxu3 %v5011_v44 }
 0x871   :  { %2587 = vmatpush.msra.mxu1 %v4701_v5  ;;  %v5520_v5 = vld [vmem:[#allocation35_spill] sm:$0xff] }
 0x872   :  { %2639 = vmatpush.msrb.mxu2 %v4881_v52  ;;  %2659 = vmatpush.msra.mxu3 %v5016_v25 }
 0x873   :  { %2588 = vmatpush.msra.mxu1 %v4706_v10  ;;  %v5521_v10 = vld [vmem:[#allocation48_spill] sm:$0xff] }
 0x874   :  { %2640 = vmatpush.msrb.mxu2 %v4886_v33  ;;  %2660 = vmatpush.msra.mxu3 %v5021_v21 }
 0x875   :  { %2589 = vmatpush.msra.mxu1 %v4711_v55  ;;  %v5522_v55 = vld [vmem:[#allocation32_spill] sm:$0xff] }
 0x876   :  { %2641 = vmatpush.msrb.mxu2 %v4891_v26  ;;  %2661 = vmatpush.msra.mxu3 %v5026_v6 }
 0x877   :  { %2590 = vmatpush.msra.mxu1 %v4716_v63  ;;  %v5523_v63 = vld [vmem:[#allocation36_spill] sm:$0xff] }
 0x878   :  { %2642 = vmatpush.msrb.mxu2 %v4896_v31  ;;  %2662 = vmatpush.msra.mxu3 %v5031_v27 }
 0x879   :  { %2591 = vmatpush.msra.mxu1 %v4718_v13  ;;  %v5524_v13 = vld [vmem:[#allocation49_spill] sm:$0xff] }
 0x87a   :  { %2643 = vmatpush.msrb.mxu2 %v4901_v38  ;;  %2663 = vmatpush.msra.mxu3 %v5036_v3 }
 0x87b   :  { %2592 = vmatpush.msra.mxu1 %v4723_v14 }
 0x87c   :  { %2644 = vmatpush.msrb.mxu2 %v5514_v59  ;;  %2664 = vmatpush.msra.mxu3 %v5515_v60 }
 0x87d   :  { %2593 = vmatpush.msra.mxu1 %v5516_v47 }
 0x87e   :  { %2645 = vmatpush.msrb.mxu2 %v5517_v41  ;;  %2665 = vmatpush.msra.mxu3 %v5518_v22 }
 0x87f   :  { %2594 = vmatpush.msra.mxu1 %v5519_v30 }
 0x880   :  { %2646 = vmatpush.msrb.mxu2 %v5520_v5  ;;  %2666 = vmatpush.msra.mxu3 %v5521_v10 }
 0x881   :  { %2595 = vmatpush.msra.mxu1 %v5522_v55 }
 0x882   :  { %2647 = vmatpush.msrb.mxu2 %v5523_v63  ;;  %2667 = vmatpush.msra.mxu3 %v5524_v13 }
 0x8d5   :  { %v2203_v14 = vpop.xlane.xlu0 %2202 }
 0x8d6   :  { %v2204_v29 = vmul.f32 0.015625, %v2203_v14  ;;  %v2207_v62 = vpop.xlane.xlu2 %2206 }
 0x8d7   :  { %v2208_v37 = vmul.f32 0.015625, %v2207_v62 }
 0x8d8   :  { %v2209_v57 = vmul.f32 %v2204_v29, %v2204_v29  ;;  %v2211_v14 = vsub.f32 %v5070_v53, %v2204_v29 }
 0x8da   :  { %v2210_v36 = vsub.f32 %v2208_v37, %v2209_v57 }
 0x8dc   :  { %v2212_v15 = vadd.f32 1e-05, %v2210_v36 }
 0x8de   :  { %3113 = vrsqrt.f32 %v2212_v15  ;;  %v2244_v12 = vpop.f32.mrf.mxu1  ;;  %vm2219_vm7 = vweird.f32 %v2212_v15 }
 0x8df   :  { %v2268_v56 = vadd.f32 %v2244_v12, %v1596_v20 }
 0x8e1   :  { %v2948_v49 = vmul.f32 -1.442695, %v2268_v56 }
 0x8e3   :  { %3115 = vpow2.f32 %v2948_v49 }
 0x8e4   :  { %v3114_v39 = vpop.eup %3113  ;;  %v2264_v19 = vpop.f32.mrf.mxu2 }
 0x8e5   :  { %v2214_v58 = vmul.f32 %v3114_v39, %v2212_v15  ;;  %v2289_v32 = vadd.f32 %v2264_v19, %v1667_v17  ;;  %vm2220_vm6 = vweird.f32 %v3114_v39  ;;  %v2327_v29 = vpop.f32.mrf.mxu3 }
 0x8e6   :  { %vm2221_vm8 = vmor %vm2219_vm7, %vm2220_vm6 }
 0x8e7   :  { %v2215_v45 = vmul.f32 %v3114_v39, %v2214_v58  ;;  %v2949_v24 = vmul.f32 -1.442695, %v2289_v32 }
 0x8e9   :  { %v3116_v16 = vpop.eup %3115  ;;  %v2216_v47 = vmul.f32 0.5, %v2215_v45  ;;  %3117 = vpow2.f32 %v2949_v24  ;;  %v2328_v24 = vadd.f32 %v4828_v61, %v2327_v29 }
 0x8ea   :  { %v2272_v30 = vadd.f32 1.0, %v3116_v16  ;;  %v5528_v16 = vld [vmem:[#allocation28_spill] sm:$0xff] }
 0x8eb   :  { %v2217_v55 = vsub.f32 1.5, %v2216_v47  ;;  %v1738_v47 = vadd.f32 %v4833_v51, %v5528_v16 }
 0x8ec   :  { %3119 = vrcp.f32 %v2272_v30  ;;  %v2284_v48 = vand.u32 2147483648, %v2272_v30  ;;  %v2282_v15 = vand.u32 2147483647, %v2272_v30  ;;  %vm2278_vm10 = vweird.f32 %v2272_v30 }
 0x8ed   :  { %v2218_v1 = vmul.f32 %v3114_v39, %v2217_v55 }
 0x8ee   :  { %vm2283_vm12 = vcmp.eq.f32.partialorder %v2282_v15, 8.507059e+37  ;;  %v5160_v15 = vld [vmem:[#allocation16 + $0x160] sm:$0xff] }
 0x8ef   :  { %v3118_v62 = vpop.eup %3117  ;;  %v2222_v37 = vsel %vm2221_vm8, %v3114_v39, %v2218_v1  ;;  %v2285_v39 = vor.u32 1.1754944e-38, %v2284_v48 }
 0x8f0   :  { %v2223_v57 = vmul.f32 %v2222_v37, %v2211_v14  ;;  %v2293_v36 = vadd.f32 1.0, %v3118_v62 }
 0x8f2   :  { %v3120_v18 = vpop.eup %3119  ;;  %v2224_v20 = vmul.f32 %v4958_v35, %v2223_v57  ;;  %3121 = vrcp.f32 %v2293_v36  ;;  %v2305_v14 = vand.u32 2147483648, %v2293_v36  ;;  %v2303_v37 = vand.u32 2147483647, %v2293_v36 }
 0x8f3   :  { %v2274_v12 = vmul.f32 %v3120_v18, %v2272_v30  ;;  %vm2279_vm9 = vweird.f32 %v3120_v18  ;;  %vm2299_vm14 = vweird.f32 %v2293_v36 }
 0x8f4   :  { %v2225_v56 = vadd.f32 %v4963_v2, %v2224_v20  ;;  %vm2280_vm11 = vmor %vm2278_vm10, %vm2279_vm9  ;;  %v2306_v30 = vor.u32 1.1754944e-38, %v2305_v14  ;;  %vm2304_vm0 = vcmp.eq.f32.partialorder %v2303_v37, 8.507059e+37 }
 0x8f5   :  { %v2275_v49 = vsub.f32 1.0, %v2274_v12 }
 0x8f6   :  { %2226 = vst [vmem:[#allocation17 + $0x10] sm:$0xff] %v2225_v56 }
 0x8f7   :  { %v2276_v46 = vmul.f32 %v3120_v18, %v2275_v49 }
 0x8f8   :  { %v3122_v17 = vpop.eup %3121 }
 0x8f9   :  { %v2295_v19 = vmul.f32 %v3122_v17, %v2293_v36  ;;  %v2277_v58 = vadd.f32 %v3120_v18, %v2276_v46  ;;  %vm2300_vm13 = vweird.f32 %v3122_v17  ;;  %v5155_v46 = vld [vmem:[#allocation16 + $0x168] sm:$0xff] }
 0x8fa   :  { %vm2301_vm15 = vmor %vm2299_vm14, %vm2300_vm13 }
 0x8fb   :  { %v2296_v32 = vsub.f32 1.0, %v2295_v19  ;;  %v2281_v45 = vsel %vm2280_vm11, %v3120_v18, %v2277_v58 }
 0x8fc   :  { %v2286_v55 = vsel %vm2283_vm12, %v2285_v39, %v2281_v45 }
 0x8fd   :  { %v2297_v1 = vmul.f32 %v3122_v17, %v2296_v32  ;;  %v2330_v62 = vmul.f32 %v2328_v24, %v2286_v55 }
 0x8ff   :  { %v2298_v57 = vadd.f32 %v3122_v17, %v2297_v1  ;;  %v2331_v20 = vadd.f32 %v2330_v62, %v1738_v47 }
 0x901   :  { %v2302_v12 = vsel %vm2301_vm15, %v3122_v17, %v2298_v57  ;;  %3123 = vtanh.f32 %v2331_v20 }
 0x902   :  { %v2307_v18 = vsel %vm2304_vm0, %v2306_v30, %v2302_v12 }
 0x903   :  { %v2333_v56 = vsub.f32 1.0, %v2307_v18  ;;  %v2335_v51 = vmul.f32 %v2307_v18, %v5070_v53  ;;  %v5150_v53 = vld [vmem:[#allocation16 + $0x170] sm:$0xff] }
 0x907   :  { %v3124_v61 = vpop.eup %3123 }
 0x908   :  { %v2334_v49 = vmul.f32 %v3124_v61, %v2333_v56 }
 0x90a   :  { %v5139_v48 = vadd.f32 %v2335_v51, %v2334_v49 }
 0x90c   :  { %2378 = vmatmul.f32.vlgmr.msra.gmra.mxu0 %v5139_v48  ;;  %2398 = vmatmul.f32.vlgmr.msrb.gmra.mxu1 %v5139_v48  ;;  %v2340_v36 = vmul.f32 %v5139_v48, %v5139_v48 }
 0x90d   :  { %2461 = vmatmul.f32.vlgmr.msra.gmra.mxu2 %v5139_v48  ;;  %2337 = vadd.xlane.f32.xlu1 %v5139_v48 }
 0x90e   :  { %2341 = vadd.xlane.f32.xlu0 %v2340_v36  ;;  %2715 = vmatpush.msra.mxu0 %v5078_v54 }
 0x90f   :  { %2767 = vmatpush.msrb.mxu1 %v4846_v0  ;;  %2787 = vmatpush.msra.mxu2 %v4981_v9  ;;  %v5165_v0 = vld [vmem:[#allocation16 + $0x158] sm:$0xff] }
 0x910   :  { %2716 = vmatpush.msra.mxu0 %v5150_v53 }
 0x911   :  { %2768 = vmatpush.msrb.mxu1 %v4851_v7  ;;  %2788 = vmatpush.msra.mxu2 %v4986_v42  ;;  %v5170_v7 = vld [vmem:[#allocation16 + $0x150] sm:$0xff] }
 0x912   :  { %2717 = vmatpush.msra.mxu0 %v5155_v46 }
 0x913   :  { %2769 = vmatpush.msrb.mxu1 %v4856_v28  ;;  %2789 = vmatpush.msra.mxu2 %v4991_v4  ;;  %v5175_v28 = vld [vmem:[#allocation16 + $0x148] sm:$0xff] }
 0x914   :  { %2718 = vmatpush.msra.mxu0 %v5160_v15 }
 0x915   :  { %2770 = vmatpush.msrb.mxu1 %v4861_v40  ;;  %2790 = vmatpush.msra.mxu2 %v4996_v34  ;;  %v5180_v40 = vld [vmem:[#allocation16 + $0x140] sm:$0xff] }
 0x916   :  { %2719 = vmatpush.msra.mxu0 %v5165_v0 }
 0x917   :  { %2771 = vmatpush.msrb.mxu1 %v4866_v23  ;;  %2791 = vmatpush.msra.mxu2 %v5001_v11  ;;  %v5185_v23 = vld [vmem:[#allocation16 + $0x138] sm:$0xff] }
 0x918   :  { %2720 = vmatpush.msra.mxu0 %v5170_v7 }
 0x919   :  { %2772 = vmatpush.msrb.mxu1 %v4871_v43  ;;  %2792 = vmatpush.msra.mxu2 %v5006_v50  ;;  %v5190_v43 = vld [vmem:[#allocation16 + $0x130] sm:$0xff] }
 0x91a   :  { %2721 = vmatpush.msra.mxu0 %v5175_v28 }
 0x91b   :  { %2773 = vmatpush.msrb.mxu1 %v4876_v8  ;;  %2793 = vmatpush.msra.mxu2 %v5011_v44  ;;  %v5195_v8 = vld [vmem:[#allocation16 + $0x128] sm:$0xff] }
 0x91c   :  { %2722 = vmatpush.msra.mxu0 %v5180_v40 }
 0x91d   :  { %2774 = vmatpush.msrb.mxu1 %v4881_v52  ;;  %2794 = vmatpush.msra.mxu2 %v5016_v25  ;;  %v5200_v52 = vld [vmem:[#allocation16 + $0x120] sm:$0xff]  ;;  %v5228_v25 = vld [vmem:[%s5359_s9] ss:$0 sm:$0xff] }
 0x91e   :  { %2723 = vmatpush.msra.mxu0 %v5185_v23 }
 0x91f   :  { %2775 = vmatpush.msrb.mxu1 %v4886_v33  ;;  %2795 = vmatpush.msra.mxu2 %v5021_v21  ;;  %v5205_v33 = vld [vmem:[#allocation16 + $0x118] sm:$0xff]  ;;  %v5529_v21 = vld [vmem:[#allocation41_spill] sm:$0xff] }
 0x920   :  { %2724 = vmatpush.msra.mxu0 %v5190_v43 }
 0x921   :  { %2776 = vmatpush.msrb.mxu1 %v4891_v26  ;;  %2796 = vmatpush.msra.mxu2 %v5026_v6  ;;  %v5210_v26 = vld [vmem:[#allocation16 + $0x110] sm:$0xff]  ;;  %v1599_v6 = vadd.f32 %v5228_v25, %v5529_v21  ;;  %v5251_v21 = vld [vmem:[%s5359_s9 + $0x2] ss:$0 sm:$0xff] }
 0x922   :  { %2725 = vmatpush.msra.mxu0 %v5195_v8 }
 0x923   :  { %2777 = vmatpush.msrb.mxu1 %v4896_v31  ;;  %2797 = vmatpush.msra.mxu2 %v5031_v27  ;;  %v5215_v31 = vld [vmem:[#allocation16 + $0x108] sm:$0xff]  ;;  %v5235_v27 = vld [vmem:[%s5359_s9 + $0x1] ss:$0 sm:$0xff] }
 0x924   :  { %2726 = vmatpush.msra.mxu0 %v5200_v52 }
 0x925   :  { %2778 = vmatpush.msrb.mxu1 %v4901_v38  ;;  %2798 = vmatpush.msra.mxu2 %v5036_v3  ;;  %v5220_v38 = vld [vmem:[#allocation16 + $0x100] sm:$0xff] }
 0x926   :  { %2727 = vmatpush.msra.mxu0 %v5205_v33  ;;  %v5530_v3 = vld [vmem:[#allocation27_spill] sm:$0xff] }
 0x927   :  { %2779 = vmatpush.msrb.mxu1 %v5514_v59  ;;  %2799 = vmatpush.msra.mxu2 %v5515_v60  ;;  %v1670_v59 = vadd.f32 %v5235_v27, %v5530_v3 }
 0x928   :  { %2728 = vmatpush.msra.mxu0 %v5210_v26 }
 0x929   :  { %2780 = vmatpush.msrb.mxu1 %v5517_v41  ;;  %2800 = vmatpush.msra.mxu2 %v5518_v22 }
 0x92a   :  { %2729 = vmatpush.msra.mxu0 %v5215_v31 }
 0x92b   :  { %2781 = vmatpush.msrb.mxu1 %v5520_v5  ;;  %2801 = vmatpush.msra.mxu2 %v5521_v10 }
 0x92c   :  { %2730 = vmatpush.msra.mxu0 %v5220_v38 }
 0x92d   :  { %2782 = vmatpush.msrb.mxu1 %v5523_v63  ;;  %2802 = vmatpush.msra.mxu2 %v5524_v13 }
 0x980   :  { %v2338_v9 = vpop.xlane.xlu1 %2337 }
 0x981   :  { %v2339_v42 = vmul.f32 0.015625, %v2338_v9  ;;  %v2342_v4 = vpop.xlane.xlu0 %2341 }
 0x982   :  { %v2343_v34 = vmul.f32 0.015625, %v2342_v4 }
 0x983   :  { %v2344_v11 = vmul.f32 %v2339_v42, %v2339_v42  ;;  %v2346_v47 = vsub.f32 %v5139_v48, %v2339_v42 }
 0x985   :  { %v2345_v50 = vsub.f32 %v2343_v34, %v2344_v11  ;;  %v5245_v34 = vld [vmem:[%s5360_s10] ss:$0 sm:$0xff] }
 0x987   :  { %v2347_v44 = vadd.f32 1e-05, %v2345_v50 }
 0x989   :  { %3125 = vrsqrt.f32 %v2347_v44  ;;  %v2379_v60 = vpop.f32.mrf.mxu0  ;;  %v2399_v41 = vpop.f32.mrf.mxu1  ;;  %vm2354_vm2 = vweird.f32 %v2347_v44 }
 0x98a   :  { %v2403_v22 = vadd.f32 %v2379_v60, %v1599_v6  ;;  %v2424_v5 = vadd.f32 %v2399_v41, %v1670_v59  ;;  %v5531_v6 = vld [vmem:[#allocation24_spill] sm:$0xff] }
 0x98b   :  { %v1741_v3 = vadd.f32 %v5251_v21, %v5531_v6 }
 0x98c   :  { %v2950_v10 = vmul.f32 -1.442695, %v2403_v22  ;;  %v2951_v63 = vmul.f32 -1.442695, %v2424_v5 }
 0x98e   :  { %3127 = vpow2.f32 %v2950_v10 }
 0x98f   :  { %v3126_v13 = vpop.eup %3125  ;;  %3129 = vpow2.f32 %v2951_v63 }
 0x990   :  { %v2349_v17 = vmul.f32 %v3126_v13, %v2347_v44  ;;  %vm2355_vm1 = vweird.f32 %v3126_v13  ;;  %v2462_v36 = vpop.f32.mrf.mxu2 }
 0x991   :  { %vm2356_vm3 = vmor %vm2354_vm2, %vm2355_vm1  ;;  %v2463_v11 = vadd.f32 %v5245_v34, %v2462_v36 }
 0x992   :  { %v2350_v29 = vmul.f32 %v3126_v13, %v2349_v17 }
 0x994   :  { %v3128_v19 = vpop.eup %3127  ;;  %v2351_v58 = vmul.f32 0.5, %v2350_v29 }
 0x995   :  { %v3130_v39 = vpop.eup %3129  ;;  %v2407_v32 = vadd.f32 1.0, %v3128_v19 }
 0x996   :  { %v2352_v45 = vsub.f32 1.5, %v2351_v58  ;;  %v2428_v24 = vadd.f32 1.0, %v3130_v39 }
 0x997   :  { %3131 = vrcp.f32 %v2407_v32  ;;  %v2419_v56 = vand.u32 2147483648, %v2407_v32  ;;  %v2417_v49 = vand.u32 2147483647, %v2407_v32  ;;  %vm2413_vm5 = vweird.f32 %v2407_v32 }
 0x998   :  { %v2353_v16 = vmul.f32 %v3126_v13, %v2352_v45  ;;  %3133 = vrcp.f32 %v2428_v24  ;;  %v2440_v59 = vand.u32 2147483648, %v2428_v24  ;;  %vm2434_vm9 = vweird.f32 %v2428_v24 }
 0x999   :  { %v2420_v42 = vor.u32 1.1754944e-38, %v2419_v56  ;;  %vm2418_vm7 = vcmp.eq.f32.partialorder %v2417_v49, 8.507059e+37  ;;  %v2438_v41 = vand.u32 2147483647, %v2428_v24 }
 0x99a   :  { %v2357_v55 = vsel %vm2356_vm3, %v3126_v13, %v2353_v16  ;;  %v2441_v10 = vor.u32 1.1754944e-38, %v2440_v59 }
 0x99b   :  { %v2358_v1 = vmul.f32 %v2357_v55, %v2346_v47  ;;  %vm2439_vm11 = vcmp.eq.f32.partialorder %v2438_v41, 8.507059e+37  ;;  %v5534_v41 = vld [vmem:[#allocation31_spill] sm:$0xff] }
 0x99d   :  { %v3132_v14 = vpop.eup %3131  ;;  %v2359_v62 = vmul.f32 %v4958_v35, %v2358_v1 }
 0x99e   :  { %v3134_v37 = vpop.eup %3133  ;;  %v2409_v57 = vmul.f32 %v3132_v14, %v2407_v32  ;;  %vm2414_vm4 = vweird.f32 %v3132_v14 }
 0x99f   :  { %v2360_v20 = vadd.f32 %v4963_v2, %v2359_v62  ;;  %v2430_v30 = vmul.f32 %v3134_v37, %v2428_v24  ;;  %vm2415_vm6 = vmor %vm2413_vm5, %vm2414_vm4  ;;  %vm2435_vm8 = vweird.f32 %v3134_v37 }
 0x9a0   :  { %v2410_v12 = vsub.f32 1.0, %v2409_v57  ;;  %vm2436_vm10 = vmor %vm2434_vm9, %vm2435_vm8 }
 0x9a1   :  { %2361 = vst [vmem:[#allocation17 + $0x18] sm:$0xff] %v2360_v20  ;;  %v2431_v18 = vsub.f32 1.0, %v2430_v30 }
 0x9a2   :  { %v2411_v61 = vmul.f32 %v3132_v14, %v2410_v12 }
 0x9a3   :  { %v2432_v51 = vmul.f32 %v3134_v37, %v2431_v18 }
 0x9a4   :  { %v2412_v9 = vadd.f32 %v3132_v14, %v2411_v61 }
 0x9a5   :  { %v2433_v50 = vadd.f32 %v3134_v37, %v2432_v51 }
 0x9a6   :  { %v2416_v4 = vsel %vm2415_vm6, %v3132_v14, %v2412_v9 }
 0x9a7   :  { %v2421_v44 = vsel %vm2418_vm7, %v2420_v42, %v2416_v4  ;;  %v2437_v5 = vsel %vm2436_vm10, %v3134_v37, %v2433_v50 }
 0x9a8   :  { %v2465_v60 = vmul.f32 %v2463_v11, %v2421_v44  ;;  %v2442_v63 = vsel %vm2439_vm11, %v2441_v10, %v2437_v5 }
 0x9a9   :  { %v2468_v13 = vsub.f32 1.0, %v2442_v63  ;;  %v2470_v19 = vmul.f32 %v2442_v63, %v5139_v48 }
 0x9aa   :  { %v2466_v22 = vadd.f32 %v2465_v60, %v1741_v3 }
 0x9ac   :  { %3135 = vtanh.f32 %v2466_v22  ;;  %v1744_v22 = vadd.f32 %v5251_v21, %v5534_v41 }
 0x9b2   :  { %v3136_v17 = vpop.eup %3135 }
 0x9b3   :  { %v2469_v29 = vmul.f32 %v3136_v17, %v2468_v13 }
 0x9b5   :  { %v5256_v58 = vadd.f32 %v2470_v19, %v2469_v29 }
 0x9b7   :  { %2513 = vmatmul.f32.vlgmr.msrb.gmra.mxu3 %v5256_v58  ;;  %2533 = vmatmul.f32.vlgmr.msrb.gmra.mxu0 %v5256_v58  ;;  %v2475_v39 = vmul.f32 %v5256_v58, %v5256_v58 }
 0x9b8   :  { %2596 = vmatmul.f32.vlgmr.msra.gmra.mxu1 %v5256_v58  ;;  %2472 = vadd.xlane.f32.xlu2 %v5256_v58 }
 0x9b9   :  { %2476 = vadd.xlane.f32.xlu1 %v2475_v39  ;;  %2850 = vmatpush.msrb.mxu3 %v5078_v54 }
 0x9bb   :  { %2851 = vmatpush.msrb.mxu3 %v5150_v53 }
 0x9bd   :  { %2852 = vmatpush.msrb.mxu3 %v5155_v46 }
 0x9bf   :  { %2853 = vmatpush.msrb.mxu3 %v5160_v15 }
 0x9c1   :  { %2854 = vmatpush.msrb.mxu3 %v5165_v0 }
 0x9c3   :  { %2855 = vmatpush.msrb.mxu3 %v5170_v7 }
 0x9c5   :  { %2856 = vmatpush.msrb.mxu3 %v5175_v28  ;;  %v5532_v28 = vld [vmem:[#allocation30_spill] sm:$0xff] }
 0x9c7   :  { %2857 = vmatpush.msrb.mxu3 %v5180_v40  ;;  %v1673_v40 = vadd.f32 %v5235_v27, %v5532_v28 }
 0x9c9   :  { %2858 = vmatpush.msrb.mxu3 %v5185_v23 }
 0x9cb   :  { %2859 = vmatpush.msrb.mxu3 %v5190_v43 }
 0x9cd   :  { %2860 = vmatpush.msrb.mxu3 %v5195_v8 }
 0x9cf   :  { %2861 = vmatpush.msrb.mxu3 %v5200_v52  ;;  %v5533_v52 = vld [vmem:[#allocation44_spill] sm:$0xff] }
 0x9d1   :  { %2862 = vmatpush.msrb.mxu3 %v5205_v33  ;;  %v1602_v33 = vadd.f32 %v5228_v25, %v5533_v52 }
 0x9d3   :  { %2863 = vmatpush.msrb.mxu3 %v5210_v26 }
 0x9d5   :  { %2864 = vmatpush.msrb.mxu3 %v5215_v31 }
 0x9d7   :  { %2865 = vmatpush.msrb.mxu3 %v5220_v38 }
 0xa2b   :  { %v2473_v54 = vpop.xlane.xlu2 %2472 }
 0xa2c   :  { %v2474_v48 = vmul.f32 0.015625, %v2473_v54  ;;  %v2477_v53 = vpop.xlane.xlu1 %2476 }
 0xa2d   :  { %v2478_v46 = vmul.f32 0.015625, %v2477_v53 }
 0xa2e   :  { %v2479_v15 = vmul.f32 %v2474_v48, %v2474_v48  ;;  %v2481_v62 = vsub.f32 %v5256_v58, %v2474_v48 }
 0xa30   :  { %v2480_v0 = vsub.f32 %v2478_v46, %v2479_v15  ;;  %v5535_v15 = vld [vmem:[#allocation45_spill] sm:$0xff] }
 0xa32   :  { %v2482_v7 = vadd.f32 1e-05, %v2480_v0  ;;  %v1605_v0 = vadd.f32 %v5228_v25, %v5535_v15  ;;  %v5539_v15 = vld [vmem:[#allocation39_spill] sm:$0xff] }
 0xa34   :  { %3137 = vrsqrt.f32 %v2482_v7  ;;  %v2534_v23 = vpop.f32.mrf.mxu0  ;;  %vm2489_vm13 = vweird.f32 %v2482_v7 }
 0xa35   :  { %v2559_v43 = vadd.f32 %v2534_v23, %v1673_v40  ;;  %v2597_v44 = vpop.f32.mrf.mxu1 }
 0xa36   :  { %v2598_v3 = vadd.f32 %v5245_v34, %v2597_v44 }
 0xa37   :  { %v2953_v8 = vmul.f32 -1.442695, %v2559_v43 }
 0xa39   :  { %3139 = vpow2.f32 %v2953_v8 }
 0xa3a   :  { %v3138_v26 = vpop.eup %3137  ;;  %v2514_v31 = vpop.f32.mrf.mxu3 }
 0xa3b   :  { %v2484_v38 = vmul.f32 %v3138_v26, %v2482_v7  ;;  %v2538_v32 = vadd.f32 %v2514_v31, %v1602_v33  ;;  %vm2490_vm12 = vweird.f32 %v3138_v26  ;;  %v5536_v7 = vld [vmem:[#allocation25_spill] sm:$0xff] }
 0xa3c   :  { %vm2491_vm14 = vmor %vm2489_vm13, %vm2490_vm12  ;;  %v1676_v28 = vadd.f32 %v5235_v27, %v5536_v7 }
 0xa3d   :  { %v2485_v45 = vmul.f32 %v3138_v26, %v2484_v38  ;;  %v2952_v24 = vmul.f32 -1.442695, %v2538_v32 }
 0xa3f   :  { %v3140_v16 = vpop.eup %3139  ;;  %v2486_v47 = vmul.f32 0.5, %v2485_v45  ;;  %3141 = vpow2.f32 %v2952_v24 }
 0xa40   :  { %v2563_v55 = vadd.f32 1.0, %v3140_v16 }
 0xa41   :  { %v2487_v1 = vsub.f32 1.5, %v2486_v47 }
 0xa42   :  { %3143 = vrcp.f32 %v2563_v55  ;;  %v2575_v5 = vand.u32 2147483648, %v2563_v55  ;;  %vm2569_vm4 = vweird.f32 %v2563_v55  ;;  %v2573_v63 = vand.u32 2147483647, %v2563_v55 }
 0xa43   :  { %v2488_v14 = vmul.f32 %v3138_v26, %v2487_v1 }
 0xa44   :  { %v2576_v29 = vor.u32 1.1754944e-38, %v2575_v5  ;;  %vm2574_vm6 = vcmp.eq.f32.partialorder %v2573_v63, 8.507059e+37 }
 0xa45   :  { %v3142_v37 = vpop.eup %3141  ;;  %v2492_v57 = vsel %vm2491_vm14, %v3138_v26, %v2488_v14 }
 0xa46   :  { %v2493_v20 = vmul.f32 %v2492_v57, %v2481_v62  ;;  %v2542_v30 = vadd.f32 1.0, %v3142_v37 }
 0xa48   :  { %v2494_v12 = vmul.f32 %v4958_v35, %v2493_v20  ;;  %3145 = vrcp.f32 %v2542_v30  ;;  %v3144_v18 = vpop.eup %3143  ;;  %v2554_v42 = vand.u32 2147483648, %v2542_v30  ;;  %v2552_v11 = vand.u32 2147483647, %v2542_v30 }
 0xa49   :  { %v2565_v61 = vmul.f32 %v3144_v18, %v2563_v55  ;;  %vm2548_vm0 = vweird.f32 %v2542_v30  ;;  %vm2570_vm3 = vweird.f32 %v3144_v18 }
 0xa4a   :  { %v2495_v56 = vadd.f32 %v4963_v2, %v2494_v12  ;;  %v2555_v35 = vor.u32 1.1754944e-38, %v2554_v42  ;;  %vm2553_vm2 = vcmp.eq.f32.partialorder %v2552_v11, 8.507059e+37  ;;  %vm2571_vm5 = vmor %vm2569_vm4, %vm2570_vm3 }
 0xa4b   :  { %v2566_v36 = vsub.f32 1.0, %v2565_v61 }
 0xa4c   :  { %2496 = vst [vmem:[#allocation17 + $0x20] sm:$0xff] %v2495_v56 }
 0xa4d   :  { %v2567_v50 = vmul.f32 %v3144_v18, %v2566_v36 }
 0xa4e   :  { %v3146_v49 = vpop.eup %3145 }
 0xa4f   :  { %v2544_v51 = vmul.f32 %v3146_v49, %v2542_v30  ;;  %vm2549_vm15 = vweird.f32 %v3146_v49  ;;  %v2568_v2 = vadd.f32 %v3144_v18, %v2567_v50 }
 0xa50   :  { %vm2550_vm1 = vmor %vm2548_vm0, %vm2549_vm15 }
 0xa51   :  { %v2545_v9 = vsub.f32 1.0, %v2544_v51  ;;  %v2572_v17 = vsel %vm2571_vm5, %v3144_v18, %v2568_v2 }
 0xa52   :  { %v2577_v19 = vsel %vm2574_vm6, %v2576_v29, %v2572_v17 }
 0xa53   :  { %v2546_v4 = vmul.f32 %v3146_v49, %v2545_v9  ;;  %v2603_v39 = vsub.f32 1.0, %v2577_v19  ;;  %v2605_v48 = vmul.f32 %v2577_v19, %v5256_v58  ;;  %v5538_v19 = vld [vmem:[#allocation42_spill] sm:$0xff] }
 0xa55   :  { %v2547_v6 = vadd.f32 %v3146_v49, %v2546_v4 }
 0xa57   :  { %v2551_v59 = vsel %vm2550_vm1, %v3146_v49, %v2547_v6  ;;  %v5537_v49 = vld [vmem:[#allocation38_spill] sm:$0xff] }
 0xa58   :  { %v2556_v60 = vsel %vm2553_vm2, %v2555_v35, %v2551_v59  ;;  %v1747_v51 = vadd.f32 %v5251_v21, %v5537_v49 }
 0xa59   :  { %v2600_v10 = vmul.f32 %v2598_v3, %v2556_v60 }
 0xa5b   :  { %v2601_v13 = vadd.f32 %v2600_v10, %v1744_v22 }
 0xa5d   :  { %3147 = vtanh.f32 %v2601_v13 }
 0xa63   :  { %v3148_v54 = vpop.eup %3147 }
 0xa64   :  { %v2604_v53 = vmul.f32 %v3148_v54, %v2603_v39  ;;  %v1608_v39 = vadd.f32 %v5228_v25, %v5538_v19 }
 0xa66   :  { %v5291_v46 = vadd.f32 %v2605_v48, %v2604_v53 }
 0xa68   :  { %2648 = vmatmul.f32.vlgmr.msrb.gmra.mxu2 %v5291_v46  ;;  %2668 = vmatmul.f32.vlgmr.msra.gmra.mxu3 %v5291_v46 }
 0xa69   :  { %2731 = vmatmul.f32.vlgmr.msra.gmra.mxu0 %v5291_v46  ;;  %2607 = vadd.xlane.f32.xlu0 %v5291_v46 }
 0xadc   :  { %v5313_v41 = vpop.xlane.xlu0 %2607 }
 0xae6   :  { %v2732_v37 = vpop.f32.mrf.mxu0 }
 0xae7   :  { %v2733_v12 = vadd.f32 %v5245_v34, %v2732_v37 }
 0xaeb   :  { %v2649_v40 = vpop.f32.mrf.mxu2  ;;  %v2669_v23 = vpop.f32.mrf.mxu3 }
 0xaec   :  { %v2673_v58 = vadd.f32 %v2649_v40, %v1605_v0  ;;  %v2694_v43 = vadd.f32 %v2669_v23, %v1676_v28  ;;  %v1679_v0 = vadd.f32 %v5235_v27, %v5539_v15 }
 0xaee   :  { %v2954_v8 = vmul.f32 -1.442695, %v2673_v58  ;;  %v2955_v52 = vmul.f32 -1.442695, %v2694_v43 }
 0xaf0   :  { %3149 = vpow2.f32 %v2954_v8 }
 0xaf1   :  { %3151 = vpow2.f32 %v2955_v52 }
 0xaf6   :  { %v3150_v33 = vpop.eup %3149 }
 0xaf7   :  { %v3152_v26 = vpop.eup %3151  ;;  %v2677_v31 = vadd.f32 1.0, %v3150_v33 }
 0xaf8   :  { %v2698_v38 = vadd.f32 1.0, %v3152_v26 }
 0xaf9   :  { %3153 = vrcp.f32 %v2677_v31  ;;  %v2689_v55 = vand.u32 2147483648, %v2677_v31  ;;  %v2687_v62 = vand.u32 2147483647, %v2677_v31  ;;  %vm2683_vm8 = vweird.f32 %v2677_v31 }
 0xafa   :  { %3155 = vrcp.f32 %v2698_v38  ;;  %v2710_v9 = vand.u32 2147483648, %v2698_v38  ;;  %vm2704_vm12 = vweird.f32 %v2698_v38  ;;  %v2708_v42 = vand.u32 2147483647, %v2698_v38 }
 0xafb   :  { %v2690_v30 = vor.u32 1.1754944e-38, %v2689_v55  ;;  %vm2688_vm10 = vcmp.eq.f32.partialorder %v2687_v62, 8.507059e+37 }
 0xafc   :  { %v2711_v50 = vor.u32 1.1754944e-38, %v2710_v9  ;;  %vm2709_vm14 = vcmp.eq.f32.partialorder %v2708_v42, 8.507059e+37  ;;  %v5540_v9 = vld [vmem:[#allocation29_spill] sm:$0xff] }
 0xafd   :  { %v1750_v42 = vadd.f32 %v5251_v21, %v5540_v9 }
 0xaff   :  { %v3154_v32 = vpop.eup %3153 }
 0xb00   :  { %v3156_v45 = vpop.eup %3155  ;;  %v2679_v24 = vmul.f32 %v3154_v32, %v2677_v31  ;;  %vm2684_vm7 = vweird.f32 %v3154_v32 }
 0xb01   :  { %v2700_v16 = vmul.f32 %v3156_v45, %v2698_v38  ;;  %vm2685_vm9 = vmor %vm2683_vm8, %vm2684_vm7  ;;  %vm2705_vm11 = vweird.f32 %v3156_v45 }
 0xb02   :  { %v2680_v47 = vsub.f32 1.0, %v2679_v24  ;;  %vm2706_vm13 = vmor %vm2704_vm12, %vm2705_vm11 }
 0xb03   :  { %v2701_v1 = vsub.f32 1.0, %v2700_v16  ;;  %v5323_v16 = vld [vmem:[%s5361_s11] ss:$0 sm:$0xff]  ;;  %s3496_s11 = smov [#allocation17]  }
 0xb04   :  { %v2681_v14 = vmul.f32 %v3154_v32, %v2680_v47 }
 0xb05   :  { %v2702_v57 = vmul.f32 %v3156_v45, %v2701_v1  ;;  %v5329_v1 = vld [vmem:[%s5362_s12] ss:$0 sm:$0xff]  ;;  %s2906_s12 = sshll.u32 %s3496_s11, 4  ;;  %s2907_s12 = int_to_ptr.vmem [resolvable:$true] %s2906_s12 }
 0xb06   :  { %v2682_v20 = vadd.f32 %v3154_v32, %v2681_v14 }
 0xb07   :  { %v2703_v61 = vadd.f32 %v3156_v45, %v2702_v57 }
 0xb08   :  { %v2686_v18 = vsel %vm2685_vm9, %v3154_v32, %v2682_v20 }
 0xb09   :  { %v2691_v56 = vsel %vm2688_vm10, %v2690_v30, %v2686_v18  ;;  %v2707_v11 = vsel %vm2706_vm13, %v3156_v45, %v2703_v61 }
 0xb0a   :  { %v2735_v36 = vmul.f32 %v2733_v12, %v2691_v56  ;;  %v2712_v44 = vsel %vm2709_vm14, %v2711_v50, %v2707_v11 }
 0xb0b   :  { %v2738_v6 = vsub.f32 1.0, %v2712_v44  ;;  %v2740_v59 = vmul.f32 %v2712_v44, %v5291_v46 }
 0xb0c   :  { %v2736_v4 = vadd.f32 %v2735_v36, %v1747_v51 }
 0xb0e   :  { %3157 = vtanh.f32 %v2736_v4 }
 0xb14   :  { %v3158_v35 = vpop.eup %3157 }
 0xb15   :  { %v2739_v3 = vmul.f32 %v3158_v35, %v2738_v6 }
 0xb17   :  { %v5305_v2 = vadd.f32 %v2740_v59, %v2739_v3 }
 0xb19   :  { %2783 = vmatmul.f32.vlgmr.msrb.gmra.mxu1 %v5305_v2  ;;  %2803 = vmatmul.f32.vlgmr.msra.gmra.mxu2 %v5305_v2  ;;  %v2745_v60 = vmul.f32 %v5305_v2, %v5305_v2 }
 0xb1a   :  { %2866 = vmatmul.f32.vlgmr.msrb.gmra.mxu3 %v5305_v2  ;;  %2742 = vadd.xlane.f32.xlu1 %v5305_v2 }
 0xb1b   :  { %2746 = vadd.xlane.f32.xlu0 %v2745_v60 }
 0xb8d   :  { %v2743_v22 = vpop.xlane.xlu1 %2742 }
 0xb8e   :  { %v2744_v5 = vmul.f32 0.015625, %v2743_v22  ;;  %v2747_v10 = vpop.xlane.xlu0 %2746 }
 0xb8f   :  { %v2748_v63 = vmul.f32 0.015625, %v2747_v10 }
 0xb90   :  { %v2749_v13 = vmul.f32 %v2744_v5, %v2744_v5  ;;  %v2751_v31 = vsub.f32 %v5305_v2, %v2744_v5 }
 0xb92   :  { %v2750_v17 = vsub.f32 %v2748_v63, %v2749_v13 }
 0xb94   :  { %v2752_v29 = vadd.f32 1e-05, %v2750_v17  ;;  %v2610_v17 = vmul.f32 %v5291_v46, %v5291_v46 }
 0xb96   :  { %3159 = vrsqrt.f32 %v2752_v29  ;;  %v2784_v54 = vpop.f32.mrf.mxu1  ;;  %vm2759_vm0 = vweird.f32 %v2752_v29 }
 0xb97   :  { %v2808_v48 = vadd.f32 %v2784_v54, %v1608_v39 }
 0xb99   :  { %v2956_v53 = vmul.f32 -1.442695, %v2808_v48 }
 0xb9b   :  { %3161 = vpow2.f32 %v2956_v53  ;;  %v2609_v53 = vmul.f32 0.015625, %v5313_v41 }
 0xb9c   :  { %v3160_v7 = vpop.eup %3159  ;;  %v2804_v28 = vpop.f32.mrf.mxu2 }
 0xb9d   :  { %v2754_v40 = vmul.f32 %v3160_v7, %v2752_v29  ;;  %v2829_v23 = vadd.f32 %v2804_v28, %v1679_v0  ;;  %vm2760_vm15 = vweird.f32 %v3160_v7  ;;  %v2867_v12 = vpop.f32.mrf.mxu3  ;;  %v2614_v28 = vmul.f32 %v2609_v53, %v2609_v53 }
 0xb9e   :  { %vm2761_vm1 = vmor %vm2759_vm0, %vm2760_vm15  ;;  %v2868_v36 = vadd.f32 %v5245_v34, %v2867_v12 }
 0xb9f   :  { %v2755_v58 = vmul.f32 %v3160_v7, %v2754_v40  ;;  %v2957_v43 = vmul.f32 -1.442695, %v2829_v23 }
 0xba1   :  { %v3162_v8 = vpop.eup %3161  ;;  %v2756_v52 = vmul.f32 0.5, %v2755_v58  ;;  %3163 = vpow2.f32 %v2957_v43 }
 0xba2   :  { %v2812_v33 = vadd.f32 1.0, %v3162_v8 }
 0xba3   :  { %v2757_v26 = vsub.f32 1.5, %v2756_v52 }
 0xba4   :  { %3165 = vrcp.f32 %v2812_v33  ;;  %v2824_v37 = vand.u32 2147483648, %v2812_v33  ;;  %v2822_v20 = vand.u32 2147483647, %v2812_v33  ;;  %vm2818_vm3 = vweird.f32 %v2812_v33 }
 0xba5   :  { %v2758_v25 = vmul.f32 %v3160_v7, %v2757_v26 }
 0xba6   :  { %v2825_v61 = vor.u32 1.1754944e-38, %v2824_v37  ;;  %vm2823_vm5 = vcmp.eq.f32.partialorder %v2822_v20, 8.507059e+37 }
 0xba7   :  { %v3164_v27 = vpop.eup %3163  ;;  %v2762_v38 = vsel %vm2761_vm1, %v3160_v7, %v2758_v25 }
 0xba8   :  { %v2763_v32 = vmul.f32 %v2762_v38, %v2751_v31  ;;  %v2833_v45 = vadd.f32 1.0, %v3164_v27 }
 0xbaa   :  { %v3166_v24 = vpop.eup %3165  ;;  %v2764_v47 = vmul.f32 %v5323_v16, %v2763_v32  ;;  %3167 = vrcp.f32 %v2833_v45  ;;  %v2845_v44 = vand.u32 2147483648, %v2833_v45  ;;  %v2843_v6 = vand.u32 2147483647, %v2833_v45 }
 0xbab   :  { %v2814_v55 = vmul.f32 %v3166_v24, %v2812_v33  ;;  %vm2819_vm2 = vweird.f32 %v3166_v24  ;;  %vm2839_vm7 = vweird.f32 %v2833_v45 }
 0xbac   :  { %v2765_v14 = vadd.f32 %v5329_v1, %v2764_v47  ;;  %vm2820_vm4 = vmor %vm2818_vm3, %vm2819_vm2  ;;  %v2846_v60 = vor.u32 1.1754944e-38, %v2845_v44  ;;  %vm2844_vm9 = vcmp.eq.f32.partialorder %v2843_v6, 8.507059e+37 }
 0xbad   :  { %v2815_v62 = vsub.f32 1.0, %v2814_v55 }
 0xbae   :  { %2766 = vst [vmem:[#allocation17 + $0x30] sm:$0xff] %v2765_v14  ;;  %v2616_v14 = vsub.f32 %v5291_v46, %v2609_v53 }
 0xbaf   :  { %v2816_v57 = vmul.f32 %v3166_v24, %v2815_v62 }
 0xbb0   :  { %v3168_v30 = vpop.eup %3167 }
 0xbb1   :  { %v2835_v18 = vmul.f32 %v3168_v30, %v2833_v45  ;;  %v2817_v56 = vadd.f32 %v3166_v24, %v2816_v57  ;;  %vm2840_vm6 = vweird.f32 %v3168_v30 }
 0xbb2   :  { %vm2841_vm8 = vmor %vm2839_vm7, %vm2840_vm6 }
 0xbb3   :  { %v2836_v49 = vsub.f32 1.0, %v2835_v18  ;;  %v2821_v51 = vsel %vm2820_vm4, %v3166_v24, %v2817_v56 }
 0xbb4   :  { %v2826_v4 = vsel %vm2823_vm5, %v2825_v61, %v2821_v51 }
 0xbb5   :  { %v2870_v11 = vmul.f32 %v2868_v36, %v2826_v4  ;;  %v2837_v50 = vmul.f32 %v3168_v30, %v2836_v49 }
 0xbb7   :  { %v2871_v35 = vadd.f32 %v2870_v11, %v1750_v42  ;;  %v2838_v3 = vadd.f32 %v3168_v30, %v2837_v50 }
 0xbb9   :  { %3169 = vtanh.f32 %v2871_v35  ;;  %v2842_v59 = vsel %vm2841_vm8, %v3168_v30, %v2838_v3 }
 0xbba   :  { %v2847_v22 = vsel %vm2844_vm9, %v2846_v60, %v2842_v59 }
 0xbbb   :  { %v2873_v5 = vsub.f32 1.0, %v2847_v22  ;;  %v2875_v21 = vmul.f32 %v2847_v22, %v5305_v2 }
 0xbbf   :  { %v3170_v34 = vpop.eup %3169 }
 0xbc0   :  { %v2874_v10 = vmul.f32 %v3170_v34, %v2873_v5 }
 0xbc2   :  { %v2876_v63 = vadd.f32 %v2875_v21, %v2874_v10 }
 0xbc4   :  { %2877 = vadd.xlane.f32.xlu2 %v2876_v63  ;;  %v2880_v13 = vmul.f32 %v2876_v63, %v2876_v63 }
 0xbc6   :  { %2881 = vadd.xlane.f32.xlu1 %v2880_v13 }
 0xbcc   :  { %2611 = vadd.xlane.f32.xlu2 %v2610_v17 }
 0xc37   :  { %v2878_v29 = vpop.xlane.xlu2 %2877 }
 0xc38   :  { %v2879_v19 = vmul.f32 0.015625, %v2878_v29 }
 0xc39   :  { %v2882_v39 = vpop.xlane.xlu1 %2881 }
 0xc3a   :  { %v2884_v54 = vmul.f32 %v2879_v19, %v2879_v19  ;;  %v2883_v48 = vmul.f32 0.015625, %v2882_v39  ;;  %v2886_v27 = vsub.f32 %v2876_v63, %v2879_v19 }
 0xc3c   :  { %v2885_v15 = vsub.f32 %v2883_v48, %v2884_v54 }
 0xc3e   :  { %v2887_v0 = vadd.f32 1e-05, %v2885_v15 }
 0xc3f   :  { %v2612_v7 = vpop.xlane.xlu2 %2611 }
 0xc40   :  { %3171 = vrsqrt.f32 %v2887_v0  ;;  %v2613_v2 = vmul.f32 0.015625, %v2612_v7  ;;  %vm2894_vm11 = vweird.f32 %v2887_v0 }
 0xc42   :  { %v2615_v40 = vsub.f32 %v2613_v2, %v2614_v28 }
 0xc44   :  { %v2617_v23 = vadd.f32 1e-05, %v2615_v40 }
 0xc46   :  { %v3172_v58 = vpop.eup %3171  ;;  %3173 = vrsqrt.f32 %v2617_v23  ;;  %vm2624_vm14 = vweird.f32 %v2617_v23 }
 0xc47   :  { %v2889_v43 = vmul.f32 %v3172_v58, %v2887_v0  ;;  %vm2895_vm10 = vweird.f32 %v3172_v58 }
 0xc48   :  { %vm2896_vm12 = vmor %vm2894_vm11, %vm2895_vm10 }
 0xc49   :  { %v2890_v8 = vmul.f32 %v3172_v58, %v2889_v43 }
 0xc4b   :  { %v2891_v52 = vmul.f32 0.5, %v2890_v8 }
 0xc4c   :  { %v3174_v33 = vpop.eup %3173 }
 0xc4d   :  { %v2892_v26 = vsub.f32 1.5, %v2891_v52  ;;  %v2619_v25 = vmul.f32 %v3174_v33, %v2617_v23  ;;  %vm2625_vm13 = vweird.f32 %v3174_v33 }
 0xc4e   :  { %vm2626_vm15 = vmor %vm2624_vm14, %vm2625_vm13 }
 0xc4f   :  { %v2893_v31 = vmul.f32 %v3172_v58, %v2892_v26  ;;  %v2620_v41 = vmul.f32 %v3174_v33, %v2619_v25 }
 0xc51   :  { %v2897_v38 = vsel %vm2896_vm12, %v3172_v58, %v2893_v31  ;;  %v2621_v32 = vmul.f32 0.5, %v2620_v41 }
 0xc52   :  { %v2898_v45 = vmul.f32 %v2897_v38, %v2886_v27 }
 0xc53   :  { %v2622_v24 = vsub.f32 1.5, %v2621_v32 }
 0xc54   :  { %v2899_v47 = vmul.f32 %v5323_v16, %v2898_v45 }
 0xc55   :  { %v2623_v55 = vmul.f32 %v3174_v33, %v2622_v24 }
 0xc56   :  { %v2900_v62 = vadd.f32 %v5329_v1, %v2899_v47 }
 0xc57   :  { %v2627_v37 = vsel %vm2626_vm15, %v3174_v33, %v2623_v55 }
 0xc58   :  { %2901 = vst [vmem:[#allocation17 + $0x38] sm:$0xff] %v2900_v62  ;;  %v2628_v57 = vmul.f32 %v2627_v37, %v2616_v14 }
 0xc5a   :  { %v2629_v20 = vmul.f32 %v5323_v16, %v2628_v57 }
 0xc5c   :  { %v2630_v30 = vadd.f32 %v5329_v1, %v2629_v20 }
 0xc5e   :  { %2631 = vst [vmem:[#allocation17 + $0x28] sm:$0xff] %v2630_v30 }
 0xc5f   :  { %2914 = dma.vmem_to_hbm [thread:$0]  %s2907_s12, 1024, %s2909_s5, [#allocation7], %s3485_s16, %s3485_s16, %s3486_s17  }
 0xc60   :  { %3482 = dma.done.wait [#allocation7], 1024  }
 0xc61   :  { %3483 = vsyncadd [#allocation7], 4294966272 }
 0xc62   :  { %2919 = vsyncpa [#allocation6], 1 }
 0xc63   :  { %2920 = vsyncpa [#allocation9], 1 }
 0xc64   :  { %2921 = vsyncpa [#allocation12], 1 }
 0xc65   :  { %2922 = vsyncpa [#allocation15], 1 }
 0xc66   :  { %2923 = vsyncpa [#allocation7], 1 }

</bundles_post_ra>
